<compile_context>
chip_gen: v7x
topology: tpu7x:2x2x1
jax: 0.10.0
libtpu: 0.0.40
codegen_flags: <defaults>
</compile_context>

<pallas_src>
import jax
import jax.numpy as jnp
from jax import lax
from jax.experimental import pallas as pl
from jax.experimental.pallas import tpu as pltpu


def fused_conv_relu_x2(x_nhwc, w1r, b1, w2, b2):
    """relu(conv2(relu(conv1(x)))) in a single fused Pallas kernel.

    x_nhwc: (N, H, W, 1)      first conv input (channels-last, Cin = 1)
    w1r:    (KH, KW, C1)      conv1 weights (Cin=1 squeezed out)
    b1:     (1, C1)
    w2:     (KH2, KW2, C1, C2) conv2 weights, HWIO
    b2:     (1, C2)
    returns (N, H2, W2, C2) NHWC.
    """
    N, H, W, Cin = x_nhwc.shape                  # Cin == 1
    KH, KW, C1 = w1r.shape
    KH2, KW2, _, C2 = w2.shape
    H1, W1 = H - KH + 1, W - KW + 1              # conv1 output spatial (12, 12)
    H2, W2_ = H1 - KH2 + 1, W1 - KW2 + 1         # conv2 output spatial (8, 8)
    M = H2 * W2_                                 # matmul M dimension (64)

    def kernel(x_ref, w1_ref, b1_ref, w2_ref, b2_ref, o_ref, y1_ref):
        # x_ref: (H, W, 1)        w1_ref: (KH, KW, C1)     b1_ref: (1, C1)
        # w2_ref: (KH2, KW2, C1, C2)  b2_ref: (1, C2)
        # o_ref: (H2, W2_, C2)    y1_ref: VMEM scratch (H1, W1, C1)

        # ---------- layer 1: Conv2d(1, C1, 5) + ReLU on the VPU ----------
        # Cin == 1, so each tap is a lane-broadcast multiply-add:
        #   acc1[h, w, :] += x[h+kh, w+kw] * w1[kh, kw, :]
        acc1 = jnp.broadcast_to(b1_ref[...].reshape(1, 1, C1), (H1, W1, C1))
        for kh in range(KH):                     # static unroll (5)
            for kw in range(KW):                 # static unroll (5)
                xw = x_ref[pl.ds(kh, H1), pl.ds(kw, W1), :]      # (H1, W1, 1)
                acc1 = acc1 + xw * w1_ref[kh, kw]                # bcast to (H1,W1,C1)
        y1_ref[...] = jnp.maximum(acc1, 0.0)     # intermediate stays in VMEM

        # ---------- layer 2: Conv2d(C1, C2, 5) + ReLU on the MXU ----------
        # One (M, C1) @ (C1, C2) dot per tap, accumulated in f32 registers.
        acc2 = jnp.broadcast_to(b2_ref[...], (M, C2))
        for kh in range(KH2):                    # static unroll (5)
            for kw in range(KW2):                # static unroll (5)
                win = y1_ref[pl.ds(kh, H2), pl.ds(kw, W2_), :]   # (H2, W2_, C1)
                acc2 = acc2 + jnp.dot(win.reshape(M, C1), w2_ref[kh, kw],
                                      preferred_element_type=jnp.float32)

        # Single whole-block store of the output tile.
        o_ref[...] = jnp.maximum(acc2, 0.0).reshape(H2, W2_, C2).astype(o_ref.dtype)

    return pl.pallas_call(
        kernel,
        out_shape=jax.ShapeDtypeStruct((N, H2, W2_, C2), x_nhwc.dtype),
        grid=(N,),
        in_specs=[
            pl.BlockSpec((None, H, W, Cin), lambda n: (n, 0, 0, 0)),
            pl.BlockSpec((KH, KW, C1), lambda n: (0, 0, 0)),
            pl.BlockSpec((1, C1), lambda n: (0, 0)),
            pl.BlockSpec((KH2, KW2, C1, C2), lambda n: (0, 0, 0, 0)),
            pl.BlockSpec((1, C2), lambda n: (0, 0)),
        ],
        out_specs=pl.BlockSpec((None, H2, W2_, C2), lambda n: (n, 0, 0, 0)),
        scratch_shapes=[pltpu.VMEM((H1, W1, C1), jnp.float32)],
        compiler_params=pltpu.CompilerParams(
            dimension_semantics=("parallel",)),   # one image per TC on v7x
    )(x_nhwc, w1r, b1, w2, b2)


def model_forward(x_nchw, params):
    """Equivalent of Model.forward: relu(conv2(relu(conv1(x))))."""
    w1r, b1, w2, b2 = params
    N, Cin, H, W = x_nchw.shape                  # Cin == 1
    x_nhwc = x_nchw.reshape(N, H, W, Cin)        # free bitcast: NCHW w/ C=1 == NHWC
    y = fused_conv_relu_x2(x_nhwc, w1r, b1, w2, b2)   # (N, H2, W2, C2) NHWC
    return jnp.transpose(y, (0, 3, 1, 2))        # small NHWC -> NCHW glue


def conv_relu_ref(x_nchw, w_hwio, b):
    """Pure-JAX reference (lax conv) for correctness checking."""
    out = lax.conv_general_dilated(
        x_nchw, w_hwio, window_strides=(1, 1), padding="VALID",
        dimension_numbers=("NCHW", "HWIO", "NCHW"))
    return jnp.maximum(out + b[None, :, None, None], 0.0)


if __name__ == "__main__":
    key = jax.random.PRNGKey(0)
    kx, kw1, kb1, kw2, kb2 = jax.random.split(key, 5)

    # Input: N=2, C=1, H=W=16  ->  conv1: (2,20,12,12)  ->  conv2: (2,20,8,8)
    x = jax.random.normal(kx, (2, 1, 16, 16), jnp.float32)

    # Synthetic parameters (shapes from nn.Conv2d(1,20,5) / nn.Conv2d(20,20,5)), HWIO.
    w1 = jax.random.normal(kw1, (5, 5, 1, 20), jnp.float32) * 0.2
    b1 = jax.random.normal(kb1, (20,), jnp.float32) * 0.1
    w2 = jax.random.normal(kw2, (5, 5, 20, 20), jnp.float32) * 0.1
    b2 = jax.random.normal(kb2, (20,), jnp.float32) * 0.1

    # One-time weight preparation (layout only, no math).
    params = (w1.reshape(5, 5, 20), b1.reshape(1, 20), w2, b2.reshape(1, 20))

    out = jax.jit(model_forward)(x, params)
    out = jax.block_until_ready(out)

    ref = conv_relu_ref(conv_relu_ref(x, w1, b1), w2, b2)
    assert out.shape == (2, 20, 8, 8), out.shape
    assert jnp.allclose(out, ref, atol=1e-4, rtol=1e-4), "mismatch vs reference"

    print("KERNEL_OK")
</pallas_src>

<mosaic_0001>
module attributes {stable_mosaic.version = 11 : i64} {
  func.func @kernel(%arg0: i32, %arg1: memref<1x16x16x1xf32, #tpu.memory_space<vmem>>, %arg2: memref<5x5x20xf32, #tpu.memory_space<vmem>>, %arg3: memref<1x20xf32, #tpu.memory_space<vmem>>, %arg4: memref<5x5x20x20xf32, #tpu.memory_space<vmem>>, %arg5: memref<1x20xf32, #tpu.memory_space<vmem>>, %arg6: memref<1x8x8x20xf32, #tpu.memory_space<vmem>>, %arg7: memref<12x12x20xf32, #tpu.memory_space<vmem>>) attributes {dimension_semantics = [#tpu.dimension_semantics<parallel>], iteration_bounds = array<i64: 2>, scalar_prefetch = 0 : i64, scratch_operands = 1 : i64, tpu.core_type = #tpu.core_type<tc>, window_params = [{transform_indices = @transform_0, window_bounds = array<i64: 1, 16, 16, 1>}, {pipeline_mode = #tpu.pipeline_mode<synchronous>, transform_indices = @transform_1, window_bounds = array<i64: 5, 5, 20>}, {pipeline_mode = #tpu.pipeline_mode<synchronous>, transform_indices = @transform_2, window_bounds = array<i64: 1, 20>}, {pipeline_mode = #tpu.pipeline_mode<synchronous>, transform_indices = @transform_3, window_bounds = array<i64: 5, 5, 20, 20>}, {pipeline_mode = #tpu.pipeline_mode<synchronous>, transform_indices = @transform_4, window_bounds = array<i64: 1, 20>}, {transform_indices = @transform_5, window_bounds = array<i64: 1, 8, 8, 20>}]} {
    %c0 = arith.constant 0 : index
    %c0_0 = arith.constant 0 : index
    %0 = vector.load %arg3[%c0, %c0_0] : memref<1x20xf32, #tpu.memory_space<vmem>>, vector<1x20xf32>
    %1 = vector.shape_cast %0 : vector<1x20xf32> to vector<1x1x20xf32>
    %2 = vector.shape_cast %1 : vector<1x1x20xf32> to vector<1x1x20xf32>
    %3 = vector.broadcast %2 : vector<1x1x20xf32> to vector<12x12x20xf32>
    %c0_1 = arith.constant 0 : index
    %c0_2 = arith.constant 0 : index
    %c0_3 = arith.constant 0 : index
    %c0_4 = arith.constant 0 : index
    %4 = vector.load %arg1[%c0_1, %c0_2, %c0_3, %c0_4] : memref<1x16x16x1xf32, #tpu.memory_space<vmem>>, vector<1x12x12x1xf32>
    %5 = vector.shape_cast %4 : vector<1x12x12x1xf32> to vector<12x12x1xf32>
    %c0_5 = arith.constant 0 : index
    %c0_6 = arith.constant 0 : index
    %c0_7 = arith.constant 0 : index
    %6 = vector.load %arg2[%c0_5, %c0_6, %c0_7] : memref<5x5x20xf32, #tpu.memory_space<vmem>>, vector<1x1x20xf32>
    %7 = vector.shape_cast %6 : vector<1x1x20xf32> to vector<20xf32>
    %8 = vector.shape_cast %7 : vector<20xf32> to vector<1x1x20xf32>
    %9 = vector.broadcast %5 : vector<12x12x1xf32> to vector<12x12x20xf32>
    %10 = vector.broadcast %8 : vector<1x1x20xf32> to vector<12x12x20xf32>
    %11 = arith.mulf %9, %10 : vector<12x12x20xf32>
    %12 = arith.addf %3, %11 : vector<12x12x20xf32>
    %c0_8 = arith.constant 0 : index
    %c0_9 = arith.constant 0 : index
    %c1 = arith.constant 1 : index
    %c0_10 = arith.constant 0 : index
    %13 = vector.load %arg1[%c0_8, %c0_9, %c1, %c0_10] : memref<1x16x16x1xf32, #tpu.memory_space<vmem>>, vector<1x12x12x1xf32>
    %14 = vector.shape_cast %13 : vector<1x12x12x1xf32> to vector<12x12x1xf32>
    %c0_11 = arith.constant 0 : index
    %c1_12 = arith.constant 1 : index
    %c0_13 = arith.constant 0 : index
    %15 = vector.load %arg2[%c0_11, %c1_12, %c0_13] : memref<5x5x20xf32, #tpu.memory_space<vmem>>, vector<1x1x20xf32>
    %16 = vector.shape_cast %15 : vector<1x1x20xf32> to vector<20xf32>
    %17 = vector.shape_cast %16 : vector<20xf32> to vector<1x1x20xf32>
    %18 = vector.broadcast %14 : vector<12x12x1xf32> to vector<12x12x20xf32>
    %19 = vector.broadcast %17 : vector<1x1x20xf32> to vector<12x12x20xf32>
    %20 = arith.mulf %18, %19 : vector<12x12x20xf32>
    %21 = arith.addf %12, %20 : vector<12x12x20xf32>
    %c0_14 = arith.constant 0 : index
    %c0_15 = arith.constant 0 : index
    %c2 = arith.constant 2 : index
    %c0_16 = arith.constant 0 : index
    %22 = vector.load %arg1[%c0_14, %c0_15, %c2, %c0_16] : memref<1x16x16x1xf32, #tpu.memory_space<vmem>>, vector<1x12x12x1xf32>
    %23 = vector.shape_cast %22 : vector<1x12x12x1xf32> to vector<12x12x1xf32>
    %c0_17 = arith.constant 0 : index
    %c2_18 = arith.constant 2 : index
    %c0_19 = arith.constant 0 : index
    %24 = vector.load %arg2[%c0_17, %c2_18, %c0_19] : memref<5x5x20xf32, #tpu.memory_space<vmem>>, vector<1x1x20xf32>
    %25 = vector.shape_cast %24 : vector<1x1x20xf32> to vector<20xf32>
    %26 = vector.shape_cast %25 : vector<20xf32> to vector<1x1x20xf32>
    %27 = vector.broadcast %23 : vector<12x12x1xf32> to vector<12x12x20xf32>
    %28 = vector.broadcast %26 : vector<1x1x20xf32> to vector<12x12x20xf32>
    %29 = arith.mulf %27, %28 : vector<12x12x20xf32>
    %30 = arith.addf %21, %29 : vector<12x12x20xf32>
    %c0_20 = arith.constant 0 : index
    %c0_21 = arith.constant 0 : index
    %c3 = arith.constant 3 : index
    %c0_22 = arith.constant 0 : index
    %31 = vector.load %arg1[%c0_20, %c0_21, %c3, %c0_22] : memref<1x16x16x1xf32, #tpu.memory_space<vmem>>, vector<1x12x12x1xf32>
    %32 = vector.shape_cast %31 : vector<1x12x12x1xf32> to vector<12x12x1xf32>
    %c0_23 = arith.constant 0 : index
    %c3_24 = arith.constant 3 : index
    %c0_25 = arith.constant 0 : index
    %33 = vector.load %arg2[%c0_23, %c3_24, %c0_25] : memref<5x5x20xf32, #tpu.memory_space<vmem>>, vector<1x1x20xf32>
    %34 = vector.shape_cast %33 : vector<1x1x20xf32> to vector<20xf32>
    %35 = vector.shape_cast %34 : vector<20xf32> to vector<1x1x20xf32>
    %36 = vector.broadcast %32 : vector<12x12x1xf32> to vector<12x12x20xf32>
    %37 = vector.broadcast %35 : vector<1x1x20xf32> to vector<12x12x20xf32>
    %38 = arith.mulf %36, %37 : vector<12x12x20xf32>
    %39 = arith.addf %30, %38 : vector<12x12x20xf32>
    %c0_26 = arith.constant 0 : index
    %c0_27 = arith.constant 0 : index
    %c4 = arith.constant 4 : index
    %c0_28 = arith.constant 0 : index
    %40 = vector.load %arg1[%c0_26, %c0_27, %c4, %c0_28] : memref<1x16x16x1xf32, #tpu.memory_space<vmem>>, vector<1x12x12x1xf32>
    %41 = vector.shape_cast %40 : vector<1x12x12x1xf32> to vector<12x12x1xf32>
    %c0_29 = arith.constant 0 : index
    %c4_30 = arith.constant 4 : index
    %c0_31 = arith.constant 0 : index
    %42 = vector.load %arg2[%c0_29, %c4_30, %c0_31] : memref<5x5x20xf32, #tpu.memory_space<vmem>>, vector<1x1x20xf32>
    %43 = vector.shape_cast %42 : vector<1x1x20xf32> to vector<20xf32>
    %44 = vector.shape_cast %43 : vector<20xf32> to vector<1x1x20xf32>
    %45 = vector.broadcast %41 : vector<12x12x1xf32> to vector<12x12x20xf32>
    %46 = vector.broadcast %44 : vector<1x1x20xf32> to vector<12x12x20xf32>
    %47 = arith.mulf %45, %46 : vector<12x12x20xf32>
    %48 = arith.addf %39, %47 : vector<12x12x20xf32>
    %c0_32 = arith.constant 0 : index
    %c1_33 = arith.constant 1 : index
    %c0_34 = arith.constant 0 : index
    %c0_35 = arith.constant 0 : index
    %49 = vector.load %arg1[%c0_32, %c1_33, %c0_34, %c0_35] : memref<1x16x16x1xf32, #tpu.memory_space<vmem>>, vector<1x12x12x1xf32>
    %50 = vector.shape_cast %49 : vector<1x12x12x1xf32> to vector<12x12x1xf32>
    %c1_36 = arith.constant 1 : index
    %c0_37 = arith.constant 0 : index
    %c0_38 = arith.constant 0 : index
    %51 = vector.load %arg2[%c1_36, %c0_37, %c0_38] : memref<5x5x20xf32, #tpu.memory_space<vmem>>, vector<1x1x20xf32>
    %52 = vector.shape_cast %51 : vector<1x1x20xf32> to vector<20xf32>
    %53 = vector.shape_cast %52 : vector<20xf32> to vector<1x1x20xf32>
    %54 = vector.broadcast %50 : vector<12x12x1xf32> to vector<12x12x20xf32>
    %55 = vector.broadcast %53 : vector<1x1x20xf32> to vector<12x12x20xf32>
    %56 = arith.mulf %54, %55 : vector<12x12x20xf32>
    %57 = arith.addf %48, %56 : vector<12x12x20xf32>
    %c0_39 = arith.constant 0 : index
    %c1_40 = arith.constant 1 : index
    %c1_41 = arith.constant 1 : index
    %c0_42 = arith.constant 0 : index
    %58 = vector.load %arg1[%c0_39, %c1_40, %c1_41, %c0_42] : memref<1x16x16x1xf32, #tpu.memory_space<vmem>>, vector<1x12x12x1xf32>
    %59 = vector.shape_cast %58 : vector<1x12x12x1xf32> to vector<12x12x1xf32>
    %c1_43 = arith.constant 1 : index
    %c1_44 = arith.constant 1 : index
    %c0_45 = arith.constant 0 : index
    %60 = vector.load %arg2[%c1_43, %c1_44, %c0_45] : memref<5x5x20xf32, #tpu.memory_space<vmem>>, vector<1x1x20xf32>
    %61 = vector.shape_cast %60 : vector<1x1x20xf32> to vector<20xf32>
    %62 = vector.shape_cast %61 : vector<20xf32> to vector<1x1x20xf32>
    %63 = vector.broadcast %59 : vector<12x12x1xf32> to vector<12x12x20xf32>
    %64 = vector.broadcast %62 : vector<1x1x20xf32> to vector<12x12x20xf32>
    %65 = arith.mulf %63, %64 : vector<12x12x20xf32>
    %66 = arith.addf %57, %65 : vector<12x12x20xf32>
    %c0_46 = arith.constant 0 : index
    %c1_47 = arith.constant 1 : index
    %c2_48 = arith.constant 2 : index
    %c0_49 = arith.constant 0 : index
    %67 = vector.load %arg1[%c0_46, %c1_47, %c2_48, %c0_49] : memref<1x16x16x1xf32, #tpu.memory_space<vmem>>, vector<1x12x12x1xf32>
    %68 = vector.shape_cast %67 : vector<1x12x12x1xf32> to vector<12x12x1xf32>
    %c1_50 = arith.constant 1 : index
    %c2_51 = arith.constant 2 : index
    %c0_52 = arith.constant 0 : index
    %69 = vector.load %arg2[%c1_50, %c2_51, %c0_52] : memref<5x5x20xf32, #tpu.memory_space<vmem>>, vector<1x1x20xf32>
    %70 = vector.shape_cast %69 : vector<1x1x20xf32> to vector<20xf32>
    %71 = vector.shape_cast %70 : vector<20xf32> to vector<1x1x20xf32>
    %72 = vector.broadcast %68 : vector<12x12x1xf32> to vector<12x12x20xf32>
    %73 = vector.broadcast %71 : vector<1x1x20xf32> to vector<12x12x20xf32>
    %74 = arith.mulf %72, %73 : vector<12x12x20xf32>
    %75 = arith.addf %66, %74 : vector<12x12x20xf32>
    %c0_53 = arith.constant 0 : index
    %c1_54 = arith.constant 1 : index
    %c3_55 = arith.constant 3 : index
    %c0_56 = arith.constant 0 : index
    %76 = vector.load %arg1[%c0_53, %c1_54, %c3_55, %c0_56] : memref<1x16x16x1xf32, #tpu.memory_space<vmem>>, vector<1x12x12x1xf32>
    %77 = vector.shape_cast %76 : vector<1x12x12x1xf32> to vector<12x12x1xf32>
    %c1_57 = arith.constant 1 : index
    %c3_58 = arith.constant 3 : index
    %c0_59 = arith.constant 0 : index
    %78 = vector.load %arg2[%c1_57, %c3_58, %c0_59] : memref<5x5x20xf32, #tpu.memory_space<vmem>>, vector<1x1x20xf32>
    %79 = vector.shape_cast %78 : vector<1x1x20xf32> to vector<20xf32>
    %80 = vector.shape_cast %79 : vector<20xf32> to vector<1x1x20xf32>
    %81 = vector.broadcast %77 : vector<12x12x1xf32> to vector<12x12x20xf32>
    %82 = vector.broadcast %80 : vector<1x1x20xf32> to vector<12x12x20xf32>
    %83 = arith.mulf %81, %82 : vector<12x12x20xf32>
    %84 = arith.addf %75, %83 : vector<12x12x20xf32>
    %c0_60 = arith.constant 0 : index
    %c1_61 = arith.constant 1 : index
    %c4_62 = arith.constant 4 : index
    %c0_63 = arith.constant 0 : index
    %85 = vector.load %arg1[%c0_60, %c1_61, %c4_62, %c0_63] : memref<1x16x16x1xf32, #tpu.memory_space<vmem>>, vector<1x12x12x1xf32>
    %86 = vector.shape_cast %85 : vector<1x12x12x1xf32> to vector<12x12x1xf32>
    %c1_64 = arith.constant 1 : index
    %c4_65 = arith.constant 4 : index
    %c0_66 = arith.constant 0 : index
    %87 = vector.load %arg2[%c1_64, %c4_65, %c0_66] : memref<5x5x20xf32, #tpu.memory_space<vmem>>, vector<1x1x20xf32>
    %88 = vector.shape_cast %87 : vector<1x1x20xf32> to vector<20xf32>
    %89 = vector.shape_cast %88 : vector<20xf32> to vector<1x1x20xf32>
    %90 = vector.broadcast %86 : vector<12x12x1xf32> to vector<12x12x20xf32>
    %91 = vector.broadcast %89 : vector<1x1x20xf32> to vector<12x12x20xf32>
    %92 = arith.mulf %90, %91 : vector<12x12x20xf32>
    %93 = arith.addf %84, %92 : vector<12x12x20xf32>
    %c0_67 = arith.constant 0 : index
    %c2_68 = arith.constant 2 : index
    %c0_69 = arith.constant 0 : index
    %c0_70 = arith.constant 0 : index
    %94 = vector.load %arg1[%c0_67, %c2_68, %c0_69, %c0_70] : memref<1x16x16x1xf32, #tpu.memory_space<vmem>>, vector<1x12x12x1xf32>
    %95 = vector.shape_cast %94 : vector<1x12x12x1xf32> to vector<12x12x1xf32>
    %c2_71 = arith.constant 2 : index
    %c0_72 = arith.constant 0 : index
    %c0_73 = arith.constant 0 : index
    %96 = vector.load %arg2[%c2_71, %c0_72, %c0_73] : memref<5x5x20xf32, #tpu.memory_space<vmem>>, vector<1x1x20xf32>
    %97 = vector.shape_cast %96 : vector<1x1x20xf32> to vector<20xf32>
    %98 = vector.shape_cast %97 : vector<20xf32> to vector<1x1x20xf32>
    %99 = vector.broadcast %95 : vector<12x12x1xf32> to vector<12x12x20xf32>
    %100 = vector.broadcast %98 : vector<1x1x20xf32> to vector<12x12x20xf32>
    %101 = arith.mulf %99, %100 : vector<12x12x20xf32>
    %102 = arith.addf %93, %101 : vector<12x12x20xf32>
    %c0_74 = arith.constant 0 : index
    %c2_75 = arith.constant 2 : index
    %c1_76 = arith.constant 1 : index
    %c0_77 = arith.constant 0 : index
    %103 = vector.load %arg1[%c0_74, %c2_75, %c1_76, %c0_77] : memref<1x16x16x1xf32, #tpu.memory_space<vmem>>, vector<1x12x12x1xf32>
    %104 = vector.shape_cast %103 : vector<1x12x12x1xf32> to vector<12x12x1xf32>
    %c2_78 = arith.constant 2 : index
    %c1_79 = arith.constant 1 : index
    %c0_80 = arith.constant 0 : index
    %105 = vector.load %arg2[%c2_78, %c1_79, %c0_80] : memref<5x5x20xf32, #tpu.memory_space<vmem>>, vector<1x1x20xf32>
    %106 = vector.shape_cast %105 : vector<1x1x20xf32> to vector<20xf32>
    %107 = vector.shape_cast %106 : vector<20xf32> to vector<1x1x20xf32>
    %108 = vector.broadcast %104 : vector<12x12x1xf32> to vector<12x12x20xf32>
    %109 = vector.broadcast %107 : vector<1x1x20xf32> to vector<12x12x20xf32>
    %110 = arith.mulf %108, %109 : vector<12x12x20xf32>
    %111 = arith.addf %102, %110 : vector<12x12x20xf32>
    %c0_81 = arith.constant 0 : index
    %c2_82 = arith.constant 2 : index
    %c2_83 = arith.constant 2 : index
    %c0_84 = arith.constant 0 : index
    %112 = vector.load %arg1[%c0_81, %c2_82, %c2_83, %c0_84] : memref<1x16x16x1xf32, #tpu.memory_space<vmem>>, vector<1x12x12x1xf32>
    %113 = vector.shape_cast %112 : vector<1x12x12x1xf32> to vector<12x12x1xf32>
    %c2_85 = arith.constant 2 : index
    %c2_86 = arith.constant 2 : index
    %c0_87 = arith.constant 0 : index
    %114 = vector.load %arg2[%c2_85, %c2_86, %c0_87] : memref<5x5x20xf32, #tpu.memory_space<vmem>>, vector<1x1x20xf32>
    %115 = vector.shape_cast %114 : vector<1x1x20xf32> to vector<20xf32>
    %116 = vector.shape_cast %115 : vector<20xf32> to vector<1x1x20xf32>
    %117 = vector.broadcast %113 : vector<12x12x1xf32> to vector<12x12x20xf32>
    %118 = vector.broadcast %116 : vector<1x1x20xf32> to vector<12x12x20xf32>
    %119 = arith.mulf %117, %118 : vector<12x12x20xf32>
    %120 = arith.addf %111, %119 : vector<12x12x20xf32>
    %c0_88 = arith.constant 0 : index
    %c2_89 = arith.constant 2 : index
    %c3_90 = arith.constant 3 : index
    %c0_91 = arith.constant 0 : index
    %121 = vector.load %arg1[%c0_88, %c2_89, %c3_90, %c0_91] : memref<1x16x16x1xf32, #tpu.memory_space<vmem>>, vector<1x12x12x1xf32>
    %122 = vector.shape_cast %121 : vector<1x12x12x1xf32> to vector<12x12x1xf32>
    %c2_92 = arith.constant 2 : index
    %c3_93 = arith.constant 3 : index
    %c0_94 = arith.constant 0 : index
    %123 = vector.load %arg2[%c2_92, %c3_93, %c0_94] : memref<5x5x20xf32, #tpu.memory_space<vmem>>, vector<1x1x20xf32>
    %124 = vector.shape_cast %123 : vector<1x1x20xf32> to vector<20xf32>
    %125 = vector.shape_cast %124 : vector<20xf32> to vector<1x1x20xf32>
    %126 = vector.broadcast %122 : vector<12x12x1xf32> to vector<12x12x20xf32>
    %127 = vector.broadcast %125 : vector<1x1x20xf32> to vector<12x12x20xf32>
    %128 = arith.mulf %126, %127 : vector<12x12x20xf32>
    %129 = arith.addf %120, %128 : vector<12x12x20xf32>
    %c0_95 = arith.constant 0 : index
    %c2_96 = arith.constant 2 : index
    %c4_97 = arith.constant 4 : index
    %c0_98 = arith.constant 0 : index
    %130 = vector.load %arg1[%c0_95, %c2_96, %c4_97, %c0_98] : memref<1x16x16x1xf32, #tpu.memory_space<vmem>>, vector<1x12x12x1xf32>
    %131 = vector.shape_cast %130 : vector<1x12x12x1xf32> to vector<12x12x1xf32>
    %c2_99 = arith.constant 2 : index
    %c4_100 = arith.constant 4 : index
    %c0_101 = arith.constant 0 : index
    %132 = vector.load %arg2[%c2_99, %c4_100, %c0_101] : memref<5x5x20xf32, #tpu.memory_space<vmem>>, vector<1x1x20xf32>
    %133 = vector.shape_cast %132 : vector<1x1x20xf32> to vector<20xf32>
    %134 = vector.shape_cast %133 : vector<20xf32> to vector<1x1x20xf32>
    %135 = vector.broadcast %131 : vector<12x12x1xf32> to vector<12x12x20xf32>
    %136 = vector.broadcast %134 : vector<1x1x20xf32> to vector<12x12x20xf32>
    %137 = arith.mulf %135, %136 : vector<12x12x20xf32>
    %138 = arith.addf %129, %137 : vector<12x12x20xf32>
    %c0_102 = arith.constant 0 : index
    %c3_103 = arith.constant 3 : index
    %c0_104 = arith.constant 0 : index
    %c0_105 = arith.constant 0 : index
    %139 = vector.load %arg1[%c0_102, %c3_103, %c0_104, %c0_105] : memref<1x16x16x1xf32, #tpu.memory_space<vmem>>, vector<1x12x12x1xf32>
    %140 = vector.shape_cast %139 : vector<1x12x12x1xf32> to vector<12x12x1xf32>
    %c3_106 = arith.constant 3 : index
    %c0_107 = arith.constant 0 : index
    %c0_108 = arith.constant 0 : index
    %141 = vector.load %arg2[%c3_106, %c0_107, %c0_108] : memref<5x5x20xf32, #tpu.memory_space<vmem>>, vector<1x1x20xf32>
    %142 = vector.shape_cast %141 : vector<1x1x20xf32> to vector<20xf32>
    %143 = vector.shape_cast %142 : vector<20xf32> to vector<1x1x20xf32>
    %144 = vector.broadcast %140 : vector<12x12x1xf32> to vector<12x12x20xf32>
    %145 = vector.broadcast %143 : vector<1x1x20xf32> to vector<12x12x20xf32>
    %146 = arith.mulf %144, %145 : vector<12x12x20xf32>
    %147 = arith.addf %138, %146 : vector<12x12x20xf32>
    %c0_109 = arith.constant 0 : index
    %c3_110 = arith.constant 3 : index
    %c1_111 = arith.constant 1 : index
    %c0_112 = arith.constant 0 : index
    %148 = vector.load %arg1[%c0_109, %c3_110, %c1_111, %c0_112] : memref<1x16x16x1xf32, #tpu.memory_space<vmem>>, vector<1x12x12x1xf32>
    %149 = vector.shape_cast %148 : vector<1x12x12x1xf32> to vector<12x12x1xf32>
    %c3_113 = arith.constant 3 : index
    %c1_114 = arith.constant 1 : index
    %c0_115 = arith.constant 0 : index
    %150 = vector.load %arg2[%c3_113, %c1_114, %c0_115] : memref<5x5x20xf32, #tpu.memory_space<vmem>>, vector<1x1x20xf32>
    %151 = vector.shape_cast %150 : vector<1x1x20xf32> to vector<20xf32>
    %152 = vector.shape_cast %151 : vector<20xf32> to vector<1x1x20xf32>
    %153 = vector.broadcast %149 : vector<12x12x1xf32> to vector<12x12x20xf32>
    %154 = vector.broadcast %152 : vector<1x1x20xf32> to vector<12x12x20xf32>
    %155 = arith.mulf %153, %154 : vector<12x12x20xf32>
    %156 = arith.addf %147, %155 : vector<12x12x20xf32>
    %c0_116 = arith.constant 0 : index
    %c3_117 = arith.constant 3 : index
    %c2_118 = arith.constant 2 : index
    %c0_119 = arith.constant 0 : index
    %157 = vector.load %arg1[%c0_116, %c3_117, %c2_118, %c0_119] : memref<1x16x16x1xf32, #tpu.memory_space<vmem>>, vector<1x12x12x1xf32>
    %158 = vector.shape_cast %157 : vector<1x12x12x1xf32> to vector<12x12x1xf32>
    %c3_120 = arith.constant 3 : index
    %c2_121 = arith.constant 2 : index
    %c0_122 = arith.constant 0 : index
    %159 = vector.load %arg2[%c3_120, %c2_121, %c0_122] : memref<5x5x20xf32, #tpu.memory_space<vmem>>, vector<1x1x20xf32>
    %160 = vector.shape_cast %159 : vector<1x1x20xf32> to vector<20xf32>
    %161 = vector.shape_cast %160 : vector<20xf32> to vector<1x1x20xf32>
    %162 = vector.broadcast %158 : vector<12x12x1xf32> to vector<12x12x20xf32>
    %163 = vector.broadcast %161 : vector<1x1x20xf32> to vector<12x12x20xf32>
    %164 = arith.mulf %162, %163 : vector<12x12x20xf32>
    %165 = arith.addf %156, %164 : vector<12x12x20xf32>
    %c0_123 = arith.constant 0 : index
    %c3_124 = arith.constant 3 : index
    %c3_125 = arith.constant 3 : index
    %c0_126 = arith.constant 0 : index
    %166 = vector.load %arg1[%c0_123, %c3_124, %c3_125, %c0_126] : memref<1x16x16x1xf32, #tpu.memory_space<vmem>>, vector<1x12x12x1xf32>
    %167 = vector.shape_cast %166 : vector<1x12x12x1xf32> to vector<12x12x1xf32>
    %c3_127 = arith.constant 3 : index
    %c3_128 = arith.constant 3 : index
    %c0_129 = arith.constant 0 : index
    %168 = vector.load %arg2[%c3_127, %c3_128, %c0_129] : memref<5x5x20xf32, #tpu.memory_space<vmem>>, vector<1x1x20xf32>
    %169 = vector.shape_cast %168 : vector<1x1x20xf32> to vector<20xf32>
    %170 = vector.shape_cast %169 : vector<20xf32> to vector<1x1x20xf32>
    %171 = vector.broadcast %167 : vector<12x12x1xf32> to vector<12x12x20xf32>
    %172 = vector.broadcast %170 : vector<1x1x20xf32> to vector<12x12x20xf32>
    %173 = arith.mulf %171, %172 : vector<12x12x20xf32>
    %174 = arith.addf %165, %173 : vector<12x12x20xf32>
    %c0_130 = arith.constant 0 : index
    %c3_131 = arith.constant 3 : index
    %c4_132 = arith.constant 4 : index
    %c0_133 = arith.constant 0 : index
    %175 = vector.load %arg1[%c0_130, %c3_131, %c4_132, %c0_133] : memref<1x16x16x1xf32, #tpu.memory_space<vmem>>, vector<1x12x12x1xf32>
    %176 = vector.shape_cast %175 : vector<1x12x12x1xf32> to vector<12x12x1xf32>
    %c3_134 = arith.constant 3 : index
    %c4_135 = arith.constant 4 : index
    %c0_136 = arith.constant 0 : index
    %177 = vector.load %arg2[%c3_134, %c4_135, %c0_136] : memref<5x5x20xf32, #tpu.memory_space<vmem>>, vector<1x1x20xf32>
    %178 = vector.shape_cast %177 : vector<1x1x20xf32> to vector<20xf32>
    %179 = vector.shape_cast %178 : vector<20xf32> to vector<1x1x20xf32>
    %180 = vector.broadcast %176 : vector<12x12x1xf32> to vector<12x12x20xf32>
    %181 = vector.broadcast %179 : vector<1x1x20xf32> to vector<12x12x20xf32>
    %182 = arith.mulf %180, %181 : vector<12x12x20xf32>
    %183 = arith.addf %174, %182 : vector<12x12x20xf32>
    %c0_137 = arith.constant 0 : index
    %c4_138 = arith.constant 4 : index
    %c0_139 = arith.constant 0 : index
    %c0_140 = arith.constant 0 : index
    %184 = vector.load %arg1[%c0_137, %c4_138, %c0_139, %c0_140] : memref<1x16x16x1xf32, #tpu.memory_space<vmem>>, vector<1x12x12x1xf32>
    %185 = vector.shape_cast %184 : vector<1x12x12x1xf32> to vector<12x12x1xf32>
    %c4_141 = arith.constant 4 : index
    %c0_142 = arith.constant 0 : index
    %c0_143 = arith.constant 0 : index
    %186 = vector.load %arg2[%c4_141, %c0_142, %c0_143] : memref<5x5x20xf32, #tpu.memory_space<vmem>>, vector<1x1x20xf32>
    %187 = vector.shape_cast %186 : vector<1x1x20xf32> to vector<20xf32>
    %188 = vector.shape_cast %187 : vector<20xf32> to vector<1x1x20xf32>
    %189 = vector.broadcast %185 : vector<12x12x1xf32> to vector<12x12x20xf32>
    %190 = vector.broadcast %188 : vector<1x1x20xf32> to vector<12x12x20xf32>
    %191 = arith.mulf %189, %190 : vector<12x12x20xf32>
    %192 = arith.addf %183, %191 : vector<12x12x20xf32>
    %c0_144 = arith.constant 0 : index
    %c4_145 = arith.constant 4 : index
    %c1_146 = arith.constant 1 : index
    %c0_147 = arith.constant 0 : index
    %193 = vector.load %arg1[%c0_144, %c4_145, %c1_146, %c0_147] : memref<1x16x16x1xf32, #tpu.memory_space<vmem>>, vector<1x12x12x1xf32>
    %194 = vector.shape_cast %193 : vector<1x12x12x1xf32> to vector<12x12x1xf32>
    %c4_148 = arith.constant 4 : index
    %c1_149 = arith.constant 1 : index
    %c0_150 = arith.constant 0 : index
    %195 = vector.load %arg2[%c4_148, %c1_149, %c0_150] : memref<5x5x20xf32, #tpu.memory_space<vmem>>, vector<1x1x20xf32>
    %196 = vector.shape_cast %195 : vector<1x1x20xf32> to vector<20xf32>
    %197 = vector.shape_cast %196 : vector<20xf32> to vector<1x1x20xf32>
    %198 = vector.broadcast %194 : vector<12x12x1xf32> to vector<12x12x20xf32>
    %199 = vector.broadcast %197 : vector<1x1x20xf32> to vector<12x12x20xf32>
    %200 = arith.mulf %198, %199 : vector<12x12x20xf32>
    %201 = arith.addf %192, %200 : vector<12x12x20xf32>
    %c0_151 = arith.constant 0 : index
    %c4_152 = arith.constant 4 : index
    %c2_153 = arith.constant 2 : index
    %c0_154 = arith.constant 0 : index
    %202 = vector.load %arg1[%c0_151, %c4_152, %c2_153, %c0_154] : memref<1x16x16x1xf32, #tpu.memory_space<vmem>>, vector<1x12x12x1xf32>
    %203 = vector.shape_cast %202 : vector<1x12x12x1xf32> to vector<12x12x1xf32>
    %c4_155 = arith.constant 4 : index
    %c2_156 = arith.constant 2 : index
    %c0_157 = arith.constant 0 : index
    %204 = vector.load %arg2[%c4_155, %c2_156, %c0_157] : memref<5x5x20xf32, #tpu.memory_space<vmem>>, vector<1x1x20xf32>
    %205 = vector.shape_cast %204 : vector<1x1x20xf32> to vector<20xf32>
    %206 = vector.shape_cast %205 : vector<20xf32> to vector<1x1x20xf32>
    %207 = vector.broadcast %203 : vector<12x12x1xf32> to vector<12x12x20xf32>
    %208 = vector.broadcast %206 : vector<1x1x20xf32> to vector<12x12x20xf32>
    %209 = arith.mulf %207, %208 : vector<12x12x20xf32>
    %210 = arith.addf %201, %209 : vector<12x12x20xf32>
    %c0_158 = arith.constant 0 : index
    %c4_159 = arith.constant 4 : index
    %c3_160 = arith.constant 3 : index
    %c0_161 = arith.constant 0 : index
    %211 = vector.load %arg1[%c0_158, %c4_159, %c3_160, %c0_161] : memref<1x16x16x1xf32, #tpu.memory_space<vmem>>, vector<1x12x12x1xf32>
    %212 = vector.shape_cast %211 : vector<1x12x12x1xf32> to vector<12x12x1xf32>
    %c4_162 = arith.constant 4 : index
    %c3_163 = arith.constant 3 : index
    %c0_164 = arith.constant 0 : index
    %213 = vector.load %arg2[%c4_162, %c3_163, %c0_164] : memref<5x5x20xf32, #tpu.memory_space<vmem>>, vector<1x1x20xf32>
    %214 = vector.shape_cast %213 : vector<1x1x20xf32> to vector<20xf32>
    %215 = vector.shape_cast %214 : vector<20xf32> to vector<1x1x20xf32>
    %216 = vector.broadcast %212 : vector<12x12x1xf32> to vector<12x12x20xf32>
    %217 = vector.broadcast %215 : vector<1x1x20xf32> to vector<12x12x20xf32>
    %218 = arith.mulf %216, %217 : vector<12x12x20xf32>
    %219 = arith.addf %210, %218 : vector<12x12x20xf32>
    %c0_165 = arith.constant 0 : index
    %c4_166 = arith.constant 4 : index
    %c4_167 = arith.constant 4 : index
    %c0_168 = arith.constant 0 : index
    %220 = vector.load %arg1[%c0_165, %c4_166, %c4_167, %c0_168] : memref<1x16x16x1xf32, #tpu.memory_space<vmem>>, vector<1x12x12x1xf32>
    %221 = vector.shape_cast %220 : vector<1x12x12x1xf32> to vector<12x12x1xf32>
    %c4_169 = arith.constant 4 : index
    %c4_170 = arith.constant 4 : index
    %c0_171 = arith.constant 0 : index
    %222 = vector.load %arg2[%c4_169, %c4_170, %c0_171] : memref<5x5x20xf32, #tpu.memory_space<vmem>>, vector<1x1x20xf32>
    %223 = vector.shape_cast %222 : vector<1x1x20xf32> to vector<20xf32>
    %224 = vector.shape_cast %223 : vector<20xf32> to vector<1x1x20xf32>
    %225 = vector.broadcast %221 : vector<12x12x1xf32> to vector<12x12x20xf32>
    %226 = vector.broadcast %224 : vector<1x1x20xf32> to vector<12x12x20xf32>
    %227 = arith.mulf %225, %226 : vector<12x12x20xf32>
    %228 = arith.addf %219, %227 : vector<12x12x20xf32>
    %cst = arith.constant 0.000000e+00 : f32
    %229 = vector.broadcast %cst : f32 to vector<12x12x20xf32>
    %230 = arith.maximumf %228, %229 : vector<12x12x20xf32>
    %c0_172 = arith.constant 0 : index
    %c0_173 = arith.constant 0 : index
    %c0_174 = arith.constant 0 : index
    %231 = vector.load %arg7[%c0_172, %c0_173, %c0_174] : memref<12x12x20xf32, #tpu.memory_space<vmem>>, vector<12x12x20xf32>
    tpu.vector_store %arg7[%c0_172, %c0_173, %c0_174], %230 {strides = array<i32>} : memref<12x12x20xf32, #tpu.memory_space<vmem>>, vector<12x12x20xf32>,
    %c0_175 = arith.constant 0 : index
    %c0_176 = arith.constant 0 : index
    %232 = vector.load %arg5[%c0_175, %c0_176] : memref<1x20xf32, #tpu.memory_space<vmem>>, vector<1x20xf32>
    %233 = vector.shape_cast %232 : vector<1x20xf32> to vector<1x20xf32>
    %234 = vector.broadcast %233 : vector<1x20xf32> to vector<64x20xf32>
    %c0_177 = arith.constant 0 : index
    %c0_178 = arith.constant 0 : index
    %c0_179 = arith.constant 0 : index
    %235 = vector.load %arg7[%c0_177, %c0_178, %c0_179] : memref<12x12x20xf32, #tpu.memory_space<vmem>>, vector<8x8x20xf32>
    %236 = vector.shape_cast %235 : vector<8x8x20xf32> to vector<64x20xf32>
    %c0_180 = arith.constant 0 : index
    %c0_181 = arith.constant 0 : index
    %c0_182 = arith.constant 0 : index
    %c0_183 = arith.constant 0 : index
    %237 = vector.load %arg4[%c0_180, %c0_181, %c0_182, %c0_183] : memref<5x5x20x20xf32, #tpu.memory_space<vmem>>, vector<1x1x20x20xf32>
    %238 = vector.shape_cast %237 : vector<1x1x20x20xf32> to vector<20x20xf32>
    %cst_184 = arith.constant dense<0.000000e+00> : vector<64x20xf32>
    %239 = tpu.matmul %236, %238, %cst_184 {dimension_numbers = #tpu.dot_dimension_numbers<[1], [0], [0], [1], [0, 0, 1, 1], [], []>} : vector<64x20xf32>, vector<20x20xf32>, vector<64x20xf32> -> vector<64x20xf32>
    %240 = arith.addf %234, %239 : vector<64x20xf32>
    %c0_185 = arith.constant 0 : index
    %c1_186 = arith.constant 1 : index
    %c0_187 = arith.constant 0 : index
    %241 = vector.load %arg7[%c0_185, %c1_186, %c0_187] : memref<12x12x20xf32, #tpu.memory_space<vmem>>, vector<8x8x20xf32>
    %242 = vector.shape_cast %241 : vector<8x8x20xf32> to vector<64x20xf32>
    %c0_188 = arith.constant 0 : index
    %c1_189 = arith.constant 1 : index
    %c0_190 = arith.constant 0 : index
    %c0_191 = arith.constant 0 : index
    %243 = vector.load %arg4[%c0_188, %c1_189, %c0_190, %c0_191] : memref<5x5x20x20xf32, #tpu.memory_space<vmem>>, vector<1x1x20x20xf32>
    %244 = vector.shape_cast %243 : vector<1x1x20x20xf32> to vector<20x20xf32>
    %cst_192 = arith.constant dense<0.000000e+00> : vector<64x20xf32>
    %245 = tpu.matmul %242, %244, %cst_192 {dimension_numbers = #tpu.dot_dimension_numbers<[1], [0], [0], [1], [0, 0, 1, 1], [], []>} : vector<64x20xf32>, vector<20x20xf32>, vector<64x20xf32> -> vector<64x20xf32>
    %246 = arith.addf %240, %245 : vector<64x20xf32>
    %c0_193 = arith.constant 0 : index
    %c2_194 = arith.constant 2 : index
    %c0_195 = arith.constant 0 : index
    %247 = vector.load %arg7[%c0_193, %c2_194, %c0_195] : memref<12x12x20xf32, #tpu.memory_space<vmem>>, vector<8x8x20xf32>
    %248 = vector.shape_cast %247 : vector<8x8x20xf32> to vector<64x20xf32>
    %c0_196 = arith.constant 0 : index
    %c2_197 = arith.constant 2 : index
    %c0_198 = arith.constant 0 : index
    %c0_199 = arith.constant 0 : index
    %249 = vector.load %arg4[%c0_196, %c2_197, %c0_198, %c0_199] : memref<5x5x20x20xf32, #tpu.memory_space<vmem>>, vector<1x1x20x20xf32>
    %250 = vector.shape_cast %249 : vector<1x1x20x20xf32> to vector<20x20xf32>
    %cst_200 = arith.constant dense<0.000000e+00> : vector<64x20xf32>
    %251 = tpu.matmul %248, %250, %cst_200 {dimension_numbers = #tpu.dot_dimension_numbers<[1], [0], [0], [1], [0, 0, 1, 1], [], []>} : vector<64x20xf32>, vector<20x20xf32>, vector<64x20xf32> -> vector<64x20xf32>
    %252 = arith.addf %246, %251 : vector<64x20xf32>
    %c0_201 = arith.constant 0 : index
    %c3_202 = arith.constant 3 : index
    %c0_203 = arith.constant 0 : index
    %253 = vector.load %arg7[%c0_201, %c3_202, %c0_203] : memref<12x12x20xf32, #tpu.memory_space<vmem>>, vector<8x8x20xf32>
    %254 = vector.shape_cast %253 : vector<8x8x20xf32> to vector<64x20xf32>
    %c0_204 = arith.constant 0 : index
    %c3_205 = arith.constant 3 : index
    %c0_206 = arith.constant 0 : index
    %c0_207 = arith.constant 0 : index
    %255 = vector.load %arg4[%c0_204, %c3_205, %c0_206, %c0_207] : memref<5x5x20x20xf32, #tpu.memory_space<vmem>>, vector<1x1x20x20xf32>
    %256 = vector.shape_cast %255 : vector<1x1x20x20xf32> to vector<20x20xf32>
    %cst_208 = arith.constant dense<0.000000e+00> : vector<64x20xf32>
    %257 = tpu.matmul %254, %256, %cst_208 {dimension_numbers = #tpu.dot_dimension_numbers<[1], [0], [0], [1], [0, 0, 1, 1], [], []>} : vector<64x20xf32>, vector<20x20xf32>, vector<64x20xf32> -> vector<64x20xf32>
    %258 = arith.addf %252, %257 : vector<64x20xf32>
    %c0_209 = arith.constant 0 : index
    %c4_210 = arith.constant 4 : index
    %c0_211 = arith.constant 0 : index
    %259 = vector.load %arg7[%c0_209, %c4_210, %c0_211] : memref<12x12x20xf32, #tpu.memory_space<vmem>>, vector<8x8x20xf32>
    %260 = vector.shape_cast %259 : vector<8x8x20xf32> to vector<64x20xf32>
    %c0_212 = arith.constant 0 : index
    %c4_213 = arith.constant 4 : index
    %c0_214 = arith.constant 0 : index
    %c0_215 = arith.constant 0 : index
    %261 = vector.load %arg4[%c0_212, %c4_213, %c0_214, %c0_215] : memref<5x5x20x20xf32, #tpu.memory_space<vmem>>, vector<1x1x20x20xf32>
    %262 = vector.shape_cast %261 : vector<1x1x20x20xf32> to vector<20x20xf32>
    %cst_216 = arith.constant dense<0.000000e+00> : vector<64x20xf32>
    %263 = tpu.matmul %260, %262, %cst_216 {dimension_numbers = #tpu.dot_dimension_numbers<[1], [0], [0], [1], [0, 0, 1, 1], [], []>} : vector<64x20xf32>, vector<20x20xf32>, vector<64x20xf32> -> vector<64x20xf32>
    %264 = arith.addf %258, %263 : vector<64x20xf32>
    %c1_217 = arith.constant 1 : index
    %c0_218 = arith.constant 0 : index
    %c0_219 = arith.constant 0 : index
    %265 = vector.load %arg7[%c1_217, %c0_218, %c0_219] : memref<12x12x20xf32, #tpu.memory_space<vmem>>, vector<8x8x20xf32>
    %266 = vector.shape_cast %265 : vector<8x8x20xf32> to vector<64x20xf32>
    %c1_220 = arith.constant 1 : index
    %c0_221 = arith.constant 0 : index
    %c0_222 = arith.constant 0 : index
    %c0_223 = arith.constant 0 : index
    %267 = vector.load %arg4[%c1_220, %c0_221, %c0_222, %c0_223] : memref<5x5x20x20xf32, #tpu.memory_space<vmem>>, vector<1x1x20x20xf32>
    %268 = vector.shape_cast %267 : vector<1x1x20x20xf32> to vector<20x20xf32>
    %cst_224 = arith.constant dense<0.000000e+00> : vector<64x20xf32>
    %269 = tpu.matmul %266, %268, %cst_224 {dimension_numbers = #tpu.dot_dimension_numbers<[1], [0], [0], [1], [0, 0, 1, 1], [], []>} : vector<64x20xf32>, vector<20x20xf32>, vector<64x20xf32> -> vector<64x20xf32>
    %270 = arith.addf %264, %269 : vector<64x20xf32>
    %c1_225 = arith.constant 1 : index
    %c1_226 = arith.constant 1 : index
    %c0_227 = arith.constant 0 : index
    %271 = vector.load %arg7[%c1_225, %c1_226, %c0_227] : memref<12x12x20xf32, #tpu.memory_space<vmem>>, vector<8x8x20xf32>
    %272 = vector.shape_cast %271 : vector<8x8x20xf32> to vector<64x20xf32>
    %c1_228 = arith.constant 1 : index
    %c1_229 = arith.constant 1 : index
    %c0_230 = arith.constant 0 : index
    %c0_231 = arith.constant 0 : index
    %273 = vector.load %arg4[%c1_228, %c1_229, %c0_230, %c0_231] : memref<5x5x20x20xf32, #tpu.memory_space<vmem>>, vector<1x1x20x20xf32>
    %274 = vector.shape_cast %273 : vector<1x1x20x20xf32> to vector<20x20xf32>
    %cst_232 = arith.constant dense<0.000000e+00> : vector<64x20xf32>
    %275 = tpu.matmul %272, %274, %cst_232 {dimension_numbers = #tpu.dot_dimension_numbers<[1], [0], [0], [1], [0, 0, 1, 1], [], []>} : vector<64x20xf32>, vector<20x20xf32>, vector<64x20xf32> -> vector<64x20xf32>
    %276 = arith.addf %270, %275 : vector<64x20xf32>
    %c1_233 = arith.constant 1 : index
    %c2_234 = arith.constant 2 : index
    %c0_235 = arith.constant 0 : index
    %277 = vector.load %arg7[%c1_233, %c2_234, %c0_235] : memref<12x12x20xf32, #tpu.memory_space<vmem>>, vector<8x8x20xf32>
    %278 = vector.shape_cast %277 : vector<8x8x20xf32> to vector<64x20xf32>
    %c1_236 = arith.constant 1 : index
    %c2_237 = arith.constant 2 : index
    %c0_238 = arith.constant 0 : index
    %c0_239 = arith.constant 0 : index
    %279 = vector.load %arg4[%c1_236, %c2_237, %c0_238, %c0_239] : memref<5x5x20x20xf32, #tpu.memory_space<vmem>>, vector<1x1x20x20xf32>
    %280 = vector.shape_cast %279 : vector<1x1x20x20xf32> to vector<20x20xf32>
    %cst_240 = arith.constant dense<0.000000e+00> : vector<64x20xf32>
    %281 = tpu.matmul %278, %280, %cst_240 {dimension_numbers = #tpu.dot_dimension_numbers<[1], [0], [0], [1], [0, 0, 1, 1], [], []>} : vector<64x20xf32>, vector<20x20xf32>, vector<64x20xf32> -> vector<64x20xf32>
    %282 = arith.addf %276, %281 : vector<64x20xf32>
    %c1_241 = arith.constant 1 : index
    %c3_242 = arith.constant 3 : index
    %c0_243 = arith.constant 0 : index
    %283 = vector.load %arg7[%c1_241, %c3_242, %c0_243] : memref<12x12x20xf32, #tpu.memory_space<vmem>>, vector<8x8x20xf32>
    %284 = vector.shape_cast %283 : vector<8x8x20xf32> to vector<64x20xf32>
    %c1_244 = arith.constant 1 : index
    %c3_245 = arith.constant 3 : index
    %c0_246 = arith.constant 0 : index
    %c0_247 = arith.constant 0 : index
    %285 = vector.load %arg4[%c1_244, %c3_245, %c0_246, %c0_247] : memref<5x5x20x20xf32, #tpu.memory_space<vmem>>, vector<1x1x20x20xf32>
    %286 = vector.shape_cast %285 : vector<1x1x20x20xf32> to vector<20x20xf32>
    %cst_248 = arith.constant dense<0.000000e+00> : vector<64x20xf32>
    %287 = tpu.matmul %284, %286, %cst_248 {dimension_numbers = #tpu.dot_dimension_numbers<[1], [0], [0], [1], [0, 0, 1, 1], [], []>} : vector<64x20xf32>, vector<20x20xf32>, vector<64x20xf32> -> vector<64x20xf32>
    %288 = arith.addf %282, %287 : vector<64x20xf32>
    %c1_249 = arith.constant 1 : index
    %c4_250 = arith.constant 4 : index
    %c0_251 = arith.constant 0 : index
    %289 = vector.load %arg7[%c1_249, %c4_250, %c0_251] : memref<12x12x20xf32, #tpu.memory_space<vmem>>, vector<8x8x20xf32>
    %290 = vector.shape_cast %289 : vector<8x8x20xf32> to vector<64x20xf32>
    %c1_252 = arith.constant 1 : index
    %c4_253 = arith.constant 4 : index
    %c0_254 = arith.constant 0 : index
    %c0_255 = arith.constant 0 : index
    %291 = vector.load %arg4[%c1_252, %c4_253, %c0_254, %c0_255] : memref<5x5x20x20xf32, #tpu.memory_space<vmem>>, vector<1x1x20x20xf32>
    %292 = vector.shape_cast %291 : vector<1x1x20x20xf32> to vector<20x20xf32>
    %cst_256 = arith.constant dense<0.000000e+00> : vector<64x20xf32>
    %293 = tpu.matmul %290, %292, %cst_256 {dimension_numbers = #tpu.dot_dimension_numbers<[1], [0], [0], [1], [0, 0, 1, 1], [], []>} : vector<64x20xf32>, vector<20x20xf32>, vector<64x20xf32> -> vector<64x20xf32>
    %294 = arith.addf %288, %293 : vector<64x20xf32>
    %c2_257 = arith.constant 2 : index
    %c0_258 = arith.constant 0 : index
    %c0_259 = arith.constant 0 : index
    %295 = vector.load %arg7[%c2_257, %c0_258, %c0_259] : memref<12x12x20xf32, #tpu.memory_space<vmem>>, vector<8x8x20xf32>
    %296 = vector.shape_cast %295 : vector<8x8x20xf32> to vector<64x20xf32>
    %c2_260 = arith.constant 2 : index
    %c0_261 = arith.constant 0 : index
    %c0_262 = arith.constant 0 : index
    %c0_263 = arith.constant 0 : index
    %297 = vector.load %arg4[%c2_260, %c0_261, %c0_262, %c0_263] : memref<5x5x20x20xf32, #tpu.memory_space<vmem>>, vector<1x1x20x20xf32>
    %298 = vector.shape_cast %297 : vector<1x1x20x20xf32> to vector<20x20xf32>
    %cst_264 = arith.constant dense<0.000000e+00> : vector<64x20xf32>
    %299 = tpu.matmul %296, %298, %cst_264 {dimension_numbers = #tpu.dot_dimension_numbers<[1], [0], [0], [1], [0, 0, 1, 1], [], []>} : vector<64x20xf32>, vector<20x20xf32>, vector<64x20xf32> -> vector<64x20xf32>
    %300 = arith.addf %294, %299 : vector<64x20xf32>
    %c2_265 = arith.constant 2 : index
    %c1_266 = arith.constant 1 : index
    %c0_267 = arith.constant 0 : index
    %301 = vector.load %arg7[%c2_265, %c1_266, %c0_267] : memref<12x12x20xf32, #tpu.memory_space<vmem>>, vector<8x8x20xf32>
    %302 = vector.shape_cast %301 : vector<8x8x20xf32> to vector<64x20xf32>
    %c2_268 = arith.constant 2 : index
    %c1_269 = arith.constant 1 : index
    %c0_270 = arith.constant 0 : index
    %c0_271 = arith.constant 0 : index
    %303 = vector.load %arg4[%c2_268, %c1_269, %c0_270, %c0_271] : memref<5x5x20x20xf32, #tpu.memory_space<vmem>>, vector<1x1x20x20xf32>
    %304 = vector.shape_cast %303 : vector<1x1x20x20xf32> to vector<20x20xf32>
    %cst_272 = arith.constant dense<0.000000e+00> : vector<64x20xf32>
    %305 = tpu.matmul %302, %304, %cst_272 {dimension_numbers = #tpu.dot_dimension_numbers<[1], [0], [0], [1], [0, 0, 1, 1], [], []>} : vector<64x20xf32>, vector<20x20xf32>, vector<64x20xf32> -> vector<64x20xf32>
    %306 = arith.addf %300, %305 : vector<64x20xf32>
    %c2_273 = arith.constant 2 : index
    %c2_274 = arith.constant 2 : index
    %c0_275 = arith.constant 0 : index
    %307 = vector.load %arg7[%c2_273, %c2_274, %c0_275] : memref<12x12x20xf32, #tpu.memory_space<vmem>>, vector<8x8x20xf32>
    %308 = vector.shape_cast %307 : vector<8x8x20xf32> to vector<64x20xf32>
    %c2_276 = arith.constant 2 : index
    %c2_277 = arith.constant 2 : index
    %c0_278 = arith.constant 0 : index
    %c0_279 = arith.constant 0 : index
    %309 = vector.load %arg4[%c2_276, %c2_277, %c0_278, %c0_279] : memref<5x5x20x20xf32, #tpu.memory_space<vmem>>, vector<1x1x20x20xf32>
    %310 = vector.shape_cast %309 : vector<1x1x20x20xf32> to vector<20x20xf32>
    %cst_280 = arith.constant dense<0.000000e+00> : vector<64x20xf32>
    %311 = tpu.matmul %308, %310, %cst_280 {dimension_numbers = #tpu.dot_dimension_numbers<[1], [0], [0], [1], [0, 0, 1, 1], [], []>} : vector<64x20xf32>, vector<20x20xf32>, vector<64x20xf32> -> vector<64x20xf32>
    %312 = arith.addf %306, %311 : vector<64x20xf32>
    %c2_281 = arith.constant 2 : index
    %c3_282 = arith.constant 3 : index
    %c0_283 = arith.constant 0 : index
    %313 = vector.load %arg7[%c2_281, %c3_282, %c0_283] : memref<12x12x20xf32, #tpu.memory_space<vmem>>, vector<8x8x20xf32>
    %314 = vector.shape_cast %313 : vector<8x8x20xf32> to vector<64x20xf32>
    %c2_284 = arith.constant 2 : index
    %c3_285 = arith.constant 3 : index
    %c0_286 = arith.constant 0 : index
    %c0_287 = arith.constant 0 : index
    %315 = vector.load %arg4[%c2_284, %c3_285, %c0_286, %c0_287] : memref<5x5x20x20xf32, #tpu.memory_space<vmem>>, vector<1x1x20x20xf32>
    %316 = vector.shape_cast %315 : vector<1x1x20x20xf32> to vector<20x20xf32>
    %cst_288 = arith.constant dense<0.000000e+00> : vector<64x20xf32>
    %317 = tpu.matmul %314, %316, %cst_288 {dimension_numbers = #tpu.dot_dimension_numbers<[1], [0], [0], [1], [0, 0, 1, 1], [], []>} : vector<64x20xf32>, vector<20x20xf32>, vector<64x20xf32> -> vector<64x20xf32>
    %318 = arith.addf %312, %317 : vector<64x20xf32>
    %c2_289 = arith.constant 2 : index
    %c4_290 = arith.constant 4 : index
    %c0_291 = arith.constant 0 : index
    %319 = vector.load %arg7[%c2_289, %c4_290, %c0_291] : memref<12x12x20xf32, #tpu.memory_space<vmem>>, vector<8x8x20xf32>
    %320 = vector.shape_cast %319 : vector<8x8x20xf32> to vector<64x20xf32>
    %c2_292 = arith.constant 2 : index
    %c4_293 = arith.constant 4 : index
    %c0_294 = arith.constant 0 : index
    %c0_295 = arith.constant 0 : index
    %321 = vector.load %arg4[%c2_292, %c4_293, %c0_294, %c0_295] : memref<5x5x20x20xf32, #tpu.memory_space<vmem>>, vector<1x1x20x20xf32>
    %322 = vector.shape_cast %321 : vector<1x1x20x20xf32> to vector<20x20xf32>
    %cst_296 = arith.constant dense<0.000000e+00> : vector<64x20xf32>
    %323 = tpu.matmul %320, %322, %cst_296 {dimension_numbers = #tpu.dot_dimension_numbers<[1], [0], [0], [1], [0, 0, 1, 1], [], []>} : vector<64x20xf32>, vector<20x20xf32>, vector<64x20xf32> -> vector<64x20xf32>
    %324 = arith.addf %318, %323 : vector<64x20xf32>
    %c3_297 = arith.constant 3 : index
    %c0_298 = arith.constant 0 : index
    %c0_299 = arith.constant 0 : index
    %325 = vector.load %arg7[%c3_297, %c0_298, %c0_299] : memref<12x12x20xf32, #tpu.memory_space<vmem>>, vector<8x8x20xf32>
    %326 = vector.shape_cast %325 : vector<8x8x20xf32> to vector<64x20xf32>
    %c3_300 = arith.constant 3 : index
    %c0_301 = arith.constant 0 : index
    %c0_302 = arith.constant 0 : index
    %c0_303 = arith.constant 0 : index
    %327 = vector.load %arg4[%c3_300, %c0_301, %c0_302, %c0_303] : memref<5x5x20x20xf32, #tpu.memory_space<vmem>>, vector<1x1x20x20xf32>
    %328 = vector.shape_cast %327 : vector<1x1x20x20xf32> to vector<20x20xf32>
    %cst_304 = arith.constant dense<0.000000e+00> : vector<64x20xf32>
    %329 = tpu.matmul %326, %328, %cst_304 {dimension_numbers = #tpu.dot_dimension_numbers<[1], [0], [0], [1], [0, 0, 1, 1], [], []>} : vector<64x20xf32>, vector<20x20xf32>, vector<64x20xf32> -> vector<64x20xf32>
    %330 = arith.addf %324, %329 : vector<64x20xf32>
    %c3_305 = arith.constant 3 : index
    %c1_306 = arith.constant 1 : index
    %c0_307 = arith.constant 0 : index
    %331 = vector.load %arg7[%c3_305, %c1_306, %c0_307] : memref<12x12x20xf32, #tpu.memory_space<vmem>>, vector<8x8x20xf32>
    %332 = vector.shape_cast %331 : vector<8x8x20xf32> to vector<64x20xf32>
    %c3_308 = arith.constant 3 : index
    %c1_309 = arith.constant 1 : index
    %c0_310 = arith.constant 0 : index
    %c0_311 = arith.constant 0 : index
    %333 = vector.load %arg4[%c3_308, %c1_309, %c0_310, %c0_311] : memref<5x5x20x20xf32, #tpu.memory_space<vmem>>, vector<1x1x20x20xf32>
    %334 = vector.shape_cast %333 : vector<1x1x20x20xf32> to vector<20x20xf32>
    %cst_312 = arith.constant dense<0.000000e+00> : vector<64x20xf32>
    %335 = tpu.matmul %332, %334, %cst_312 {dimension_numbers = #tpu.dot_dimension_numbers<[1], [0], [0], [1], [0, 0, 1, 1], [], []>} : vector<64x20xf32>, vector<20x20xf32>, vector<64x20xf32> -> vector<64x20xf32>
    %336 = arith.addf %330, %335 : vector<64x20xf32>
    %c3_313 = arith.constant 3 : index
    %c2_314 = arith.constant 2 : index
    %c0_315 = arith.constant 0 : index
    %337 = vector.load %arg7[%c3_313, %c2_314, %c0_315] : memref<12x12x20xf32, #tpu.memory_space<vmem>>, vector<8x8x20xf32>
    %338 = vector.shape_cast %337 : vector<8x8x20xf32> to vector<64x20xf32>
    %c3_316 = arith.constant 3 : index
    %c2_317 = arith.constant 2 : index
    %c0_318 = arith.constant 0 : index
    %c0_319 = arith.constant 0 : index
    %339 = vector.load %arg4[%c3_316, %c2_317, %c0_318, %c0_319] : memref<5x5x20x20xf32, #tpu.memory_space<vmem>>, vector<1x1x20x20xf32>
    %340 = vector.shape_cast %339 : vector<1x1x20x20xf32> to vector<20x20xf32>
    %cst_320 = arith.constant dense<0.000000e+00> : vector<64x20xf32>
    %341 = tpu.matmul %338, %340, %cst_320 {dimension_numbers = #tpu.dot_dimension_numbers<[1], [0], [0], [1], [0, 0, 1, 1], [], []>} : vector<64x20xf32>, vector<20x20xf32>, vector<64x20xf32> -> vector<64x20xf32>
    %342 = arith.addf %336, %341 : vector<64x20xf32>
    %c3_321 = arith.constant 3 : index
    %c3_322 = arith.constant 3 : index
    %c0_323 = arith.constant 0 : index
    %343 = vector.load %arg7[%c3_321, %c3_322, %c0_323] : memref<12x12x20xf32, #tpu.memory_space<vmem>>, vector<8x8x20xf32>
    %344 = vector.shape_cast %343 : vector<8x8x20xf32> to vector<64x20xf32>
    %c3_324 = arith.constant 3 : index
    %c3_325 = arith.constant 3 : index
    %c0_326 = arith.constant 0 : index
    %c0_327 = arith.constant 0 : index
    %345 = vector.load %arg4[%c3_324, %c3_325, %c0_326, %c0_327] : memref<5x5x20x20xf32, #tpu.memory_space<vmem>>, vector<1x1x20x20xf32>
    %346 = vector.shape_cast %345 : vector<1x1x20x20xf32> to vector<20x20xf32>
    %cst_328 = arith.constant dense<0.000000e+00> : vector<64x20xf32>
    %347 = tpu.matmul %344, %346, %cst_328 {dimension_numbers = #tpu.dot_dimension_numbers<[1], [0], [0], [1], [0, 0, 1, 1], [], []>} : vector<64x20xf32>, vector<20x20xf32>, vector<64x20xf32> -> vector<64x20xf32>
    %348 = arith.addf %342, %347 : vector<64x20xf32>
    %c3_329 = arith.constant 3 : index
    %c4_330 = arith.constant 4 : index
    %c0_331 = arith.constant 0 : index
    %349 = vector.load %arg7[%c3_329, %c4_330, %c0_331] : memref<12x12x20xf32, #tpu.memory_space<vmem>>, vector<8x8x20xf32>
    %350 = vector.shape_cast %349 : vector<8x8x20xf32> to vector<64x20xf32>
    %c3_332 = arith.constant 3 : index
    %c4_333 = arith.constant 4 : index
    %c0_334 = arith.constant 0 : index
    %c0_335 = arith.constant 0 : index
    %351 = vector.load %arg4[%c3_332, %c4_333, %c0_334, %c0_335] : memref<5x5x20x20xf32, #tpu.memory_space<vmem>>, vector<1x1x20x20xf32>
    %352 = vector.shape_cast %351 : vector<1x1x20x20xf32> to vector<20x20xf32>
    %cst_336 = arith.constant dense<0.000000e+00> : vector<64x20xf32>
    %353 = tpu.matmul %350, %352, %cst_336 {dimension_numbers = #tpu.dot_dimension_numbers<[1], [0], [0], [1], [0, 0, 1, 1], [], []>} : vector<64x20xf32>, vector<20x20xf32>, vector<64x20xf32> -> vector<64x20xf32>
    %354 = arith.addf %348, %353 : vector<64x20xf32>
    %c4_337 = arith.constant 4 : index
    %c0_338 = arith.constant 0 : index
    %c0_339 = arith.constant 0 : index
    %355 = vector.load %arg7[%c4_337, %c0_338, %c0_339] : memref<12x12x20xf32, #tpu.memory_space<vmem>>, vector<8x8x20xf32>
    %356 = vector.shape_cast %355 : vector<8x8x20xf32> to vector<64x20xf32>
    %c4_340 = arith.constant 4 : index
    %c0_341 = arith.constant 0 : index
    %c0_342 = arith.constant 0 : index
    %c0_343 = arith.constant 0 : index
    %357 = vector.load %arg4[%c4_340, %c0_341, %c0_342, %c0_343] : memref<5x5x20x20xf32, #tpu.memory_space<vmem>>, vector<1x1x20x20xf32>
    %358 = vector.shape_cast %357 : vector<1x1x20x20xf32> to vector<20x20xf32>
    %cst_344 = arith.constant dense<0.000000e+00> : vector<64x20xf32>
    %359 = tpu.matmul %356, %358, %cst_344 {dimension_numbers = #tpu.dot_dimension_numbers<[1], [0], [0], [1], [0, 0, 1, 1], [], []>} : vector<64x20xf32>, vector<20x20xf32>, vector<64x20xf32> -> vector<64x20xf32>
    %360 = arith.addf %354, %359 : vector<64x20xf32>
    %c4_345 = arith.constant 4 : index
    %c1_346 = arith.constant 1 : index
    %c0_347 = arith.constant 0 : index
    %361 = vector.load %arg7[%c4_345, %c1_346, %c0_347] : memref<12x12x20xf32, #tpu.memory_space<vmem>>, vector<8x8x20xf32>
    %362 = vector.shape_cast %361 : vector<8x8x20xf32> to vector<64x20xf32>
    %c4_348 = arith.constant 4 : index
    %c1_349 = arith.constant 1 : index
    %c0_350 = arith.constant 0 : index
    %c0_351 = arith.constant 0 : index
    %363 = vector.load %arg4[%c4_348, %c1_349, %c0_350, %c0_351] : memref<5x5x20x20xf32, #tpu.memory_space<vmem>>, vector<1x1x20x20xf32>
    %364 = vector.shape_cast %363 : vector<1x1x20x20xf32> to vector<20x20xf32>
    %cst_352 = arith.constant dense<0.000000e+00> : vector<64x20xf32>
    %365 = tpu.matmul %362, %364, %cst_352 {dimension_numbers = #tpu.dot_dimension_numbers<[1], [0], [0], [1], [0, 0, 1, 1], [], []>} : vector<64x20xf32>, vector<20x20xf32>, vector<64x20xf32> -> vector<64x20xf32>
    %366 = arith.addf %360, %365 : vector<64x20xf32>
    %c4_353 = arith.constant 4 : index
    %c2_354 = arith.constant 2 : index
    %c0_355 = arith.constant 0 : index
    %367 = vector.load %arg7[%c4_353, %c2_354, %c0_355] : memref<12x12x20xf32, #tpu.memory_space<vmem>>, vector<8x8x20xf32>
    %368 = vector.shape_cast %367 : vector<8x8x20xf32> to vector<64x20xf32>
    %c4_356 = arith.constant 4 : index
    %c2_357 = arith.constant 2 : index
    %c0_358 = arith.constant 0 : index
    %c0_359 = arith.constant 0 : index
    %369 = vector.load %arg4[%c4_356, %c2_357, %c0_358, %c0_359] : memref<5x5x20x20xf32, #tpu.memory_space<vmem>>, vector<1x1x20x20xf32>
    %370 = vector.shape_cast %369 : vector<1x1x20x20xf32> to vector<20x20xf32>
    %cst_360 = arith.constant dense<0.000000e+00> : vector<64x20xf32>
    %371 = tpu.matmul %368, %370, %cst_360 {dimension_numbers = #tpu.dot_dimension_numbers<[1], [0], [0], [1], [0, 0, 1, 1], [], []>} : vector<64x20xf32>, vector<20x20xf32>, vector<64x20xf32> -> vector<64x20xf32>
    %372 = arith.addf %366, %371 : vector<64x20xf32>
    %c4_361 = arith.constant 4 : index
    %c3_362 = arith.constant 3 : index
    %c0_363 = arith.constant 0 : index
    %373 = vector.load %arg7[%c4_361, %c3_362, %c0_363] : memref<12x12x20xf32, #tpu.memory_space<vmem>>, vector<8x8x20xf32>
    %374 = vector.shape_cast %373 : vector<8x8x20xf32> to vector<64x20xf32>
    %c4_364 = arith.constant 4 : index
    %c3_365 = arith.constant 3 : index
    %c0_366 = arith.constant 0 : index
    %c0_367 = arith.constant 0 : index
    %375 = vector.load %arg4[%c4_364, %c3_365, %c0_366, %c0_367] : memref<5x5x20x20xf32, #tpu.memory_space<vmem>>, vector<1x1x20x20xf32>
    %376 = vector.shape_cast %375 : vector<1x1x20x20xf32> to vector<20x20xf32>
    %cst_368 = arith.constant dense<0.000000e+00> : vector<64x20xf32>
    %377 = tpu.matmul %374, %376, %cst_368 {dimension_numbers = #tpu.dot_dimension_numbers<[1], [0], [0], [1], [0, 0, 1, 1], [], []>} : vector<64x20xf32>, vector<20x20xf32>, vector<64x20xf32> -> vector<64x20xf32>
    %378 = arith.addf %372, %377 : vector<64x20xf32>
    %c4_369 = arith.constant 4 : index
    %c4_370 = arith.constant 4 : index
    %c0_371 = arith.constant 0 : index
    %379 = vector.load %arg7[%c4_369, %c4_370, %c0_371] : memref<12x12x20xf32, #tpu.memory_space<vmem>>, vector<8x8x20xf32>
    %380 = vector.shape_cast %379 : vector<8x8x20xf32> to vector<64x20xf32>
    %c4_372 = arith.constant 4 : index
    %c4_373 = arith.constant 4 : index
    %c0_374 = arith.constant 0 : index
    %c0_375 = arith.constant 0 : index
    %381 = vector.load %arg4[%c4_372, %c4_373, %c0_374, %c0_375] : memref<5x5x20x20xf32, #tpu.memory_space<vmem>>, vector<1x1x20x20xf32>
    %382 = vector.shape_cast %381 : vector<1x1x20x20xf32> to vector<20x20xf32>
    %cst_376 = arith.constant dense<0.000000e+00> : vector<64x20xf32>
    %383 = tpu.matmul %380, %382, %cst_376 {dimension_numbers = #tpu.dot_dimension_numbers<[1], [0], [0], [1], [0, 0, 1, 1], [], []>} : vector<64x20xf32>, vector<20x20xf32>, vector<64x20xf32> -> vector<64x20xf32>
    %384 = arith.addf %378, %383 : vector<64x20xf32>
    %cst_377 = arith.constant 0.000000e+00 : f32
    %385 = vector.broadcast %cst_377 : f32 to vector<64x20xf32>
    %386 = arith.maximumf %384, %385 : vector<64x20xf32>
    %387 = vector.shape_cast %386 : vector<64x20xf32> to vector<8x8x20xf32>
    %c0_378 = arith.constant 0 : index
    %c0_379 = arith.constant 0 : index
    %c0_380 = arith.constant 0 : index
    %c0_381 = arith.constant 0 : index
    %388 = vector.load %arg6[%c0_378, %c0_379, %c0_380, %c0_381] : memref<1x8x8x20xf32, #tpu.memory_space<vmem>>, vector<1x8x8x20xf32>
    %389 = vector.shape_cast %388 : vector<1x8x8x20xf32> to vector<8x8x20xf32>
    %390 = vector.shape_cast %387 : vector<8x8x20xf32> to vector<1x8x8x20xf32>
    tpu.vector_store %arg6[%c0_378, %c0_379, %c0_380, %c0_381], %390 {strides = array<i32>} : memref<1x8x8x20xf32, #tpu.memory_space<vmem>>, vector<1x8x8x20xf32>,
    return
  }
  func.func @transform_0(%arg0: i32) -> (i32, i32, i32, i32) {
    %c0_i32 = arith.constant 0 : i32
    %c0_i32_0 = arith.constant 0 : i32
    %c0_i32_1 = arith.constant 0 : i32
    %c0_i32_2 = arith.constant 0 : i32
    return %arg0, %c0_i32, %c0_i32_0, %c0_i32_1 : i32, i32, i32, i32
  }
  func.func @transform_1(%arg0: i32) -> (i32, i32, i32) {
    %c0_i32 = arith.constant 0 : i32
    %c0_i32_0 = arith.constant 0 : i32
    %c0_i32_1 = arith.constant 0 : i32
    %c0_i32_2 = arith.constant 0 : i32
    return %c0_i32, %c0_i32_0, %c0_i32_1 : i32, i32, i32
  }
  func.func @transform_2(%arg0: i32) -> (i32, i32) {
    %c0_i32 = arith.constant 0 : i32
    %c0_i32_0 = arith.constant 0 : i32
    %c0_i32_1 = arith.constant 0 : i32
    return %c0_i32, %c0_i32_0 : i32, i32
  }
  func.func @transform_3(%arg0: i32) -> (i32, i32, i32, i32) {
    %c0_i32 = arith.constant 0 : i32
    %c0_i32_0 = arith.constant 0 : i32
    %c0_i32_1 = arith.constant 0 : i32
    %c0_i32_2 = arith.constant 0 : i32
    %c0_i32_3 = arith.constant 0 : i32
    return %c0_i32, %c0_i32_0, %c0_i32_1, %c0_i32_2 : i32, i32, i32, i32
  }
  func.func @transform_4(%arg0: i32) -> (i32, i32) {
    %c0_i32 = arith.constant 0 : i32
    %c0_i32_0 = arith.constant 0 : i32
    %c0_i32_1 = arith.constant 0 : i32
    return %c0_i32, %c0_i32_0 : i32, i32
  }
  func.func @transform_5(%arg0: i32) -> (i32, i32, i32, i32) {
    %c0_i32 = arith.constant 0 : i32
    %c0_i32_0 = arith.constant 0 : i32
    %c0_i32_1 = arith.constant 0 : i32
    %c0_i32_2 = arith.constant 0 : i32
    return %arg0, %c0_i32, %c0_i32_0, %c0_i32_1 : i32, i32, i32, i32
  }
}

</mosaic_0001>

<bundles_post_ra>
// kernel: model_forward.1
= control target key start
LH: loop header
LB: loop body
LE: loop exit
PB: predicated region body
PF: predicated region fallthrough
CT: control target
= control target key end

     0   :  { %10 = vsyncpa [#allocation4], 0  ;;  %s14962_s0 = inlined_call_operand.vmem [shape: f32[2,16,16,1], index: 0, kind: input, shape index: {}]   ;;  %s14963_s1 = inlined_call_operand.vmem [shape: f32[5,5,20], index: 1, kind: input, shape index: {}]   ;;  %s14964_s2 = inlined_call_operand.vmem [shape: f32[1,20], index: 2, kind: input, shape index: {}]   ;;  %s14965_s3 = inlined_call_operand.hbm [shape: f32[5,5,20,20], index: 3, kind: input, shape index: {}]   ;;  %s14966_s4 = inlined_call_operand.vmem [shape: f32[1,20], index: 4, kind: input, shape index: {}]   ;;  %s14967_s5 = inlined_call_operand.hbm [shape: f32[2,8,8,20], index: 5, kind: output, shape index: {}]  }
   0x1   :  { %11 = vsyncpa [#allocation5], 0 }
   0x2   :  { %13 = vsyncpa [#allocation5 + $0x1], 0  ;;  %s11158_s18 = smov 0   ;;  %s11160_s19 = smov 0  }
   0x3   :  { %s11162_s20 = smov 0   ;;  %s11164_s21 = smov 0  }
   0x4 LB: > { %s11179_s22 = sadd.s32 4294967295, %s11119_s21   ;;  %s9143_s23 = sadd.s32 4294967294, %s11119_s21   ;;  %s11119_s21 = sphi %s11164_s21, %s15424_s21   ;;  %s11115_s20 = sphi %s11162_s20, %s15423_s20   ;;  %s11111_s19 = sphi %s11160_s19, %s15422_s19   ;;  %s11107_s18 = sphi %s11158_s18, %s15421_s18  }
   0x5   : > { %s11183_s24 = sadd.s32 1, %s11119_s21   ;;  %s136_s25 = sadd.s32 1, %s11115_s20 }
   0x6   : > { %s133_s26 = ssub.s32 %s11119_s21, %s11183_s24  ;;  %p146_p0 = scmp.ne.s32.totalorder %s11115_s20, %s11111_s19 }
   0x7   : > { %p134_p1 = scmp.eq.s32.totalorder %s133_s26, 0  ;;  %p147_p2 = scmp.eq.s32.totalorder %s11179_s22, 1 }
   0x8   : > { %p152_p3 = scmp.ne.s32.totalorder %s11111_s19, %s11107_s18  ;;  %p153_p4 = scmp.eq.s32.totalorder %s9143_s23, 1 }
   0x9   : > { %s11194_s27 = scalar_select %p134_p1, %s11115_s20, %s136_s25  }
   0xa   : > { %p11196_p5 = por %p147_p2, %p146_p0  ;;  %p11200_p6 = por %p153_p4, %p152_p3 }
   0xb   : > { %p9144_p7 = scmp.ge.s32.totalorder %s11119_s21, 1  ;;  %p160_p8 = scmp.lt.s32.totalorder %s11119_s21, 3 }
   0xc   : > { %s14980_s28 = scalar_select %p11196_p5, 1, 0 }
   0xd   : > { %s14981_s29 = scalar_select %p11200_p6, 1, 0 }
   0xe   : > { %p14968_p9 = scmp.eq.s32.totalorder %s11179_s22, 0  ;;  %p11207_p10 = pnand %p9144_p7, %p160_p8 }
   0xf   : > { %s11121_s6 = smov [#allocation3]   ;;  %s11025_s11 = scalar_lea.hbm %s14965_s3, 9600 }
  0x10   : > { %s14982_s30 = scalar_select %p11207_p10, 1, 0 }
  0x11   : > { %s178_s7 = sshll.u32 %s11121_s6, 4  ;;  %p10946_p11 = pneg %p11207_p10  ;;  %s179_s7 = int_to_ptr.vmem [resolvable:$true] %s178_s7 }
  0x12   : > { %p11026_p13 = scmp.ne.s32.totalorder %s14965_s3, %s11025_s11  ;;  %p11032_p3 = scmp.lt.u32.totalorder %s11025_s11, %s14965_s3 }
  0x13   : > { %p11215_p12 = pnand %p14968_p9, %p10946_p11 }
  0x15   : > { %p11027_p0 = pneg %p11215_p12 }
  0x17   : > { %p11028_p1 = pnand %p11027_p0, %p11026_p13 }
  0x19   : > { %p11029_p2 = pneg %p11028_p1 }
  0x1b   : > { %p11034_p4 = pnand %p11032_p3, %p11029_p2 }
  0x1d   : > { %11037 = shalt.err (!%p11034_p4)
}
  0x1e   : > { %s11038_s16 = scalar_lea.vmem %s179_s7, 9600  ;;  %p11046_p9 = scmp.lt.s32.totalorder %s179_s7, %s179_s7 }
  0x1f   : > { %p11039_p7 = scmp.ne.s32.totalorder %s179_s7, %s11038_s16  ;;  %p11047_p6 = scmp.lt.s32.totalorder %s11038_s16, %s11038_s16 }
  0x21   : > { %p11041_p8 = pnand %p11039_p7, %p11027_p0  ;;  %p11048_p5 = por %p11047_p6, %p11046_p9 }
  0x23   : > { %p11042_p11 = pneg %p11041_p8 }
  0x25   : > { %p11049_p10 = pnand %p11048_p5, %p11042_p11 }
  0x27   : > { %11052 = shalt.err (!%p11049_p10)
}
  0x28   : > { %s11122_s17 = smov 128   ;;  %s11123_s23 = smov 8  }
  0x29   : > { %10949 = dma.hbm_to_vmem [thread:$0]  (!%p11215_p12), %s14965_s3, 9600, %s179_s7, [#allocation4], %s11122_s17, %s11122_s17, %s11123_s23  }
  0x2a   : > { %p14984_p13 = scmp.ne.s32.totalorder %s14982_s30, 0 }
  0x2c   : > { %205 = sbr.rel (%p14984_p13) target bundleno = 1760 (0x6e0), region = 40 }
  0x33   : > { %p14985_p1 = scmp.eq.s32.totalorder %s11179_s22, 0 }
  0x35   : > { %11098 = dma.done.wait (%p14985_p1), [#allocation4], 9600   ;;  %p14986_p0 = pmov %p14985_p1 }
  0x36   : > { %p233_p5 = scmp.lt.s32.totalorder %s11179_s22, 1  ;;  %v11124_v0 = vmov 0   ;;  %vm5270_vm0 = vcmask 1043456   ;;  %vm5202_vm1 = vcmask 162816   ;;  %vm5204_vm2 = vcmask 158720   ;;  %s230_s30 = sand.u32 1, %s11111_s19  }
  0x37   : > { %11100 = vsyncadd (%p14986_p0), [#allocation4], 4294957696  ;;  %10996 = vset.pattern.permute.xlu1 %v11124_v0  ;;  %10995 = vset.pattern.permute.xlu0 %v11124_v0  ;;  %s9149_s11 = sshll.u32 %s230_s30, 6  ;;  %s9910_s12 = sshll.u32 %s11179_s22, 10 }
  0x38   : > { %s234_s6 = scalar_select %p233_p5, %s11179_s22, 1 }
  0x39   : > { %s14911_s16 = scalar_lea.hbm %s14967_s5, %s9910_s12  ;;  %s14921_s22 = scalar_lea.sflag [#allocation5], %s230_s30 }
  0x3a   : > { %s9909_s8 = sshll.u32 %s234_s6, 8  ;;  %p15419_p9 = scmp.ne.s32.totalorder %s14980_s28, 0 }
  0x3b   : > { %s11246_s7 = scalar_lea.vmem %s14962_s0, %s9909_s8  ;;  %s11125_s23 = smov [#allocation6]  }
  0x3c   : > { %v11249_v1 = vld [vmem:[%s11246_s7 + $0x10] sm:$0xff]  ;;  %v245_v2 = vld [vmem:[%s11246_s7] sm:$0xff]  ;;  %v248_v3 = vld [vmem:[%s11246_s7 + $0x18] sm:$0xf]  ;;  %s11057_s25 = sshll.u32 %s11125_s23, 4  ;;  %s11058_s25 = int_to_ptr.vmem [resolvable:$false] %s11057_s25 }
  0x3d   : > { %282 = vperm.xlu1 %10996, %v11249_v1   ;;  %272 = vperm.xlu0 %10995, %v245_v2   ;;  %v246_v4 = vld [vmem:[%s11246_s7 + $0x8] sm:$0xf]  ;;  %v11257_v6 = vld [vmem:[%s11246_s7 + $0x20] sm:$0xff]  ;;  %v252_v7 = vld [vmem:[%s11246_s7 + $0x38] sm:$0xf]  ;;  %s11059_s26 = scalar_lea.vmem %s11058_s25, 2048 }
  0x3e   : > { %v250_v5 = vld [vmem:[%s11246_s7 + $0x28] sm:$0xf]  ;;  %v11262_v8 = vld [vmem:[%s11246_s7 + $0x30] sm:$0xff]  ;;  %v11267_v10 = vld [vmem:[%s11246_s7 + $0x40] sm:$0xff] }
  0x3f   : > { %v254_v9 = vld [vmem:[%s11246_s7 + $0x48] sm:$0xf]  ;;  %v256_v11 = vld [vmem:[%s11246_s7 + $0x58] sm:$0xf]  ;;  %v11272_v12 = vld [vmem:[%s11246_s7 + $0x50] sm:$0xff] }
  0x40   : > { %v258_v13 = vld [vmem:[%s11246_s7 + $0x68] sm:$0xf]  ;;  %v11277_v14 = vld [vmem:[%s11246_s7 + $0x60] sm:$0xff]  ;;  %v260_v15 = vld [vmem:[%s11246_s7 + $0x78] sm:$0xf] }
  0x41   : > { %287 = vperm.xlu1 %10996, %v248_v3   ;;  %277 = vperm.xlu0 %10995, %v246_v4   ;;  %v11282_v16 = vld [vmem:[%s11246_s7 + $0x70] sm:$0xff]  ;;  %v262_v17 = vld [vmem:[%s11246_s7 + $0x88] sm:$0xf]  ;;  %v11287_v18 = vld [vmem:[%s11246_s7 + $0x80] sm:$0xff] }
  0x42   : > { %v264_v19 = vld [vmem:[%s11246_s7 + $0x98] sm:$0xf]  ;;  %v11292_v20 = vld [vmem:[%s11246_s7 + $0x90] sm:$0xff]  ;;  %v266_v21 = vld [vmem:[%s11246_s7 + $0xa8] sm:$0xf] }
  0x43   : > { %v11297_v22 = vld [vmem:[%s11246_s7 + $0xa0] sm:$0xff]  ;;  %v268_v23 = vld [vmem:[%s11246_s7 + $0xb8] sm:$0xf]  ;;  %v11302_v24 = vld [vmem:[%s11246_s7 + $0xb0] sm:$0xff] }
  0x44   : > { %v443_v25 = vld [vmem:[%s11246_s7 + $0x9] sm:$0xf]  ;;  %v442_v26 = vld [vmem:[%s11246_s7 + $0x1] sm:$0xff]  ;;  %v445_v27 = vld [vmem:[%s11246_s7 + $0x19] sm:$0xf] }
  0x45   : > { %297 = vperm.xlu1 %10996, %v250_v5   ;;  %292 = vperm.xlu0 %10995, %v11257_v6   ;;  %v11309_v28 = vld [vmem:[%s11246_s7 + $0x11] sm:$0xff]  ;;  %v447_v29 = vld [vmem:[%s11246_s7 + $0x29] sm:$0xf]  ;;  %v11314_v30 = vld [vmem:[%s11246_s7 + $0x21] sm:$0xff] }
  0x46   : > { %v449_v31 = vld [vmem:[%s11246_s7 + $0x39] sm:$0xf]  ;;  %v11319_v32 = vld [vmem:[%s11246_s7 + $0x31] sm:$0xff]  ;;  %v451_v33 = vld [vmem:[%s11246_s7 + $0x49] sm:$0xf] }
  0x47   : > { %v11324_v34 = vld [vmem:[%s11246_s7 + $0x41] sm:$0xff]  ;;  %v453_v35 = vld [vmem:[%s11246_s7 + $0x59] sm:$0xf]  ;;  %v11329_v36 = vld [vmem:[%s11246_s7 + $0x51] sm:$0xff] }
  0x48   : > { %v455_v37 = vld [vmem:[%s11246_s7 + $0x69] sm:$0xf]  ;;  %v454_v38 = vld [vmem:[%s11246_s7 + $0x61] sm:$0xff]  ;;  %v457_v39 = vld [vmem:[%s11246_s7 + $0x79] sm:$0xf] }
  0x49   : > { %307 = vperm.xlu1 %10996, %v252_v7   ;;  %302 = vperm.xlu0 %10995, %v11262_v8   ;;  %v456_v40 = vld [vmem:[%s11246_s7 + $0x71] sm:$0xff]  ;;  %v459_v41 = vld [vmem:[%s11246_s7 + $0x89] sm:$0xf]  ;;  %v458_v42 = vld [vmem:[%s11246_s7 + $0x81] sm:$0xff] }
  0x4a   : > { %v461_v43 = vld [vmem:[%s11246_s7 + $0x99] sm:$0xf]  ;;  %v460_v44 = vld [vmem:[%s11246_s7 + $0x91] sm:$0xff]  ;;  %v463_v45 = vld [vmem:[%s11246_s7 + $0xa9] sm:$0xf] }
  0x4b   : > { %v462_v46 = vld [vmem:[%s11246_s7 + $0xa1] sm:$0xff]  ;;  %v465_v47 = vld [vmem:[%s11246_s7 + $0xb9] sm:$0xf]  ;;  %v464_v48 = vld [vmem:[%s11246_s7 + $0xb1] sm:$0xff] }
  0x4c   : > { %v640_v49 = vld [vmem:[%s11246_s7 + $0xa] sm:$0xf]  ;;  %v639_v50 = vld [vmem:[%s11246_s7 + $0x2] sm:$0xff]  ;;  %v642_v51 = vld [vmem:[%s11246_s7 + $0x1a] sm:$0xf] }
  0x4d   : > { %317 = vperm.xlu1 %10996, %v254_v9   ;;  %312 = vperm.xlu0 %10995, %v11267_v10   ;;  %v641_v52 = vld [vmem:[%s11246_s7 + $0x12] sm:$0xff]  ;;  %v644_v53 = vld [vmem:[%s11246_s7 + $0x2a] sm:$0xf]  ;;  %v643_v54 = vld [vmem:[%s11246_s7 + $0x22] sm:$0xff] }
  0x4e   : > { %v646_v55 = vld [vmem:[%s11246_s7 + $0x3a] sm:$0xf]  ;;  %v645_v56 = vld [vmem:[%s11246_s7 + $0x32] sm:$0xff]  ;;  %v648_v57 = vld [vmem:[%s11246_s7 + $0x4a] sm:$0xf] }
  0x4f   : > { %v647_v58 = vld [vmem:[%s11246_s7 + $0x42] sm:$0xff]  ;;  %v650_v59 = vld [vmem:[%s11246_s7 + $0x5a] sm:$0xf]  ;;  %v649_v60 = vld [vmem:[%s11246_s7 + $0x52] sm:$0xff] }
  0x50   : > { %v652_v61 = vld [vmem:[%s11246_s7 + $0x6a] sm:$0xf]  ;;  %v651_v62 = vld [vmem:[%s11246_s7 + $0x62] sm:$0xff]  ;;  %v654_v63 = vld [vmem:[%s11246_s7 + $0x7a] sm:$0xf] }
  0x51   : > { %327 = vperm.xlu1 %10996, %v256_v11   ;;  %322 = vperm.xlu0 %10995, %v11272_v12   ;;  %v653_v0 = vld [vmem:[%s11246_s7 + $0x72] sm:$0xff]  ;;  %v656_v2 = vld [vmem:[%s11246_s7 + $0x8a] sm:$0xf]  ;;  %v655_v3 = vld [vmem:[%s11246_s7 + $0x82] sm:$0xff] }
  0x52   : > { %v658_v7 = vld [vmem:[%s11246_s7 + $0x9a] sm:$0xf]  ;;  %v657_v9 = vld [vmem:[%s11246_s7 + $0x92] sm:$0xff]  ;;  %v11371_v11 = vld [vmem:[%s14963_s1] ss:$0 sm:$0xff] }
  0x55   : > { %337 = vperm.xlu1 %10996, %v258_v13   ;;  %332 = vperm.xlu0 %10995, %v11277_v14  }
  0x59   : > { %347 = vperm.xlu1 %10996, %v260_v15   ;;  %342 = vperm.xlu0 %10995, %v11282_v16  }
  0x5d   : > { %357 = vperm.xlu1 %10996, %v262_v17   ;;  %352 = vperm.xlu0 %10995, %v11287_v18  }
  0x61   : > { %367 = vperm.xlu1 %10996, %v264_v19   ;;  %362 = vperm.xlu0 %10995, %v11292_v20  }
  0x65   : > { %377 = vperm.xlu1 %10996, %v266_v21   ;;  %372 = vperm.xlu0 %10995, %v11297_v22   ;;  %v11378_v21 = vld [vmem:[%s14964_s2] ss:$0 sm:$0xff] }
  0x69   : > { %387 = vperm.xlu1 %10996, %v268_v23   ;;  %382 = vperm.xlu0 %10995, %v11302_v24   ;;  %v660_v23 = vld [vmem:[%s11246_s7 + $0xaa] sm:$0xf] }
  0x6d   : > { %474 = vperm.xlu1 %10996, %v443_v25   ;;  %469 = vperm.xlu0 %10995, %v442_v26   ;;  %v659_v25 = vld [vmem:[%s11246_s7 + $0xa2] sm:$0xff] }
  0x71   : > { %484 = vperm.xlu1 %10996, %v445_v27   ;;  %479 = vperm.xlu0 %10995, %v11309_v28  }
  0x75   : > { %494 = vperm.xlu1 %10996, %v447_v29   ;;  %489 = vperm.xlu0 %10995, %v11314_v30  }
  0x79   : > { %504 = vperm.xlu1 %10996, %v449_v31   ;;  %499 = vperm.xlu0 %10995, %v11319_v32  }
  0x7d   : > { %514 = vperm.xlu1 %10996, %v451_v33   ;;  %509 = vperm.xlu0 %10995, %v11324_v34   ;;  %v662_v33 = vld [vmem:[%s11246_s7 + $0xba] sm:$0xf] }
  0x81   : > { %524 = vperm.xlu1 %10996, %v453_v35   ;;  %519 = vperm.xlu0 %10995, %v11329_v36   ;;  %v661_v35 = vld [vmem:[%s11246_s7 + $0xb2] sm:$0xff] }
  0x85   : > { %534 = vperm.xlu1 %10996, %v455_v37   ;;  %529 = vperm.xlu0 %10995, %v454_v38  }
  0x89   : > { %544 = vperm.xlu1 %10996, %v457_v39   ;;  %539 = vperm.xlu0 %10995, %v456_v40   ;;  %v837_v39 = vld [vmem:[%s11246_s7 + $0xb] sm:$0xf]  ;;  %v836_v40 = vld [vmem:[%s11246_s7 + $0x3] sm:$0xff] }
  0x8d   : > { %554 = vperm.xlu1 %10996, %v459_v41   ;;  %549 = vperm.xlu0 %10995, %v458_v42  }
  0x91   : > { %564 = vperm.xlu1 %10996, %v461_v43   ;;  %559 = vperm.xlu0 %10995, %v460_v44   ;;  %v839_v43 = vld [vmem:[%s11246_s7 + $0x1b] sm:$0xf]  ;;  %v838_v44 = vld [vmem:[%s11246_s7 + $0x13] sm:$0xff] }
  0x95   : > { %574 = vperm.xlu1 %10996, %v463_v45   ;;  %569 = vperm.xlu0 %10995, %v462_v46  }
  0x99   : > { %584 = vperm.xlu1 %10996, %v465_v47   ;;  %579 = vperm.xlu0 %10995, %v464_v48   ;;  %v841_v47 = vld [vmem:[%s11246_s7 + $0x2b] sm:$0xf]  ;;  %v840_v48 = vld [vmem:[%s11246_s7 + $0x23] sm:$0xff] }
  0x9d   : > { %671 = vperm.xlu1 %10996, %v640_v49   ;;  %666 = vperm.xlu0 %10995, %v639_v50  }
  0xa1   : > { %681 = vperm.xlu1 %10996, %v642_v51   ;;  %676 = vperm.xlu0 %10995, %v641_v52  }
  0xa5   : > { %691 = vperm.xlu1 %10996, %v644_v53   ;;  %686 = vperm.xlu0 %10995, %v643_v54   ;;  %v843_v53 = vld [vmem:[%s11246_s7 + $0x3b] sm:$0xf]  ;;  %v842_v54 = vld [vmem:[%s11246_s7 + $0x33] sm:$0xff] }
  0xa9   : > { %701 = vperm.xlu1 %10996, %v646_v55   ;;  %696 = vperm.xlu0 %10995, %v645_v56  }
  0xad   : > { %711 = vperm.xlu1 %10996, %v648_v57   ;;  %706 = vperm.xlu0 %10995, %v647_v58  }
  0xb1   : > { %721 = vperm.xlu1 %10996, %v650_v59   ;;  %716 = vperm.xlu0 %10995, %v649_v60  }
  0xb5   : > { %731 = vperm.xlu1 %10996, %v652_v61   ;;  %726 = vperm.xlu0 %10995, %v651_v62   ;;  %v845_v61 = vld [vmem:[%s11246_s7 + $0x4b] sm:$0xf]  ;;  %v844_v62 = vld [vmem:[%s11246_s7 + $0x43] sm:$0xff] }
  0xb9   : > { %741 = vperm.xlu1 %10996, %v654_v63   ;;  %736 = vperm.xlu0 %10995, %v653_v0  }
  0xbc   : > { %v11362_v4 = vpop.permute.xlu1 %282  ;;  %v11364_v5 = vpop.permute.xlu0 %272 }
  0xbd   : > { %751 = vperm.xlu1 %10996, %v656_v2   ;;  %746 = vperm.xlu0 %10995, %v655_v3  }
  0xc0   : > { %v288_v13 = vpop.permute.xlu1 %287  ;;  %v278_v15 = vpop.permute.xlu0 %277 }
  0xc1   : > { %v397_v17 = vmul.f32 %v11371_v11, %v288_v13  ;;  %v395_v19 = vmul.f32 %v11371_v11, %v278_v15  ;;  %761 = vperm.xlu1 %10996, %v658_v7   ;;  %756 = vperm.xlu0 %10995, %v657_v9   ;;  %v847_v13 = vld [vmem:[%s11246_s7 + $0x5b] sm:$0xf]  ;;  %v846_v15 = vld [vmem:[%s11246_s7 + $0x53] sm:$0xff] }
  0xc3   : > { %v11383_v26 = vadd.f32 %v11378_v21, %v397_v17  ;;  %v11386_v27 = vadd.f32 %v11378_v21, %v395_v19 }
  0xc4   : > { %v11388_v29 = vpop.permute.xlu1 %297  ;;  %v11390_v31 = vpop.permute.xlu0 %292 }
  0xc5   : > { %771 = vperm.xlu1 %10996, %v660_v23   ;;  %766 = vperm.xlu0 %10995, %v659_v25  }
  0xc8   : > { %v11394_v37 = vpop.permute.xlu1 %307  ;;  %v11396_v38 = vpop.permute.xlu0 %302 }
  0xc9   : > { %781 = vperm.xlu1 %10996, %v662_v33   ;;  %776 = vperm.xlu0 %10995, %v661_v35  }
  0xcc   : > { %v11400_v41 = vpop.permute.xlu1 %317  ;;  %v11402_v42 = vpop.permute.xlu0 %312 }
  0xcd   : > { %868 = vperm.xlu1 %10996, %v837_v39   ;;  %863 = vperm.xlu0 %10995, %v836_v40   ;;  %v849_v39 = vld [vmem:[%s11246_s7 + $0x6b] sm:$0xf]  ;;  %v848_v40 = vld [vmem:[%s11246_s7 + $0x63] sm:$0xff] }
  0xd0   : > { %v11406_v45 = vpop.permute.xlu1 %327  ;;  %v11408_v46 = vpop.permute.xlu0 %322 }
  0xd1   : > { %878 = vperm.xlu1 %10996, %v839_v43   ;;  %873 = vperm.xlu0 %10995, %v838_v44  }
  0xd4   : > { %v338_v49 = vpop.permute.xlu1 %337  ;;  %v333_v50 = vpop.permute.xlu0 %332 }
  0xd5   : > { %v407_v51 = vmul.f32 %v11371_v11, %v338_v49  ;;  %v406_v52 = vmul.f32 %v11371_v11, %v333_v50  ;;  %888 = vperm.xlu1 %10996, %v841_v47   ;;  %883 = vperm.xlu0 %10995, %v840_v48  }
  0xd7   : > { %v11417_v55 = vadd.f32 %v11378_v21, %v407_v51  ;;  %v11420_v56 = vadd.f32 %v11378_v21, %v406_v52  ;;  %v851_v51 = vld [vmem:[%s11246_s7 + $0x7b] sm:$0xf]  ;;  %v850_v52 = vld [vmem:[%s11246_s7 + $0x73] sm:$0xff] }
  0xd8   : > { %v348_v57 = vpop.permute.xlu1 %347  ;;  %v343_v58 = vpop.permute.xlu0 %342 }
  0xd9   : > { %v409_v59 = vmul.f32 %v11371_v11, %v348_v57  ;;  %v408_v60 = vmul.f32 %v11371_v11, %v343_v58  ;;  %898 = vperm.xlu1 %10996, %v843_v53   ;;  %893 = vperm.xlu0 %10995, %v842_v54  }
  0xdb   : > { %v11427_v63 = vadd.f32 %v11378_v21, %v409_v59  ;;  %v11430_v0 = vadd.f32 %v11378_v21, %v408_v60 }
  0xdc   : > { %v358_v2 = vpop.permute.xlu1 %357  ;;  %v353_v3 = vpop.permute.xlu0 %352 }
  0xdd   : > { %v411_v7 = vmul.f32 %v11371_v11, %v358_v2  ;;  %v410_v9 = vmul.f32 %v11371_v11, %v353_v3  ;;  %908 = vperm.xlu1 %10996, %v845_v61   ;;  %903 = vperm.xlu0 %10995, %v844_v62   ;;  %v11467_v61 = vld [vmem:[%s14963_s1 + $0x1] ss:$0 sm:$0xff]  ;;  %v853_v62 = vld [vmem:[%s11246_s7 + $0x8b] sm:$0xf]  ;;  %v852_v2 = vld [vmem:[%s11246_s7 + $0x83] sm:$0xff] }
  0xdf   : > { %v11437_v17 = vadd.f32 %v11378_v21, %v411_v7  ;;  %v11440_v19 = vadd.f32 %v11378_v21, %v410_v9 }
  0xe0   : > { %v368_v23 = vpop.permute.xlu1 %367  ;;  %v363_v25 = vpop.permute.xlu0 %362 }
  0xe1   : > { %v413_v33 = vmul.f32 %v11371_v11, %v368_v23  ;;  %v412_v35 = vmul.f32 %v11371_v11, %v363_v25  ;;  %918 = vperm.xlu1 %10996, %v847_v13   ;;  %913 = vperm.xlu0 %10995, %v846_v15   ;;  %v855_v15 = vld [vmem:[%s11246_s7 + $0x9b] sm:$0xf]  ;;  %v854_v23 = vld [vmem:[%s11246_s7 + $0x93] sm:$0xff] }
  0xe3   : > { %v11447_v43 = vadd.f32 %v11378_v21, %v413_v33  ;;  %v11450_v44 = vadd.f32 %v11378_v21, %v412_v35 }
  0xe4   : > { %v378_v47 = vpop.permute.xlu1 %377  ;;  %v373_v48 = vpop.permute.xlu0 %372 }
  0xe5   : > { %v415_v49 = vmul.f32 %v11371_v11, %v378_v47  ;;  %v414_v50 = vmul.f32 %v11371_v11, %v373_v48  ;;  %928 = vperm.xlu1 %10996, %v849_v39   ;;  %923 = vperm.xlu0 %10995, %v848_v40   ;;  %v857_v39 = vld [vmem:[%s11246_s7 + $0xab] sm:$0xf]  ;;  %v856_v40 = vld [vmem:[%s11246_s7 + $0xa3] sm:$0xff] }
  0xe7   : > { %v11457_v53 = vadd.f32 %v11378_v21, %v415_v49  ;;  %v11460_v54 = vadd.f32 %v11378_v21, %v414_v50  ;;  %v858_v50 = vld [vmem:[%s11246_s7 + $0xb3] sm:$0xff] }
  0xe8   : > { %v388_v57 = vpop.permute.xlu1 %387  ;;  %v383_v58 = vpop.permute.xlu0 %382 }
  0xe9   : > { %v417_v59 = vmul.f32 %v11371_v11, %v388_v57  ;;  %v416_v60 = vmul.f32 %v11371_v11, %v383_v58  ;;  %938 = vperm.xlu1 %10996, %v851_v51   ;;  %933 = vperm.xlu0 %10995, %v850_v52   ;;  %v1033_v57 = vld [vmem:[%s11246_s7 + $0x4] sm:$0xff] }
  0xeb   : > { %v11472_v3 = vadd.f32 %v11378_v21, %v417_v59  ;;  %v11475_v7 = vadd.f32 %v11378_v21, %v416_v60  ;;  %v1036_v60 = vld [vmem:[%s11246_s7 + $0x1c] sm:$0xf] }
  0xec   : > { %v475_v9 = vpop.permute.xlu1 %474  ;;  %v11477_v13 = vpop.permute.xlu0 %469 }
  0xed   : > { %v592_v11 = vmul.f32 %v11467_v61, %v475_v9  ;;  %948 = vperm.xlu1 %10996, %v853_v62   ;;  %943 = vperm.xlu0 %10995, %v852_v2   ;;  %v1035_v62 = vld [vmem:[%s11246_s7 + $0x14] sm:$0xff] }
  0xef   : > { %v11483_v25 = vadd.f32 %v592_v11, %v11386_v27  ;;  %v859_v27 = vld [vmem:[%s11246_s7 + $0xbb] sm:$0xf]  ;;  %v1038_v11 = vld [vmem:[%s11246_s7 + $0x2c] sm:$0xf] }
  0xf0   : > { %v485_v33 = vpop.permute.xlu1 %484  ;;  %v11485_v35 = vpop.permute.xlu0 %479 }
  0xf1   : > { %v594_v21 = vmul.f32 %v11467_v61, %v485_v33  ;;  %958 = vperm.xlu1 %10996, %v855_v15   ;;  %953 = vperm.xlu0 %10995, %v854_v23   ;;  %v1037_v15 = vld [vmem:[%s11246_s7 + $0x24] sm:$0xff] }
  0xf3   : > { %v11491_v47 = vadd.f32 %v594_v21, %v11383_v26  ;;  %v1034_v26 = vld [vmem:[%s11246_s7 + $0xc] sm:$0xf] }
  0xf4   : > { %v11493_v48 = vpop.permute.xlu1 %494  ;;  %v11495_v49 = vpop.permute.xlu0 %489 }
  0xf5   : > { %968 = vperm.xlu1 %10996, %v857_v39   ;;  %963 = vperm.xlu0 %10995, %v856_v40   ;;  %v1040_v40 = vld [vmem:[%s11246_s7 + $0x3c] sm:$0xf] }
  0xf8   : > { %v11499_v51 = vpop.permute.xlu1 %504  ;;  %v11501_v52 = vpop.permute.xlu0 %499 }
  0xf9   : > { %978 = vperm.xlu1 %10996, %v859_v27   ;;  %973 = vperm.xlu0 %10995, %v858_v50   ;;  %v1039_v27 = vld [vmem:[%s11246_s7 + $0x34] sm:$0xff] }
  0xfc   : > { %v11505_v58 = vpop.permute.xlu1 %514  ;;  %v11507_v59 = vpop.permute.xlu0 %509 }
  0xfd   : > { %14987 = vst [vmem:[#allocation9_spill] sm:$0xff] %v11505_v58  ;;  %14988 = vst [vmem:[#allocation10_spill] sm:$0xff] %v11507_v59  ;;  %1065 = vperm.xlu1 %10996, %v1034_v26   ;;  %1060 = vperm.xlu0 %10995, %v1033_v57   ;;  %v13195_v59 = vld [vmem:[%s11246_s7 + $0x94] sm:$0xff] }
  0xfe   : > { %15143 = vst [vmem:[#allocation165_spill] sm:$0xff] %v13195_v59 }
 0x100   : > { %v11511_v2 = vpop.permute.xlu1 %524  ;;  %v11513_v9 = vpop.permute.xlu0 %519 }
 0x101   : > { %14989 = vst [vmem:[#allocation11_spill] sm:$0xff] %v11511_v2  ;;  %14990 = vst [vmem:[#allocation12_spill] sm:$0xff] %v11513_v9  ;;  %1075 = vperm.xlu1 %10996, %v1036_v60   ;;  %1070 = vperm.xlu0 %10995, %v1035_v62   ;;  %v13169_v9 = vld [vmem:[%s11246_s7 + $0x74] sm:$0xff]  ;;  %v13182_v2 = vld [vmem:[%s11246_s7 + $0x84] sm:$0xff] }
 0x104   : > { %v535_v23 = vpop.permute.xlu1 %534  ;;  %v530_v33 = vpop.permute.xlu0 %529 }
 0x105   : > { %v604_v21 = vmul.f32 %v11467_v61, %v535_v23  ;;  %v603_v39 = vmul.f32 %v11467_v61, %v530_v33  ;;  %1085 = vperm.xlu1 %10996, %v1038_v11   ;;  %1080 = vperm.xlu0 %10995, %v1037_v15   ;;  %v1042_v11 = vld [vmem:[%s11246_s7 + $0x4c] sm:$0xf]  ;;  %v1041_v15 = vld [vmem:[%s11246_s7 + $0x44] sm:$0xff] }
 0x107   : > { %v11522_v50 = vadd.f32 %v604_v21, %v11417_v55  ;;  %v11525_v26 = vadd.f32 %v603_v39, %v11420_v56 }
 0x108   : > { %v545_v57 = vpop.permute.xlu1 %544  ;;  %v540_v60 = vpop.permute.xlu0 %539 }
 0x109   : > { %v606_v62 = vmul.f32 %v11467_v61, %v545_v57  ;;  %v605_v23 = vmul.f32 %v11467_v61, %v540_v60  ;;  %1095 = vperm.xlu1 %10996, %v1040_v40   ;;  %1090 = vperm.xlu0 %10995, %v1039_v27   ;;  %v1044_v40 = vld [vmem:[%s11246_s7 + $0x5c] sm:$0xf]  ;;  %v1043_v27 = vld [vmem:[%s11246_s7 + $0x54] sm:$0xff] }
 0x10b   : > { %v11532_v33 = vadd.f32 %v606_v62, %v11427_v63  ;;  %v11535_v55 = vadd.f32 %v605_v23, %v11430_v0 }
 0x10c   : > { %v555_v56 = vpop.permute.xlu1 %554  ;;  %v550_v21 = vpop.permute.xlu0 %549 }
 0x10d   : > { %v608_v39 = vmul.f32 %v11467_v61, %v555_v56  ;;  %v607_v57 = vmul.f32 %v11467_v61, %v550_v21  ;;  %1105 = vperm.xlu1 %10996, %v1042_v11   ;;  %1100 = vperm.xlu0 %10995, %v1041_v15   ;;  %v1046_v11 = vld [vmem:[%s11246_s7 + $0x6c] sm:$0xf]  ;;  %v1045_v15 = vld [vmem:[%s11246_s7 + $0x64] sm:$0xff] }
 0x10f   : > { %v11542_v60 = vadd.f32 %v608_v39, %v11437_v17  ;;  %v11545_v63 = vadd.f32 %v607_v57, %v11440_v19 }
 0x110   : > { %v565_v0 = vpop.permute.xlu1 %564  ;;  %v560_v62 = vpop.permute.xlu0 %559 }
 0x111   : > { %v610_v23 = vmul.f32 %v11467_v61, %v565_v0  ;;  %v609_v56 = vmul.f32 %v11467_v61, %v560_v62  ;;  %1115 = vperm.xlu1 %10996, %v1044_v40   ;;  %1110 = vperm.xlu0 %10995, %v1043_v27   ;;  %v1048_v40 = vld [vmem:[%s11246_s7 + $0x7c] sm:$0xf]  ;;  %v1047_v27 = vld [vmem:[%s11246_s7 + $0x74] sm:$0xff] }
 0x113   : > { %v11552_v21 = vadd.f32 %v610_v23, %v11447_v43  ;;  %v11555_v17 = vadd.f32 %v609_v56, %v11450_v44 }
 0x114   : > { %v575_v19 = vpop.permute.xlu1 %574  ;;  %v570_v39 = vpop.permute.xlu0 %569 }
 0x115   : > { %v612_v57 = vmul.f32 %v11467_v61, %v575_v19  ;;  %v611_v0 = vmul.f32 %v11467_v61, %v570_v39  ;;  %1125 = vperm.xlu1 %10996, %v1046_v11   ;;  %1120 = vperm.xlu0 %10995, %v1045_v15   ;;  %v11572_v11 = vld [vmem:[%s14963_s1 + $0x2] ss:$0 sm:$0xff]  ;;  %v1049_v15 = vld [vmem:[%s11246_s7 + $0x84] sm:$0xff] }
 0x117   : > { %v11562_v62 = vadd.f32 %v612_v57, %v11457_v53  ;;  %v11565_v43 = vadd.f32 %v611_v0, %v11460_v54  ;;  %v1050_v53 = vld [vmem:[%s11246_s7 + $0x8c] sm:$0xf] }
 0x118   : > { %v585_v44 = vpop.permute.xlu1 %584  ;;  %v580_v23 = vpop.permute.xlu0 %579 }
 0x119   : > { %v614_v56 = vmul.f32 %v11467_v61, %v585_v44  ;;  %v613_v19 = vmul.f32 %v11467_v61, %v580_v23  ;;  %1135 = vperm.xlu1 %10996, %v1048_v40   ;;  %1130 = vperm.xlu0 %10995, %v1047_v27   ;;  %v1052_v40 = vld [vmem:[%s11246_s7 + $0x9c] sm:$0xf]  ;;  %v1051_v27 = vld [vmem:[%s11246_s7 + $0x94] sm:$0xff] }
 0x11b   : > { %v11577_v54 = vadd.f32 %v614_v56, %v11472_v3  ;;  %v11580_v39 = vadd.f32 %v613_v19, %v11475_v7  ;;  %v1054_v56 = vld [vmem:[%s11246_s7 + $0xac] sm:$0xf]  ;;  %v1053_v19 = vld [vmem:[%s11246_s7 + $0xa4] sm:$0xff] }
 0x11c   : > { %v672_v57 = vpop.permute.xlu1 %671  ;;  %v11582_v0 = vpop.permute.xlu0 %666 }
 0x11d   : > { %14991 = vst [vmem:[#allocation13_spill] sm:$0xff] %v11582_v0  ;;  %v789_v61 = vmul.f32 %v11572_v11, %v672_v57  ;;  %1145 = vperm.xlu1 %10996, %v1050_v53   ;;  %1140 = vperm.xlu0 %10995, %v1049_v15  }
 0x11f   : > { %v11588_v44 = vadd.f32 %v789_v61, %v11483_v25  ;;  %v1056_v25 = vld [vmem:[%s11246_s7 + $0xbc] sm:$0xf]  ;;  %v1055_v61 = vld [vmem:[%s11246_s7 + $0xb4] sm:$0xff] }
 0x120   : > { %v682_v3 = vpop.permute.xlu1 %681  ;;  %v11590_v23 = vpop.permute.xlu0 %676 }
 0x121   : > { %14992 = vst [vmem:[#allocation14_spill] sm:$0xff] %v11590_v23  ;;  %v791_v7 = vmul.f32 %v11572_v11, %v682_v3  ;;  %1155 = vperm.xlu1 %10996, %v1052_v40   ;;  %1150 = vperm.xlu0 %10995, %v1051_v27   ;;  %v9159_v40 = vld [vmem:[%s11246_s7 + $0x18] sm:$0xf] }
 0x123   : > { %v11596_v53 = vadd.f32 %v791_v7, %v11491_v47  ;;  %v9161_v7 = vld [vmem:[%s11246_s7 + $0x28] sm:$0xf] }
 0x124   : > { %v11598_v15 = vpop.permute.xlu1 %691  ;;  %v11600_v57 = vpop.permute.xlu0 %686 }
 0x125   : > { %14993 = vst [vmem:[#allocation15_spill] sm:$0xff] %v11598_v15  ;;  %14994 = vst [vmem:[#allocation16_spill] sm:$0xff] %v11600_v57  ;;  %1165 = vperm.xlu1 %10996, %v1054_v56   ;;  %1160 = vperm.xlu0 %10995, %v1053_v19  }
 0x128   : > { %v11604_v23 = vpop.permute.xlu1 %701  ;;  %v11606_v3 = vpop.permute.xlu0 %696 }
 0x129   : > { %14995 = vst [vmem:[#allocation17_spill] sm:$0xff] %v11604_v23  ;;  %14996 = vst [vmem:[#allocation18_spill] sm:$0xff] %v11606_v3  ;;  %1175 = vperm.xlu1 %10996, %v1056_v25   ;;  %1170 = vperm.xlu0 %10995, %v1055_v61   ;;  %v9163_v3 = vld [vmem:[%s11246_s7 + $0x38] sm:$0xf] }
 0x12c   : > { %v11609_v27 = vpop.permute.xlu1 %711  ;;  %v11611_v47 = vpop.permute.xlu0 %706 }
 0x12d   : > { %14997 = vst [vmem:[#allocation19_spill] sm:$0xff] %v11609_v27  ;;  %14998 = vst [vmem:[#allocation20_spill] sm:$0xff] %v11611_v47  ;;  %1264 = vperm.xlu1 %10996, %v9159_v40   ;;  %1259 = vperm.xlu0 %10995, %v11249_v1   ;;  %v9165_v1 = vld [vmem:[%s11246_s7 + $0x48] sm:$0xf] }
 0x130   : > { %v11615_v56 = vpop.permute.xlu1 %721  ;;  %v11617_v19 = vpop.permute.xlu0 %716 }
 0x131   : > { %14999 = vst [vmem:[#allocation21_spill] sm:$0xff] %v11615_v56  ;;  %15000 = vst [vmem:[#allocation22_spill] sm:$0xff] %v11617_v19  ;;  %1274 = vperm.xlu1 %10996, %v9161_v7   ;;  %1269 = vperm.xlu0 %10995, %v11257_v6  }
 0x134   : > { %v732_v25 = vpop.permute.xlu1 %731  ;;  %v727_v61 = vpop.permute.xlu0 %726 }
 0x135   : > { %v801_v27 = vmul.f32 %v11572_v11, %v732_v25  ;;  %v800_v23 = vmul.f32 %v11572_v11, %v727_v61  ;;  %1284 = vperm.xlu1 %10996, %v9163_v3   ;;  %1279 = vperm.xlu0 %10995, %v11262_v8   ;;  %v9167_v3 = vld [vmem:[%s11246_s7 + $0x58] sm:$0xf]  ;;  %v9169_v61 = vld [vmem:[%s11246_s7 + $0x68] sm:$0xf] }
 0x137   : > { %v11626_v40 = vadd.f32 %v801_v27, %v11522_v50  ;;  %v11629_v19 = vadd.f32 %v800_v23, %v11525_v26 }
 0x138   : > { %v742_v6 = vpop.permute.xlu1 %741  ;;  %v737_v7 = vpop.permute.xlu0 %736 }
 0x139   : > { %v803_v56 = vmul.f32 %v11572_v11, %v742_v6  ;;  %v802_v47 = vmul.f32 %v11572_v11, %v737_v7  ;;  %1294 = vperm.xlu1 %10996, %v9165_v1   ;;  %1289 = vperm.xlu0 %10995, %v11267_v10   ;;  %v9171_v6 = vld [vmem:[%s11246_s7 + $0x78] sm:$0xf] }
 0x13b   : > { %v11636_v8 = vadd.f32 %v803_v56, %v11532_v33  ;;  %v11639_v50 = vadd.f32 %v802_v47, %v11535_v55 }
 0x13c   : > { %v752_v26 = vpop.permute.xlu1 %751  ;;  %v747_v23 = vpop.permute.xlu0 %746 }
 0x13d   : > { %v805_v27 = vmul.f32 %v11572_v11, %v752_v26  ;;  %v804_v25 = vmul.f32 %v11572_v11, %v747_v23  ;;  %1304 = vperm.xlu1 %10996, %v9167_v3   ;;  %1299 = vperm.xlu0 %10995, %v11272_v12   ;;  %v9173_v23 = vld [vmem:[%s11246_s7 + $0x88] sm:$0xf] }
 0x13f   : > { %v11646_v10 = vadd.f32 %v805_v27, %v11542_v60  ;;  %v11649_v33 = vadd.f32 %v804_v25, %v11545_v63 }
 0x140   : > { %v762_v55 = vpop.permute.xlu1 %761  ;;  %v757_v47 = vpop.permute.xlu0 %756 }
 0x141   : > { %v807_v56 = vmul.f32 %v11572_v11, %v762_v55  ;;  %v806_v1 = vmul.f32 %v11572_v11, %v757_v47  ;;  %1314 = vperm.xlu1 %10996, %v9169_v61   ;;  %1309 = vperm.xlu0 %10995, %v11277_v14  }
 0x143   : > { %v11656_v12 = vadd.f32 %v807_v56, %v11552_v21  ;;  %v11659_v60 = vadd.f32 %v806_v1, %v11555_v17 }
 0x144   : > { %v772_v7 = vpop.permute.xlu1 %771  ;;  %v767_v63 = vpop.permute.xlu0 %766 }
 0x145   : > { %v809_v3 = vmul.f32 %v11572_v11, %v772_v7  ;;  %v808_v26 = vmul.f32 %v11572_v11, %v767_v63  ;;  %1324 = vperm.xlu1 %10996, %v9171_v6   ;;  %1319 = vperm.xlu0 %10995, %v11282_v16   ;;  %v11677_v16 = vld [vmem:[%s14963_s1 + $0x3] ss:$0 sm:$0xff]  ;;  %v9179_v7 = vld [vmem:[%s11246_s7 + $0xb8] sm:$0xf] }
 0x147   : > { %v11666_v14 = vadd.f32 %v809_v3, %v11562_v62  ;;  %v11669_v21 = vadd.f32 %v808_v26, %v11565_v43  ;;  %v9175_v62 = vld [vmem:[%s11246_s7 + $0x98] sm:$0xf]  ;;  %v9180_v26 = vld [vmem:[%s11246_s7 + $0xc0] sm:$0xff] }
 0x148   : > { %v782_v17 = vpop.permute.xlu1 %781  ;;  %v777_v27 = vpop.permute.xlu0 %776 }
 0x149   : > { %v811_v25 = vmul.f32 %v11572_v11, %v782_v17  ;;  %v810_v61 = vmul.f32 %v11572_v11, %v777_v27  ;;  %1334 = vperm.xlu1 %10996, %v9173_v23   ;;  %1329 = vperm.xlu0 %10995, %v11287_v18   ;;  %v9177_v18 = vld [vmem:[%s11246_s7 + $0xa8] sm:$0xf] }
 0x14b   : > { %v11681_v43 = vadd.f32 %v811_v25, %v11577_v54  ;;  %v11684_v55 = vadd.f32 %v810_v61, %v11580_v39  ;;  %v9187_v25 = vld [vmem:[%s11246_s7 + $0x29] sm:$0xf] }
 0x14c   : > { %v869_v47 = vpop.permute.xlu1 %868  ;;  %v11686_v56 = vpop.permute.xlu0 %863 }
 0x14d   : > { %15001 = vst [vmem:[#allocation23_spill] sm:$0xff] %v11686_v56  ;;  %v986_v11 = vmul.f32 %v11677_v16, %v869_v47  ;;  %1344 = vperm.xlu1 %10996, %v9175_v62   ;;  %1339 = vperm.xlu0 %10995, %v11292_v20   ;;  %v9189_v62 = vld [vmem:[%s11246_s7 + $0x39] sm:$0xf] }
 0x14e   : > { %v13066_v56 = vld [vmem:[%s11246_s7 + $0x93] sm:$0xff] }
 0x14f   : > { %v11692_v1 = vadd.f32 %v986_v11, %v11588_v44  ;;  %v9181_v44 = vld [vmem:[%s11246_s7 + $0xc8] sm:$0xf] }
 0x150   : > { %v879_v6 = vpop.permute.xlu1 %878  ;;  %v11694_v54 = vpop.permute.xlu0 %873 }
 0x151   : > { %15002 = vst [vmem:[#allocation24_spill] sm:$0xff] %v11694_v54  ;;  %v988_v39 = vmul.f32 %v11677_v16, %v879_v6  ;;  %1354 = vperm.xlu1 %10996, %v9177_v18   ;;  %1349 = vperm.xlu0 %10995, %v11297_v22   ;;  %v9185_v22 = vld [vmem:[%s11246_s7 + $0x19] sm:$0xf]  ;;  %v13053_v54 = vld [vmem:[%s11246_s7 + $0x83] sm:$0xff] }
 0x153   : > { %v11700_v63 = vadd.f32 %v988_v39, %v11596_v53 }
 0x154   : > { %v11702_v3 = vpop.permute.xlu1 %888  ;;  %v11704_v20 = vpop.permute.xlu0 %883 }
 0x155   : > { %15003 = vst [vmem:[#allocation25_spill] sm:$0xff] %v11702_v3  ;;  %15004 = vst [vmem:[#allocation26_spill] sm:$0xff] %v11704_v20  ;;  %1364 = vperm.xlu1 %10996, %v9179_v7   ;;  %1359 = vperm.xlu0 %10995, %v11302_v24   ;;  %v13040_v3 = vld [vmem:[%s11246_s7 + $0x73] sm:$0xff] }
 0x158   : > { %v11709_v23 = vpop.permute.xlu1 %898  ;;  %v11711_v17 = vpop.permute.xlu0 %893 }
 0x159   : > { %15005 = vst [vmem:[#allocation27_spill] sm:$0xff] %v11709_v23  ;;  %15006 = vst [vmem:[#allocation28_spill] sm:$0xff] %v11711_v17  ;;  %1374 = vperm.xlu1 %10996, %v9181_v44   ;;  %1369 = vperm.xlu0 %10995, %v9180_v26  }
 0x15c   : > { %v11714_v53 = vpop.permute.xlu1 %908  ;;  %v11716_v27 = vpop.permute.xlu0 %903 }
 0x15d   : > { %15007 = vst [vmem:[#allocation29_spill] sm:$0xff] %v11714_v53  ;;  %15008 = vst [vmem:[#allocation30_spill] sm:$0xff] %v11716_v27  ;;  %1461 = vperm.xlu1 %10996, %v9185_v22   ;;  %1456 = vperm.xlu0 %10995, %v11309_v28   ;;  %v9191_v28 = vld [vmem:[%s11246_s7 + $0x49] sm:$0xf]  ;;  %v12943_v53 = vld [vmem:[%s11246_s7 + $0x92] sm:$0xff] }
 0x15e   : > { %v12930_v27 = vld [vmem:[%s11246_s7 + $0x82] sm:$0xff] }
 0x160   : > { %v11720_v24 = vpop.permute.xlu1 %918  ;;  %v11722_v61 = vpop.permute.xlu0 %913 }
 0x161   : > { %15009 = vst [vmem:[#allocation31_spill] sm:$0xff] %v11720_v24  ;;  %15010 = vst [vmem:[#allocation32_spill] sm:$0xff] %v11722_v61  ;;  %1471 = vperm.xlu1 %10996, %v9187_v25   ;;  %1466 = vperm.xlu0 %10995, %v11314_v30   ;;  %v9193_v25 = vld [vmem:[%s11246_s7 + $0x59] sm:$0xf] }
 0x162   : > { %v12917_v24 = vld [vmem:[%s11246_s7 + $0x72] sm:$0xff] }
 0x164   : > { %v929_v47 = vpop.permute.xlu1 %928  ;;  %v924_v11 = vpop.permute.xlu0 %923 }
 0x165   : > { %v998_v18 = vmul.f32 %v11677_v16, %v929_v47  ;;  %v997_v6 = vmul.f32 %v11677_v16, %v924_v11  ;;  %1481 = vperm.xlu1 %10996, %v9189_v62   ;;  %1476 = vperm.xlu0 %10995, %v11319_v32  }
 0x167   : > { %v11731_v39 = vadd.f32 %v998_v18, %v11626_v40  ;;  %v11734_v7 = vadd.f32 %v997_v6, %v11629_v19  ;;  %v9195_v18 = vld [vmem:[%s11246_s7 + $0x69] sm:$0xf] }
 0x168   : > { %v939_v30 = vpop.permute.xlu1 %938  ;;  %v934_v44 = vpop.permute.xlu0 %933 }
 0x169   : > { %v1000_v26 = vmul.f32 %v11677_v16, %v939_v30  ;;  %v999_v22 = vmul.f32 %v11677_v16, %v934_v44  ;;  %1491 = vperm.xlu1 %10996, %v9191_v28   ;;  %1486 = vperm.xlu0 %10995, %v11324_v34   ;;  %v9194_v34 = vld [vmem:[%s11246_s7 + $0x61] sm:$0xff] }
 0x16b   : > { %v11741_v32 = vadd.f32 %v1000_v26, %v11636_v8  ;;  %v11744_v40 = vadd.f32 %v999_v22, %v11639_v50  ;;  %v9197_v26 = vld [vmem:[%s11246_s7 + $0x79] sm:$0xf] }
 0x16c   : > { %v949_v19 = vpop.permute.xlu1 %948  ;;  %v944_v62 = vpop.permute.xlu0 %943 }
 0x16d   : > { %v1002_v47 = vmul.f32 %v11677_v16, %v949_v19  ;;  %v1001_v11 = vmul.f32 %v11677_v16, %v944_v62  ;;  %1501 = vperm.xlu1 %10996, %v9193_v25   ;;  %1496 = vperm.xlu0 %10995, %v11329_v36   ;;  %v9196_v36 = vld [vmem:[%s11246_s7 + $0x71] sm:$0xff] }
 0x16f   : > { %v11752_v6 = vadd.f32 %v1002_v47, %v11646_v10  ;;  %v11755_v8 = vadd.f32 %v1001_v11, %v11649_v33  ;;  %v9199_v47 = vld [vmem:[%s11246_s7 + $0x89] sm:$0xf]  ;;  %v9198_v11 = vld [vmem:[%s11246_s7 + $0x81] sm:$0xff] }
 0x170   : > { %v959_v50 = vpop.permute.xlu1 %958  ;;  %v954_v28 = vpop.permute.xlu0 %953 }
 0x171   : > { %v1004_v30 = vmul.f32 %v11677_v16, %v959_v50  ;;  %v1003_v44 = vmul.f32 %v11677_v16, %v954_v28  ;;  %1511 = vperm.xlu1 %10996, %v9195_v18   ;;  %1506 = vperm.xlu0 %10995, %v9194_v34  }
 0x173   : > { %v11762_v22 = vadd.f32 %v1004_v30, %v11656_v12  ;;  %v11765_v10 = vadd.f32 %v1003_v44, %v11659_v60  ;;  %v11782_v30 = vld [vmem:[%s14963_s1 + $0x4] ss:$0 sm:$0xff]  ;;  %v9200_v44 = vld [vmem:[%s11246_s7 + $0x91] sm:$0xff] }
 0x174   : > { %v969_v33 = vpop.permute.xlu1 %968  ;;  %v964_v25 = vpop.permute.xlu0 %963 }
 0x175   : > { %v1006_v19 = vmul.f32 %v11677_v16, %v969_v33  ;;  %v1005_v62 = vmul.f32 %v11677_v16, %v964_v25  ;;  %1521 = vperm.xlu1 %10996, %v9197_v26   ;;  %1516 = vperm.xlu0 %10995, %v9196_v36   ;;  %v9203_v25 = vld [vmem:[%s11246_s7 + $0xa9] sm:$0xf] }
 0x177   : > { %v11772_v18 = vadd.f32 %v1006_v19, %v11666_v14  ;;  %v11775_v12 = vadd.f32 %v1005_v62, %v11669_v21  ;;  %v9201_v14 = vld [vmem:[%s11246_s7 + $0x99] sm:$0xf]  ;;  %v9202_v19 = vld [vmem:[%s11246_s7 + $0xa1] sm:$0xff] }
 0x178   : > { %v979_v60 = vpop.permute.xlu1 %978  ;;  %v974_v34 = vpop.permute.xlu0 %973 }
 0x179   : > { %v1008_v50 = vmul.f32 %v11677_v16, %v979_v60  ;;  %v1007_v28 = vmul.f32 %v11677_v16, %v974_v34  ;;  %1531 = vperm.xlu1 %10996, %v9199_v47   ;;  %1526 = vperm.xlu0 %10995, %v9198_v11   ;;  %v9205_v11 = vld [vmem:[%s11246_s7 + $0xb9] sm:$0xf]  ;;  %v9204_v60 = vld [vmem:[%s11246_s7 + $0xb1] sm:$0xff] }
 0x17b   : > { %v11787_v21 = vadd.f32 %v1008_v50, %v11681_v43  ;;  %v11790_v26 = vadd.f32 %v1007_v28, %v11684_v55 }
 0x17c   : > { %v1066_v36 = vpop.permute.xlu1 %1065  ;;  %v11792_v33 = vpop.permute.xlu0 %1060 }
 0x17d   : > { %15011 = vst [vmem:[#allocation33_spill] sm:$0xff] %v11792_v33  ;;  %v1183_v16 = vmul.f32 %v11782_v30, %v1066_v36  ;;  %1541 = vperm.xlu1 %10996, %v9201_v14   ;;  %1536 = vperm.xlu0 %10995, %v9200_v44   ;;  %v9206_v14 = vld [vmem:[%s11246_s7 + $0xc1] sm:$0xff] }
 0x17f   : > { %v11798_v62 = vadd.f32 %v1183_v16, %v11692_v1  ;;  %v9207_v1 = vld [vmem:[%s11246_s7 + $0xc9] sm:$0xf]  ;;  %v9210_v16 = vld [vmem:[%s11246_s7 + $0x12] sm:$0xff] }
 0x180   : > { %v1076_v43 = vpop.permute.xlu1 %1075  ;;  %v11800_v47 = vpop.permute.xlu0 %1070 }
 0x181   : > { %15012 = vst [vmem:[#allocation34_spill] sm:$0xff] %v11800_v47  ;;  %v1185_v55 = vmul.f32 %v11782_v30, %v1076_v43  ;;  %1551 = vperm.xlu1 %10996, %v9203_v25   ;;  %1546 = vperm.xlu0 %10995, %v9202_v19   ;;  %v9213_v43 = vld [vmem:[%s11246_s7 + $0x2a] sm:$0xf]  ;;  %v9454_v47 = vld [vmem:[%s11246_s7 + $0x81] sm:$0xff] }
 0x183   : > { %v11806_v34 = vadd.f32 %v1185_v55, %v11700_v63  ;;  %v9211_v63 = vld [vmem:[%s11246_s7 + $0x1a] sm:$0xf]  ;;  %v9212_v55 = vld [vmem:[%s11246_s7 + $0x22] sm:$0xff] }
 0x184   : > { %v11808_v50 = vpop.permute.xlu1 %1085  ;;  %v11810_v28 = vpop.permute.xlu0 %1080 }
 0x185   : > { %15013 = vst [vmem:[#allocation35_spill] sm:$0xff] %v11808_v50  ;;  %15014 = vst [vmem:[#allocation36_spill] sm:$0xff] %v11810_v28  ;;  %1561 = vperm.xlu1 %10996, %v9205_v11   ;;  %1556 = vperm.xlu0 %10995, %v9204_v60   ;;  %v12800_v50 = vld [vmem:[%s11246_s7 + $0x71] sm:$0xff] }
 0x188   : > { %v11814_v44 = vpop.permute.xlu1 %1095  ;;  %v11816_v36 = vpop.permute.xlu0 %1090 }
 0x189   : > { %15015 = vst [vmem:[#allocation37_spill] sm:$0xff] %v11814_v44  ;;  %15016 = vst [vmem:[#allocation38_spill] sm:$0xff] %v11816_v36  ;;  %1571 = vperm.xlu1 %10996, %v9207_v1   ;;  %1566 = vperm.xlu0 %10995, %v9206_v14   ;;  %v9215_v1 = vld [vmem:[%s11246_s7 + $0x3a] sm:$0xf]  ;;  %v9214_v14 = vld [vmem:[%s11246_s7 + $0x32] sm:$0xff] }
 0x18c   : > { %v11820_v25 = vpop.permute.xlu1 %1105  ;;  %v11822_v19 = vpop.permute.xlu0 %1100 }
 0x18d   : > { %15017 = vst [vmem:[#allocation39_spill] sm:$0xff] %v11820_v25  ;;  %15018 = vst [vmem:[#allocation40_spill] sm:$0xff] %v11822_v19  ;;  %1658 = vperm.xlu1 %10996, %v9211_v63   ;;  %1653 = vperm.xlu0 %10995, %v9210_v16   ;;  %v9217_v16 = vld [vmem:[%s11246_s7 + $0x4a] sm:$0xf]  ;;  %v9216_v25 = vld [vmem:[%s11246_s7 + $0x42] sm:$0xff] }
 0x190   : > { %v11826_v11 = vpop.permute.xlu1 %1115  ;;  %v11828_v60 = vpop.permute.xlu0 %1110 }
 0x191   : > { %15019 = vst [vmem:[#allocation41_spill] sm:$0xff] %v11826_v11  ;;  %15020 = vst [vmem:[#allocation42_spill] sm:$0xff] %v11828_v60  ;;  %1668 = vperm.xlu1 %10996, %v9213_v43   ;;  %1663 = vperm.xlu0 %10995, %v9212_v55  }
 0x194   : > { %v1126_v36 = vpop.permute.xlu1 %1125  ;;  %v1121_v44 = vpop.permute.xlu0 %1120 }
 0x195   : > { %v1195_v19 = vmul.f32 %v11782_v30, %v1126_v36  ;;  %v1194_v63 = vmul.f32 %v11782_v30, %v1121_v44  ;;  %1678 = vperm.xlu1 %10996, %v9215_v1   ;;  %1673 = vperm.xlu0 %10995, %v9214_v14   ;;  %v9219_v44 = vld [vmem:[%s11246_s7 + $0x5a] sm:$0xf]  ;;  %v9218_v1 = vld [vmem:[%s11246_s7 + $0x52] sm:$0xff] }
 0x197   : > { %v11837_v11 = vadd.f32 %v1195_v19, %v11731_v39  ;;  %v11840_v43 = vadd.f32 %v1194_v63, %v11734_v7 }
 0x198   : > { %v1136_v55 = vpop.permute.xlu1 %1135  ;;  %v1131_v60 = vpop.permute.xlu0 %1130 }
 0x199   : > { %v1197_v28 = vmul.f32 %v11782_v30, %v1136_v55  ;;  %v1196_v36 = vmul.f32 %v11782_v30, %v1131_v60  ;;  %1688 = vperm.xlu1 %10996, %v9217_v16   ;;  %1683 = vperm.xlu0 %10995, %v9216_v25   ;;  %v9221_v60 = vld [vmem:[%s11246_s7 + $0x6a] sm:$0xf]  ;;  %v9220_v25 = vld [vmem:[%s11246_s7 + $0x62] sm:$0xff] }
 0x19b   : > { %v11847_v14 = vadd.f32 %v1197_v28, %v11741_v32  ;;  %v11850_v39 = vadd.f32 %v1196_v36, %v11744_v40 }
 0x19c   : > { %v1146_v7 = vpop.permute.xlu1 %1145  ;;  %v1141_v19 = vpop.permute.xlu0 %1140 }
 0x19d   : > { %v1199_v63 = vmul.f32 %v11782_v30, %v1146_v7  ;;  %v1198_v55 = vmul.f32 %v11782_v30, %v1141_v19  ;;  %1698 = vperm.xlu1 %10996, %v9219_v44   ;;  %1693 = vperm.xlu0 %10995, %v9218_v1   ;;  %v9223_v44 = vld [vmem:[%s11246_s7 + $0x7a] sm:$0xf]  ;;  %v9222_v1 = vld [vmem:[%s11246_s7 + $0x72] sm:$0xff] }
 0x19f   : > { %v11857_v16 = vadd.f32 %v1199_v63, %v11752_v6  ;;  %v11860_v32 = vadd.f32 %v1198_v55, %v11755_v8 }
 0x1a0   : > { %v1156_v40 = vpop.permute.xlu1 %1155  ;;  %v1151_v28 = vpop.permute.xlu0 %1150 }
 0x1a1   : > { %v1201_v36 = vmul.f32 %v11782_v30, %v1156_v40  ;;  %v1200_v7 = vmul.f32 %v11782_v30, %v1151_v28  ;;  %1708 = vperm.xlu1 %10996, %v9221_v60   ;;  %1703 = vperm.xlu0 %10995, %v9220_v25   ;;  %v9225_v60 = vld [vmem:[%s11246_s7 + $0x8a] sm:$0xf]  ;;  %v9224_v25 = vld [vmem:[%s11246_s7 + $0x82] sm:$0xff] }
 0x1a3   : > { %v11867_v19 = vadd.f32 %v1201_v36, %v11762_v22  ;;  %v11870_v6 = vadd.f32 %v1200_v7, %v11765_v10 }
 0x1a4   : > { %v1166_v8 = vpop.permute.xlu1 %1165  ;;  %v1161_v63 = vpop.permute.xlu0 %1160 }
 0x1a5   : > { %v1203_v55 = vmul.f32 %v11782_v30, %v1166_v8  ;;  %v1202_v40 = vmul.f32 %v11782_v30, %v1161_v63  ;;  %1718 = vperm.xlu1 %10996, %v9223_v44   ;;  %1713 = vperm.xlu0 %10995, %v9222_v1   ;;  %v11887_v44 = vld [vmem:[%s14963_s1 + $0x8] ss:$0 sm:$0xff]  ;;  %v9226_v1 = vld [vmem:[%s11246_s7 + $0x92] sm:$0xff] }
 0x1a7   : > { %v11877_v28 = vadd.f32 %v1203_v55, %v11772_v18  ;;  %v11880_v22 = vadd.f32 %v1202_v40, %v11775_v12  ;;  %v9227_v18 = vld [vmem:[%s11246_s7 + $0x9a] sm:$0xf] }
 0x1a8   : > { %v1176_v10 = vpop.permute.xlu1 %1175  ;;  %v1171_v36 = vpop.permute.xlu0 %1170 }
 0x1a9   : > { %v1205_v7 = vmul.f32 %v11782_v30, %v1176_v10  ;;  %v1204_v8 = vmul.f32 %v11782_v30, %v1171_v36  ;;  %1728 = vperm.xlu1 %10996, %v9225_v60   ;;  %1723 = vperm.xlu0 %10995, %v9224_v25   ;;  %v9229_v60 = vld [vmem:[%s11246_s7 + $0xaa] sm:$0xf]  ;;  %v9228_v25 = vld [vmem:[%s11246_s7 + $0xa2] sm:$0xff] }
 0x1ab   : > { %v11892_v12 = vadd.f32 %v1205_v7, %v11787_v21  ;;  %v11895_v63 = vadd.f32 %v1204_v8, %v11790_v26  ;;  %v9231_v7 = vld [vmem:[%s11246_s7 + $0xba] sm:$0xf]  ;;  %v9230_v8 = vld [vmem:[%s11246_s7 + $0xb2] sm:$0xff] }
 0x1ac   : > { %v1265_v55 = vpop.permute.xlu1 %1264  ;;  %v11897_v40 = vpop.permute.xlu0 %1259 }
 0x1ad   : > { %15021 = vst [vmem:[#allocation43_spill] sm:$0xff] %v11897_v40  ;;  %v1382_v30 = vmul.f32 %v11887_v44, %v1265_v55  ;;  %1738 = vperm.xlu1 %10996, %v9227_v18   ;;  %1733 = vperm.xlu0 %10995, %v9226_v1  }
 0x1af   : > { %v11903_v10 = vadd.f32 %v1382_v30, %v11798_v62  ;;  %v9233_v62 = vld [vmem:[%s11246_s7 + $0xca] sm:$0xf]  ;;  %v9232_v30 = vld [vmem:[%s11246_s7 + $0xc2] sm:$0xff] }
 0x1b0   : > { %v1275_v21 = vpop.permute.xlu1 %1274  ;;  %v11905_v36 = vpop.permute.xlu0 %1269 }
 0x1b1   : > { %15022 = vst [vmem:[#allocation44_spill] sm:$0xff] %v11905_v36  ;;  %v1384_v26 = vmul.f32 %v11887_v44, %v1275_v21  ;;  %1748 = vperm.xlu1 %10996, %v9229_v60   ;;  %1743 = vperm.xlu0 %10995, %v9228_v25   ;;  %v9236_v25 = vld [vmem:[%s11246_s7 + $0x13] sm:$0xff] }
 0x1b3   : > { %v11911_v18 = vadd.f32 %v1384_v26, %v11806_v34  ;;  %v9237_v34 = vld [vmem:[%s11246_s7 + $0x1b] sm:$0xf] }
 0x1b4   : > { %v11913_v1 = vpop.permute.xlu1 %1284  ;;  %v11915_v55 = vpop.permute.xlu0 %1279 }
 0x1b5   : > { %15023 = vst [vmem:[#allocation45_spill] sm:$0xff] %v11913_v1  ;;  %15024 = vst [vmem:[#allocation46_spill] sm:$0xff] %v11915_v55  ;;  %1758 = vperm.xlu1 %10996, %v9231_v7   ;;  %1753 = vperm.xlu0 %10995, %v9230_v8   ;;  %v9239_v7 = vld [vmem:[%s11246_s7 + $0x2b] sm:$0xf]  ;;  %v9238_v8 = vld [vmem:[%s11246_s7 + $0x23] sm:$0xff] }
 0x1b8   : > { %v11919_v21 = vpop.permute.xlu1 %1294  ;;  %v11921_v60 = vpop.permute.xlu0 %1289 }
 0x1b9   : > { %15025 = vst [vmem:[#allocation47_spill] sm:$0xff] %v11919_v21  ;;  %15026 = vst [vmem:[#allocation48_spill] sm:$0xff] %v11921_v60  ;;  %1768 = vperm.xlu1 %10996, %v9233_v62   ;;  %1763 = vperm.xlu0 %10995, %v9232_v30   ;;  %v9241_v62 = vld [vmem:[%s11246_s7 + $0x3b] sm:$0xf]  ;;  %v9240_v30 = vld [vmem:[%s11246_s7 + $0x33] sm:$0xff] }
 0x1bc   : > { %v11925_v26 = vpop.permute.xlu1 %1304  ;;  %v11927_v1 = vpop.permute.xlu0 %1299 }
 0x1bd   : > { %15027 = vst [vmem:[#allocation49_spill] sm:$0xff] %v11925_v26  ;;  %15028 = vst [vmem:[#allocation50_spill] sm:$0xff] %v11927_v1  ;;  %1855 = vperm.xlu1 %10996, %v9237_v34   ;;  %1850 = vperm.xlu0 %10995, %v9236_v25   ;;  %v9243_v25 = vld [vmem:[%s11246_s7 + $0x4b] sm:$0xf]  ;;  %v9242_v26 = vld [vmem:[%s11246_s7 + $0x43] sm:$0xff] }
 0x1c0   : > { %v11931_v55 = vpop.permute.xlu1 %1314  ;;  %v11933_v21 = vpop.permute.xlu0 %1309 }
 0x1c1   : > { %15029 = vst [vmem:[#allocation51_spill] sm:$0xff] %v11931_v55  ;;  %15030 = vst [vmem:[#allocation52_spill] sm:$0xff] %v11933_v21  ;;  %1865 = vperm.xlu1 %10996, %v9239_v7   ;;  %1860 = vperm.xlu0 %10995, %v9238_v8  }
 0x1c4   : > { %v1325_v60 = vpop.permute.xlu1 %1324  ;;  %v1320_v36 = vpop.permute.xlu0 %1319 }
 0x1c5   : > { %v1394_v1 = vmul.f32 %v11887_v44, %v1325_v60  ;;  %v1393_v34 = vmul.f32 %v11887_v44, %v1320_v36  ;;  %1875 = vperm.xlu1 %10996, %v9241_v62   ;;  %1870 = vperm.xlu0 %10995, %v9240_v30   ;;  %v9245_v36 = vld [vmem:[%s11246_s7 + $0x5b] sm:$0xf]  ;;  %v9244_v62 = vld [vmem:[%s11246_s7 + $0x53] sm:$0xff] }
 0x1c7   : > { %v11942_v55 = vadd.f32 %v1394_v1, %v11837_v11  ;;  %v11945_v7 = vadd.f32 %v1393_v34, %v11840_v43 }
 0x1c8   : > { %v1335_v8 = vpop.permute.xlu1 %1334  ;;  %v1330_v21 = vpop.permute.xlu0 %1329 }
 0x1c9   : > { %v1396_v40 = vmul.f32 %v11887_v44, %v1335_v8  ;;  %v1395_v60 = vmul.f32 %v11887_v44, %v1330_v21  ;;  %1885 = vperm.xlu1 %10996, %v9243_v25   ;;  %1880 = vperm.xlu0 %10995, %v9242_v26   ;;  %v9247_v21 = vld [vmem:[%s11246_s7 + $0x6b] sm:$0xf]  ;;  %v9246_v26 = vld [vmem:[%s11246_s7 + $0x63] sm:$0xff] }
 0x1cb   : > { %v11952_v30 = vadd.f32 %v1396_v40, %v11847_v14  ;;  %v11955_v11 = vadd.f32 %v1395_v60, %v11850_v39 }
 0x1cc   : > { %v1345_v43 = vpop.permute.xlu1 %1344  ;;  %v1340_v1 = vpop.permute.xlu0 %1339 }
 0x1cd   : > { %v1398_v34 = vmul.f32 %v11887_v44, %v1345_v43  ;;  %v1397_v8 = vmul.f32 %v11887_v44, %v1340_v1  ;;  %1895 = vperm.xlu1 %10996, %v9245_v36   ;;  %1890 = vperm.xlu0 %10995, %v9244_v62   ;;  %v9249_v36 = vld [vmem:[%s11246_s7 + $0x7b] sm:$0xf]  ;;  %v9248_v62 = vld [vmem:[%s11246_s7 + $0x73] sm:$0xff] }
 0x1cf   : > { %v11962_v25 = vadd.f32 %v1398_v34, %v11857_v16  ;;  %v11965_v14 = vadd.f32 %v1397_v8, %v11860_v32 }
 0x1d0   : > { %v1355_v39 = vpop.permute.xlu1 %1354  ;;  %v1350_v40 = vpop.permute.xlu0 %1349 }
 0x1d1   : > { %v1400_v60 = vmul.f32 %v11887_v44, %v1355_v39  ;;  %v1399_v43 = vmul.f32 %v11887_v44, %v1350_v40  ;;  %1905 = vperm.xlu1 %10996, %v9247_v21   ;;  %1900 = vperm.xlu0 %10995, %v9246_v26   ;;  %v9251_v21 = vld [vmem:[%s11246_s7 + $0x8b] sm:$0xf]  ;;  %v9250_v26 = vld [vmem:[%s11246_s7 + $0x83] sm:$0xff] }
 0x1d3   : > { %v11972_v1 = vadd.f32 %v1400_v60, %v11867_v19  ;;  %v11975_v16 = vadd.f32 %v1399_v43, %v11870_v6 }
 0x1d4   : > { %v1365_v32 = vpop.permute.xlu1 %1364  ;;  %v1360_v34 = vpop.permute.xlu0 %1359 }
 0x1d5   : > { %v1402_v8 = vmul.f32 %v11887_v44, %v1365_v32  ;;  %v1401_v39 = vmul.f32 %v11887_v44, %v1360_v34  ;;  %1915 = vperm.xlu1 %10996, %v9249_v36   ;;  %1910 = vperm.xlu0 %10995, %v9248_v62   ;;  %v11992_v36 = vld [vmem:[%s14963_s1 + $0x9] ss:$0 sm:$0xff]  ;;  %v9252_v62 = vld [vmem:[%s11246_s7 + $0x93] sm:$0xff] }
 0x1d7   : > { %v11982_v40 = vadd.f32 %v1402_v8, %v11877_v28  ;;  %v11985_v19 = vadd.f32 %v1401_v39, %v11880_v22  ;;  %v9253_v28 = vld [vmem:[%s11246_s7 + $0x9b] sm:$0xf] }
 0x1d8   : > { %v1375_v6 = vpop.permute.xlu1 %1374  ;;  %v1370_v60 = vpop.permute.xlu0 %1369 }
 0x1d9   : > { %v1404_v43 = vmul.f32 %v11887_v44, %v1375_v6  ;;  %v1403_v32 = vmul.f32 %v11887_v44, %v1370_v60  ;;  %1925 = vperm.xlu1 %10996, %v9251_v21   ;;  %1920 = vperm.xlu0 %10995, %v9250_v26   ;;  %v9255_v21 = vld [vmem:[%s11246_s7 + $0xab] sm:$0xf]  ;;  %v9254_v26 = vld [vmem:[%s11246_s7 + $0xa3] sm:$0xff] }
 0x1db   : > { %v11997_v22 = vadd.f32 %v1404_v43, %v11892_v12  ;;  %v12000_v34 = vadd.f32 %v1403_v32, %v11895_v63  ;;  %v9257_v43 = vld [vmem:[%s11246_s7 + $0xbb] sm:$0xf]  ;;  %v9256_v32 = vld [vmem:[%s11246_s7 + $0xb3] sm:$0xff] }
 0x1dc   : > { %v1462_v8 = vpop.permute.xlu1 %1461  ;;  %v12002_v39 = vpop.permute.xlu0 %1456 }
 0x1dd   : > { %15031 = vst [vmem:[#allocation53_spill] sm:$0xff] %v12002_v39  ;;  %v1579_v44 = vmul.f32 %v11992_v36, %v1462_v8  ;;  %1935 = vperm.xlu1 %10996, %v9253_v28   ;;  %1930 = vperm.xlu0 %10995, %v9252_v62  }
 0x1df   : > { %v12008_v6 = vadd.f32 %v1579_v44, %v11903_v10  ;;  %v9259_v10 = vld [vmem:[%s11246_s7 + $0xcb] sm:$0xf]  ;;  %v9258_v44 = vld [vmem:[%s11246_s7 + $0xc3] sm:$0xff] }
 0x1e0   : > { %v1472_v12 = vpop.permute.xlu1 %1471  ;;  %v12010_v60 = vpop.permute.xlu0 %1466 }
 0x1e1   : > { %15032 = vst [vmem:[#allocation54_spill] sm:$0xff] %v12010_v60  ;;  %v1581_v63 = vmul.f32 %v11992_v36, %v1472_v12  ;;  %1945 = vperm.xlu1 %10996, %v9255_v21   ;;  %1940 = vperm.xlu0 %10995, %v9254_v26   ;;  %v9262_v26 = vld [vmem:[%s11246_s7 + $0x14] sm:$0xff] }
 0x1e3   : > { %v12016_v28 = vadd.f32 %v1581_v63, %v11911_v18  ;;  %v9263_v18 = vld [vmem:[%s11246_s7 + $0x1c] sm:$0xf] }
 0x1e4   : > { %v12018_v62 = vpop.permute.xlu1 %1481  ;;  %v12020_v8 = vpop.permute.xlu0 %1476 }
 0x1e5   : > { %15033 = vst [vmem:[#allocation55_spill] sm:$0xff] %v12018_v62  ;;  %15034 = vst [vmem:[#allocation56_spill] sm:$0xff] %v12020_v8  ;;  %1955 = vperm.xlu1 %10996, %v9257_v43   ;;  %1950 = vperm.xlu0 %10995, %v9256_v32   ;;  %v9265_v43 = vld [vmem:[%s11246_s7 + $0x2c] sm:$0xf]  ;;  %v9264_v32 = vld [vmem:[%s11246_s7 + $0x24] sm:$0xff] }
 0x1e8   : > { %v12024_v12 = vpop.permute.xlu1 %1491  ;;  %v12026_v21 = vpop.permute.xlu0 %1486 }
 0x1e9   : > { %15035 = vst [vmem:[#allocation57_spill] sm:$0xff] %v12024_v12  ;;  %15036 = vst [vmem:[#allocation58_spill] sm:$0xff] %v12026_v21  ;;  %1965 = vperm.xlu1 %10996, %v9259_v10   ;;  %1960 = vperm.xlu0 %10995, %v9258_v44   ;;  %v9267_v10 = vld [vmem:[%s11246_s7 + $0x3c] sm:$0xf]  ;;  %v9266_v44 = vld [vmem:[%s11246_s7 + $0x34] sm:$0xff] }
 0x1ec   : > { %v12030_v63 = vpop.permute.xlu1 %1501  ;;  %v12032_v62 = vpop.permute.xlu0 %1496 }
 0x1ed   : > { %15037 = vst [vmem:[#allocation59_spill] sm:$0xff] %v12030_v63  ;;  %15038 = vst [vmem:[#allocation60_spill] sm:$0xff] %v12032_v62  ;;  %2052 = vperm.xlu1 %10996, %v9263_v18   ;;  %2047 = vperm.xlu0 %10995, %v9262_v26   ;;  %v9269_v26 = vld [vmem:[%s11246_s7 + $0x4c] sm:$0xf]  ;;  %v9268_v63 = vld [vmem:[%s11246_s7 + $0x44] sm:$0xff] }
 0x1f0   : > { %v12036_v8 = vpop.permute.xlu1 %1511  ;;  %v12038_v12 = vpop.permute.xlu0 %1506 }
 0x1f1   : > { %15039 = vst [vmem:[#allocation61_spill] sm:$0xff] %v12036_v8  ;;  %15040 = vst [vmem:[#allocation62_spill] sm:$0xff] %v12038_v12  ;;  %2062 = vperm.xlu1 %10996, %v9265_v43   ;;  %2057 = vperm.xlu0 %10995, %v9264_v32  }
 0x1f4   : > { %v1522_v21 = vpop.permute.xlu1 %1521  ;;  %v1517_v60 = vpop.permute.xlu0 %1516 }
 0x1f5   : > { %v1591_v62 = vmul.f32 %v11992_v36, %v1522_v21  ;;  %v1590_v18 = vmul.f32 %v11992_v36, %v1517_v60  ;;  %2072 = vperm.xlu1 %10996, %v9267_v10   ;;  %2067 = vperm.xlu0 %10995, %v9266_v44   ;;  %v9271_v60 = vld [vmem:[%s11246_s7 + $0x5c] sm:$0xf]  ;;  %v9270_v10 = vld [vmem:[%s11246_s7 + $0x54] sm:$0xff] }
 0x1f7   : > { %v12047_v8 = vadd.f32 %v1591_v62, %v11942_v55  ;;  %v12050_v43 = vadd.f32 %v1590_v18, %v11945_v7 }
 0x1f8   : > { %v1532_v32 = vpop.permute.xlu1 %1531  ;;  %v1527_v12 = vpop.permute.xlu0 %1526 }
 0x1f9   : > { %v1593_v39 = vmul.f32 %v11992_v36, %v1532_v32  ;;  %v1592_v21 = vmul.f32 %v11992_v36, %v1527_v12  ;;  %2082 = vperm.xlu1 %10996, %v9269_v26   ;;  %2077 = vperm.xlu0 %10995, %v9268_v63   ;;  %v9273_v12 = vld [vmem:[%s11246_s7 + $0x6c] sm:$0xf]  ;;  %v9272_v63 = vld [vmem:[%s11246_s7 + $0x64] sm:$0xff] }
 0x1fb   : > { %v12057_v44 = vadd.f32 %v1593_v39, %v11952_v30  ;;  %v12060_v55 = vadd.f32 %v1592_v21, %v11955_v11 }
 0x1fc   : > { %v1542_v7 = vpop.permute.xlu1 %1541  ;;  %v1537_v62 = vpop.permute.xlu0 %1536 }
 0x1fd   : > { %v1595_v18 = vmul.f32 %v11992_v36, %v1542_v7  ;;  %v1594_v32 = vmul.f32 %v11992_v36, %v1537_v62  ;;  %2092 = vperm.xlu1 %10996, %v9271_v60   ;;  %2087 = vperm.xlu0 %10995, %v9270_v10   ;;  %v9275_v60 = vld [vmem:[%s11246_s7 + $0x7c] sm:$0xf]  ;;  %v9274_v10 = vld [vmem:[%s11246_s7 + $0x74] sm:$0xff] }
 0x1ff   : > { %v12067_v26 = vadd.f32 %v1595_v18, %v11962_v25  ;;  %v12070_v30 = vadd.f32 %v1594_v32, %v11965_v14 }
 0x200   : > { %v1552_v11 = vpop.permute.xlu1 %1551  ;;  %v1547_v39 = vpop.permute.xlu0 %1546 }
 0x201   : > { %v1597_v21 = vmul.f32 %v11992_v36, %v1552_v11  ;;  %v1596_v7 = vmul.f32 %v11992_v36, %v1547_v39  ;;  %2102 = vperm.xlu1 %10996, %v9273_v12   ;;  %2097 = vperm.xlu0 %10995, %v9272_v63   ;;  %v9277_v12 = vld [vmem:[%s11246_s7 + $0x8c] sm:$0xf]  ;;  %v9276_v63 = vld [vmem:[%s11246_s7 + $0x84] sm:$0xff] }
 0x203   : > { %v12077_v62 = vadd.f32 %v1597_v21, %v11972_v1  ;;  %v12080_v25 = vadd.f32 %v1596_v7, %v11975_v16 }
 0x204   : > { %v1562_v14 = vpop.permute.xlu1 %1561  ;;  %v1557_v18 = vpop.permute.xlu0 %1556 }
 0x205   : > { %v1599_v32 = vmul.f32 %v11992_v36, %v1562_v14  ;;  %v1598_v11 = vmul.f32 %v11992_v36, %v1557_v18  ;;  %2112 = vperm.xlu1 %10996, %v9275_v60   ;;  %2107 = vperm.xlu0 %10995, %v9274_v10   ;;  %v12097_v60 = vld [vmem:[%s14963_s1 + $0xa] ss:$0 sm:$0xff]  ;;  %v9278_v10 = vld [vmem:[%s11246_s7 + $0x94] sm:$0xff] }
 0x207   : > { %v12087_v39 = vadd.f32 %v1599_v32, %v11982_v40  ;;  %v12090_v1 = vadd.f32 %v1598_v11, %v11985_v19  ;;  %v9279_v40 = vld [vmem:[%s11246_s7 + $0x9c] sm:$0xf] }
 0x208   : > { %v1572_v16 = vpop.permute.xlu1 %1571  ;;  %v1567_v21 = vpop.permute.xlu0 %1566 }
 0x209   : > { %v1601_v7 = vmul.f32 %v11992_v36, %v1572_v16  ;;  %v1600_v14 = vmul.f32 %v11992_v36, %v1567_v21  ;;  %2122 = vperm.xlu1 %10996, %v9277_v12   ;;  %2117 = vperm.xlu0 %10995, %v9276_v63   ;;  %v9281_v12 = vld [vmem:[%s11246_s7 + $0xac] sm:$0xf]  ;;  %v9280_v63 = vld [vmem:[%s11246_s7 + $0xa4] sm:$0xff] }
 0x20b   : > { %v12102_v19 = vadd.f32 %v1601_v7, %v11997_v22  ;;  %v12105_v18 = vadd.f32 %v1600_v14, %v12000_v34  ;;  %v9283_v7 = vld [vmem:[%s11246_s7 + $0xbc] sm:$0xf]  ;;  %v9282_v14 = vld [vmem:[%s11246_s7 + $0xb4] sm:$0xff] }
 0x20c   : > { %v1659_v32 = vpop.permute.xlu1 %1658  ;;  %v12107_v11 = vpop.permute.xlu0 %1653 }
 0x20d   : > { %15041 = vst [vmem:[#allocation63_spill] sm:$0xff] %v12107_v11  ;;  %v1776_v36 = vmul.f32 %v12097_v60, %v1659_v32  ;;  %2132 = vperm.xlu1 %10996, %v9279_v40   ;;  %2127 = vperm.xlu0 %10995, %v9278_v10  }
 0x20f   : > { %v12113_v16 = vadd.f32 %v1776_v36, %v12008_v6  ;;  %v9285_v6 = vld [vmem:[%s11246_s7 + $0xcc] sm:$0xf]  ;;  %v9284_v36 = vld [vmem:[%s11246_s7 + $0xc4] sm:$0xff] }
 0x210   : > { %v1669_v22 = vpop.permute.xlu1 %1668  ;;  %v12115_v21 = vpop.permute.xlu0 %1663 }
 0x211   : > { %15042 = vst [vmem:[#allocation64_spill] sm:$0xff] %v12115_v21  ;;  %v1778_v34 = vmul.f32 %v12097_v60, %v1669_v22  ;;  %2142 = vperm.xlu1 %10996, %v9281_v12   ;;  %2137 = vperm.xlu0 %10995, %v9280_v63   ;;  %v9288_v63 = vld [vmem:[%s11246_s7 + $0x20] sm:$0xff] }
 0x213   : > { %v12121_v40 = vadd.f32 %v1778_v34, %v12016_v28  ;;  %v9289_v28 = vld [vmem:[%s11246_s7 + $0x28] sm:$0xf] }
 0x214   : > { %v12123_v10 = vpop.permute.xlu1 %1678  ;;  %v12125_v32 = vpop.permute.xlu0 %1673 }
 0x215   : > { %15043 = vst [vmem:[#allocation65_spill] sm:$0xff] %v12123_v10  ;;  %15044 = vst [vmem:[#allocation66_spill] sm:$0xff] %v12125_v32  ;;  %2152 = vperm.xlu1 %10996, %v9283_v7   ;;  %2147 = vperm.xlu0 %10995, %v9282_v14   ;;  %v9291_v7 = vld [vmem:[%s11246_s7 + $0x38] sm:$0xf]  ;;  %v9290_v14 = vld [vmem:[%s11246_s7 + $0x30] sm:$0xff] }
 0x218   : > { %v12129_v22 = vpop.permute.xlu1 %1688  ;;  %v12131_v12 = vpop.permute.xlu0 %1683 }
 0x219   : > { %15045 = vst [vmem:[#allocation67_spill] sm:$0xff] %v12129_v22  ;;  %15046 = vst [vmem:[#allocation68_spill] sm:$0xff] %v12131_v12  ;;  %2162 = vperm.xlu1 %10996, %v9285_v6   ;;  %2157 = vperm.xlu0 %10995, %v9284_v36   ;;  %v9293_v6 = vld [vmem:[%s11246_s7 + $0x48] sm:$0xf]  ;;  %v9292_v36 = vld [vmem:[%s11246_s7 + $0x40] sm:$0xff] }
 0x21c   : > { %v12135_v34 = vpop.permute.xlu1 %1698  ;;  %v12137_v10 = vpop.permute.xlu0 %1693 }
 0x21d   : > { %15047 = vst [vmem:[#allocation69_spill] sm:$0xff] %v12135_v34  ;;  %15048 = vst [vmem:[#allocation70_spill] sm:$0xff] %v12137_v10  ;;  %2251 = vperm.xlu1 %10996, %v9289_v28   ;;  %2246 = vperm.xlu0 %10995, %v9288_v63   ;;  %v9295_v63 = vld [vmem:[%s11246_s7 + $0x58] sm:$0xf]  ;;  %v9294_v34 = vld [vmem:[%s11246_s7 + $0x50] sm:$0xff] }
 0x220   : > { %v12141_v32 = vpop.permute.xlu1 %1708  ;;  %v12143_v22 = vpop.permute.xlu0 %1703 }
 0x221   : > { %15049 = vst [vmem:[#allocation71_spill] sm:$0xff] %v12141_v32  ;;  %15050 = vst [vmem:[#allocation72_spill] sm:$0xff] %v12143_v22  ;;  %2261 = vperm.xlu1 %10996, %v9291_v7   ;;  %2256 = vperm.xlu0 %10995, %v9290_v14  }
 0x224   : > { %v1719_v12 = vpop.permute.xlu1 %1718  ;;  %v1714_v21 = vpop.permute.xlu0 %1713 }
 0x225   : > { %v1788_v10 = vmul.f32 %v12097_v60, %v1719_v12  ;;  %v1787_v28 = vmul.f32 %v12097_v60, %v1714_v21  ;;  %2271 = vperm.xlu1 %10996, %v9293_v6   ;;  %2266 = vperm.xlu0 %10995, %v9292_v36   ;;  %v9297_v21 = vld [vmem:[%s11246_s7 + $0x68] sm:$0xf]  ;;  %v9296_v6 = vld [vmem:[%s11246_s7 + $0x60] sm:$0xff] }
 0x227   : > { %v12152_v32 = vadd.f32 %v1788_v10, %v12047_v8  ;;  %v12155_v7 = vadd.f32 %v1787_v28, %v12050_v43 }
 0x228   : > { %v1729_v14 = vpop.permute.xlu1 %1728  ;;  %v1724_v22 = vpop.permute.xlu0 %1723 }
 0x229   : > { %v1790_v11 = vmul.f32 %v12097_v60, %v1729_v14  ;;  %v1789_v12 = vmul.f32 %v12097_v60, %v1724_v22  ;;  %2281 = vperm.xlu1 %10996, %v9295_v63   ;;  %2276 = vperm.xlu0 %10995, %v9294_v34   ;;  %v9299_v22 = vld [vmem:[%s11246_s7 + $0x78] sm:$0xf]  ;;  %v9298_v34 = vld [vmem:[%s11246_s7 + $0x70] sm:$0xff] }
 0x22b   : > { %v12162_v36 = vadd.f32 %v1790_v11, %v12057_v44  ;;  %v12165_v8 = vadd.f32 %v1789_v12, %v12060_v55 }
 0x22c   : > { %v1739_v43 = vpop.permute.xlu1 %1738  ;;  %v1734_v10 = vpop.permute.xlu0 %1733 }
 0x22d   : > { %v1792_v28 = vmul.f32 %v12097_v60, %v1739_v43  ;;  %v1791_v14 = vmul.f32 %v12097_v60, %v1734_v10  ;;  %2291 = vperm.xlu1 %10996, %v9297_v21   ;;  %2286 = vperm.xlu0 %10995, %v9296_v6   ;;  %v9301_v21 = vld [vmem:[%s11246_s7 + $0x88] sm:$0xf]  ;;  %v9300_v6 = vld [vmem:[%s11246_s7 + $0x80] sm:$0xff] }
 0x22f   : > { %v12172_v63 = vadd.f32 %v1792_v28, %v12067_v26  ;;  %v12175_v44 = vadd.f32 %v1791_v14, %v12070_v30 }
 0x230   : > { %v1749_v55 = vpop.permute.xlu1 %1748  ;;  %v1744_v11 = vpop.permute.xlu0 %1743 }
 0x231   : > { %v1794_v12 = vmul.f32 %v12097_v60, %v1749_v55  ;;  %v1793_v43 = vmul.f32 %v12097_v60, %v1744_v11  ;;  %2301 = vperm.xlu1 %10996, %v9299_v22   ;;  %2296 = vperm.xlu0 %10995, %v9298_v34   ;;  %v9303_v22 = vld [vmem:[%s11246_s7 + $0x98] sm:$0xf]  ;;  %v9302_v34 = vld [vmem:[%s11246_s7 + $0x90] sm:$0xff] }
 0x233   : > { %v12182_v10 = vadd.f32 %v1794_v12, %v12077_v62  ;;  %v12185_v26 = vadd.f32 %v1793_v43, %v12080_v25 }
 0x234   : > { %v1759_v30 = vpop.permute.xlu1 %1758  ;;  %v1754_v28 = vpop.permute.xlu0 %1753 }
 0x235   : > { %v1796_v14 = vmul.f32 %v12097_v60, %v1759_v30  ;;  %v1795_v55 = vmul.f32 %v12097_v60, %v1754_v28  ;;  %2311 = vperm.xlu1 %10996, %v9301_v21   ;;  %2306 = vperm.xlu0 %10995, %v9300_v6   ;;  %v12202_v21 = vld [vmem:[%s14963_s1 + $0xb] ss:$0 sm:$0xff]  ;;  %v9304_v6 = vld [vmem:[%s11246_s7 + $0xa0] sm:$0xff] }
 0x237   : > { %v12192_v11 = vadd.f32 %v1796_v14, %v12087_v39  ;;  %v12195_v62 = vadd.f32 %v1795_v55, %v12090_v1  ;;  %v9305_v39 = vld [vmem:[%s11246_s7 + $0xa8] sm:$0xf] }
 0x238   : > { %v1769_v25 = vpop.permute.xlu1 %1768  ;;  %v1764_v12 = vpop.permute.xlu0 %1763 }
 0x239   : > { %v1798_v43 = vmul.f32 %v12097_v60, %v1769_v25  ;;  %v1797_v30 = vmul.f32 %v12097_v60, %v1764_v12  ;;  %2321 = vperm.xlu1 %10996, %v9303_v22   ;;  %2316 = vperm.xlu0 %10995, %v9302_v34   ;;  %v9307_v22 = vld [vmem:[%s11246_s7 + $0xb8] sm:$0xf]  ;;  %v9306_v34 = vld [vmem:[%s11246_s7 + $0xb0] sm:$0xff] }
 0x23b   : > { %v12207_v1 = vadd.f32 %v1798_v43, %v12102_v19  ;;  %v12210_v28 = vadd.f32 %v1797_v30, %v12105_v18  ;;  %v9309_v43 = vld [vmem:[%s11246_s7 + $0xc8] sm:$0xf]  ;;  %v9308_v30 = vld [vmem:[%s11246_s7 + $0xc0] sm:$0xff] }
 0x23c   : > { %v1856_v14 = vpop.permute.xlu1 %1855  ;;  %v12212_v55 = vpop.permute.xlu0 %1850 }
 0x23d   : > { %15051 = vst [vmem:[#allocation73_spill] sm:$0xff] %v12212_v55  ;;  %v1973_v60 = vmul.f32 %v12202_v21, %v1856_v14  ;;  %2331 = vperm.xlu1 %10996, %v9305_v39   ;;  %2326 = vperm.xlu0 %10995, %v9304_v6  }
 0x23f   : > { %v12218_v25 = vadd.f32 %v1973_v60, %v12113_v16  ;;  %v9311_v16 = vld [vmem:[%s11246_s7 + $0xd8] sm:$0xf]  ;;  %v9310_v60 = vld [vmem:[%s11246_s7 + $0xd0] sm:$0xff] }
 0x240   : > { %v1866_v19 = vpop.permute.xlu1 %1865  ;;  %v12220_v12 = vpop.permute.xlu0 %1860 }
 0x241   : > { %15052 = vst [vmem:[#allocation74_spill] sm:$0xff] %v12220_v12  ;;  %v1975_v18 = vmul.f32 %v12202_v21, %v1866_v19  ;;  %2341 = vperm.xlu1 %10996, %v9307_v22   ;;  %2336 = vperm.xlu0 %10995, %v9306_v34   ;;  %v9314_v34 = vld [vmem:[%s11246_s7 + $0x21] sm:$0xff] }
 0x243   : > { %v12226_v39 = vadd.f32 %v1975_v18, %v12121_v40  ;;  %v9315_v40 = vld [vmem:[%s11246_s7 + $0x29] sm:$0xf] }
 0x244   : > { %v12228_v6 = vpop.permute.xlu1 %1875  ;;  %v12230_v14 = vpop.permute.xlu0 %1870 }
 0x245   : > { %15053 = vst [vmem:[#allocation75_spill] sm:$0xff] %v12228_v6  ;;  %15054 = vst [vmem:[#allocation76_spill] sm:$0xff] %v12230_v14  ;;  %2351 = vperm.xlu1 %10996, %v9309_v43   ;;  %2346 = vperm.xlu0 %10995, %v9308_v30   ;;  %v9317_v43 = vld [vmem:[%s11246_s7 + $0x39] sm:$0xf]  ;;  %v9316_v30 = vld [vmem:[%s11246_s7 + $0x31] sm:$0xff] }
 0x248   : > { %v12234_v19 = vpop.permute.xlu1 %1885  ;;  %v12236_v22 = vpop.permute.xlu0 %1880 }
 0x249   : > { %15055 = vst [vmem:[#allocation77_spill] sm:$0xff] %v12234_v19  ;;  %15056 = vst [vmem:[#allocation78_spill] sm:$0xff] %v12236_v22  ;;  %2361 = vperm.xlu1 %10996, %v9311_v16   ;;  %2356 = vperm.xlu0 %10995, %v9310_v60   ;;  %v9319_v16 = vld [vmem:[%s11246_s7 + $0x49] sm:$0xf]  ;;  %v9318_v60 = vld [vmem:[%s11246_s7 + $0x41] sm:$0xff] }
 0x24c   : > { %v12240_v18 = vpop.permute.xlu1 %1895  ;;  %v12242_v6 = vpop.permute.xlu0 %1890 }
 0x24d   : > { %15057 = vst [vmem:[#allocation79_spill] sm:$0xff] %v12240_v18  ;;  %15058 = vst [vmem:[#allocation80_spill] sm:$0xff] %v12242_v6  ;;  %2448 = vperm.xlu1 %10996, %v9315_v40   ;;  %2443 = vperm.xlu0 %10995, %v9314_v34   ;;  %v9321_v34 = vld [vmem:[%s11246_s7 + $0x59] sm:$0xf]  ;;  %v9320_v18 = vld [vmem:[%s11246_s7 + $0x51] sm:$0xff] }
 0x250   : > { %v12246_v14 = vpop.permute.xlu1 %1905  ;;  %v12248_v19 = vpop.permute.xlu0 %1900 }
 0x251   : > { %15059 = vst [vmem:[#allocation81_spill] sm:$0xff] %v12246_v14  ;;  %15060 = vst [vmem:[#allocation82_spill] sm:$0xff] %v12248_v19  ;;  %2458 = vperm.xlu1 %10996, %v9317_v43   ;;  %2453 = vperm.xlu0 %10995, %v9316_v30  }
 0x254   : > { %v1916_v22 = vpop.permute.xlu1 %1915  ;;  %v1911_v12 = vpop.permute.xlu0 %1910 }
 0x255   : > { %v1985_v6 = vmul.f32 %v12202_v21, %v1916_v22  ;;  %v1984_v40 = vmul.f32 %v12202_v21, %v1911_v12  ;;  %2468 = vperm.xlu1 %10996, %v9319_v16   ;;  %2463 = vperm.xlu0 %10995, %v9318_v60   ;;  %v9323_v12 = vld [vmem:[%s11246_s7 + $0x69] sm:$0xf]  ;;  %v9322_v16 = vld [vmem:[%s11246_s7 + $0x61] sm:$0xff] }
 0x257   : > { %v12257_v14 = vadd.f32 %v1985_v6, %v12152_v32  ;;  %v12260_v43 = vadd.f32 %v1984_v40, %v12155_v7 }
 0x258   : > { %v1926_v30 = vpop.permute.xlu1 %1925  ;;  %v1921_v19 = vpop.permute.xlu0 %1920 }
 0x259   : > { %v1987_v55 = vmul.f32 %v12202_v21, %v1926_v30  ;;  %v1986_v22 = vmul.f32 %v12202_v21, %v1921_v19  ;;  %2478 = vperm.xlu1 %10996, %v9321_v34   ;;  %2473 = vperm.xlu0 %10995, %v9320_v18   ;;  %v9325_v19 = vld [vmem:[%s11246_s7 + $0x79] sm:$0xf]  ;;  %v9324_v18 = vld [vmem:[%s11246_s7 + $0x71] sm:$0xff] }
 0x25b   : > { %v12267_v60 = vadd.f32 %v1987_v55, %v12162_v36  ;;  %v12270_v32 = vadd.f32 %v1986_v22, %v12165_v8 }
 0x25c   : > { %v1936_v7 = vpop.permute.xlu1 %1935  ;;  %v1931_v6 = vpop.permute.xlu0 %1930 }
 0x25d   : > { %v1989_v40 = vmul.f32 %v12202_v21, %v1936_v7  ;;  %v1988_v30 = vmul.f32 %v12202_v21, %v1931_v6  ;;  %2488 = vperm.xlu1 %10996, %v9323_v12   ;;  %2483 = vperm.xlu0 %10995, %v9322_v16   ;;  %v9327_v12 = vld [vmem:[%s11246_s7 + $0x89] sm:$0xf]  ;;  %v9326_v16 = vld [vmem:[%s11246_s7 + $0x81] sm:$0xff] }
 0x25f   : > { %v12277_v34 = vadd.f32 %v1989_v40, %v12172_v63  ;;  %v12280_v36 = vadd.f32 %v1988_v30, %v12175_v44 }
 0x260   : > { %v1946_v8 = vpop.permute.xlu1 %1945  ;;  %v1941_v55 = vpop.permute.xlu0 %1940 }
 0x261   : > { %v1991_v22 = vmul.f32 %v12202_v21, %v1946_v8  ;;  %v1990_v7 = vmul.f32 %v12202_v21, %v1941_v55  ;;  %2498 = vperm.xlu1 %10996, %v9325_v19   ;;  %2493 = vperm.xlu0 %10995, %v9324_v18   ;;  %v9329_v19 = vld [vmem:[%s11246_s7 + $0x99] sm:$0xf]  ;;  %v9328_v18 = vld [vmem:[%s11246_s7 + $0x91] sm:$0xff] }
 0x263   : > { %v12287_v6 = vadd.f32 %v1991_v22, %v12182_v10  ;;  %v12290_v63 = vadd.f32 %v1990_v7, %v12185_v26 }
 0x264   : > { %v1956_v44 = vpop.permute.xlu1 %1955  ;;  %v1951_v40 = vpop.permute.xlu0 %1950 }
 0x265   : > { %v1993_v30 = vmul.f32 %v12202_v21, %v1956_v44  ;;  %v1992_v8 = vmul.f32 %v12202_v21, %v1951_v40  ;;  %2508 = vperm.xlu1 %10996, %v9327_v12   ;;  %2503 = vperm.xlu0 %10995, %v9326_v16   ;;  %v12307_v12 = vld [vmem:[%s14963_s1 + $0xc] ss:$0 sm:$0xff]  ;;  %v9330_v16 = vld [vmem:[%s11246_s7 + $0xa1] sm:$0xff] }
 0x267   : > { %v12297_v55 = vadd.f32 %v1993_v30, %v12192_v11  ;;  %v12300_v10 = vadd.f32 %v1992_v8, %v12195_v62  ;;  %v9331_v11 = vld [vmem:[%s11246_s7 + $0xa9] sm:$0xf] }
 0x268   : > { %v1966_v26 = vpop.permute.xlu1 %1965  ;;  %v1961_v22 = vpop.permute.xlu0 %1960 }
 0x269   : > { %v1995_v7 = vmul.f32 %v12202_v21, %v1966_v26  ;;  %v1994_v44 = vmul.f32 %v12202_v21, %v1961_v22  ;;  %2518 = vperm.xlu1 %10996, %v9329_v19   ;;  %2513 = vperm.xlu0 %10995, %v9328_v18   ;;  %v9333_v19 = vld [vmem:[%s11246_s7 + $0xb9] sm:$0xf]  ;;  %v9332_v18 = vld [vmem:[%s11246_s7 + $0xb1] sm:$0xff] }
 0x26b   : > { %v12312_v62 = vadd.f32 %v1995_v7, %v12207_v1  ;;  %v12315_v40 = vadd.f32 %v1994_v44, %v12210_v28  ;;  %v9335_v7 = vld [vmem:[%s11246_s7 + $0xc9] sm:$0xf]  ;;  %v9334_v44 = vld [vmem:[%s11246_s7 + $0xc1] sm:$0xff] }
 0x26c   : > { %v2053_v30 = vpop.permute.xlu1 %2052  ;;  %v12317_v8 = vpop.permute.xlu0 %2047 }
 0x26d   : > { %15061 = vst [vmem:[#allocation83_spill] sm:$0xff] %v12317_v8  ;;  %v2170_v21 = vmul.f32 %v12307_v12, %v2053_v30  ;;  %2528 = vperm.xlu1 %10996, %v9331_v11   ;;  %2523 = vperm.xlu0 %10995, %v9330_v16  }
 0x26f   : > { %v12323_v26 = vadd.f32 %v2170_v21, %v12218_v25  ;;  %v9337_v25 = vld [vmem:[%s11246_s7 + $0xd9] sm:$0xf]  ;;  %v9336_v21 = vld [vmem:[%s11246_s7 + $0xd1] sm:$0xff] }
 0x270   : > { %v2063_v1 = vpop.permute.xlu1 %2062  ;;  %v12325_v22 = vpop.permute.xlu0 %2057 }
 0x271   : > { %15062 = vst [vmem:[#allocation84_spill] sm:$0xff] %v12325_v22  ;;  %v2172_v28 = vmul.f32 %v12307_v12, %v2063_v1  ;;  %2538 = vperm.xlu1 %10996, %v9333_v19   ;;  %2533 = vperm.xlu0 %10995, %v9332_v18   ;;  %v9340_v18 = vld [vmem:[%s11246_s7 + $0x22] sm:$0xff] }
 0x273   : > { %v12331_v11 = vadd.f32 %v2172_v28, %v12226_v39  ;;  %v9341_v39 = vld [vmem:[%s11246_s7 + $0x2a] sm:$0xf] }
 0x274   : > { %v12333_v16 = vpop.permute.xlu1 %2072  ;;  %v12335_v30 = vpop.permute.xlu0 %2067 }
 0x275   : > { %15063 = vst [vmem:[#allocation85_spill] sm:$0xff] %v12333_v16  ;;  %15064 = vst [vmem:[#allocation86_spill] sm:$0xff] %v12335_v30  ;;  %2548 = vperm.xlu1 %10996, %v9335_v7   ;;  %2543 = vperm.xlu0 %10995, %v9334_v44   ;;  %v9343_v7 = vld [vmem:[%s11246_s7 + $0x3a] sm:$0xf]  ;;  %v9342_v44 = vld [vmem:[%s11246_s7 + $0x32] sm:$0xff] }
 0x278   : > { %v12339_v1 = vpop.permute.xlu1 %2082  ;;  %v12341_v19 = vpop.permute.xlu0 %2077 }
 0x279   : > { %15065 = vst [vmem:[#allocation87_spill] sm:$0xff] %v12339_v1  ;;  %15066 = vst [vmem:[#allocation88_spill] sm:$0xff] %v12341_v19  ;;  %2558 = vperm.xlu1 %10996, %v9337_v25   ;;  %2553 = vperm.xlu0 %10995, %v9336_v21   ;;  %v9345_v25 = vld [vmem:[%s11246_s7 + $0x4a] sm:$0xf]  ;;  %v9344_v21 = vld [vmem:[%s11246_s7 + $0x42] sm:$0xff] }
 0x27c   : > { %v12345_v28 = vpop.permute.xlu1 %2092  ;;  %v12347_v16 = vpop.permute.xlu0 %2087 }
 0x27d   : > { %15067 = vst [vmem:[#allocation89_spill] sm:$0xff] %v12345_v28  ;;  %15068 = vst [vmem:[#allocation90_spill] sm:$0xff] %v12347_v16  ;;  %2645 = vperm.xlu1 %10996, %v9341_v39   ;;  %2640 = vperm.xlu0 %10995, %v9340_v18   ;;  %v9347_v18 = vld [vmem:[%s11246_s7 + $0x5a] sm:$0xf]  ;;  %v9346_v28 = vld [vmem:[%s11246_s7 + $0x52] sm:$0xff] }
 0x280   : > { %v12351_v30 = vpop.permute.xlu1 %2102  ;;  %v12353_v1 = vpop.permute.xlu0 %2097 }
 0x281   : > { %15069 = vst [vmem:[#allocation91_spill] sm:$0xff] %v12351_v30  ;;  %15070 = vst [vmem:[#allocation92_spill] sm:$0xff] %v12353_v1  ;;  %2655 = vperm.xlu1 %10996, %v9343_v7   ;;  %2650 = vperm.xlu0 %10995, %v9342_v44  }
 0x284   : > { %v2113_v19 = vpop.permute.xlu1 %2112  ;;  %v2108_v22 = vpop.permute.xlu0 %2107 }
 0x285   : > { %v2182_v16 = vmul.f32 %v12307_v12, %v2113_v19  ;;  %v2181_v39 = vmul.f32 %v12307_v12, %v2108_v22  ;;  %2665 = vperm.xlu1 %10996, %v9345_v25   ;;  %2660 = vperm.xlu0 %10995, %v9344_v21   ;;  %v9349_v22 = vld [vmem:[%s11246_s7 + $0x6a] sm:$0xf]  ;;  %v9348_v25 = vld [vmem:[%s11246_s7 + $0x62] sm:$0xff] }
 0x287   : > { %v12362_v30 = vadd.f32 %v2182_v16, %v12257_v14  ;;  %v12365_v7 = vadd.f32 %v2181_v39, %v12260_v43 }
 0x288   : > { %v2123_v44 = vpop.permute.xlu1 %2122  ;;  %v2118_v1 = vpop.permute.xlu0 %2117 }
 0x289   : > { %v2184_v8 = vmul.f32 %v12307_v12, %v2123_v44  ;;  %v2183_v19 = vmul.f32 %v12307_v12, %v2118_v1  ;;  %2675 = vperm.xlu1 %10996, %v9347_v18   ;;  %2670 = vperm.xlu0 %10995, %v9346_v28   ;;  %v9351_v1 = vld [vmem:[%s11246_s7 + $0x7a] sm:$0xf]  ;;  %v9350_v28 = vld [vmem:[%s11246_s7 + $0x72] sm:$0xff] }
 0x28b   : > { %v12372_v21 = vadd.f32 %v2184_v8, %v12267_v60  ;;  %v12375_v14 = vadd.f32 %v2183_v19, %v12270_v32 }
 0x28c   : > { %v2133_v43 = vpop.permute.xlu1 %2132  ;;  %v2128_v16 = vpop.permute.xlu0 %2127 }
 0x28d   : > { %v2186_v39 = vmul.f32 %v12307_v12, %v2133_v43  ;;  %v2185_v44 = vmul.f32 %v12307_v12, %v2128_v16  ;;  %2685 = vperm.xlu1 %10996, %v9349_v22   ;;  %2680 = vperm.xlu0 %10995, %v9348_v25   ;;  %v9353_v22 = vld [vmem:[%s11246_s7 + $0x8a] sm:$0xf]  ;;  %v9352_v25 = vld [vmem:[%s11246_s7 + $0x82] sm:$0xff] }
 0x28f   : > { %v12382_v18 = vadd.f32 %v2186_v39, %v12277_v34  ;;  %v12385_v60 = vadd.f32 %v2185_v44, %v12280_v36 }
 0x290   : > { %v2143_v32 = vpop.permute.xlu1 %2142  ;;  %v2138_v8 = vpop.permute.xlu0 %2137 }
 0x291   : > { %v2188_v19 = vmul.f32 %v12307_v12, %v2143_v32  ;;  %v2187_v43 = vmul.f32 %v12307_v12, %v2138_v8  ;;  %2695 = vperm.xlu1 %10996, %v9351_v1   ;;  %2690 = vperm.xlu0 %10995, %v9350_v28   ;;  %v9355_v1 = vld [vmem:[%s11246_s7 + $0x9a] sm:$0xf]  ;;  %v9354_v28 = vld [vmem:[%s11246_s7 + $0x92] sm:$0xff] }
 0x293   : > { %v12392_v16 = vadd.f32 %v2188_v19, %v12287_v6  ;;  %v12395_v34 = vadd.f32 %v2187_v43, %v12290_v63 }
 0x294   : > { %v2153_v36 = vpop.permute.xlu1 %2152  ;;  %v2148_v39 = vpop.permute.xlu0 %2147 }
 0x295   : > { %v2190_v44 = vmul.f32 %v12307_v12, %v2153_v36  ;;  %v2189_v32 = vmul.f32 %v12307_v12, %v2148_v39  ;;  %2705 = vperm.xlu1 %10996, %v9353_v22   ;;  %2700 = vperm.xlu0 %10995, %v9352_v25   ;;  %v12412_v22 = vld [vmem:[%s14963_s1 + $0x10] ss:$0 sm:$0xff]  ;;  %v9356_v25 = vld [vmem:[%s11246_s7 + $0xa2] sm:$0xff] }
 0x297   : > { %v12402_v8 = vadd.f32 %v2190_v44, %v12297_v55  ;;  %v12405_v6 = vadd.f32 %v2189_v32, %v12300_v10  ;;  %v9357_v55 = vld [vmem:[%s11246_s7 + $0xaa] sm:$0xf] }
 0x298   : > { %v2163_v63 = vpop.permute.xlu1 %2162  ;;  %v2158_v19 = vpop.permute.xlu0 %2157 }
 0x299   : > { %v2192_v43 = vmul.f32 %v12307_v12, %v2163_v63  ;;  %v2191_v36 = vmul.f32 %v12307_v12, %v2158_v19  ;;  %2715 = vperm.xlu1 %10996, %v9355_v1   ;;  %2710 = vperm.xlu0 %10995, %v9354_v28   ;;  %v9359_v1 = vld [vmem:[%s11246_s7 + $0xba] sm:$0xf]  ;;  %v9358_v28 = vld [vmem:[%s11246_s7 + $0xb2] sm:$0xff] }
 0x29b   : > { %v12417_v10 = vadd.f32 %v2192_v43, %v12312_v62  ;;  %v12420_v39 = vadd.f32 %v2191_v36, %v12315_v40  ;;  %v9361_v43 = vld [vmem:[%s11246_s7 + $0xca] sm:$0xf]  ;;  %v9360_v36 = vld [vmem:[%s11246_s7 + $0xc2] sm:$0xff] }
 0x29c   : > { %v2252_v44 = vpop.permute.xlu1 %2251  ;;  %v12422_v32 = vpop.permute.xlu0 %2246 }
 0x29d   : > { %15071 = vst [vmem:[#allocation93_spill] sm:$0xff] %v12422_v32  ;;  %v2369_v12 = vmul.f32 %v12412_v22, %v2252_v44  ;;  %2725 = vperm.xlu1 %10996, %v9357_v55   ;;  %2720 = vperm.xlu0 %10995, %v9356_v25  }
 0x29f   : > { %v12428_v63 = vadd.f32 %v2369_v12, %v12323_v26  ;;  %v9363_v26 = vld [vmem:[%s11246_s7 + $0xda] sm:$0xf]  ;;  %v9362_v12 = vld [vmem:[%s11246_s7 + $0xd2] sm:$0xff] }
 0x2a0   : > { %v2262_v62 = vpop.permute.xlu1 %2261  ;;  %v12430_v19 = vpop.permute.xlu0 %2256 }
 0x2a1   : > { %15072 = vst [vmem:[#allocation94_spill] sm:$0xff] %v12430_v19  ;;  %v2371_v40 = vmul.f32 %v12412_v22, %v2262_v62  ;;  %2735 = vperm.xlu1 %10996, %v9359_v1   ;;  %2730 = vperm.xlu0 %10995, %v9358_v28   ;;  %v9366_v28 = vld [vmem:[%s11246_s7 + $0x23] sm:$0xff] }
 0x2a3   : > { %v12436_v55 = vadd.f32 %v2371_v40, %v12331_v11  ;;  %v9367_v11 = vld [vmem:[%s11246_s7 + $0x2b] sm:$0xf] }
 0x2a4   : > { %v12438_v25 = vpop.permute.xlu1 %2271  ;;  %v12440_v44 = vpop.permute.xlu0 %2266 }
 0x2a5   : > { %15073 = vst [vmem:[#allocation95_spill] sm:$0xff] %v12438_v25  ;;  %15074 = vst [vmem:[#allocation96_spill] sm:$0xff] %v12440_v44  ;;  %2745 = vperm.xlu1 %10996, %v9361_v43   ;;  %2740 = vperm.xlu0 %10995, %v9360_v36   ;;  %v9369_v43 = vld [vmem:[%s11246_s7 + $0x3b] sm:$0xf]  ;;  %v9368_v36 = vld [vmem:[%s11246_s7 + $0x33] sm:$0xff] }
 0x2a8   : > { %v12444_v62 = vpop.permute.xlu1 %2281  ;;  %v12446_v1 = vpop.permute.xlu0 %2276 }
 0x2a9   : > { %15075 = vst [vmem:[#allocation97_spill] sm:$0xff] %v12444_v62  ;;  %15076 = vst [vmem:[#allocation98_spill] sm:$0xff] %v12446_v1  ;;  %2755 = vperm.xlu1 %10996, %v9363_v26   ;;  %2750 = vperm.xlu0 %10995, %v9362_v12   ;;  %v9371_v26 = vld [vmem:[%s11246_s7 + $0x4b] sm:$0xf]  ;;  %v9370_v12 = vld [vmem:[%s11246_s7 + $0x43] sm:$0xff] }
 0x2ac   : > { %v12450_v40 = vpop.permute.xlu1 %2291  ;;  %v12452_v25 = vpop.permute.xlu0 %2286 }
 0x2ad   : > { %15077 = vst [vmem:[#allocation99_spill] sm:$0xff] %v12450_v40  ;;  %15078 = vst [vmem:[#allocation100_spill] sm:$0xff] %v12452_v25  ;;  %2842 = vperm.xlu1 %10996, %v9367_v11   ;;  %2837 = vperm.xlu0 %10995, %v9366_v28   ;;  %v9373_v28 = vld [vmem:[%s11246_s7 + $0x5b] sm:$0xf]  ;;  %v9372_v40 = vld [vmem:[%s11246_s7 + $0x53] sm:$0xff] }
 0x2b0   : > { %v12456_v44 = vpop.permute.xlu1 %2301  ;;  %v12458_v62 = vpop.permute.xlu0 %2296 }
 0x2b1   : > { %15079 = vst [vmem:[#allocation101_spill] sm:$0xff] %v12456_v44  ;;  %15080 = vst [vmem:[#allocation102_spill] sm:$0xff] %v12458_v62  ;;  %2852 = vperm.xlu1 %10996, %v9369_v43   ;;  %2847 = vperm.xlu0 %10995, %v9368_v36  }
 0x2b4   : > { %v2312_v1 = vpop.permute.xlu1 %2311  ;;  %v2307_v19 = vpop.permute.xlu0 %2306 }
 0x2b5   : > { %v2381_v25 = vmul.f32 %v12412_v22, %v2312_v1  ;;  %v2380_v11 = vmul.f32 %v12412_v22, %v2307_v19  ;;  %2862 = vperm.xlu1 %10996, %v9371_v26   ;;  %2857 = vperm.xlu0 %10995, %v9370_v12   ;;  %v9375_v19 = vld [vmem:[%s11246_s7 + $0x6b] sm:$0xf]  ;;  %v9374_v26 = vld [vmem:[%s11246_s7 + $0x63] sm:$0xff] }
 0x2b7   : > { %v12467_v44 = vadd.f32 %v2381_v25, %v12362_v30  ;;  %v12470_v43 = vadd.f32 %v2380_v11, %v12365_v7 }
 0x2b8   : > { %v2322_v36 = vpop.permute.xlu1 %2321  ;;  %v2317_v62 = vpop.permute.xlu0 %2316 }
 0x2b9   : > { %v2383_v32 = vmul.f32 %v12412_v22, %v2322_v36  ;;  %v2382_v1 = vmul.f32 %v12412_v22, %v2317_v62  ;;  %2872 = vperm.xlu1 %10996, %v9373_v28   ;;  %2867 = vperm.xlu0 %10995, %v9372_v40   ;;  %v9377_v62 = vld [vmem:[%s11246_s7 + $0x7b] sm:$0xf]  ;;  %v9376_v40 = vld [vmem:[%s11246_s7 + $0x73] sm:$0xff] }
 0x2bb   : > { %v12477_v12 = vadd.f32 %v2383_v32, %v12372_v21  ;;  %v12480_v30 = vadd.f32 %v2382_v1, %v12375_v14 }
 0x2bc   : > { %v2332_v7 = vpop.permute.xlu1 %2331  ;;  %v2327_v25 = vpop.permute.xlu0 %2326 }
 0x2bd   : > { %v2385_v11 = vmul.f32 %v12412_v22, %v2332_v7  ;;  %v2384_v36 = vmul.f32 %v12412_v22, %v2327_v25  ;;  %2882 = vperm.xlu1 %10996, %v9375_v19   ;;  %2877 = vperm.xlu0 %10995, %v9374_v26   ;;  %v9379_v19 = vld [vmem:[%s11246_s7 + $0x8b] sm:$0xf]  ;;  %v9378_v26 = vld [vmem:[%s11246_s7 + $0x83] sm:$0xff] }
 0x2bf   : > { %v12487_v28 = vadd.f32 %v2385_v11, %v12382_v18  ;;  %v12490_v21 = vadd.f32 %v2384_v36, %v12385_v60 }
 0x2c0   : > { %v2342_v14 = vpop.permute.xlu1 %2341  ;;  %v2337_v32 = vpop.permute.xlu0 %2336 }
 0x2c1   : > { %v2387_v1 = vmul.f32 %v12412_v22, %v2342_v14  ;;  %v2386_v7 = vmul.f32 %v12412_v22, %v2337_v32  ;;  %2892 = vperm.xlu1 %10996, %v9377_v62   ;;  %2887 = vperm.xlu0 %10995, %v9376_v40   ;;  %v9381_v62 = vld [vmem:[%s11246_s7 + $0x9b] sm:$0xf]  ;;  %v9380_v40 = vld [vmem:[%s11246_s7 + $0x93] sm:$0xff] }
 0x2c3   : > { %v12497_v25 = vadd.f32 %v2387_v1, %v12392_v16  ;;  %v12500_v18 = vadd.f32 %v2386_v7, %v12395_v34 }
 0x2c4   : > { %v2352_v60 = vpop.permute.xlu1 %2351  ;;  %v2347_v11 = vpop.permute.xlu0 %2346 }
 0x2c5   : > { %v2389_v36 = vmul.f32 %v12412_v22, %v2352_v60  ;;  %v2388_v14 = vmul.f32 %v12412_v22, %v2347_v11  ;;  %2902 = vperm.xlu1 %10996, %v9379_v19   ;;  %2897 = vperm.xlu0 %10995, %v9378_v26   ;;  %v12517_v19 = vld [vmem:[%s14963_s1 + $0x11] ss:$0 sm:$0xff]  ;;  %v9382_v26 = vld [vmem:[%s11246_s7 + $0xa3] sm:$0xff] }
 0x2c7   : > { %v12507_v32 = vadd.f32 %v2389_v36, %v12402_v8  ;;  %v12510_v16 = vadd.f32 %v2388_v14, %v12405_v6  ;;  %v9383_v8 = vld [vmem:[%s11246_s7 + $0xab] sm:$0xf] }
 0x2c8   : > { %v2362_v34 = vpop.permute.xlu1 %2361  ;;  %v2357_v1 = vpop.permute.xlu0 %2356 }
 0x2c9   : > { %v2391_v7 = vmul.f32 %v12412_v22, %v2362_v34  ;;  %v2390_v60 = vmul.f32 %v12412_v22, %v2357_v1  ;;  %2912 = vperm.xlu1 %10996, %v9381_v62   ;;  %2907 = vperm.xlu0 %10995, %v9380_v40   ;;  %v9385_v62 = vld [vmem:[%s11246_s7 + $0xbb] sm:$0xf]  ;;  %v9384_v40 = vld [vmem:[%s11246_s7 + $0xb3] sm:$0xff] }
 0x2cb   : > { %v12522_v6 = vadd.f32 %v2391_v7, %v12417_v10  ;;  %v12525_v11 = vadd.f32 %v2390_v60, %v12420_v39  ;;  %v9387_v7 = vld [vmem:[%s11246_s7 + $0xcb] sm:$0xf]  ;;  %v9386_v60 = vld [vmem:[%s11246_s7 + $0xc3] sm:$0xff] }
 0x2cc   : > { %v2449_v36 = vpop.permute.xlu1 %2448  ;;  %v12527_v14 = vpop.permute.xlu0 %2443 }
 0x2cd   : > { %15081 = vst [vmem:[#allocation103_spill] sm:$0xff] %v12527_v14  ;;  %v2566_v22 = vmul.f32 %v12517_v19, %v2449_v36  ;;  %2922 = vperm.xlu1 %10996, %v9383_v8   ;;  %2917 = vperm.xlu0 %10995, %v9382_v26  }
 0x2cf   : > { %v12533_v34 = vadd.f32 %v2566_v22, %v12428_v63  ;;  %v9389_v63 = vld [vmem:[%s11246_s7 + $0xdb] sm:$0xf]  ;;  %v9388_v22 = vld [vmem:[%s11246_s7 + $0xd3] sm:$0xff] }
 0x2d0   : > { %v2459_v10 = vpop.permute.xlu1 %2458  ;;  %v12535_v1 = vpop.permute.xlu0 %2453 }
 0x2d1   : > { %15082 = vst [vmem:[#allocation104_spill] sm:$0xff] %v12535_v1  ;;  %v2568_v39 = vmul.f32 %v12517_v19, %v2459_v10  ;;  %2932 = vperm.xlu1 %10996, %v9385_v62   ;;  %2927 = vperm.xlu0 %10995, %v9384_v40   ;;  %v9392_v40 = vld [vmem:[%s11246_s7 + $0x24] sm:$0xff] }
 0x2d3   : > { %v12541_v8 = vadd.f32 %v2568_v39, %v12436_v55  ;;  %v9393_v55 = vld [vmem:[%s11246_s7 + $0x2c] sm:$0xf] }
 0x2d4   : > { %v12543_v26 = vpop.permute.xlu1 %2468  ;;  %v12545_v36 = vpop.permute.xlu0 %2463 }
 0x2d5   : > { %15083 = vst [vmem:[#allocation105_spill] sm:$0xff] %v12543_v26  ;;  %15084 = vst [vmem:[#allocation106_spill] sm:$0xff] %v12545_v36  ;;  %2942 = vperm.xlu1 %10996, %v9387_v7   ;;  %2937 = vperm.xlu0 %10995, %v9386_v60   ;;  %v9395_v7 = vld [vmem:[%s11246_s7 + $0x3c] sm:$0xf]  ;;  %v9394_v60 = vld [vmem:[%s11246_s7 + $0x34] sm:$0xff] }
 0x2d8   : > { %v12549_v10 = vpop.permute.xlu1 %2478  ;;  %v12551_v62 = vpop.permute.xlu0 %2473 }
 0x2d9   : > { %15085 = vst [vmem:[#allocation107_spill] sm:$0xff] %v12549_v10  ;;  %15086 = vst [vmem:[#allocation108_spill] sm:$0xff] %v12551_v62  ;;  %2952 = vperm.xlu1 %10996, %v9389_v63   ;;  %2947 = vperm.xlu0 %10995, %v9388_v22   ;;  %v9397_v63 = vld [vmem:[%s11246_s7 + $0x4c] sm:$0xf]  ;;  %v9396_v22 = vld [vmem:[%s11246_s7 + $0x44] sm:$0xff] }
 0x2dc   : > { %v12555_v39 = vpop.permute.xlu1 %2488  ;;  %v12557_v26 = vpop.permute.xlu0 %2483 }
 0x2dd   : > { %15087 = vst [vmem:[#allocation109_spill] sm:$0xff] %v12555_v39  ;;  %15088 = vst [vmem:[#allocation110_spill] sm:$0xff] %v12557_v26  ;;  %3039 = vperm.xlu1 %10996, %v9393_v55   ;;  %3034 = vperm.xlu0 %10995, %v9392_v40   ;;  %v9399_v40 = vld [vmem:[%s11246_s7 + $0x5c] sm:$0xf]  ;;  %v9398_v39 = vld [vmem:[%s11246_s7 + $0x54] sm:$0xff] }
 0x2e0   : > { %v12561_v36 = vpop.permute.xlu1 %2498  ;;  %v12563_v10 = vpop.permute.xlu0 %2493 }
 0x2e1   : > { %15089 = vst [vmem:[#allocation111_spill] sm:$0xff] %v12561_v36  ;;  %15090 = vst [vmem:[#allocation112_spill] sm:$0xff] %v12563_v10  ;;  %3049 = vperm.xlu1 %10996, %v9395_v7   ;;  %3044 = vperm.xlu0 %10995, %v9394_v60  }
 0x2e4   : > { %v2509_v62 = vpop.permute.xlu1 %2508  ;;  %v2504_v1 = vpop.permute.xlu0 %2503 }
 0x2e5   : > { %v2578_v26 = vmul.f32 %v12517_v19, %v2509_v62  ;;  %v2577_v55 = vmul.f32 %v12517_v19, %v2504_v1  ;;  %3059 = vperm.xlu1 %10996, %v9397_v63   ;;  %3054 = vperm.xlu0 %10995, %v9396_v22   ;;  %v9401_v1 = vld [vmem:[%s11246_s7 + $0x6c] sm:$0xf]  ;;  %v9400_v63 = vld [vmem:[%s11246_s7 + $0x64] sm:$0xff] }
 0x2e7   : > { %v12572_v36 = vadd.f32 %v2578_v26, %v12467_v44  ;;  %v12575_v7 = vadd.f32 %v2577_v55, %v12470_v43 }
 0x2e8   : > { %v2519_v60 = vpop.permute.xlu1 %2518  ;;  %v2514_v10 = vpop.permute.xlu0 %2513 }
 0x2e9   : > { %v2580_v14 = vmul.f32 %v12517_v19, %v2519_v60  ;;  %v2579_v62 = vmul.f32 %v12517_v19, %v2514_v10  ;;  %3069 = vperm.xlu1 %10996, %v9399_v40   ;;  %3064 = vperm.xlu0 %10995, %v9398_v39   ;;  %v9403_v10 = vld [vmem:[%s11246_s7 + $0x7c] sm:$0xf]  ;;  %v9402_v39 = vld [vmem:[%s11246_s7 + $0x74] sm:$0xff] }
 0x2eb   : > { %v12582_v22 = vadd.f32 %v2580_v14, %v12477_v12  ;;  %v12585_v44 = vadd.f32 %v2579_v62, %v12480_v30 }
 0x2ec   : > { %v2529_v43 = vpop.permute.xlu1 %2528  ;;  %v2524_v26 = vpop.permute.xlu0 %2523 }
 0x2ed   : > { %v2582_v55 = vmul.f32 %v12517_v19, %v2529_v43  ;;  %v2581_v60 = vmul.f32 %v12517_v19, %v2524_v26  ;;  %3079 = vperm.xlu1 %10996, %v9401_v1   ;;  %3074 = vperm.xlu0 %10995, %v9400_v63   ;;  %v9405_v1 = vld [vmem:[%s11246_s7 + $0x8c] sm:$0xf]  ;;  %v9404_v63 = vld [vmem:[%s11246_s7 + $0x84] sm:$0xff] }
 0x2ef   : > { %v12592_v40 = vadd.f32 %v2582_v55, %v12487_v28  ;;  %v12595_v12 = vadd.f32 %v2581_v60, %v12490_v21 }
 0x2f0   : > { %v2539_v30 = vpop.permute.xlu1 %2538  ;;  %v2534_v14 = vpop.permute.xlu0 %2533 }
 0x2f1   : > { %v2584_v62 = vmul.f32 %v12517_v19, %v2539_v30  ;;  %v2583_v43 = vmul.f32 %v12517_v19, %v2534_v14  ;;  %3089 = vperm.xlu1 %10996, %v9403_v10   ;;  %3084 = vperm.xlu0 %10995, %v9402_v39   ;;  %v9407_v10 = vld [vmem:[%s11246_s7 + $0x9c] sm:$0xf]  ;;  %v9406_v39 = vld [vmem:[%s11246_s7 + $0x94] sm:$0xff] }
 0x2f3   : > { %v12602_v26 = vadd.f32 %v2584_v62, %v12497_v25  ;;  %v12605_v28 = vadd.f32 %v2583_v43, %v12500_v18 }
 0x2f4   : > { %v2549_v21 = vpop.permute.xlu1 %2548  ;;  %v2544_v55 = vpop.permute.xlu0 %2543 }
 0x2f5   : > { %v2586_v60 = vmul.f32 %v12517_v19, %v2549_v21  ;;  %v2585_v30 = vmul.f32 %v12517_v19, %v2544_v55  ;;  %3099 = vperm.xlu1 %10996, %v9405_v1   ;;  %3094 = vperm.xlu0 %10995, %v9404_v63   ;;  %v12622_v1 = vld [vmem:[%s14963_s1 + $0x12] ss:$0 sm:$0xff]  ;;  %v9408_v63 = vld [vmem:[%s11246_s7 + $0xa4] sm:$0xff] }
 0x2f7   : > { %v12612_v14 = vadd.f32 %v2586_v60, %v12507_v32  ;;  %v12615_v25 = vadd.f32 %v2585_v30, %v12510_v16  ;;  %v9409_v32 = vld [vmem:[%s11246_s7 + $0xac] sm:$0xf] }
 0x2f8   : > { %v2559_v18 = vpop.permute.xlu1 %2558  ;;  %v2554_v62 = vpop.permute.xlu0 %2553 }
 0x2f9   : > { %v2588_v43 = vmul.f32 %v12517_v19, %v2559_v18  ;;  %v2587_v21 = vmul.f32 %v12517_v19, %v2554_v62  ;;  %3109 = vperm.xlu1 %10996, %v9407_v10   ;;  %3104 = vperm.xlu0 %10995, %v9406_v39   ;;  %v9411_v10 = vld [vmem:[%s11246_s7 + $0xbc] sm:$0xf]  ;;  %v9410_v39 = vld [vmem:[%s11246_s7 + $0xb4] sm:$0xff] }
 0x2fb   : > { %v12627_v16 = vadd.f32 %v2588_v43, %v12522_v6  ;;  %v12630_v55 = vadd.f32 %v2587_v21, %v12525_v11  ;;  %v9413_v43 = vld [vmem:[%s11246_s7 + $0xcc] sm:$0xf]  ;;  %v9412_v21 = vld [vmem:[%s11246_s7 + $0xc4] sm:$0xff] }
 0x2fc   : > { %v2646_v60 = vpop.permute.xlu1 %2645  ;;  %v12632_v30 = vpop.permute.xlu0 %2640 }
 0x2fd   : > { %15091 = vst [vmem:[#allocation113_spill] sm:$0xff] %v12632_v30  ;;  %v2763_v19 = vmul.f32 %v12622_v1, %v2646_v60  ;;  %3119 = vperm.xlu1 %10996, %v9409_v32   ;;  %3114 = vperm.xlu0 %10995, %v9408_v63  }
 0x2ff   : > { %v12638_v18 = vadd.f32 %v2763_v19, %v12533_v34  ;;  %v9415_v34 = vld [vmem:[%s11246_s7 + $0xdc] sm:$0xf]  ;;  %v9414_v19 = vld [vmem:[%s11246_s7 + $0xd4] sm:$0xff] }
 0x300   : > { %v2656_v6 = vpop.permute.xlu1 %2655  ;;  %v12640_v62 = vpop.permute.xlu0 %2650 }
 0x301   : > { %15092 = vst [vmem:[#allocation114_spill] sm:$0xff] %v12640_v62  ;;  %v2765_v11 = vmul.f32 %v12622_v1, %v2656_v6  ;;  %3129 = vperm.xlu1 %10996, %v9411_v10   ;;  %3124 = vperm.xlu0 %10995, %v9410_v39   ;;  %v9418_v39 = vld [vmem:[%s11246_s7 + $0x30] sm:$0xff] }
 0x303   : > { %v12646_v32 = vadd.f32 %v2765_v11, %v12541_v8  ;;  %v9419_v8 = vld [vmem:[%s11246_s7 + $0x38] sm:$0xf] }
 0x304   : > { %v12648_v63 = vpop.permute.xlu1 %2665  ;;  %v12650_v60 = vpop.permute.xlu0 %2660 }
 0x305   : > { %15093 = vst [vmem:[#allocation115_spill] sm:$0xff] %v12648_v63  ;;  %15094 = vst [vmem:[#allocation116_spill] sm:$0xff] %v12650_v60  ;;  %3139 = vperm.xlu1 %10996, %v9413_v43   ;;  %3134 = vperm.xlu0 %10995, %v9412_v21   ;;  %v9421_v43 = vld [vmem:[%s11246_s7 + $0x48] sm:$0xf]  ;;  %v9420_v21 = vld [vmem:[%s11246_s7 + $0x40] sm:$0xff] }
 0x308   : > { %v12654_v6 = vpop.permute.xlu1 %2675  ;;  %v12656_v10 = vpop.permute.xlu0 %2670 }
 0x309   : > { %15095 = vst [vmem:[#allocation117_spill] sm:$0xff] %v12654_v6  ;;  %15096 = vst [vmem:[#allocation118_spill] sm:$0xff] %v12656_v10  ;;  %3149 = vperm.xlu1 %10996, %v9415_v34   ;;  %3144 = vperm.xlu0 %10995, %v9414_v19   ;;  %v9423_v34 = vld [vmem:[%s11246_s7 + $0x58] sm:$0xf]  ;;  %v9422_v19 = vld [vmem:[%s11246_s7 + $0x50] sm:$0xff] }
 0x30c   : > { %v12660_v11 = vpop.permute.xlu1 %2685  ;;  %v12662_v63 = vpop.permute.xlu0 %2680 }
 0x30d   : > { %15097 = vst [vmem:[#allocation119_spill] sm:$0xff] %v12660_v11  ;;  %15098 = vst [vmem:[#allocation120_spill] sm:$0xff] %v12662_v63  ;;  %3238 = vperm.xlu1 %10996, %v9419_v8   ;;  %3233 = vperm.xlu0 %10995, %v9418_v39   ;;  %v9425_v39 = vld [vmem:[%s11246_s7 + $0x68] sm:$0xf]  ;;  %v9424_v11 = vld [vmem:[%s11246_s7 + $0x60] sm:$0xff] }
 0x310   : > { %v12666_v60 = vpop.permute.xlu1 %2695  ;;  %v12668_v6 = vpop.permute.xlu0 %2690 }
 0x311   : > { %15099 = vst [vmem:[#allocation121_spill] sm:$0xff] %v12666_v60  ;;  %15100 = vst [vmem:[#allocation122_spill] sm:$0xff] %v12668_v6  ;;  %3248 = vperm.xlu1 %10996, %v9421_v43   ;;  %3243 = vperm.xlu0 %10995, %v9420_v21  }
 0x314   : > { %v2706_v10 = vpop.permute.xlu1 %2705  ;;  %v2701_v62 = vpop.permute.xlu0 %2700 }
 0x315   : > { %v2775_v63 = vmul.f32 %v12622_v1, %v2706_v10  ;;  %v2774_v8 = vmul.f32 %v12622_v1, %v2701_v62  ;;  %3258 = vperm.xlu1 %10996, %v9423_v34   ;;  %3253 = vperm.xlu0 %10995, %v9422_v19   ;;  %v9427_v62 = vld [vmem:[%s11246_s7 + $0x78] sm:$0xf]  ;;  %v9426_v34 = vld [vmem:[%s11246_s7 + $0x70] sm:$0xff] }
 0x317   : > { %v12677_v60 = vadd.f32 %v2775_v63, %v12572_v36  ;;  %v12680_v43 = vadd.f32 %v2774_v8, %v12575_v7 }
 0x318   : > { %v2716_v21 = vpop.permute.xlu1 %2715  ;;  %v2711_v6 = vpop.permute.xlu0 %2710 }
 0x319   : > { %v2777_v30 = vmul.f32 %v12622_v1, %v2716_v21  ;;  %v2776_v10 = vmul.f32 %v12622_v1, %v2711_v6  ;;  %3268 = vperm.xlu1 %10996, %v9425_v39   ;;  %3263 = vperm.xlu0 %10995, %v9424_v11   ;;  %v9429_v6 = vld [vmem:[%s11246_s7 + $0x88] sm:$0xf]  ;;  %v9428_v11 = vld [vmem:[%s11246_s7 + $0x80] sm:$0xff] }
 0x31b   : > { %v12687_v19 = vadd.f32 %v2777_v30, %v12582_v22  ;;  %v12690_v36 = vadd.f32 %v2776_v10, %v12585_v44 }
 0x31c   : > { %v2726_v7 = vpop.permute.xlu1 %2725  ;;  %v2721_v63 = vpop.permute.xlu0 %2720 }
 0x31d   : > { %v2779_v8 = vmul.f32 %v12622_v1, %v2726_v7  ;;  %v2778_v21 = vmul.f32 %v12622_v1, %v2721_v63  ;;  %3278 = vperm.xlu1 %10996, %v9427_v62   ;;  %3273 = vperm.xlu0 %10995, %v9426_v34   ;;  %v9431_v62 = vld [vmem:[%s11246_s7 + $0x98] sm:$0xf]  ;;  %v9430_v34 = vld [vmem:[%s11246_s7 + $0x90] sm:$0xff] }
 0x31f   : > { %v12697_v39 = vadd.f32 %v2779_v8, %v12592_v40  ;;  %v12700_v22 = vadd.f32 %v2778_v21, %v12595_v12 }
 0x320   : > { %v2736_v44 = vpop.permute.xlu1 %2735  ;;  %v2731_v30 = vpop.permute.xlu0 %2730 }
 0x321   : > { %v2781_v10 = vmul.f32 %v12622_v1, %v2736_v44  ;;  %v2780_v7 = vmul.f32 %v12622_v1, %v2731_v30  ;;  %3288 = vperm.xlu1 %10996, %v9429_v6   ;;  %3283 = vperm.xlu0 %10995, %v9428_v11   ;;  %v9433_v6 = vld [vmem:[%s11246_s7 + $0xa8] sm:$0xf]  ;;  %v9432_v11 = vld [vmem:[%s11246_s7 + $0xa0] sm:$0xff] }
 0x323   : > { %v12707_v63 = vadd.f32 %v2781_v10, %v12602_v26  ;;  %v12710_v40 = vadd.f32 %v2780_v7, %v12605_v28 }
 0x324   : > { %v2746_v12 = vpop.permute.xlu1 %2745  ;;  %v2741_v8 = vpop.permute.xlu0 %2740 }
 0x325   : > { %v2783_v21 = vmul.f32 %v12622_v1, %v2746_v12  ;;  %v2782_v44 = vmul.f32 %v12622_v1, %v2741_v8  ;;  %3298 = vperm.xlu1 %10996, %v9431_v62   ;;  %3293 = vperm.xlu0 %10995, %v9430_v34   ;;  %v12727_v62 = vld [vmem:[%s14963_s1 + $0x13] ss:$0 sm:$0xff] }
 0x326   : > { %v9434_v34 = vld [vmem:[%s11246_s7 + $0xb0] sm:$0xff] }
 0x327   : > { %v12717_v30 = vadd.f32 %v2783_v21, %v12612_v14  ;;  %v12720_v26 = vadd.f32 %v2782_v44, %v12615_v25  ;;  %v9435_v14 = vld [vmem:[%s11246_s7 + $0xb8] sm:$0xf] }
 0x328   : > { %v2756_v28 = vpop.permute.xlu1 %2755  ;;  %v2751_v10 = vpop.permute.xlu0 %2750 }
 0x329   : > { %v2785_v7 = vmul.f32 %v12622_v1, %v2756_v28  ;;  %v2784_v12 = vmul.f32 %v12622_v1, %v2751_v10  ;;  %3308 = vperm.xlu1 %10996, %v9433_v6   ;;  %3303 = vperm.xlu0 %10995, %v9432_v11   ;;  %v9437_v6 = vld [vmem:[%s11246_s7 + $0xc8] sm:$0xf]  ;;  %v9436_v11 = vld [vmem:[%s11246_s7 + $0xc0] sm:$0xff] }
 0x32b   : > { %v12732_v25 = vadd.f32 %v2785_v7, %v12627_v16  ;;  %v12735_v8 = vadd.f32 %v2784_v12, %v12630_v55  ;;  %v9439_v7 = vld [vmem:[%s11246_s7 + $0xd8] sm:$0xf]  ;;  %v9438_v12 = vld [vmem:[%s11246_s7 + $0xd0] sm:$0xff] }
 0x32c   : > { %v2843_v21 = vpop.permute.xlu1 %2842  ;;  %v12737_v44 = vpop.permute.xlu0 %2837 }
 0x32d   : > { %15101 = vst [vmem:[#allocation123_spill] sm:$0xff] %v12737_v44  ;;  %v2960_v1 = vmul.f32 %v12727_v62, %v2843_v21  ;;  %3318 = vperm.xlu1 %10996, %v9435_v14   ;;  %3313 = vperm.xlu0 %10995, %v9434_v34  }
 0x32f   : > { %v12743_v28 = vadd.f32 %v2960_v1, %v12638_v18  ;;  %v9441_v18 = vld [vmem:[%s11246_s7 + $0xe8] sm:$0xf]  ;;  %v9440_v1 = vld [vmem:[%s11246_s7 + $0xe0] sm:$0xff] }
 0x330   : > { %v2853_v16 = vpop.permute.xlu1 %2852  ;;  %v12745_v10 = vpop.permute.xlu0 %2847 }
 0x331   : > { %15102 = vst [vmem:[#allocation124_spill] sm:$0xff] %v12745_v10  ;;  %v2962_v55 = vmul.f32 %v12727_v62, %v2853_v16  ;;  %3328 = vperm.xlu1 %10996, %v9437_v6   ;;  %3323 = vperm.xlu0 %10995, %v9436_v11   ;;  %v9444_v11 = vld [vmem:[%s11246_s7 + $0x31] sm:$0xff] }
 0x333   : > { %v12751_v14 = vadd.f32 %v2962_v55, %v12646_v32  ;;  %v9445_v32 = vld [vmem:[%s11246_s7 + $0x39] sm:$0xf] }
 0x334   : > { %v12753_v34 = vpop.permute.xlu1 %2862  ;;  %v12755_v21 = vpop.permute.xlu0 %2857 }
 0x335   : > { %15103 = vst [vmem:[#allocation125_spill] sm:$0xff] %v12753_v34  ;;  %15104 = vst [vmem:[#allocation126_spill] sm:$0xff] %v12755_v21  ;;  %3338 = vperm.xlu1 %10996, %v9439_v7   ;;  %3333 = vperm.xlu0 %10995, %v9438_v12   ;;  %v9447_v7 = vld [vmem:[%s11246_s7 + $0x49] sm:$0xf]  ;;  %v12771_v12 = vld [vmem:[%s11246_s7 + $0x41] sm:$0xff] }
 0x338   : > { %v12759_v16 = vpop.permute.xlu1 %2872  ;;  %v12761_v6 = vpop.permute.xlu0 %2867 }
 0x339   : > { %15105 = vst [vmem:[#allocation127_spill] sm:$0xff] %v12759_v16  ;;  %15106 = vst [vmem:[#allocation128_spill] sm:$0xff] %v12761_v6  ;;  %3348 = vperm.xlu1 %10996, %v9441_v18   ;;  %3343 = vperm.xlu0 %10995, %v9440_v1   ;;  %v9449_v18 = vld [vmem:[%s11246_s7 + $0x59] sm:$0xf]  ;;  %v12780_v1 = vld [vmem:[%s11246_s7 + $0x51] sm:$0xff] }
 0x33a   : > { %v12787_v6 = vld [vmem:[%s11246_s7 + $0x61] sm:$0xff] }
 0x33c   : > { %v12765_v55 = vpop.permute.xlu1 %2882  ;;  %v12767_v34 = vpop.permute.xlu0 %2877 }
 0x33d   : > { %15107 = vst [vmem:[#allocation129_spill] sm:$0xff] %v12765_v55  ;;  %15108 = vst [vmem:[#allocation130_spill] sm:$0xff] %v12767_v34  ;;  %3435 = vperm.xlu1 %10996, %v9445_v32   ;;  %3430 = vperm.xlu0 %10995, %v9444_v11  }
 0x340   : > { %v12773_v16 = vpop.permute.xlu1 %2892  ;;  %v12775_v21 = vpop.permute.xlu0 %2887 }
 0x341   : > { %15109 = vst [vmem:[#allocation131_spill] sm:$0xff] %v12773_v16  ;;  %15110 = vst [vmem:[#allocation132_spill] sm:$0xff] %v12775_v21  ;;  %3445 = vperm.xlu1 %10996, %v9447_v7   ;;  %3440 = vperm.xlu0 %10995, %v12771_v12   ;;  %v9451_v16 = vld [vmem:[%s11246_s7 + $0x69] sm:$0xf] }
 0x344   : > { %v2903_v55 = vpop.permute.xlu1 %2902  ;;  %v2898_v34 = vpop.permute.xlu0 %2897 }
 0x345   : > { %v2972_v32 = vmul.f32 %v12727_v62, %v2903_v55  ;;  %v2971_v11 = vmul.f32 %v12727_v62, %v2898_v34  ;;  %3455 = vperm.xlu1 %10996, %v9449_v18   ;;  %3450 = vperm.xlu0 %10995, %v12780_v1   ;;  %v9453_v18 = vld [vmem:[%s11246_s7 + $0x79] sm:$0xf] }
 0x347   : > { %v12790_v7 = vadd.f32 %v2972_v32, %v12677_v60  ;;  %v12793_v21 = vadd.f32 %v2971_v11, %v12680_v43 }
 0x348   : > { %v2913_v10 = vpop.permute.xlu1 %2912  ;;  %v2908_v44 = vpop.permute.xlu0 %2907 }
 0x349   : > { %v2974_v55 = vmul.f32 %v12727_v62, %v2913_v10  ;;  %v2973_v34 = vmul.f32 %v12727_v62, %v2908_v44  ;;  %3465 = vperm.xlu1 %10996, %v9451_v16   ;;  %3460 = vperm.xlu0 %10995, %v12787_v6   ;;  %v9455_v16 = vld [vmem:[%s11246_s7 + $0x89] sm:$0xf] }
 0x34b   : > { %v12803_v60 = vadd.f32 %v2974_v55, %v12687_v19  ;;  %v12806_v43 = vadd.f32 %v2973_v34, %v12690_v36 }
 0x34c   : > { %v2923_v32 = vpop.permute.xlu1 %2922  ;;  %v2918_v11 = vpop.permute.xlu0 %2917 }
 0x34d   : > { %v2976_v10 = vmul.f32 %v12727_v62, %v2923_v32  ;;  %v2975_v44 = vmul.f32 %v12727_v62, %v2918_v11  ;;  %3475 = vperm.xlu1 %10996, %v9453_v18   ;;  %3470 = vperm.xlu0 %10995, %v12800_v50   ;;  %v9457_v18 = vld [vmem:[%s11246_s7 + $0x99] sm:$0xf]  ;;  %v9456_v11 = vld [vmem:[%s11246_s7 + $0x91] sm:$0xff] }
 0x34f   : > { %v12814_v33 = vadd.f32 %v2976_v10, %v12697_v39  ;;  %v12817_v19 = vadd.f32 %v2975_v44, %v12700_v22 }
 0x350   : > { %v2933_v36 = vpop.permute.xlu1 %2932  ;;  %v2928_v55 = vpop.permute.xlu0 %2927 }
 0x351   : > { %v2978_v34 = vmul.f32 %v12727_v62, %v2933_v36  ;;  %v2977_v32 = vmul.f32 %v12727_v62, %v2928_v55  ;;  %3485 = vperm.xlu1 %10996, %v9455_v16   ;;  %3480 = vperm.xlu0 %10995, %v9454_v47   ;;  %v9459_v16 = vld [vmem:[%s11246_s7 + $0xa9] sm:$0xf]  ;;  %v9458_v47 = vld [vmem:[%s11246_s7 + $0xa1] sm:$0xff] }
 0x353   : > { %v12824_v61 = vadd.f32 %v2978_v34, %v12707_v63  ;;  %v12827_v39 = vadd.f32 %v2977_v32, %v12710_v40 }
 0x354   : > { %v2943_v22 = vpop.permute.xlu1 %2942  ;;  %v2938_v10 = vpop.permute.xlu0 %2937 }
 0x355   : > { %v2980_v44 = vmul.f32 %v12727_v62, %v2943_v22  ;;  %v2979_v36 = vmul.f32 %v12727_v62, %v2938_v10  ;;  %3495 = vperm.xlu1 %10996, %v9457_v18   ;;  %3490 = vperm.xlu0 %10995, %v9456_v11   ;;  %v12844_v18 = vld [vmem:[%s14963_s1 + $0x14] ss:$0 sm:$0xff] }
 0x356   : > { %v9460_v11 = vld [vmem:[%s11246_s7 + $0xb1] sm:$0xff] }
 0x357   : > { %v12834_v55 = vadd.f32 %v2980_v44, %v12717_v30  ;;  %v12837_v63 = vadd.f32 %v2979_v36, %v12720_v26  ;;  %v9461_v30 = vld [vmem:[%s11246_s7 + $0xb9] sm:$0xf] }
 0x358   : > { %v2953_v40 = vpop.permute.xlu1 %2952  ;;  %v2948_v34 = vpop.permute.xlu0 %2947 }
 0x359   : > { %v2982_v32 = vmul.f32 %v12727_v62, %v2953_v40  ;;  %v2981_v22 = vmul.f32 %v12727_v62, %v2948_v34  ;;  %3505 = vperm.xlu1 %10996, %v9459_v16   ;;  %3500 = vperm.xlu0 %10995, %v9458_v47   ;;  %v9463_v16 = vld [vmem:[%s11246_s7 + $0xc9] sm:$0xf]  ;;  %v9462_v47 = vld [vmem:[%s11246_s7 + $0xc1] sm:$0xff] }
 0x35b   : > { %v12849_v26 = vadd.f32 %v2982_v32, %v12732_v25  ;;  %v12852_v10 = vadd.f32 %v2981_v22, %v12735_v8  ;;  %v9465_v32 = vld [vmem:[%s11246_s7 + $0xd9] sm:$0xf]  ;;  %v9464_v22 = vld [vmem:[%s11246_s7 + $0xd1] sm:$0xff] }
 0x35c   : > { %v3040_v44 = vpop.permute.xlu1 %3039  ;;  %v12854_v36 = vpop.permute.xlu0 %3034 }
 0x35d   : > { %15111 = vst [vmem:[#allocation133_spill] sm:$0xff] %v12854_v36  ;;  %v3157_v62 = vmul.f32 %v12844_v18, %v3040_v44  ;;  %3515 = vperm.xlu1 %10996, %v9461_v30   ;;  %3510 = vperm.xlu0 %10995, %v9460_v11  }
 0x35f   : > { %v12860_v40 = vadd.f32 %v3157_v62, %v12743_v28  ;;  %v9467_v28 = vld [vmem:[%s11246_s7 + $0xe9] sm:$0xf]  ;;  %v9466_v62 = vld [vmem:[%s11246_s7 + $0xe1] sm:$0xff] }
 0x360   : > { %v3050_v25 = vpop.permute.xlu1 %3049  ;;  %v12862_v34 = vpop.permute.xlu0 %3044 }
 0x361   : > { %15112 = vst [vmem:[#allocation134_spill] sm:$0xff] %v12862_v34  ;;  %v3159_v8 = vmul.f32 %v12844_v18, %v3050_v25  ;;  %3525 = vperm.xlu1 %10996, %v9463_v16   ;;  %3520 = vperm.xlu0 %10995, %v9462_v47   ;;  %v9470_v47 = vld [vmem:[%s11246_s7 + $0x32] sm:$0xff] }
 0x363   : > { %v12868_v30 = vadd.f32 %v3159_v8, %v12751_v14  ;;  %v9471_v14 = vld [vmem:[%s11246_s7 + $0x3a] sm:$0xf] }
 0x364   : > { %v12870_v11 = vpop.permute.xlu1 %3059  ;;  %v12872_v44 = vpop.permute.xlu0 %3054 }
 0x365   : > { %15113 = vst [vmem:[#allocation135_spill] sm:$0xff] %v12870_v11  ;;  %15114 = vst [vmem:[#allocation136_spill] sm:$0xff] %v12872_v44  ;;  %3535 = vperm.xlu1 %10996, %v9465_v32   ;;  %3530 = vperm.xlu0 %10995, %v9464_v22   ;;  %v9473_v32 = vld [vmem:[%s11246_s7 + $0x4a] sm:$0xf]  ;;  %v12888_v22 = vld [vmem:[%s11246_s7 + $0x42] sm:$0xff] }
 0x368   : > { %v12876_v25 = vpop.permute.xlu1 %3069  ;;  %v12878_v16 = vpop.permute.xlu0 %3064 }
 0x369   : > { %15115 = vst [vmem:[#allocation137_spill] sm:$0xff] %v12876_v25  ;;  %15116 = vst [vmem:[#allocation138_spill] sm:$0xff] %v12878_v16  ;;  %3545 = vperm.xlu1 %10996, %v9467_v28   ;;  %3540 = vperm.xlu0 %10995, %v9466_v62   ;;  %v9475_v28 = vld [vmem:[%s11246_s7 + $0x5a] sm:$0xf]  ;;  %v12897_v62 = vld [vmem:[%s11246_s7 + $0x52] sm:$0xff] }
 0x36a   : > { %v12904_v16 = vld [vmem:[%s11246_s7 + $0x62] sm:$0xff] }
 0x36c   : > { %v12882_v8 = vpop.permute.xlu1 %3079  ;;  %v12884_v11 = vpop.permute.xlu0 %3074 }
 0x36d   : > { %15117 = vst [vmem:[#allocation139_spill] sm:$0xff] %v12882_v8  ;;  %15118 = vst [vmem:[#allocation140_spill] sm:$0xff] %v12884_v11  ;;  %3632 = vperm.xlu1 %10996, %v9471_v14   ;;  %3627 = vperm.xlu0 %10995, %v9470_v47  }
 0x370   : > { %v12890_v25 = vpop.permute.xlu1 %3089  ;;  %v12892_v44 = vpop.permute.xlu0 %3084 }
 0x371   : > { %15119 = vst [vmem:[#allocation141_spill] sm:$0xff] %v12890_v25  ;;  %15120 = vst [vmem:[#allocation142_spill] sm:$0xff] %v12892_v44  ;;  %3642 = vperm.xlu1 %10996, %v9473_v32   ;;  %3637 = vperm.xlu0 %10995, %v12888_v22   ;;  %v9477_v25 = vld [vmem:[%s11246_s7 + $0x6a] sm:$0xf] }
 0x374   : > { %v3100_v8 = vpop.permute.xlu1 %3099  ;;  %v3095_v11 = vpop.permute.xlu0 %3094 }
 0x375   : > { %v3169_v14 = vmul.f32 %v12844_v18, %v3100_v8  ;;  %v3168_v47 = vmul.f32 %v12844_v18, %v3095_v11  ;;  %3652 = vperm.xlu1 %10996, %v9475_v28   ;;  %3647 = vperm.xlu0 %10995, %v12897_v62   ;;  %v9479_v28 = vld [vmem:[%s11246_s7 + $0x7a] sm:$0xf] }
 0x377   : > { %v12907_v32 = vadd.f32 %v3169_v14, %v12790_v7  ;;  %v12910_v44 = vadd.f32 %v3168_v47, %v12793_v21 }
 0x378   : > { %v3110_v34 = vpop.permute.xlu1 %3109  ;;  %v3105_v36 = vpop.permute.xlu0 %3104 }
 0x379   : > { %v3171_v8 = vmul.f32 %v12844_v18, %v3110_v34  ;;  %v3170_v11 = vmul.f32 %v12844_v18, %v3105_v36  ;;  %3662 = vperm.xlu1 %10996, %v9477_v25   ;;  %3657 = vperm.xlu0 %10995, %v12904_v16   ;;  %v9481_v25 = vld [vmem:[%s11246_s7 + $0x8a] sm:$0xf] }
 0x37b   : > { %v12920_v7 = vadd.f32 %v3171_v8, %v12803_v60  ;;  %v12923_v21 = vadd.f32 %v3170_v11, %v12806_v43 }
 0x37c   : > { %v3120_v14 = vpop.permute.xlu1 %3119  ;;  %v3115_v47 = vpop.permute.xlu0 %3114 }
 0x37d   : > { %v3173_v34 = vmul.f32 %v12844_v18, %v3120_v14  ;;  %v3172_v36 = vmul.f32 %v12844_v18, %v3115_v47  ;;  %3672 = vperm.xlu1 %10996, %v9479_v28   ;;  %3667 = vperm.xlu0 %10995, %v12917_v24   ;;  %v9483_v28 = vld [vmem:[%s11246_s7 + $0x9a] sm:$0xf] }
 0x37f   : > { %v12933_v60 = vadd.f32 %v3173_v34, %v12814_v33  ;;  %v12936_v43 = vadd.f32 %v3172_v36, %v12817_v19 }
 0x380   : > { %v3130_v8 = vpop.permute.xlu1 %3129  ;;  %v3125_v11 = vpop.permute.xlu0 %3124 }
 0x381   : > { %v3175_v14 = vmul.f32 %v12844_v18, %v3130_v8  ;;  %v3174_v47 = vmul.f32 %v12844_v18, %v3125_v11  ;;  %3682 = vperm.xlu1 %10996, %v9481_v25   ;;  %3677 = vperm.xlu0 %10995, %v12930_v27   ;;  %v9485_v25 = vld [vmem:[%s11246_s7 + $0xaa] sm:$0xf]  ;;  %v9484_v11 = vld [vmem:[%s11246_s7 + $0xa2] sm:$0xff] }
 0x383   : > { %v12946_v33 = vadd.f32 %v3175_v14, %v12824_v61  ;;  %v12949_v19 = vadd.f32 %v3174_v47, %v12827_v39 }
 0x384   : > { %v3140_v34 = vpop.permute.xlu1 %3139  ;;  %v3135_v36 = vpop.permute.xlu0 %3134 }
 0x385   : > { %v3177_v17 = vmul.f32 %v12844_v18, %v3140_v34  ;;  %v3176_v8 = vmul.f32 %v12844_v18, %v3135_v36  ;;  %3692 = vperm.xlu1 %10996, %v9483_v28   ;;  %3687 = vperm.xlu0 %10995, %v12943_v53   ;;  %v12967_v28 = vld [vmem:[%s14963_s1 + $0x18] ss:$0 sm:$0xff] }
 0x387   : > { %v12957_v23 = vadd.f32 %v3177_v17, %v12834_v55  ;;  %v12960_v61 = vadd.f32 %v3176_v8, %v12837_v63  ;;  %v9487_v17 = vld [vmem:[%s11246_s7 + $0xba] sm:$0xf]  ;;  %v9486_v55 = vld [vmem:[%s11246_s7 + $0xb2] sm:$0xff] }
 0x388   : > { %v3150_v39 = vpop.permute.xlu1 %3149  ;;  %v3145_v14 = vpop.permute.xlu0 %3144 }
 0x389   : > { %v3179_v47 = vmul.f32 %v12844_v18, %v3150_v39  ;;  %v3178_v34 = vmul.f32 %v12844_v18, %v3145_v14  ;;  %3702 = vperm.xlu1 %10996, %v9485_v25   ;;  %3697 = vperm.xlu0 %10995, %v9484_v11   ;;  %v9489_v25 = vld [vmem:[%s11246_s7 + $0xca] sm:$0xf]  ;;  %v9488_v11 = vld [vmem:[%s11246_s7 + $0xc2] sm:$0xff] }
 0x38b   : > { %v12972_v63 = vadd.f32 %v3179_v47, %v12849_v26  ;;  %v12975_v36 = vadd.f32 %v3178_v34, %v12852_v10  ;;  %v9491_v34 = vld [vmem:[%s11246_s7 + $0xda] sm:$0xf] }
 0x38c   : > { %v3239_v8 = vpop.permute.xlu1 %3238  ;;  %v12977_v39 = vpop.permute.xlu0 %3233 }
 0x38d   : > { %15121 = vst [vmem:[#allocation143_spill] sm:$0xff] %v12977_v39  ;;  %v3356_v18 = vmul.f32 %v12967_v28, %v3239_v8  ;;  %3712 = vperm.xlu1 %10996, %v9487_v17   ;;  %3707 = vperm.xlu0 %10995, %v9486_v55   ;;  %v9490_v8 = vld [vmem:[%s11246_s7 + $0xd2] sm:$0xff] }
 0x38f   : > { %v12983_v14 = vadd.f32 %v3356_v18, %v12860_v40  ;;  %v9493_v40 = vld [vmem:[%s11246_s7 + $0xea] sm:$0xf]  ;;  %v9492_v18 = vld [vmem:[%s11246_s7 + $0xe2] sm:$0xff] }
 0x390   : > { %v3249_v26 = vpop.permute.xlu1 %3248  ;;  %v12985_v47 = vpop.permute.xlu0 %3243 }
 0x391   : > { %15122 = vst [vmem:[#allocation144_spill] sm:$0xff] %v12985_v47  ;;  %v3358_v10 = vmul.f32 %v12967_v28, %v3249_v26  ;;  %3722 = vperm.xlu1 %10996, %v9489_v25   ;;  %3717 = vperm.xlu0 %10995, %v9488_v11   ;;  %v9496_v11 = vld [vmem:[%s11246_s7 + $0x33] sm:$0xff] }
 0x393   : > { %v12991_v17 = vadd.f32 %v3358_v10, %v12868_v30  ;;  %v9497_v30 = vld [vmem:[%s11246_s7 + $0x3b] sm:$0xf] }
 0x394   : > { %v12993_v55 = vpop.permute.xlu1 %3258  ;;  %v12995_v39 = vpop.permute.xlu0 %3253 }
 0x395   : > { %15123 = vst [vmem:[#allocation145_spill] sm:$0xff] %v12993_v55  ;;  %15124 = vst [vmem:[#allocation146_spill] sm:$0xff] %v12995_v39  ;;  %3732 = vperm.xlu1 %10996, %v9491_v34   ;;  %3727 = vperm.xlu0 %10995, %v9490_v8   ;;  %v9499_v34 = vld [vmem:[%s11246_s7 + $0x4b] sm:$0xf]  ;;  %v13011_v8 = vld [vmem:[%s11246_s7 + $0x43] sm:$0xff] }
 0x398   : > { %v12999_v26 = vpop.permute.xlu1 %3268  ;;  %v13001_v25 = vpop.permute.xlu0 %3263 }
 0x399   : > { %15125 = vst [vmem:[#allocation147_spill] sm:$0xff] %v12999_v26  ;;  %15126 = vst [vmem:[#allocation148_spill] sm:$0xff] %v13001_v25  ;;  %3742 = vperm.xlu1 %10996, %v9493_v40   ;;  %3737 = vperm.xlu0 %10995, %v9492_v18   ;;  %v9501_v40 = vld [vmem:[%s11246_s7 + $0x5b] sm:$0xf]  ;;  %v13020_v18 = vld [vmem:[%s11246_s7 + $0x53] sm:$0xff] }
 0x39a   : > { %v13027_v25 = vld [vmem:[%s11246_s7 + $0x63] sm:$0xff] }
 0x39c   : > { %v13005_v10 = vpop.permute.xlu1 %3278  ;;  %v13007_v55 = vpop.permute.xlu0 %3273 }
 0x39d   : > { %15127 = vst [vmem:[#allocation149_spill] sm:$0xff] %v13005_v10  ;;  %15128 = vst [vmem:[#allocation150_spill] sm:$0xff] %v13007_v55  ;;  %3829 = vperm.xlu1 %10996, %v9497_v30   ;;  %3824 = vperm.xlu0 %10995, %v9496_v11  }
 0x3a0   : > { %v13013_v26 = vpop.permute.xlu1 %3288  ;;  %v13015_v39 = vpop.permute.xlu0 %3283 }
 0x3a1   : > { %15129 = vst [vmem:[#allocation151_spill] sm:$0xff] %v13013_v26  ;;  %15130 = vst [vmem:[#allocation152_spill] sm:$0xff] %v13015_v39  ;;  %3839 = vperm.xlu1 %10996, %v9499_v34   ;;  %3834 = vperm.xlu0 %10995, %v13011_v8   ;;  %v9503_v26 = vld [vmem:[%s11246_s7 + $0x6b] sm:$0xf] }
 0x3a4   : > { %v3299_v10 = vpop.permute.xlu1 %3298  ;;  %v3294_v55 = vpop.permute.xlu0 %3293 }
 0x3a5   : > { %v3368_v30 = vmul.f32 %v12967_v28, %v3299_v10  ;;  %v3367_v11 = vmul.f32 %v12967_v28, %v3294_v55  ;;  %3849 = vperm.xlu1 %10996, %v9501_v40   ;;  %3844 = vperm.xlu0 %10995, %v13020_v18   ;;  %v9505_v40 = vld [vmem:[%s11246_s7 + $0x7b] sm:$0xf] }
 0x3a7   : > { %v13030_v34 = vadd.f32 %v3368_v30, %v12907_v32  ;;  %v13033_v39 = vadd.f32 %v3367_v11, %v12910_v44 }
 0x3a8   : > { %v3309_v47 = vpop.permute.xlu1 %3308  ;;  %v3304_v20 = vpop.permute.xlu0 %3303 }
 0x3a9   : > { %v3370_v10 = vmul.f32 %v12967_v28, %v3309_v47  ;;  %v3369_v55 = vmul.f32 %v12967_v28, %v3304_v20  ;;  %3859 = vperm.xlu1 %10996, %v9503_v26   ;;  %3854 = vperm.xlu0 %10995, %v13027_v25   ;;  %v9507_v26 = vld [vmem:[%s11246_s7 + $0x8b] sm:$0xf] }
 0x3ab   : > { %v13043_v32 = vadd.f32 %v3370_v10, %v12920_v7  ;;  %v13046_v44 = vadd.f32 %v3369_v55, %v12923_v21 }
 0x3ac   : > { %v3319_v30 = vpop.permute.xlu1 %3318  ;;  %v3314_v11 = vpop.permute.xlu0 %3313 }
 0x3ad   : > { %v3372_v47 = vmul.f32 %v12967_v28, %v3319_v30  ;;  %v3371_v20 = vmul.f32 %v12967_v28, %v3314_v11  ;;  %3869 = vperm.xlu1 %10996, %v9505_v40   ;;  %3864 = vperm.xlu0 %10995, %v13040_v3   ;;  %v9509_v40 = vld [vmem:[%s11246_s7 + $0x9b] sm:$0xf] }
 0x3af   : > { %v13056_v7 = vadd.f32 %v3372_v47, %v12933_v60  ;;  %v13059_v21 = vadd.f32 %v3371_v20, %v12936_v43 }
 0x3b0   : > { %v3329_v10 = vpop.permute.xlu1 %3328  ;;  %v3324_v55 = vpop.permute.xlu0 %3323 }
 0x3b1   : > { %v3374_v30 = vmul.f32 %v12967_v28, %v3329_v10  ;;  %v3373_v11 = vmul.f32 %v12967_v28, %v3324_v55  ;;  %3879 = vperm.xlu1 %10996, %v9507_v26   ;;  %3874 = vperm.xlu0 %10995, %v13053_v54   ;;  %v9511_v26 = vld [vmem:[%s11246_s7 + $0xab] sm:$0xf]  ;;  %v13079_v55 = vld [vmem:[%s11246_s7 + $0xa3] sm:$0xff] }
 0x3b2   : > { %15131 = vst [vmem:[#allocation153_spill] sm:$0xff] %v13079_v55 }
 0x3b3   : > { %v13069_v60 = vadd.f32 %v3374_v30, %v12946_v33  ;;  %v13072_v43 = vadd.f32 %v3373_v11, %v12949_v19 }
 0x3b4   : > { %v3339_v47 = vpop.permute.xlu1 %3338  ;;  %v3334_v20 = vpop.permute.xlu0 %3333 }
 0x3b5   : > { %v3376_v57 = vmul.f32 %v12967_v28, %v3339_v47  ;;  %v3375_v10 = vmul.f32 %v12967_v28, %v3334_v20  ;;  %3889 = vperm.xlu1 %10996, %v9509_v40   ;;  %3884 = vperm.xlu0 %10995, %v13066_v56   ;;  %v13093_v40 = vld [vmem:[%s14963_s1 + $0x19] ss:$0 sm:$0xff] }
 0x3b7   : > { %v13082_v33 = vadd.f32 %v3376_v57, %v12957_v23  ;;  %v13085_v19 = vadd.f32 %v3375_v10, %v12960_v61  ;;  %v9513_v57 = vld [vmem:[%s11246_s7 + $0xbb] sm:$0xf]  ;;  %v13097_v23 = vld [vmem:[%s11246_s7 + $0xb3] sm:$0xff] }
 0x3b8   : > { %v3349_v30 = vpop.permute.xlu1 %3348  ;;  %v3344_v11 = vpop.permute.xlu0 %3343  ;;  %15132 = vst [vmem:[#allocation154_spill] sm:$0xff] %v13097_v23 }
 0x3b9   : > { %v3378_v47 = vmul.f32 %v12967_v28, %v3349_v30  ;;  %v3377_v20 = vmul.f32 %v12967_v28, %v3344_v11  ;;  %3899 = vperm.xlu1 %10996, %v9511_v26   ;;  %3894 = vperm.xlu0 %10995, %v13079_v55   ;;  %v9515_v11 = vld [vmem:[%s11246_s7 + $0xcb] sm:$0xf]  ;;  %v9514_v55 = vld [vmem:[%s11246_s7 + $0xc3] sm:$0xff] }
 0x3bb   : > { %v13100_v61 = vadd.f32 %v3378_v47, %v12972_v63  ;;  %v13103_v10 = vadd.f32 %v3377_v20, %v12975_v36  ;;  %v9517_v20 = vld [vmem:[%s11246_s7 + $0xdb] sm:$0xf] }
 0x3bc   : > { %v3436_v28 = vpop.permute.xlu1 %3435  ;;  %v13105_v26 = vpop.permute.xlu0 %3430 }
 0x3bd   : > { %15133 = vst [vmem:[#allocation155_spill] sm:$0xff] %v13105_v26  ;;  %v3553_v30 = vmul.f32 %v13093_v40, %v3436_v28  ;;  %3909 = vperm.xlu1 %10996, %v9513_v57   ;;  %3904 = vperm.xlu0 %10995, %v13097_v23   ;;  %v9516_v57 = vld [vmem:[%s11246_s7 + $0xd3] sm:$0xff] }
 0x3bf   : > { %v13112_v15 = vadd.f32 %v3553_v30, %v12983_v14  ;;  %v9519_v14 = vld [vmem:[%s11246_s7 + $0xeb] sm:$0xf]  ;;  %v9518_v30 = vld [vmem:[%s11246_s7 + $0xe3] sm:$0xff] }
 0x3c0   : > { %v3446_v63 = vpop.permute.xlu1 %3445  ;;  %v13114_v47 = vpop.permute.xlu0 %3440 }
 0x3c1   : > { %15134 = vst [vmem:[#allocation156_spill] sm:$0xff] %v13114_v47  ;;  %v3555_v36 = vmul.f32 %v13093_v40, %v3446_v63  ;;  %3919 = vperm.xlu1 %10996, %v9515_v11   ;;  %3914 = vperm.xlu0 %10995, %v9514_v55   ;;  %v9522_v55 = vld [vmem:[%s11246_s7 + $0x34] sm:$0xff] }
 0x3c3   : > { %v13120_v28 = vadd.f32 %v3555_v36, %v12991_v17  ;;  %v9523_v17 = vld [vmem:[%s11246_s7 + $0x3c] sm:$0xf] }
 0x3c4   : > { %v13122_v26 = vpop.permute.xlu1 %3455  ;;  %v13124_v23 = vpop.permute.xlu0 %3450 }
 0x3c5   : > { %15135 = vst [vmem:[#allocation157_spill] sm:$0xff] %v13122_v26  ;;  %15136 = vst [vmem:[#allocation158_spill] sm:$0xff] %v13124_v23  ;;  %3929 = vperm.xlu1 %10996, %v9517_v20   ;;  %3924 = vperm.xlu0 %10995, %v9516_v57   ;;  %v9525_v20 = vld [vmem:[%s11246_s7 + $0x4c] sm:$0xf]  ;;  %v13140_v57 = vld [vmem:[%s11246_s7 + $0x44] sm:$0xff] }
 0x3c8   : > { %v13128_v63 = vpop.permute.xlu1 %3465  ;;  %v13130_v11 = vpop.permute.xlu0 %3460 }
 0x3c9   : > { %15137 = vst [vmem:[#allocation159_spill] sm:$0xff] %v13128_v63  ;;  %15138 = vst [vmem:[#allocation160_spill] sm:$0xff] %v13130_v11  ;;  %3939 = vperm.xlu1 %10996, %v9519_v14   ;;  %3934 = vperm.xlu0 %10995, %v9518_v30   ;;  %v9527_v14 = vld [vmem:[%s11246_s7 + $0x5c] sm:$0xf]  ;;  %v13149_v30 = vld [vmem:[%s11246_s7 + $0x54] sm:$0xff] }
 0x3ca   : > { %v13156_v11 = vld [vmem:[%s11246_s7 + $0x64] sm:$0xff] }
 0x3cc   : > { %v13134_v36 = vpop.permute.xlu1 %3475  ;;  %v13136_v26 = vpop.permute.xlu0 %3470 }
 0x3cd   : > { %15139 = vst [vmem:[#allocation161_spill] sm:$0xff] %v13134_v36  ;;  %15140 = vst [vmem:[#allocation162_spill] sm:$0xff] %v13136_v26  ;;  %4026 = vperm.xlu1 %10996, %v9523_v17   ;;  %4021 = vperm.xlu0 %10995, %v9522_v55  }
 0x3d0   : > { %v13142_v63 = vpop.permute.xlu1 %3485  ;;  %v13144_v23 = vpop.permute.xlu0 %3480 }
 0x3d1   : > { %15141 = vst [vmem:[#allocation163_spill] sm:$0xff] %v13142_v63  ;;  %15142 = vst [vmem:[#allocation164_spill] sm:$0xff] %v13144_v23  ;;  %4036 = vperm.xlu1 %10996, %v9525_v20   ;;  %4031 = vperm.xlu0 %10995, %v13140_v57   ;;  %v9529_v63 = vld [vmem:[%s11246_s7 + $0x6c] sm:$0xf] }
 0x3d4   : > { %v3496_v36 = vpop.permute.xlu1 %3495  ;;  %v3491_v26 = vpop.permute.xlu0 %3490 }
 0x3d5   : > { %v3565_v17 = vmul.f32 %v13093_v40, %v3496_v36  ;;  %v3564_v55 = vmul.f32 %v13093_v40, %v3491_v26  ;;  %4046 = vperm.xlu1 %10996, %v9527_v14   ;;  %4041 = vperm.xlu0 %10995, %v13149_v30   ;;  %v9531_v14 = vld [vmem:[%s11246_s7 + $0x7c] sm:$0xf] }
 0x3d7   : > { %v13159_v20 = vadd.f32 %v3565_v17, %v13030_v34  ;;  %v13162_v23 = vadd.f32 %v3564_v55, %v13033_v39 }
 0x3d8   : > { %v3506_v47 = vpop.permute.xlu1 %3505  ;;  %v3501_v0 = vpop.permute.xlu0 %3500 }
 0x3d9   : > { %v3567_v36 = vmul.f32 %v13093_v40, %v3506_v47  ;;  %v3566_v26 = vmul.f32 %v13093_v40, %v3501_v0  ;;  %4056 = vperm.xlu1 %10996, %v9529_v63   ;;  %4051 = vperm.xlu0 %10995, %v13156_v11   ;;  %v9533_v63 = vld [vmem:[%s11246_s7 + $0x8c] sm:$0xf] }
 0x3db   : > { %v13172_v34 = vadd.f32 %v3567_v36, %v13043_v32  ;;  %v13175_v39 = vadd.f32 %v3566_v26, %v13046_v44 }
 0x3dc   : > { %v3516_v17 = vpop.permute.xlu1 %3515  ;;  %v3511_v55 = vpop.permute.xlu0 %3510 }
 0x3dd   : > { %v3569_v47 = vmul.f32 %v13093_v40, %v3516_v17  ;;  %v3568_v0 = vmul.f32 %v13093_v40, %v3511_v55  ;;  %4066 = vperm.xlu1 %10996, %v9531_v14   ;;  %4061 = vperm.xlu0 %10995, %v13169_v9   ;;  %v9535_v14 = vld [vmem:[%s11246_s7 + $0x9c] sm:$0xf] }
 0x3df   : > { %v13185_v32 = vadd.f32 %v3569_v47, %v13056_v7  ;;  %v13188_v44 = vadd.f32 %v3568_v0, %v13059_v21 }
 0x3e0   : > { %v3526_v36 = vpop.permute.xlu1 %3525  ;;  %v3521_v26 = vpop.permute.xlu0 %3520 }
 0x3e1   : > { %v3571_v17 = vmul.f32 %v13093_v40, %v3526_v36  ;;  %v3570_v55 = vmul.f32 %v13093_v40, %v3521_v26  ;;  %4076 = vperm.xlu1 %10996, %v9533_v63   ;;  %4071 = vperm.xlu0 %10995, %v13182_v2   ;;  %v9537_v63 = vld [vmem:[%s11246_s7 + $0xac] sm:$0xf]  ;;  %v13208_v26 = vld [vmem:[%s11246_s7 + $0xa4] sm:$0xff] }
 0x3e2   : > { %15144 = vst [vmem:[#allocation166_spill] sm:$0xff] %v13208_v26 }
 0x3e3   : > { %v13198_v7 = vadd.f32 %v3571_v17, %v13069_v60  ;;  %v13201_v21 = vadd.f32 %v3570_v55, %v13072_v43 }
 0x3e4   : > { %v3536_v47 = vpop.permute.xlu1 %3535  ;;  %v3531_v0 = vpop.permute.xlu0 %3530 }
 0x3e5   : > { %v3573_v58 = vmul.f32 %v13093_v40, %v3536_v47  ;;  %v3572_v36 = vmul.f32 %v13093_v40, %v3531_v0  ;;  %4086 = vperm.xlu1 %10996, %v9535_v14   ;;  %4081 = vperm.xlu0 %10995, %v13195_v59   ;;  %v13222_v14 = vld [vmem:[%s14963_s1 + $0x1a] ss:$0 sm:$0xff] }
 0x3e7   : > { %v13211_v60 = vadd.f32 %v3573_v58, %v13082_v33  ;;  %v13214_v43 = vadd.f32 %v3572_v36, %v13085_v19  ;;  %v9539_v58 = vld [vmem:[%s11246_s7 + $0xbc] sm:$0xf]  ;;  %v13226_v33 = vld [vmem:[%s11246_s7 + $0xb4] sm:$0xff] }
 0x3e8   : > { %v3546_v17 = vpop.permute.xlu1 %3545  ;;  %v3541_v55 = vpop.permute.xlu0 %3540  ;;  %15145 = vst [vmem:[#allocation167_spill] sm:$0xff] %v13226_v33 }
 0x3e9   : > { %v3575_v47 = vmul.f32 %v13093_v40, %v3546_v17  ;;  %v3574_v0 = vmul.f32 %v13093_v40, %v3541_v55  ;;  %4096 = vperm.xlu1 %10996, %v9537_v63   ;;  %4091 = vperm.xlu0 %10995, %v13208_v26   ;;  %v9550_v55 = vld [vmem:[%s11246_s7 + $0x50] sm:$0xff]  ;;  %v9548_v26 = vld [vmem:[%s11246_s7 + $0x40] sm:$0xff] }
 0x3eb   : > { %v13229_v19 = vadd.f32 %v3575_v47, %v13100_v61  ;;  %v13232_v36 = vadd.f32 %v3574_v0, %v13103_v10  ;;  %v9553_v0 = vld [vmem:[%s11246_s7 + $0x68] sm:$0xf] }
 0x3ec   : > { %v3633_v40 = vpop.permute.xlu1 %3632  ;;  %v13234_v63 = vpop.permute.xlu0 %3627 }
 0x3ed   : > { %15146 = vst [vmem:[#allocation168_spill] sm:$0xff] %v13234_v63  ;;  %v3750_v17 = vmul.f32 %v13222_v14, %v3633_v40  ;;  %4106 = vperm.xlu1 %10996, %v9539_v58   ;;  %4101 = vperm.xlu0 %10995, %v13226_v33   ;;  %v9552_v63 = vld [vmem:[%s11246_s7 + $0x60] sm:$0xff] }
 0x3ef   : > { %v13241_v59 = vadd.f32 %v3750_v17, %v13112_v15  ;;  %v9554_v15 = vld [vmem:[%s11246_s7 + $0x70] sm:$0xff] }
 0x3f0   : > { %v3643_v61 = vpop.permute.xlu1 %3642  ;;  %v13243_v47 = vpop.permute.xlu0 %3637 }
 0x3f1   : > { %15147 = vst [vmem:[#allocation169_spill] sm:$0xff] %v13243_v47  ;;  %v3752_v10 = vmul.f32 %v13222_v14, %v3643_v61  ;;  %4230 = vperm.xlu1 %10996, %v9550_v55   ;;  %4220 = vperm.xlu0 %10995, %v9548_v26   ;;  %v9555_v26 = vld [vmem:[%s11246_s7 + $0x78] sm:$0xf]  ;;  %v9579_v61 = vld [vmem:[%s11246_s7 + $0x69] sm:$0xf] }
 0x3f3   : > { %v13249_v58 = vadd.f32 %v3752_v10, %v13120_v28 }
 0x3f4   : > { %v13251_v40 = vpop.permute.xlu1 %3652  ;;  %v13253_v33 = vpop.permute.xlu0 %3647 }
 0x3f5   : > { %4245 = vperm.xlu1 %10996, %v9553_v0   ;;  %4240 = vperm.xlu0 %10995, %v9552_v63  }
 0x3f8   : > { %v13256_v17 = vpop.permute.xlu1 %3662  ;;  %v13258_v47 = vpop.permute.xlu0 %3657 }
 0x3f9   : > { %4250 = vperm.xlu1 %10996, %v9554_v15   ;;  %4417 = vperm.xlu0 %10995, %v12771_v12  }
 0x3fc   : > { %v13262_v55 = vpop.permute.xlu1 %3672  ;;  %v13264_v28 = vpop.permute.xlu0 %3667 }
 0x3fd   : > { %15148 = vst [vmem:[#allocation170_spill] sm:$0xff] %v13262_v55  ;;  %15149 = vst [vmem:[#allocation171_spill] sm:$0xff] %v13264_v28  ;;  %4427 = vperm.xlu1 %10996, %v12780_v1   ;;  %4255 = vperm.xlu0 %10995, %v9555_v26   ;;  %v9581_v1 = vld [vmem:[%s11246_s7 + $0x79] sm:$0xf]  ;;  %v15283_v28 = vld [vmem:[#allocation98_spill] sm:$0xff] }
 0x400   : > { %v13268_v10 = vpop.permute.xlu1 %3682  ;;  %v13270_v63 = vpop.permute.xlu0 %3677 }
 0x401   : > { %15150 = vst [vmem:[#allocation172_spill] sm:$0xff] %v13268_v10  ;;  %15151 = vst [vmem:[#allocation173_spill] sm:$0xff] %v13270_v63  ;;  %4442 = vperm.xlu1 %10996, %v9579_v61   ;;  %4437 = vperm.xlu0 %10995, %v12787_v6  }
 0x404   : > { %v3693_v0 = vpop.permute.xlu1 %3692  ;;  %v3688_v12 = vpop.permute.xlu0 %3687 }
 0x405   : > { %v3762_v15 = vmul.f32 %v13222_v14, %v3693_v0  ;;  %v3761_v55 = vmul.f32 %v13222_v14, %v3688_v12  ;;  %4447 = vperm.xlu1 %10996, %v12800_v50   ;;  %4614 = vperm.xlu0 %10995, %v12888_v22   ;;  %v9557_v50 = vld [vmem:[%s11246_s7 + $0x88] sm:$0xf]  ;;  %v9556_v12 = vld [vmem:[%s11246_s7 + $0x80] sm:$0xff] }
 0x407   : > { %v13279_v26 = vadd.f32 %v3762_v15, %v13159_v20  ;;  %v13282_v61 = vadd.f32 %v3761_v55, %v13162_v23 }
 0x408   : > { %v3703_v6 = vpop.permute.xlu1 %3702  ;;  %v3698_v63 = vpop.permute.xlu0 %3697 }
 0x409   : > { %v3764_v10 = vmul.f32 %v13222_v14, %v3703_v6  ;;  %v3763_v0 = vmul.f32 %v13222_v14, %v3698_v63  ;;  %4624 = vperm.xlu1 %10996, %v12897_v62   ;;  %4452 = vperm.xlu0 %10995, %v9581_v1   ;;  %v9605_v63 = vld [vmem:[%s11246_s7 + $0x6a] sm:$0xf] }
 0x40b   : > { %v13290_v22 = vadd.f32 %v3764_v10, %v13172_v34  ;;  %v13293_v20 = vadd.f32 %v3763_v0, %v13175_v39 }
 0x40c   : > { %v3713_v23 = vpop.permute.xlu1 %3712  ;;  %v3708_v55 = vpop.permute.xlu0 %3707 }
 0x40d   : > { %v3766_v15 = vmul.f32 %v13222_v14, %v3713_v23  ;;  %v3765_v6 = vmul.f32 %v13222_v14, %v3708_v55  ;;  %4265 = vperm.xlu1 %10996, %v9557_v50   ;;  %4260 = vperm.xlu0 %10995, %v9556_v12   ;;  %v9558_v23 = vld [vmem:[%s11246_s7 + $0x90] sm:$0xff] }
 0x40f   : > { %v13299_v62 = vadd.f32 %v3766_v15, %v13185_v32  ;;  %v13302_v1 = vadd.f32 %v3765_v6, %v13188_v44  ;;  %v9559_v6 = vld [vmem:[%s11246_s7 + $0x98] sm:$0xf] }
 0x410   : > { %v3723_v34 = vpop.permute.xlu1 %3722  ;;  %v3718_v39 = vpop.permute.xlu0 %3717 }
 0x411   : > { %v3768_v10 = vmul.f32 %v13222_v14, %v3723_v34  ;;  %v3767_v0 = vmul.f32 %v13222_v14, %v3718_v39  ;;  %4639 = vperm.xlu1 %10996, %v9605_v63   ;;  %4634 = vperm.xlu0 %10995, %v12904_v16  }
 0x413   : > { %v13309_v50 = vadd.f32 %v3768_v10, %v13198_v7  ;;  %v13312_v32 = vadd.f32 %v3767_v0, %v13201_v21 }
 0x414   : > { %v3733_v12 = vpop.permute.xlu1 %3732  ;;  %v3728_v44 = vpop.permute.xlu0 %3727 }
 0x415   : > { %v3770_v55 = vmul.f32 %v13222_v14, %v3733_v12  ;;  %v3769_v15 = vmul.f32 %v13222_v14, %v3728_v44  ;;  %4270 = vperm.xlu1 %10996, %v9558_v23   ;;  %4811 = vperm.xlu0 %10995, %v13011_v8   ;;  %v13330_v8 = vld [vmem:[%s14963_s1 + $0x1b] ss:$0 sm:$0xff]  ;;  %v9582_v12 = vld [vmem:[%s11246_s7 + $0x81] sm:$0xff] }
 0x417   : > { %v13319_v16 = vadd.f32 %v3770_v55, %v13211_v60  ;;  %v13322_v7 = vadd.f32 %v3769_v15, %v13214_v43  ;;  %v9607_v60 = vld [vmem:[%s11246_s7 + $0x7a] sm:$0xf]  ;;  %v9631_v15 = vld [vmem:[%s11246_s7 + $0x6b] sm:$0xf] }
 0x418   : > { %v3743_v21 = vpop.permute.xlu1 %3742  ;;  %v3738_v63 = vpop.permute.xlu0 %3737 }
 0x419   : > { %v3772_v34 = vmul.f32 %v13222_v14, %v3743_v21  ;;  %v3771_v39 = vmul.f32 %v13222_v14, %v3738_v63  ;;  %4644 = vperm.xlu1 %10996, %v12917_v24   ;;  %4275 = vperm.xlu0 %10995, %v9559_v6   ;;  %v9583_v24 = vld [vmem:[%s11246_s7 + $0x89] sm:$0xf] }
 0x41b   : > { %v13334_v43 = vadd.f32 %v3772_v34, %v13229_v19  ;;  %v13337_v10 = vadd.f32 %v3771_v39, %v13232_v36  ;;  %v9585_v39 = vld [vmem:[%s11246_s7 + $0x99] sm:$0xf] }
 0x41c   : > { %v3830_v0 = vpop.permute.xlu1 %3829  ;;  %v13339_v23 = vpop.permute.xlu0 %3824 }
 0x41d   : > { %v3947_v14 = vmul.f32 %v13330_v8, %v3830_v0  ;;  %4821 = vperm.xlu1 %10996, %v13020_v18   ;;  %4649 = vperm.xlu0 %10995, %v9607_v60   ;;  %v9633_v0 = vld [vmem:[%s11246_s7 + $0x7b] sm:$0xf] }
 0x41f   : > { %v13346_v44 = vadd.f32 %v3947_v14, %v13241_v59  ;;  %v9584_v59 = vld [vmem:[%s11246_s7 + $0x91] sm:$0xff] }
 0x420   : > { %v3840_v55 = vpop.permute.xlu1 %3839  ;;  %v13348_v19 = vpop.permute.xlu0 %3834 }
 0x421   : > { %15152 = vst [vmem:[#allocation174_spill] sm:$0xff] %v13346_v44  ;;  %v3949_v36 = vmul.f32 %v13330_v8, %v3840_v55  ;;  %4462 = vperm.xlu1 %10996, %v9583_v24   ;;  %4457 = vperm.xlu0 %10995, %v9582_v12   ;;  %v9609_v24 = vld [vmem:[%s11246_s7 + $0x8a] sm:$0xf] }
 0x423   : > { %v13353_v6 = vadd.f32 %v3949_v36, %v13249_v58 }
 0x424   : > { %v13355_v18 = vpop.permute.xlu1 %3849  ;;  %v13357_v21 = vpop.permute.xlu0 %3844 }
 0x425   : > { %15153 = vst [vmem:[#allocation175_spill] sm:$0xff] %v13353_v6  ;;  %4836 = vperm.xlu1 %10996, %v9631_v15   ;;  %4831 = vperm.xlu0 %10995, %v13027_v25   ;;  %v5243_v15 = vld [vmem:[#allocation3] sm:$0xff] }
 0x428   : > { %v13361_v63 = vpop.permute.xlu1 %3859  ;;  %v13363_v34 = vpop.permute.xlu0 %3854 }
 0x429   : > { %4467 = vperm.xlu1 %10996, %v9584_v59   ;;  %5008 = vperm.xlu0 %10995, %v13140_v57   ;;  %v5244_v59 = vld [vmem:[#allocation3 + $0x8] sm:$0xff] }
 0x42c   : > { %v13367_v60 = vpop.permute.xlu1 %3869  ;;  %v13369_v58 = vpop.permute.xlu0 %3864 }
 0x42d   : > { %15154 = vst [vmem:[#allocation176_spill] sm:$0xff] %v13367_v60  ;;  %15155 = vst [vmem:[#allocation177_spill] sm:$0xff] %v13369_v58  ;;  %4841 = vperm.xlu1 %10996, %v13040_v3   ;;  %4472 = vperm.xlu0 %10995, %v9585_v39   ;;  %v9657_v3 = vld [vmem:[%s11246_s7 + $0x6c] sm:$0xf] }
 0x430   : > { %v13373_v25 = vpop.permute.xlu1 %3879  ;;  %v13375_v14 = vpop.permute.xlu0 %3874 }
 0x431   : > { %15156 = vst [vmem:[#allocation178_spill] sm:$0xff] %v13373_v25  ;;  %15157 = vst [vmem:[#allocation179_spill] sm:$0xff] %v13375_v14  ;;  %5018 = vperm.xlu1 %10996, %v13149_v30   ;;  %4846 = vperm.xlu0 %10995, %v9633_v0   ;;  %v10636_v0 = vpack.c.bf16 %v5244_v59, %v5243_v15  ;;  %v15253_v25 = vld [vmem:[#allocation72_spill] sm:$0xff] }
 0x433   : > { %10637 = vmatprep.subr.bf16.mxu1 %v10636_v0 }
 0x434   : > { %v3890_v12 = vpop.permute.xlu1 %3889  ;;  %v3885_v57 = vpop.permute.xlu0 %3884  ;;  %10639 = vmatpush3.bf16.msra.mxu1 %v10636_v0 }
 0x435   : > { %v3959_v55 = vmul.f32 %v13330_v8, %v3890_v12  ;;  %v3958_v36 = vmul.f32 %v13330_v8, %v3885_v57  ;;  %4659 = vperm.xlu1 %10996, %v9609_v24   ;;  %4654 = vperm.xlu0 %10995, %v12930_v27   ;;  %v9611_v27 = vld [vmem:[%s11246_s7 + $0x9a] sm:$0xf] }
 0x437   : > { %v13384_v39 = vadd.f32 %v3959_v55, %v13279_v26  ;;  %v13387_v30 = vadd.f32 %v3958_v36, %v13282_v61  ;;  %v5245_v55 = vld [vmem:[#allocation3 + $0x10] sm:$0xf] }
 0x438   : > { %v3900_v6 = vpop.permute.xlu1 %3899  ;;  %v3895_v44 = vpop.permute.xlu0 %3894  ;;  %10190 = vmatprep.subr.msk.mxu1 %vm5270_vm0, %v5245_v55 }
 0x439   : > { %15158 = vst [vmem:[#allocation180_spill] sm:$0xff] %v13384_v39  ;;  %15159 = vst [vmem:[#allocation181_spill] sm:$0xff] %v13387_v30  ;;  %v3961_v12 = vmul.f32 %v13330_v8, %v3900_v6  ;;  %v3960_v14 = vmul.f32 %v13330_v8, %v3895_v44  ;;  %5033 = vperm.xlu1 %10996, %v9657_v3   ;;  %5028 = vperm.xlu0 %10995, %v13156_v11   ;;  %v9659_v11 = vld [vmem:[%s11246_s7 + $0x7c] sm:$0xf]  ;;  %v15194_v39 = vld [vmem:[#allocation26_spill] sm:$0xff] }
 0x43a   : > { %10191 = vmatpush3.msk.msra.mxu1 %vm5270_vm0, %v5245_v55  ;;  %v7071_v55 = vld [vmem:[#allocation3 + $0x128] sm:$0xff] }
 0x43b   : > { %v13394_v24 = vadd.f32 %v3961_v12, %v13290_v22  ;;  %v13397_v26 = vadd.f32 %v3960_v14, %v13293_v20 }
 0x43c   : > { %v3910_v61 = vpop.permute.xlu1 %3909  ;;  %v3905_v57 = vpop.permute.xlu0 %3904 }
 0x43d   : > { %15160 = vst [vmem:[#allocation182_spill] sm:$0xff] %v13394_v24  ;;  %15161 = vst [vmem:[#allocation183_spill] sm:$0xff] %v13397_v26  ;;  %v3963_v44 = vmul.f32 %v13330_v8, %v3910_v61  ;;  %v3962_v6 = vmul.f32 %v13330_v8, %v3905_v57  ;;  %4669 = vperm.xlu1 %10996, %v9611_v27   ;;  %4664 = vperm.xlu0 %10995, %v12943_v53   ;;  %v9560_v53 = vld [vmem:[%s11246_s7 + $0xa0] sm:$0xff]  ;;  %v9562_v61 = vld [vmem:[%s11246_s7 + $0xb0] sm:$0xff] }
 0x43e   : > { %v9635_v57 = vld [vmem:[%s11246_s7 + $0x8b] sm:$0xf] }
 0x43f   : > { %v13405_v22 = vadd.f32 %v3963_v44, %v13299_v62  ;;  %v13408_v20 = vadd.f32 %v3962_v6, %v13302_v1 }
 0x440   : > { %v3920_v14 = vpop.permute.xlu1 %3919  ;;  %v3915_v36 = vpop.permute.xlu0 %3914 }
 0x441   : > { %15162 = vst [vmem:[#allocation184_spill] sm:$0xff] %v13405_v22  ;;  %15163 = vst [vmem:[#allocation185_spill] sm:$0xff] %v13408_v20  ;;  %v3965_v3 = vmul.f32 %v13330_v8, %v3920_v14  ;;  %v3964_v15 = vmul.f32 %v13330_v8, %v3915_v36  ;;  %5043 = vperm.xlu1 %10996, %v9659_v11   ;;  %5038 = vperm.xlu0 %10995, %v13169_v9   ;;  %v7070_v9 = vld [vmem:[#allocation3 + $0x120] sm:$0xff]  ;;  %v9551_v20 = vld [vmem:[%s11246_s7 + $0x58] sm:$0xf] }
 0x442   : > { %v13432_v44 = vpack.c.bf16 %v7071_v55, %v7070_v9 }
 0x443   : > { %v13416_v62 = vadd.f32 %v3965_v3, %v13309_v50  ;;  %v13419_v1 = vadd.f32 %v3964_v15, %v13312_v32 }
 0x444   : > { %v3930_v59 = vpop.permute.xlu1 %3929  ;;  %v3925_v0 = vpop.permute.xlu0 %3924  ;;  %15168 = vst [vmem:[#allocation190_spill] sm:$0xff] %v13432_v44  ;;  %10685 = vmatprep.subr.bf16.mxu0 %v13432_v44 }
 0x445   : > { %15164 = vst [vmem:[#allocation186_spill] sm:$0xff] %v13416_v62  ;;  %15165 = vst [vmem:[#allocation187_spill] sm:$0xff] %v13419_v1  ;;  %v3967_v12 = vmul.f32 %v13330_v8, %v3930_v59  ;;  %v3966_v27 = vmul.f32 %v13330_v8, %v3925_v0  ;;  %4851 = vperm.xlu1 %10996, %v13053_v54   ;;  %4280 = vperm.xlu0 %10995, %v9560_v53   ;;  %v9637_v54 = vld [vmem:[%s11246_s7 + $0x9b] sm:$0xf]  ;;  %v7072_v53 = vld [vmem:[#allocation3 + $0x130] sm:$0xf] }
 0x446   : > { %10687 = vmatpush3.bf16.msra.mxu0 %v13432_v44  ;;  %v9586_v0 = vld [vmem:[%s11246_s7 + $0xa1] sm:$0xff]  ;;  %v9663_v44 = vld [vmem:[%s11246_s7 + $0x9c] sm:$0xf] }
 0x447   : > { %v13427_v50 = vadd.f32 %v3967_v12, %v13319_v16  ;;  %v13430_v32 = vadd.f32 %v3966_v27, %v13322_v7  ;;  %10406 = vmatprep.subr.msk.mxu0 %vm5270_vm0, %v7072_v53 }
 0x448   : > { %v3940_v6 = vpop.permute.xlu1 %3939  ;;  %v3935_v11 = vpop.permute.xlu0 %3934 }
 0x449   : > { %15166 = vst [vmem:[#allocation188_spill] sm:$0xff] %v13427_v50  ;;  %15167 = vst [vmem:[#allocation189_spill] sm:$0xff] %v13430_v32  ;;  %v3969_v14 = vmul.f32 %v13330_v8, %v3940_v6  ;;  %v3968_v36 = vmul.f32 %v13330_v8, %v3935_v11  ;;  %4290 = vperm.xlu1 %10996, %v9562_v61   ;;  %4856 = vperm.xlu0 %10995, %v9635_v57   ;;  %v10997_v8 = vld [vmem:[%s14963_s1] ss:$0 sm:$0xff]  ;;  %v9588_v6 = vld [vmem:[%s11246_s7 + $0xb1] sm:$0xff] }
 0x44a   : > { %v396_v59 = vmul.f32 %v10997_v8, %v11362_v4  ;;  %10407 = vmatpush3.msk.msra.mxu0 %vm5270_vm0, %v7072_v53  ;;  %v398_v12 = vmul.f32 %v10997_v8, %v11390_v31  ;;  %v401_v27 = vmul.f32 %v10997_v8, %v11394_v37  ;;  %v403_v57 = vmul.f32 %v10997_v8, %v11400_v41  ;;  %v9661_v11 = vld [vmem:[%s11246_s7 + $0x8c] sm:$0xf] }
 0x44b   : > { %v13439_v16 = vadd.f32 %v3969_v14, %v13334_v43  ;;  %v13442_v7 = vadd.f32 %v3968_v36, %v13337_v10  ;;  %v394_v43 = vmul.f32 %v10997_v8, %v11364_v5  ;;  %v399_v10 = vmul.f32 %v10997_v8, %v11388_v29  ;;  %v10998_v5 = vld [vmem:[%s14964_s2] ss:$0 sm:$0xff]  ;;  %v10999_v36 = vld [vmem:[%s14963_s1 + $0x1] ss:$0 sm:$0xff] }
 0x44c   : > { %v13445_v3 = vpop.permute.xlu1 %4026  ;;  %v13447_v15 = vpop.permute.xlu0 %4021  ;;  %v420_v29 = vadd.f32 %v10998_v5, %v396_v59  ;;  %v402_v37 = vmul.f32 %v10997_v8, %v11402_v42  ;;  %v405_v55 = vmul.f32 %v10997_v8, %v11406_v45  ;;  %v404_v14 = vmul.f32 %v10997_v8, %v11408_v46 }
 0x44d   : > { %15169 = vst [vmem:[#allocation191_spill] sm:$0xff] %v13439_v16  ;;  %15170 = vst [vmem:[#allocation192_spill] sm:$0xff] %v13442_v7  ;;  %4866 = vperm.xlu1 %10996, %v9637_v54   ;;  %4861 = vperm.xlu0 %10995, %v13066_v56   ;;  %v400_v56 = vmul.f32 %v10997_v8, %v11396_v38  ;;  %v418_v9 = vadd.f32 %v10998_v5, %v394_v43 }
 0x44e   : > { %15171 = vst [vmem:[#allocation193_spill] sm:$0xff] %v13445_v3  ;;  %v423_v31 = vadd.f32 %v10998_v5, %v399_v10  ;;  %v591_v38 = vmul.f32 %v10999_v36, %v11477_v13  ;;  %v593_v41 = vmul.f32 %v10999_v36, %v11485_v35  ;;  %v422_v54 = vadd.f32 %v10998_v5, %v398_v12  ;;  %v15174_v12 = vld [vmem:[#allocation10_spill] sm:$0xff]  ;;  %v15210_v3 = vld [vmem:[#allocation37_spill] sm:$0xff] }
 0x44f   : > { %v425_v53 = vadd.f32 %v10998_v5, %v401_v27  ;;  %v595_v42 = vmul.f32 %v10999_v36, %v11495_v49  ;;  %v598_v45 = vmul.f32 %v10999_v36, %v11499_v51  ;;  %v424_v8 = vadd.f32 %v10998_v5, %v400_v56  ;;  %v15175_v56 = vld [vmem:[#allocation11_spill] sm:$0xff] }
 0x450   : > { %v13461_v61 = vpop.permute.xlu1 %4036  ;;  %v13463_v4 = vpop.permute.xlu0 %4031  ;;  %v427_v43 = vadd.f32 %v10998_v5, %v403_v57  ;;  %v597_v10 = vmul.f32 %v10999_v36, %v11501_v52  ;;  %v426_v13 = vadd.f32 %v10998_v5, %v402_v37  ;;  %v429_v35 = vadd.f32 %v10998_v5, %v405_v55  ;;  %v15176_v52 = vld [vmem:[#allocation12_spill] sm:$0xff] }
 0x451   : > { %15172 = vst [vmem:[#allocation194_spill] sm:$0xff] %v13461_v61  ;;  %5048 = vperm.xlu1 %10996, %v13182_v2   ;;  %4477 = vperm.xlu0 %10995, %v9586_v0   ;;  %v596_v2 = vmul.f32 %v10999_v36, %v11493_v48  ;;  %v15173_v48 = vld [vmem:[#allocation9_spill] sm:$0xff]  ;;  %v599_v27 = vmul.f32 %v10999_v36, %v15174_v12  ;;  %v15184_v12 = vld [vmem:[#allocation18_spill] sm:$0xff] }
 0x452   : > { %v600_v0 = vmul.f32 %v10999_v36, %v15173_v48  ;;  %v428_v49 = vadd.f32 %v10998_v5, %v404_v14  ;;  %v615_v16 = vadd.f32 %v591_v38, %v418_v9  ;;  %v617_v51 = vadd.f32 %v593_v41, %v420_v29  ;;  %v11000_v5 = vld [vmem:[%s14963_s1 + $0x2] ss:$0 sm:$0xff]  ;;  %v15178_v9 = vld [vmem:[#allocation13_spill] sm:$0xff]  ;;  %v9549_v48 = vld [vmem:[%s11246_s7 + $0x48] sm:$0xf] }
 0x453   : > { %v620_v7 = vadd.f32 %v596_v2, %v423_v31  ;;  %v619_v50 = vadd.f32 %v595_v42, %v422_v54  ;;  %v622_v32 = vadd.f32 %v598_v45, %v425_v53  ;;  %v602_v57 = vmul.f32 %v10999_v36, %v15175_v56  ;;  %v15179_v31 = vld [vmem:[#allocation14_spill] sm:$0xff]  ;;  %v15180_v38 = vld [vmem:[#allocation165_spill] sm:$0xff]  ;;  %v15181_v54 = vld [vmem:[#allocation15_spill] sm:$0xff] }
 0x454   : > { %v13484_v59 = vpop.permute.xlu1 %4046  ;;  %v13486_v46 = vpop.permute.xlu0 %4041  ;;  %v621_v55 = vadd.f32 %v597_v10, %v424_v8  ;;  %v788_v29 = vmul.f32 %v11000_v5, %v15178_v9  ;;  %v790_v14 = vmul.f32 %v11000_v5, %v15179_v31  ;;  %v624_v41 = vadd.f32 %v600_v0, %v427_v43  ;;  %v15182_v53 = vld [vmem:[#allocation16_spill] sm:$0xff]  ;;  %v9612_v45 = vld [vmem:[%s11246_s7 + $0xa2] sm:$0xff]  ;;  %v15183_v8 = vld [vmem:[#allocation17_spill] sm:$0xff] }
 0x455   : > { %4487 = vperm.xlu1 %10996, %v9588_v6   ;;  %5053 = vperm.xlu0 %10995, %v9661_v11   ;;  %v601_v6 = vmul.f32 %v10999_v36, %v15176_v52  ;;  %v623_v2 = vadd.f32 %v599_v27, %v426_v13  ;;  %v793_v36 = vmul.f32 %v11000_v5, %v15181_v54  ;;  %v15185_v52 = vld [vmem:[#allocation19_spill] sm:$0xff]  ;;  %v15186_v9 = vld [vmem:[#allocation20_spill] sm:$0xff]  ;;  %v15188_v13 = vld [vmem:[#allocation22_spill] sm:$0xff] }
 0x456   : > { %v792_v42 = vmul.f32 %v11000_v5, %v15182_v53  ;;  %v795_v10 = vmul.f32 %v11000_v5, %v15183_v8  ;;  %v794_v56 = vmul.f32 %v11000_v5, %v15184_v12  ;;  %v797_v62 = vmul.f32 %v11000_v5, %v15185_v52  ;;  %v11001_v12 = vld [vmem:[%s14963_s1 + $0x3] ss:$0 sm:$0xff]  ;;  %v15191_v52 = vld [vmem:[#allocation23_spill] sm:$0xff] }
 0x457   : > { %v796_v1 = vmul.f32 %v11000_v5, %v15186_v9  ;;  %v626_v31 = vadd.f32 %v602_v57, %v429_v35  ;;  %v798_v0 = vmul.f32 %v11000_v5, %v15188_v13  ;;  %v812_v53 = vadd.f32 %v788_v29, %v615_v16  ;;  %v15192_v57 = vld [vmem:[#allocation24_spill] sm:$0xff] }
 0x458   : > { %v13494_v11 = vpop.permute.xlu1 %4056  ;;  %v13496_v37 = vpop.permute.xlu0 %4051  ;;  %v814_v8 = vadd.f32 %v790_v14, %v617_v51  ;;  %v985_v9 = vmul.f32 %v11001_v12, %v15191_v52  ;;  %v817_v35 = vadd.f32 %v793_v36, %v620_v7  ;;  %v9614_v13 = vld [vmem:[%s11246_s7 + $0xb2] sm:$0xff]  ;;  %v819_v22 = vadd.f32 %v795_v10, %v622_v32  ;;  %v9561_v10 = vld [vmem:[%s11246_s7 + $0xa8] sm:$0xf] }
 0x459   : > { %15177 = vst [vmem:[#allocation9_spill] sm:$0xff] %v13496_v37  ;;  %5063 = vperm.xlu1 %10996, %v9663_v44   ;;  %5058 = vperm.xlu0 %10995, %v15180_v38   ;;  %v625_v44 = vadd.f32 %v601_v6, %v428_v49  ;;  %v15187_v38 = vld [vmem:[#allocation21_spill] sm:$0xff]  ;;  %v816_v49 = vadd.f32 %v792_v42, %v619_v50  ;;  %v15198_v42 = vld [vmem:[#allocation28_spill] sm:$0xff] }
 0x45a   : > { %v799_v43 = vmul.f32 %v11000_v5, %v15187_v38  ;;  %v987_v6 = vmul.f32 %v11001_v12, %v15192_v57  ;;  %v15193_v38 = vld [vmem:[#allocation25_spill] sm:$0xff]  ;;  %v818_v16 = vadd.f32 %v794_v56, %v621_v55  ;;  %v821_v51 = vadd.f32 %v797_v62, %v624_v41  ;;  %v9575_v62 = vld [vmem:[%s11246_s7 + $0x49] sm:$0xf]  ;;  %v15200_v55 = vld [vmem:[#allocation30_spill] sm:$0xff] }
 0x45b   : > { %v990_v5 = vmul.f32 %v11001_v12, %v15193_v38  ;;  %v820_v29 = vadd.f32 %v796_v1, %v623_v2  ;;  %v822_v24 = vadd.f32 %v798_v0, %v625_v44  ;;  %v989_v52 = vmul.f32 %v11001_v12, %v15194_v39  ;;  %v15199_v38 = vld [vmem:[#allocation29_spill] sm:$0xff]  ;;  %v15201_v2 = vld [vmem:[#allocation31_spill] sm:$0xff]  ;;  %v15202_v44 = vld [vmem:[#allocation32_spill] sm:$0xff] }
 0x45c   : > { %v13514_v27 = vpop.permute.xlu1 %4066  ;;  %v13516_v54 = vpop.permute.xlu0 %4061  ;;  %v823_v14 = vadd.f32 %v799_v43, %v626_v31  ;;  %v1009_v36 = vadd.f32 %v985_v9, %v812_v53  ;;  %v991_v57 = vmul.f32 %v11001_v12, %v15198_v42  ;;  %v994_v61 = vmul.f32 %v11001_v12, %v15199_v38  ;;  %v7222_v56 = vld [vmem:[#allocation3 + $0x138] sm:$0xff]  ;;  %v7223_v31 = vld [vmem:[#allocation3 + $0x140] sm:$0xff]  ;;  %v15207_v42 = vld [vmem:[#allocation36_spill] sm:$0xff] }
 0x45d   : > { %15189 = vst [vmem:[#allocation10_spill] sm:$0xff] %v13514_v27  ;;  %15190 = vst [vmem:[#allocation11_spill] sm:$0xff] %v13516_v54  ;;  %4674 = vperm.xlu1 %10996, %v9612_v45   ;;  %4225 = vperm.xlu0 %10995, %v9549_v48   ;;  %v15195_v45 = vld [vmem:[#allocation27_spill] sm:$0xff]  ;;  %v1011_v1 = vadd.f32 %v987_v6, %v814_v8  ;;  %v1014_v32 = vadd.f32 %v990_v5, %v817_v35  ;;  %v11002_v0 = vld [vmem:[%s14963_s1 + $0x4] ss:$0 sm:$0xff] }
 0x45e   : > { %v992_v48 = vmul.f32 %v11001_v12, %v15195_v45  ;;  %v993_v41 = vmul.f32 %v11001_v12, %v15200_v55  ;;  %v996_v39 = vmul.f32 %v11001_v12, %v15201_v2  ;;  %v995_v43 = vmul.f32 %v11001_v12, %v15202_v44  ;;  %v15203_v53 = vld [vmem:[#allocation33_spill] sm:$0xff]  ;;  %v15206_v6 = vld [vmem:[#allocation35_spill] sm:$0xff] }
 0x45f   : > { %v1182_v9 = vmul.f32 %v11002_v0, %v15203_v53  ;;  %v13544_v45 = vpack.c.bf16 %v7223_v31, %v7222_v56  ;;  %v1013_v8 = vadd.f32 %v989_v52, %v816_v49  ;;  %v1187_v5 = vmul.f32 %v11002_v0, %v15206_v6  ;;  %v15211_v31 = vld [vmem:[#allocation38_spill] sm:$0xff]  ;;  %v15212_v49 = vld [vmem:[#allocation39_spill] sm:$0xff]  ;;  %v9563_v52 = vld [vmem:[%s11246_s7 + $0xb8] sm:$0xf] }
 0x460   : > { %v13528_v7 = vpop.permute.xlu1 %4076  ;;  %v13530_v50 = vpop.permute.xlu0 %4071  ;;  %v1016_v35 = vadd.f32 %v992_v48, %v819_v22  ;;  %v1186_v38 = vmul.f32 %v11002_v0, %v15207_v42  ;;  %v1015_v2 = vadd.f32 %v991_v57, %v818_v16  ;;  %v1018_v44 = vadd.f32 %v994_v61, %v821_v51  ;;  %v15215_v57 = vld [vmem:[#allocation42_spill] sm:$0xff] }
 0x461   : > { %15196 = vst [vmem:[#allocation12_spill] sm:$0xff] %v13528_v7  ;;  %15197 = vst [vmem:[#allocation13_spill] sm:$0xff] %v13530_v50  ;;  %4684 = vperm.xlu1 %10996, %v9614_v13   ;;  %4235 = vperm.xlu0 %10995, %v9551_v20   ;;  %v15204_v13 = vld [vmem:[#allocation34_spill] sm:$0xff]  ;;  %v1189_v26 = vmul.f32 %v11002_v0, %v15210_v3  ;;  %v1017_v53 = vadd.f32 %v993_v41, %v820_v29  ;;  %v15214_v3 = vld [vmem:[#allocation41_spill] sm:$0xff] }
 0x462   : > { %v1184_v20 = vmul.f32 %v11002_v0, %v15204_v13  ;;  %15205 = vst [vmem:[#allocation14_spill] sm:$0xff] %v13544_v45  ;;  %v1020_v56 = vadd.f32 %v996_v39, %v823_v14  ;;  %v1188_v13 = vmul.f32 %v11002_v0, %v15211_v31  ;;  %v1191_v22 = vmul.f32 %v11002_v0, %v15212_v49  ;;  %v15219_v39 = vld [vmem:[#allocation44_spill] sm:$0xff]  ;;  %v15251_v7 = vld [vmem:[#allocation70_spill] sm:$0xff] }
 0x463   : > { %10689 = vmatprep.subr.bf16.mxu0 %v13544_v45  ;;  %v1019_v48 = vadd.f32 %v995_v43, %v822_v24  ;;  %v1206_v6 = vadd.f32 %v1182_v9, %v1009_v36  ;;  %v1211_v16 = vadd.f32 %v1187_v5, %v1014_v32  ;;  %v1210_v61 = vadd.f32 %v1186_v38, %v1013_v8  ;;  %v11003_v24 = vld [vmem:[%s14963_s1 + $0x8] ss:$0 sm:$0xff]  ;;  %v15220_v32 = vld [vmem:[#allocation153_spill] sm:$0xff]  ;;  %v15222_v8 = vld [vmem:[#allocation46_spill] sm:$0xff] }
 0x464   : > { %v13548_v55 = vpop.permute.xlu1 %4086  ;;  %v13550_v12 = vpop.permute.xlu0 %4081  ;;  %v1208_v42 = vadd.f32 %v1184_v20, %v1011_v1  ;;  %v1193_v51 = vmul.f32 %v11002_v0, %v15214_v3  ;;  %v1192_v29 = vmul.f32 %v11002_v0, %v15215_v57  ;;  %v1213_v41 = vadd.f32 %v1189_v26, %v1016_v35  ;;  %v15218_v36 = vld [vmem:[#allocation43_spill] sm:$0xff]  ;;  %v15221_v20 = vld [vmem:[#allocation45_spill] sm:$0xff]  ;;  %v15224_v31 = vld [vmem:[#allocation48_spill] sm:$0xff] }
 0x465   : > { %15208 = vst [vmem:[#allocation165_spill] sm:$0xff] %v13548_v55  ;;  %15209 = vst [vmem:[#allocation15_spill] sm:$0xff] %v13550_v12  ;;  %4422 = vperm.xlu1 %10996, %v9575_v62   ;;  %4285 = vperm.xlu0 %10995, %v9561_v10   ;;  %v15213_v55 = vld [vmem:[#allocation40_spill] sm:$0xff]  ;;  %v1381_v1 = vmul.f32 %v11003_v24, %v15218_v36  ;;  %v1383_v10 = vmul.f32 %v11003_v24, %v15219_v39  ;;  %v9577_v38 = vld [vmem:[%s11246_s7 + $0x59] sm:$0xf] }
 0x466   : > { %v1190_v30 = vmul.f32 %v11002_v0, %v15213_v55  ;;  %v1212_v43 = vadd.f32 %v1188_v13, %v1015_v2  ;;  %v1215_v9 = vadd.f32 %v1191_v22, %v1018_v44  ;;  %v1386_v0 = vmul.f32 %v11003_v24, %v15221_v20  ;;  %v15223_v26 = vld [vmem:[#allocation47_spill] sm:$0xff]  ;;  %v15225_v3 = vld [vmem:[#allocation49_spill] sm:$0xff] }
 0x467   : > { %v1385_v5 = vmul.f32 %v11003_v24, %v15222_v8  ;;  %v1388_v35 = vmul.f32 %v11003_v24, %v15223_v26  ;;  %v1387_v49 = vmul.f32 %v11003_v24, %v15224_v31  ;;  %v1390_v57 = vmul.f32 %v11003_v24, %v15225_v3  ;;  %v15227_v2 = vld [vmem:[#allocation51_spill] sm:$0xff]  ;;  %v15231_v26 = vld [vmem:[#allocation154_spill] sm:$0xff] }
 0x468   : > { %v13560_v14 = vpop.permute.xlu1 %4096  ;;  %v13562_v62 = vpop.permute.xlu0 %4091  ;;  %v1214_v55 = vadd.f32 %v1190_v30, %v1017_v53  ;;  %v1217_v36 = vadd.f32 %v1193_v51, %v1020_v56  ;;  %v1216_v39 = vadd.f32 %v1192_v29, %v1019_v48  ;;  %v1392_v44 = vmul.f32 %v11003_v24, %v15227_v2  ;;  %v15230_v53 = vld [vmem:[#allocation52_spill] sm:$0xff]  ;;  %v11004_v48 = vld [vmem:[%s14963_s1 + $0x9] ss:$0 sm:$0xff]  ;;  %v15232_v51 = vld [vmem:[#allocation53_spill] sm:$0xff] }
 0x469   : > { %15216 = vst [vmem:[#allocation16_spill] sm:$0xff] %v13560_v14  ;;  %15217 = vst [vmem:[#allocation17_spill] sm:$0xff] %v13562_v62  ;;  %4295 = vperm.xlu1 %10996, %v9563_v52   ;;  %4871 = vperm.xlu0 %10995, %v15220_v32   ;;  %v15226_v52 = vld [vmem:[#allocation50_spill] sm:$0xff]  ;;  %v1405_v20 = vadd.f32 %v1381_v1, %v1206_v6  ;;  %v1407_v30 = vadd.f32 %v1383_v10, %v1208_v42  ;;  %v9601_v2 = vld [vmem:[%s11246_s7 + $0x4a] sm:$0xf] }
 0x46a   : > { %v1389_v32 = vmul.f32 %v11003_v24, %v15226_v52  ;;  %v1391_v8 = vmul.f32 %v11003_v24, %v15230_v53  ;;  %v1410_v31 = vadd.f32 %v1386_v0, %v1211_v16  ;;  %v1409_v56 = vadd.f32 %v1385_v5, %v1210_v61  ;;  %v15233_v3 = vld [vmem:[#allocation54_spill] sm:$0xff]  ;;  %v15234_v1 = vld [vmem:[#allocation55_spill] sm:$0xff]  ;;  %v15235_v16 = vld [vmem:[#allocation56_spill] sm:$0xff] }
 0x46b   : > { %v1578_v29 = vmul.f32 %v11004_v48, %v15232_v51  ;;  %v1580_v52 = vmul.f32 %v11004_v48, %v15233_v3  ;;  %v1411_v6 = vadd.f32 %v1387_v49, %v1212_v43  ;;  %v1414_v42 = vadd.f32 %v1390_v57, %v1215_v9  ;;  %v15236_v0 = vld [vmem:[#allocation57_spill] sm:$0xff]  ;;  %v15237_v3 = vld [vmem:[#allocation58_spill] sm:$0xff]  ;;  %v15238_v62 = vld [vmem:[#allocation59_spill] sm:$0xff] }
 0x46c   : > { %v13578_v13 = vpop.permute.xlu1 %4106  ;;  %v13580_v22 = vpop.permute.xlu0 %4101  ;;  %v1583_v24 = vmul.f32 %v11004_v48, %v15234_v1  ;;  %v1413_v10 = vadd.f32 %v1389_v32, %v1214_v55  ;;  %v1582_v61 = vmul.f32 %v11004_v48, %v15235_v16  ;;  %v1585_v5 = vmul.f32 %v11004_v48, %v15236_v0  ;;  %v15240_v49 = vld [vmem:[#allocation61_spill] sm:$0xff] }
 0x46d   : > { %15228 = vst [vmem:[#allocation18_spill] sm:$0xff] %v13578_v13  ;;  %15229 = vst [vmem:[#allocation19_spill] sm:$0xff] %v13580_v22  ;;  %4881 = vperm.xlu1 %10996, %v15231_v26   ;;  %4432 = vperm.xlu0 %10995, %v9577_v38   ;;  %v9587_v13 = vld [vmem:[%s11246_s7 + $0xa9] sm:$0xf]  ;;  %v1412_v22 = vadd.f32 %v1388_v35, %v1213_v41  ;;  %v1416_v38 = vadd.f32 %v1392_v44, %v1217_v36  ;;  %v15239_v35 = vld [vmem:[#allocation60_spill] sm:$0xff] }
 0x46e   : > { %v1415_v51 = vadd.f32 %v1391_v8, %v1216_v39  ;;  %v1584_v14 = vmul.f32 %v11004_v48, %v15237_v3  ;;  %v1587_v41 = vmul.f32 %v11004_v48, %v15238_v62  ;;  %v1602_v43 = vadd.f32 %v1578_v29, %v1405_v20  ;;  %v13603_v36 = vld [vmem:[%s11246_s7 + $0xc4] sm:$0xff]  ;;  %v15244_v62 = vld [vmem:[#allocation64_spill] sm:$0xff] }
 0x46f   : > { %v1604_v9 = vadd.f32 %v1580_v52, %v1407_v30  ;;  %v1586_v55 = vmul.f32 %v11004_v48, %v15239_v35  ;;  %v1589_v57 = vmul.f32 %v11004_v48, %v15240_v49  ;;  %15241 = vst [vmem:[#allocation20_spill] sm:$0xff] %v13603_v36  ;;  %v1607_v32 = vadd.f32 %v1583_v24, %v1410_v31  ;;  %v15242_v44 = vld [vmem:[#allocation62_spill] sm:$0xff]  ;;  %v11005_v39 = vld [vmem:[%s14963_s1 + $0xa] ss:$0 sm:$0xff]  ;;  %v15245_v30 = vld [vmem:[#allocation65_spill] sm:$0xff] }
 0x470   : > { %v13594_v53 = vpop.permute.xlu1 %4230  ;;  %v13596_v26 = vpop.permute.xlu0 %4220  ;;  %v1588_v1 = vmul.f32 %v11004_v48, %v15242_v44  ;;  %v15243_v8 = vld [vmem:[#allocation63_spill] sm:$0xff]  ;;  %v1609_v20 = vadd.f32 %v1585_v5, %v1412_v22  ;;  %v1780_v29 = vmul.f32 %v11005_v39, %v15245_v30  ;;  %v15246_v52 = vld [vmem:[#allocation66_spill] sm:$0xff]  ;;  %v1608_v48 = vadd.f32 %v1584_v14, %v1411_v6  ;;  %v15250_v5 = vld [vmem:[#allocation69_spill] sm:$0xff] }
 0x471   : > { %4619 = vperm.xlu1 %10996, %v9601_v2   ;;  %4482 = vperm.xlu0 %10995, %v9587_v13   ;;  %v1775_v16 = vmul.f32 %v11005_v39, %v15243_v8  ;;  %v1777_v2 = vmul.f32 %v11005_v39, %v15244_v62  ;;  %v1606_v13 = vadd.f32 %v1582_v61, %v1409_v56  ;;  %v15247_v35 = vld [vmem:[#allocation67_spill] sm:$0xff]  ;;  %v15248_v44 = vld [vmem:[#allocation166_spill] sm:$0xff]  ;;  %v15249_v61 = vld [vmem:[#allocation68_spill] sm:$0xff] }
 0x472   : > { %v1779_v0 = vmul.f32 %v11005_v39, %v15246_v52  ;;  %v1611_v24 = vadd.f32 %v1587_v41, %v1414_v42  ;;  %v1782_v49 = vmul.f32 %v11005_v39, %v15247_v35  ;;  %v1610_v8 = vadd.f32 %v1586_v55, %v1413_v10  ;;  %v9589_v30 = vld [vmem:[%s11246_s7 + $0xb9] sm:$0xf]  ;;  %v9541_v52 = vld [vmem:[%s11246_s7 + $0xcc] sm:$0xf] }
 0x473   : > { %v1613_v56 = vadd.f32 %v1589_v57, %v1416_v38  ;;  %v1781_v22 = vmul.f32 %v11005_v39, %v15249_v61  ;;  %v1784_v62 = vmul.f32 %v11005_v39, %v15250_v5  ;;  %v1612_v12 = vadd.f32 %v1588_v1, %v1415_v51  ;;  %v15252_v41 = vld [vmem:[#allocation71_spill] sm:$0xff]  ;;  %v15256_v57 = vld [vmem:[#allocation74_spill] sm:$0xff] }
 0x474   : > { %v13613_v3 = vpop.permute.xlu1 %4245  ;;  %v13615_v31 = vpop.permute.xlu0 %4240  ;;  %v1799_v45 = vadd.f32 %v1775_v16, %v1602_v43  ;;  %v1801_v50 = vadd.f32 %v1777_v2, %v1604_v9  ;;  %v1783_v14 = vmul.f32 %v11005_v39, %v15251_v7  ;;  %v1804_v6 = vadd.f32 %v1780_v29, %v1607_v32  ;;  %v11006_v51 = vld [vmem:[%s14963_s1 + $0xb] ss:$0 sm:$0xff]  ;;  %v15255_v43 = vld [vmem:[#allocation73_spill] sm:$0xff] }
 0x475   : > { %4111 = vperm.xlu1 %10996, %v13603_v36   ;;  %5068 = vperm.xlu0 %10995, %v15248_v44   ;;  %v1803_v42 = vadd.f32 %v1779_v0, %v1606_v13  ;;  %v1786_v35 = vmul.f32 %v11005_v39, %v15252_v41  ;;  %v1785_v44 = vmul.f32 %v11005_v39, %v15253_v25  ;;  %v15257_v16 = vld [vmem:[#allocation75_spill] sm:$0xff]  ;;  %v15258_v25 = vld [vmem:[#allocation76_spill] sm:$0xff]  ;;  %v9603_v13 = vld [vmem:[%s11246_s7 + $0x5a] sm:$0xf] }
 0x476   : > { %v1806_v55 = vadd.f32 %v1782_v49, %v1609_v20  ;;  %v1972_v9 = vmul.f32 %v11006_v51, %v15255_v43  ;;  %v1974_v7 = vmul.f32 %v11006_v51, %v15256_v57  ;;  %v1805_v32 = vadd.f32 %v1781_v22, %v1608_v48  ;;  %v15259_v0 = vld [vmem:[#allocation77_spill] sm:$0xff]  ;;  %v15260_v49 = vld [vmem:[#allocation78_spill] sm:$0xff]  ;;  %v15261_v5 = vld [vmem:[#allocation79_spill] sm:$0xff] }
 0x477   : > { %v1808_v1 = vadd.f32 %v1784_v62, %v1611_v24  ;;  %v1977_v2 = vmul.f32 %v11006_v51, %v15257_v16  ;;  %v1976_v39 = vmul.f32 %v11006_v51, %v15258_v25  ;;  %v1807_v29 = vadd.f32 %v1783_v14, %v1610_v8  ;;  %v15262_v57 = vld [vmem:[#allocation80_spill] sm:$0xff]  ;;  %v15263_v48 = vld [vmem:[#allocation81_spill] sm:$0xff]  ;;  %v15265_v14 = vld [vmem:[#allocation82_spill] sm:$0xff] }
 0x478   : > { %v13627_v10 = vpop.permute.xlu1 %4250  ;;  %v13629_v38 = vpop.permute.xlu0 %4417  ;;  %v1979_v20 = vmul.f32 %v11006_v51, %v15259_v0  ;;  %v1978_v61 = vmul.f32 %v11006_v51, %v15260_v49  ;;  %v1981_v41 = vmul.f32 %v11006_v51, %v15261_v5  ;;  %v1810_v27 = vadd.f32 %v1786_v35, %v1613_v56  ;;  %v15266_v25 = vld [vmem:[#allocation167_spill] sm:$0xff]  ;;  %v15268_v49 = vld [vmem:[#allocation84_spill] sm:$0xff] }
 0x479   : > { %15254 = vst [vmem:[#allocation21_spill] sm:$0xff] %v13627_v10  ;;  %4492 = vperm.xlu1 %10996, %v9589_v30   ;;  %4116 = vperm.xlu0 %10995, %v9541_v52   ;;  %v1809_v43 = vadd.f32 %v1785_v44, %v1612_v12  ;;  %v1980_v30 = vmul.f32 %v11006_v51, %v15262_v57  ;;  %v11007_v12 = vld [vmem:[%s14963_s1 + $0xc] ss:$0 sm:$0xff]  ;;  %v9565_v57 = vld [vmem:[%s11246_s7 + $0xc8] sm:$0xf] }
 0x47a   : > { %v1983_v24 = vmul.f32 %v11006_v51, %v15263_v48  ;;  %v1996_v52 = vadd.f32 %v1972_v9, %v1799_v45  ;;  %v1998_v8 = vadd.f32 %v1974_v7, %v1801_v50  ;;  %v1982_v16 = vmul.f32 %v11006_v51, %v15265_v14  ;;  %v15267_v35 = vld [vmem:[#allocation83_spill] sm:$0xff]  ;;  %v9564_v48 = vld [vmem:[%s11246_s7 + $0xc0] sm:$0xff]  ;;  %v15269_v9 = vld [vmem:[#allocation85_spill] sm:$0xff] }
 0x47b   : > { %v2001_v0 = vadd.f32 %v1977_v2, %v1804_v6  ;;  %v2000_v56 = vadd.f32 %v1976_v39, %v1803_v42  ;;  %v2169_v44 = vmul.f32 %v11007_v12, %v15267_v35  ;;  %v2171_v5 = vmul.f32 %v11007_v12, %v15268_v49  ;;  %v15270_v42 = vld [vmem:[#allocation86_spill] sm:$0xff]  ;;  %v15271_v39 = vld [vmem:[#allocation87_spill] sm:$0xff]  ;;  %v15272_v49 = vld [vmem:[#allocation88_spill] sm:$0xff] }
 0x47c   : > { %v13644_v22 = vpop.permute.xlu1 %4427  ;;  %v13646_v62 = vpop.permute.xlu0 %4255  ;;  %v2003_v60 = vadd.f32 %v1979_v20, %v1806_v55  ;;  %v2002_v45 = vadd.f32 %v1978_v61, %v1805_v32  ;;  %v2005_v50 = vadd.f32 %v1981_v41, %v1808_v1  ;;  %v2174_v51 = vmul.f32 %v11007_v12, %v15269_v9  ;;  %v15273_v55 = vld [vmem:[#allocation89_spill] sm:$0xff] }
 0x47d   : > { %15264 = vst [vmem:[#allocation22_spill] sm:$0xff] %v13646_v62  ;;  %5078 = vperm.xlu1 %10996, %v15266_v25   ;;  %4629 = vperm.xlu0 %10995, %v9603_v13   ;;  %v2004_v7 = vadd.f32 %v1980_v30, %v1807_v29  ;;  %v2007_v6 = vadd.f32 %v1983_v24, %v1810_v27  ;;  %v15274_v29 = vld [vmem:[#allocation90_spill] sm:$0xff]  ;;  %v15275_v27 = vld [vmem:[#allocation91_spill] sm:$0xff] }
 0x47e   : > { %v2173_v2 = vmul.f32 %v11007_v12, %v15270_v42  ;;  %v2176_v13 = vmul.f32 %v11007_v12, %v15271_v39  ;;  %v2006_v35 = vadd.f32 %v1982_v16, %v1809_v43  ;;  %v2175_v54 = vmul.f32 %v11007_v12, %v15272_v49  ;;  %v9627_v30 = vld [vmem:[%s11246_s7 + $0x4b] sm:$0xf]  ;;  %v15276_v42 = vld [vmem:[#allocation92_spill] sm:$0xff]  ;;  %v15277_v16 = vld [vmem:[#allocation93_spill] sm:$0xff] }
 0x47f   : > { %v2178_v32 = vmul.f32 %v11007_v12, %v15273_v55  ;;  %v2193_v1 = vadd.f32 %v2169_v44, %v1996_v52  ;;  %v2195_v20 = vadd.f32 %v2171_v5, %v1998_v8  ;;  %v2177_v61 = vmul.f32 %v11007_v12, %v15274_v29  ;;  %v9613_v24 = vld [vmem:[%s11246_s7 + $0xaa] sm:$0xf]  ;;  %v11008_v43 = vld [vmem:[%s14963_s1 + $0x10] ss:$0 sm:$0xff]  ;;  %v15278_v55 = vld [vmem:[#allocation94_spill] sm:$0xff] }
 0x480   : > { %v13660_v14 = vpop.permute.xlu1 %4442  ;;  %v13662_v25 = vpop.permute.xlu0 %4437  ;;  %v2180_v41 = vmul.f32 %v11007_v12, %v15275_v27  ;;  %v2198_v9 = vadd.f32 %v2174_v51, %v2001_v0  ;;  %v2179_v39 = vmul.f32 %v11007_v12, %v15276_v42  ;;  %v2368_v49 = vmul.f32 %v11008_v43, %v15277_v16  ;;  %v15279_v44 = vld [vmem:[#allocation95_spill] sm:$0xff]  ;;  %v15282_v42 = vld [vmem:[#allocation97_spill] sm:$0xff] }
 0x481   : > { %4305 = vperm.xlu1 %10996, %v9565_v57   ;;  %4300 = vperm.xlu0 %10995, %v9564_v48   ;;  %v2370_v57 = vmul.f32 %v11008_v43, %v15278_v55  ;;  %v2197_v52 = vadd.f32 %v2173_v2, %v2000_v56  ;;  %v2200_v8 = vadd.f32 %v2176_v13, %v2003_v60  ;;  %v15280_v48 = vld [vmem:[#allocation96_spill] sm:$0xff]  ;;  %v15284_v2 = vld [vmem:[#allocation99_spill] sm:$0xff]  ;;  %v9567_v13 = vld [vmem:[%s11246_s7 + $0xd8] sm:$0xf] }
 0x482   : > { %v2373_v5 = vmul.f32 %v11008_v43, %v15279_v44  ;;  %v2372_v29 = vmul.f32 %v11008_v43, %v15280_v48  ;;  %v2199_v12 = vadd.f32 %v2175_v54, %v2002_v45  ;;  %v2202_v51 = vadd.f32 %v2178_v32, %v2005_v50  ;;  %v9566_v44 = vld [vmem:[%s11246_s7 + $0xd0] sm:$0xff]  ;;  %v15286_v45 = vld [vmem:[#allocation101_spill] sm:$0xff]  ;;  %v15287_v32 = vld [vmem:[#allocation102_spill] sm:$0xff] }
 0x483   : > { %v2375_v58 = vmul.f32 %v11008_v43, %v15282_v42  ;;  %v2201_v16 = vadd.f32 %v2177_v61, %v2004_v7  ;;  %v2204_v55 = vadd.f32 %v2180_v41, %v2007_v6  ;;  %v2374_v56 = vmul.f32 %v11008_v43, %v15283_v28  ;;  %v15290_v41 = vld [vmem:[#allocation104_spill] sm:$0xff] }
 0x484   : > { %v13678_v27 = vpop.permute.xlu1 %4447  ;;  %v13680_v0 = vpop.permute.xlu0 %4614  ;;  %v2377_v60 = vmul.f32 %v11008_v43, %v15284_v2  ;;  %v2203_v62 = vadd.f32 %v2179_v39, %v2006_v35  ;;  %v2392_v48 = vadd.f32 %v2368_v49, %v2193_v1  ;;  %v2394_v10 = vadd.f32 %v2370_v57, %v2195_v20  ;;  %v11009_v35 = vld [vmem:[%s14963_s1 + $0x11] ss:$0 sm:$0xff]  ;;  %v15289_v1 = vld [vmem:[#allocation103_spill] sm:$0xff]  ;;  %v15291_v39 = vld [vmem:[#allocation105_spill] sm:$0xff] }
 0x485   : > { %15281 = vst [vmem:[#allocation23_spill] sm:$0xff] %v13678_v27  ;;  %4816 = vperm.xlu1 %10996, %v9627_v30   ;;  %4679 = vperm.xlu0 %10995, %v9613_v24   ;;  %v15285_v27 = vld [vmem:[#allocation100_spill] sm:$0xff]  ;;  %v2397_v37 = vadd.f32 %v2373_v5, %v2198_v9  ;;  %v2396_v54 = vadd.f32 %v2372_v29, %v2197_v52  ;;  %v9629_v52 = vld [vmem:[%s11246_s7 + $0x5b] sm:$0xf] }
 0x486   : > { %v2376_v36 = vmul.f32 %v11008_v43, %v15285_v27  ;;  %v2379_v50 = vmul.f32 %v11008_v43, %v15286_v45  ;;  %v2378_v7 = vmul.f32 %v11008_v43, %v15287_v32  ;;  %v2399_v61 = vadd.f32 %v2375_v58, %v2200_v8  ;;  %v15292_v43 = vld [vmem:[#allocation106_spill] sm:$0xff]  ;;  %v9615_v5 = vld [vmem:[%s11246_s7 + $0xba] sm:$0xf]  ;;  %v15293_v58 = vld [vmem:[#allocation107_spill] sm:$0xff] }
 0x487   : > { %v2565_v20 = vmul.f32 %v11009_v35, %v15289_v1  ;;  %v2567_v30 = vmul.f32 %v11009_v35, %v15290_v41  ;;  %v2398_v24 = vadd.f32 %v2374_v56, %v2199_v12  ;;  %v2401_v9 = vadd.f32 %v2377_v60, %v2202_v51  ;;  %v15294_v27 = vld [vmem:[#allocation108_spill] sm:$0xff]  ;;  %v15295_v2 = vld [vmem:[#allocation109_spill] sm:$0xff]  ;;  %v15297_v51 = vld [vmem:[#allocation111_spill] sm:$0xff] }
 0x488   : > { %v13690_v6 = vpop.permute.xlu1 %4624  ;;  %v13692_v28 = vpop.permute.xlu0 %4452  ;;  %v2570_v49 = vmul.f32 %v11009_v35, %v15291_v39  ;;  %v2569_v57 = vmul.f32 %v11009_v35, %v15292_v43  ;;  %v2400_v29 = vadd.f32 %v2376_v36, %v2201_v16  ;;  %v2572_v8 = vmul.f32 %v11009_v35, %v15293_v58  ;;  %v15300_v16 = vld [vmem:[#allocation112_spill] sm:$0xff] }
 0x489   : > { %15288 = vst [vmem:[#allocation24_spill] sm:$0xff] %v13692_v28  ;;  %4315 = vperm.xlu1 %10996, %v9567_v13   ;;  %4310 = vperm.xlu0 %10995, %v9566_v44   ;;  %v2571_v42 = vmul.f32 %v11009_v35, %v15294_v27  ;;  %v2574_v45 = vmul.f32 %v11009_v35, %v15295_v2  ;;  %v15296_v13 = vld [vmem:[#allocation110_spill] sm:$0xff]  ;;  %v9591_v2 = vld [vmem:[%s11246_s7 + $0xc9] sm:$0xf] }
 0x48a   : > { %v2403_v32 = vadd.f32 %v2379_v50, %v2204_v55  ;;  %v2402_v1 = vadd.f32 %v2378_v7, %v2203_v62  ;;  %v2573_v12 = vmul.f32 %v11009_v35, %v15296_v13  ;;  %v2576_v56 = vmul.f32 %v11009_v35, %v15297_v51  ;;  %v11010_v62 = vld [vmem:[%s14963_s1 + $0x12] ss:$0 sm:$0xff]  ;;  %v15301_v55 = vld [vmem:[#allocation113_spill] sm:$0xff]  ;;  %v15302_v7 = vld [vmem:[#allocation114_spill] sm:$0xff] }
 0x48b   : > { %v2589_v41 = vadd.f32 %v2565_v20, %v2392_v48  ;;  %v2591_v36 = vadd.f32 %v2567_v30, %v2394_v10  ;;  %v2575_v39 = vmul.f32 %v11009_v35, %v15300_v16  ;;  %v2594_v43 = vadd.f32 %v2570_v49, %v2397_v37  ;;  %v9590_v13 = vld [vmem:[%s11246_s7 + $0xc1] sm:$0xff]  ;;  %v15304_v37 = vld [vmem:[#allocation116_spill] sm:$0xff]  ;;  %v15305_v49 = vld [vmem:[#allocation117_spill] sm:$0xff] }
 0x48c   : > { %v13708_v60 = vpop.permute.xlu1 %4265  ;;  %v13710_v44 = vpop.permute.xlu0 %4260  ;;  %v2593_v58 = vadd.f32 %v2569_v57, %v2396_v54  ;;  %v2762_v50 = vmul.f32 %v11010_v62, %v15301_v55  ;;  %v2764_v27 = vmul.f32 %v11010_v62, %v15302_v7  ;;  %v2596_v51 = vadd.f32 %v2572_v8, %v2399_v61  ;;  %v15303_v10 = vld [vmem:[#allocation115_spill] sm:$0xff]  ;;  %v15307_v55 = vld [vmem:[#allocation118_spill] sm:$0xff]  ;;  %v13731_v61 = vld [vmem:[%s14963_s1 + $0x13] ss:$0 sm:$0xff] }
 0x48d   : > { %15298 = vst [vmem:[#allocation25_spill] sm:$0xff] %v13708_v60  ;;  %15299 = vst [vmem:[#allocation26_spill] sm:$0xff] %v13710_v44  ;;  %4826 = vperm.xlu1 %10996, %v9629_v52   ;;  %4689 = vperm.xlu0 %10995, %v9615_v5   ;;  %v2595_v60 = vadd.f32 %v2571_v42, %v2398_v24  ;;  %v2598_v48 = vadd.f32 %v2574_v45, %v2401_v9  ;;  %v15308_v24 = vld [vmem:[#allocation123_spill] sm:$0xff]  ;;  %v13744_v44 = vld [vmem:[%s14963_s1 + $0x14] ss:$0 sm:$0xff] }
 0x48e   : > { %v2767_v20 = vmul.f32 %v11010_v62, %v15303_v10  ;;  %v2597_v35 = vadd.f32 %v2573_v12, %v2400_v29  ;;  %v2600_v30 = vadd.f32 %v2576_v56, %v2403_v32  ;;  %v2766_v54 = vmul.f32 %v11010_v62, %v15304_v37  ;;  %v15309_v42 = vld [vmem:[#allocation119_spill] sm:$0xff]  ;;  %v15310_v32 = vld [vmem:[#allocation120_spill] sm:$0xff]  ;;  %v15311_v10 = vld [vmem:[#allocation121_spill] sm:$0xff] }
 0x48f   : > { %v2769_v57 = vmul.f32 %v11010_v62, %v15305_v49  ;;  %v2599_v16 = vadd.f32 %v2575_v39, %v2402_v1  ;;  %v2768_v7 = vmul.f32 %v11010_v62, %v15307_v55  ;;  %v2959_v9 = vmul.f32 %v13731_v61, %v15308_v24  ;;  %v9653_v56 = vld [vmem:[%s11246_s7 + $0x4c] sm:$0xf]  ;;  %v15312_v49 = vld [vmem:[#allocation122_spill] sm:$0xff] }
 0x490   : > { %v13723_v52 = vpop.permute.xlu1 %4639  ;;  %v13725_v5 = vpop.permute.xlu0 %4634  ;;  %v2786_v29 = vadd.f32 %v2762_v50, %v2589_v41  ;;  %v2788_v8 = vadd.f32 %v2764_v27, %v2591_v36  ;;  %v2771_v45 = vmul.f32 %v11010_v62, %v15309_v42  ;;  %v2770_v12 = vmul.f32 %v11010_v62, %v15310_v32  ;;  %v9639_v1 = vld [vmem:[%s11246_s7 + $0xab] sm:$0xf]  ;;  %v15314_v27 = vld [vmem:[#allocation124_spill] sm:$0xff] }
 0x491   : > { %15306 = vst [vmem:[#allocation27_spill] sm:$0xff] %v13725_v5  ;;  %4502 = vperm.xlu1 %10996, %v9591_v2   ;;  %4497 = vperm.xlu0 %10995, %v9590_v13   ;;  %v2791_v39 = vadd.f32 %v2767_v20, %v2594_v43  ;;  %v2773_v37 = vmul.f32 %v11010_v62, %v15311_v10  ;;  %v15313_v2 = vld [vmem:[#allocation133_spill] sm:$0xff] }
 0x492   : > { %v2772_v55 = vmul.f32 %v11010_v62, %v15312_v49  ;;  %v3156_v41 = vmul.f32 %v13744_v44, %v15313_v2  ;;  %v2790_v36 = vadd.f32 %v2766_v54, %v2593_v58  ;;  %v2793_v50 = vadd.f32 %v2769_v57, %v2596_v51  ;;  %v15315_v43 = vld [vmem:[#allocation125_spill] sm:$0xff]  ;;  %v15317_v58 = vld [vmem:[#allocation143_spill] sm:$0xff]  ;;  %v15318_v49 = vld [vmem:[#allocation126_spill] sm:$0xff] }
 0x493   : > { %v2961_v13 = vmul.f32 %v13731_v61, %v15314_v27  ;;  %v2964_v20 = vmul.f32 %v13731_v61, %v15315_v43  ;;  %v2792_v42 = vadd.f32 %v2768_v7, %v2595_v60  ;;  %v2983_v32 = vadd.f32 %v2959_v9, %v2786_v29  ;;  %v13759_v10 = vld [vmem:[%s14963_s1 + $0x18] ss:$0 sm:$0xff]  ;;  %v15319_v27 = vld [vmem:[#allocation127_spill] sm:$0xff]  ;;  %v9593_v60 = vld [vmem:[%s11246_s7 + $0xd9] sm:$0xf] }
 0x494   : > { %v13752_v24 = vpop.permute.xlu1 %4270  ;;  %v13754_v62 = vpop.permute.xlu0 %4811  ;;  %v3355_v51 = vmul.f32 %v13759_v10, %v15317_v58  ;;  %v2795_v54 = vadd.f32 %v2771_v45, %v2598_v48  ;;  %v2794_v57 = vadd.f32 %v2770_v12, %v2597_v35  ;;  %v2963_v2 = vmul.f32 %v13731_v61, %v15318_v49  ;;  %v9592_v7 = vld [vmem:[%s11246_s7 + $0xd1] sm:$0xff]  ;;  %v13774_v58 = vld [vmem:[%s14963_s1 + $0x19] ss:$0 sm:$0xff] }
 0x495   : > { %15316 = vst [vmem:[#allocation28_spill] sm:$0xff] %v13752_v24  ;;  %5013 = vperm.xlu1 %10996, %v9653_v56   ;;  %4876 = vperm.xlu0 %10995, %v9639_v1   ;;  %v2966_v43 = vmul.f32 %v13731_v61, %v15319_v27  ;;  %v2797_v9 = vadd.f32 %v2773_v37, %v2600_v30  ;;  %v15321_v56 = vld [vmem:[#allocation155_spill] sm:$0xff]  ;;  %v15322_v12 = vld [vmem:[#allocation128_spill] sm:$0xff]  ;;  %v15323_v49 = vld [vmem:[#allocation129_spill] sm:$0xff] }
 0x496   : > { %v13769_v29 = vadd.f32 %v2772_v55, %v2599_v16  ;;  %v3180_v24 = vadd.f32 %v3156_v41, %v2983_v32  ;;  %v3552_v48 = vmul.f32 %v13774_v58, %v15321_v56  ;;  %v2985_v35 = vadd.f32 %v2961_v13, %v2788_v8  ;;  %v15326_v55 = vld [vmem:[#allocation130_spill] sm:$0xff]  ;;  %v13791_v8 = vld [vmem:[%s14963_s1 + $0x1a] ss:$0 sm:$0xff]  ;;  %v15328_v56 = vld [vmem:[#allocation131_spill] sm:$0xff] }
 0x497   : > { %v2988_v45 = vadd.f32 %v2964_v20, %v2791_v39  ;;  %v2965_v1 = vmul.f32 %v13731_v61, %v15322_v12  ;;  %v2968_v30 = vmul.f32 %v13731_v61, %v15323_v49  ;;  %v2967_v41 = vmul.f32 %v13731_v61, %v15326_v55  ;;  %v15327_v39 = vld [vmem:[#allocation168_spill] sm:$0xff]  ;;  %v15329_v49 = vld [vmem:[#allocation134_spill] sm:$0xff]  ;;  %v9641_v55 = vld [vmem:[%s11246_s7 + $0xbb] sm:$0xf] }
 0x498   : > { %15320 = vst [vmem:[#allocation29_spill] sm:$0xff] %v13769_v29  ;;  %v13782_v16 = vpop.permute.xlu1 %4644  ;;  %v13784_v37 = vpop.permute.xlu0 %4275  ;;  %v3379_v32 = vadd.f32 %v3355_v51, %v3180_v24  ;;  %v3749_v13 = vmul.f32 %v13791_v8, %v15327_v39  ;;  %v2987_v20 = vadd.f32 %v2963_v2, %v2790_v36  ;;  %v2990_v27 = vadd.f32 %v2966_v43, %v2793_v50  ;;  %v13802_v24 = vld [vmem:[%s14963_s1 + $0x1c] ss:$0 sm:$0xff]  ;;  %v13813_v2 = vld [vmem:[%s14963_s1 + $0x1b] ss:$0 sm:$0xff] }
 0x499   : > { %15324 = vst [vmem:[#allocation30_spill] sm:$0xff] %v13782_v16  ;;  %15325 = vst [vmem:[#allocation31_spill] sm:$0xff] %v13784_v37  ;;  %4512 = vperm.xlu1 %10996, %v9593_v60   ;;  %4507 = vperm.xlu0 %10995, %v9592_v7   ;;  %v2970_v12 = vmul.f32 %v13731_v61, %v15328_v56  ;;  %v3158_v37 = vmul.f32 %v13744_v44, %v15329_v49  ;;  %v9655_v51 = vld [vmem:[%s11246_s7 + $0x5c] sm:$0xf]  ;;  %v15330_v16 = vld [vmem:[#allocation135_spill] sm:$0xff] }
 0x49a   : > { %v3161_v39 = vmul.f32 %v13744_v44, %v15330_v16  ;;  %v15331_v60 = vld [vmem:[#allocation136_spill] sm:$0xff]  ;;  %v3576_v50 = vadd.f32 %v3552_v48, %v3379_v32  ;;  %v3946_v43 = vmul.f32 %v13813_v2, %v13339_v23  ;;  %v2989_v7 = vadd.f32 %v2965_v1, %v2792_v42  ;;  %v15333_v49 = vld [vmem:[#allocation137_spill] sm:$0xff]  ;;  %v13826_v48 = vld [vmem:[%s14963_s1 + $0x20] ss:$0 sm:$0xff] }
 0x49b   : > { %v3160_v36 = vmul.f32 %v13744_v44, %v15331_v60  ;;  %v13817_v56 = vadd.f32 %v2968_v30, %v2795_v54  ;;  %v3163_v28 = vmul.f32 %v13744_v44, %v15333_v49  ;;  %v15334_v16 = vld [vmem:[#allocation144_spill] sm:$0xff]  ;;  %v13832_v23 = vadd.f32 %v2967_v41, %v2794_v57  ;;  %v13847_v57 = vld [vmem:[%s14963_s1 + $0x21] ss:$0 sm:$0xff]  ;;  %v9617_v41 = vld [vmem:[%s11246_s7 + $0xca] sm:$0xf] }
 0x49c   : > { %v3357_v60 = vmul.f32 %v13759_v10, %v15334_v16  ;;  %v13828_v32 = vpop.permute.xlu1 %4821  ;;  %v13830_v29 = vpop.permute.xlu0 %4649  ;;  %v3773_v42 = vadd.f32 %v3749_v13, %v3576_v50  ;;  %v4143_v54 = vmul.f32 %v13802_v24, %v13447_v15  ;;  %v13836_v1 = vadd.f32 %v2970_v12, %v2797_v9  ;;  %v15338_v30 = vld [vmem:[#allocation132_spill] sm:$0xff]  ;;  %v9616_v13 = vld [vmem:[%s11246_s7 + $0xc2] sm:$0xff]  ;;  %v15341_v50 = vld [vmem:[#allocation169_spill] sm:$0xff] }
 0x49d   : > { %15332 = vst [vmem:[#allocation32_spill] sm:$0xff] %v13817_v56  ;;  %15335 = vst [vmem:[#allocation33_spill] sm:$0xff] %v13830_v29  ;;  %5023 = vperm.xlu1 %10996, %v9655_v51   ;;  %4886 = vperm.xlu0 %10995, %v9641_v55   ;;  %v13840_v49 = vmul.f32 %v13731_v61, %v15338_v30  ;;  %v3182_v16 = vadd.f32 %v3158_v37, %v2985_v35  ;;  %v15339_v56 = vld [vmem:[#allocation156_spill] sm:$0xff]  ;;  %v15340_v55 = vld [vmem:[#allocation138_spill] sm:$0xff] }
 0x49e   : > { %15336 = vst [vmem:[#allocation34_spill] sm:$0xff] %v13832_v23  ;;  %15337 = vst [vmem:[#allocation35_spill] sm:$0xff] %v13836_v1  ;;  %v3554_v5 = vmul.f32 %v13774_v58, %v15339_v56  ;;  %v3185_v15 = vadd.f32 %v3161_v39, %v2988_v45  ;;  %v3184_v51 = vadd.f32 %v3160_v36, %v2987_v20  ;;  %v13860_v30 = vld [vmem:[%s14963_s1 + $0x22] ss:$0 sm:$0xff]  ;;  %v15344_v39 = vld [vmem:[#allocation145_spill] sm:$0xff] }
 0x49f   : > { %v3970_v9 = vadd.f32 %v3946_v43, %v3773_v42  ;;  %v4342_v12 = vmul.f32 %v13826_v48, %v13596_v26  ;;  %v3187_v61 = vadd.f32 %v3163_v28, %v2990_v27  ;;  %v3162_v35 = vmul.f32 %v13744_v44, %v15340_v55  ;;  %v13873_v36 = vld [vmem:[%s14963_s1 + $0x23] ss:$0 sm:$0xff]  ;;  %v9618_v43 = vld [vmem:[%s11246_s7 + $0xd2] sm:$0xff] }
 0x4a0   : > { %v3381_v37 = vadd.f32 %v3357_v60, %v3182_v16  ;;  %v3751_v56 = vmul.f32 %v13791_v8, %v15341_v50  ;;  %v13862_v45 = vpop.permute.xlu1 %4462  ;;  %v13864_v20 = vpop.permute.xlu0 %4457  ;;  %v3360_v26 = vmul.f32 %v13759_v10, %v15344_v39  ;;  %v4539_v27 = vmul.f32 %v13847_v57, %v13629_v38  ;;  %v15345_v60 = vld [vmem:[#allocation146_spill] sm:$0xff]  ;;  %v15346_v16 = vld [vmem:[#allocation147_spill] sm:$0xff]  ;;  %v5396_v38 = vld [vmem:[#allocation3 + $0x18] sm:$0xff] }
 0x4a1   : > { %15342 = vst [vmem:[#allocation36_spill] sm:$0xff] %v13862_v45  ;;  %15343 = vst [vmem:[#allocation37_spill] sm:$0xff] %v13864_v20  ;;  %v4167_v28 = vadd.f32 %v4143_v54, %v3970_v9  ;;  %4699 = vperm.xlu1 %10996, %v9617_v41   ;;  %4694 = vperm.xlu0 %10995, %v9616_v13   ;;  %v3359_v42 = vmul.f32 %v13759_v10, %v15345_v60  ;;  %v9665_v9 = vld [vmem:[%s11246_s7 + $0xac] sm:$0xf]  ;;  %v5397_v39 = vld [vmem:[#allocation3 + $0x20] sm:$0xff] }
 0x4a2   : > { %v3362_v55 = vmul.f32 %v13759_v10, %v15346_v16  ;;  %v3578_v50 = vadd.f32 %v3554_v5, %v3381_v37  ;;  %v3948_v54 = vmul.f32 %v13813_v2, %v13348_v19  ;;  %v15347_v45 = vld [vmem:[#allocation148_spill] sm:$0xff]  ;;  %v4736_v41 = vmul.f32 %v13860_v30, %v13680_v0  ;;  %v15348_v23 = vld [vmem:[#allocation157_spill] sm:$0xff] }
 0x4a3   : > { %v3361_v20 = vmul.f32 %v13759_v10, %v15347_v45  ;;  %v4366_v1 = vadd.f32 %v4342_v12, %v4167_v28  ;;  %v13887_v13 = vpack.c.bf16 %v5397_v39, %v5396_v38  ;;  %v3186_v60 = vadd.f32 %v3162_v35, %v2989_v7  ;;  %v15349_v28 = vld [vmem:[#allocation158_spill] sm:$0xff]  ;;  %v9619_v38 = vld [vmem:[%s11246_s7 + $0xda] sm:$0xf]  ;;  %v15351_v39 = vld [vmem:[#allocation160_spill] sm:$0xff] }
 0x4a4   : > { %v3557_v5 = vmul.f32 %v13774_v58, %v15348_v23  ;;  %v3775_v37 = vadd.f32 %v3751_v56, %v3578_v50  ;;  %v4145_v19 = vmul.f32 %v13802_v24, %v13463_v4  ;;  %v13893_v16 = vpop.permute.xlu1 %4836  ;;  %v13895_v29 = vpop.permute.xlu0 %4831  ;;  %v3384_v12 = vadd.f32 %v3360_v26, %v3185_v15  ;;  %v13904_v4 = vld [vmem:[%s14963_s1 + $0x24] ss:$0 sm:$0xff]  ;;  %v9667_v50 = vld [vmem:[%s11246_s7 + $0xbc] sm:$0xf]  ;;  %v15350_v26 = vld [vmem:[#allocation159_spill] sm:$0xff] }
 0x4a5   : > { %v4563_v45 = vadd.f32 %v4539_v27, %v4366_v1  ;;  %v4933_v0 = vmul.f32 %v13873_v36, %v13754_v62  ;;  %4704 = vperm.xlu1 %10996, %v9618_v43   ;;  %5073 = vperm.xlu0 %10995, %v9665_v9   ;;  %v3383_v7 = vadd.f32 %v3359_v42, %v3184_v51 }
 0x4a6   : > { %v3386_v35 = vadd.f32 %v3362_v55, %v3187_v61  ;;  %v3556_v23 = vmul.f32 %v13774_v58, %v15349_v28  ;;  %v3972_v56 = vadd.f32 %v3948_v54, %v3775_v37  ;;  %10641 = vmatprep.subr.bf16.mxu1 %v13887_v13  ;;  %v3385_v1 = vadd.f32 %v3361_v20, %v3186_v60  ;;  %v9642_v37 = vld [vmem:[%s11246_s7 + $0xc3] sm:$0xff] }
 0x4a7   : > { %v3754_v62 = vmul.f32 %v13791_v8, %v13251_v40  ;;  %v4344_v15 = vmul.f32 %v13826_v48, %v13594_v53  ;;  %v4760_v51 = vadd.f32 %v4736_v41, %v4563_v45  ;;  %v3581_v61 = vadd.f32 %v3557_v5, %v3384_v12  ;;  %v9643_v5 = vld [vmem:[%s11246_s7 + $0xcb] sm:$0xf] }
 0x4a8   : > { %v3559_v27 = vmul.f32 %v13774_v58, %v15350_v26  ;;  %v3753_v43 = vmul.f32 %v13791_v8, %v13253_v33  ;;  %v4169_v42 = vadd.f32 %v4145_v19, %v3972_v56  ;;  %v13917_v55 = vpop.permute.xlu1 %4467  ;;  %v5009_v20 = vpop.permute.xlu0 %5008  ;;  %v4541_v40 = vmul.f32 %v13847_v57, %v13644_v22 }
 0x4a9   : > { %v4957_v54 = vadd.f32 %v4933_v0, %v4760_v51  ;;  %v5130_v53 = vmul.f32 %v13904_v4, %v5009_v20  ;;  %5083 = vperm.xlu1 %10996, %v9667_v50   ;;  %4709 = vperm.xlu0 %10995, %v9619_v38   ;;  %v3580_v9 = vadd.f32 %v3556_v23, %v3383_v7  ;;  %v9644_v51 = vld [vmem:[%s11246_s7 + $0xd3] sm:$0xff] }
 0x4aa   : > { %v3558_v41 = vmul.f32 %v13774_v58, %v15351_v39  ;;  %v3951_v60 = vmul.f32 %v13813_v2, %v13355_v18  ;;  %v3950_v33 = vmul.f32 %v13813_v2, %v13357_v21  ;;  %v3778_v19 = vadd.f32 %v3754_v62, %v3581_v61 }
 0x4ab   : > { %v4368_v12 = vadd.f32 %v4344_v15, %v4169_v42  ;;  %v4738_v22 = vmul.f32 %v13860_v30, %v13690_v6  ;;  %v5154_v45 = vadd.f32 %v5130_v53, %v4957_v54  ;;  %v3777_v0 = vadd.f32 %v3753_v43, %v3580_v9  ;;  %v9645_v15 = vld [vmem:[%s11246_s7 + $0xdb] sm:$0xf] }
 0x4ac   : > { %v4148_v7 = vmul.f32 %v13802_v24, %v13484_v59  ;;  %v4147_v18 = vmul.f32 %v13802_v24, %v13486_v46  ;;  %v13936_v28 = vpop.permute.xlu1 %4841  ;;  %v13938_v21 = vpop.permute.xlu0 %4472  ;;  %v3583_v23 = vadd.f32 %v3559_v27, %v3386_v35  ;;  %v4935_v6 = vmul.f32 %v13873_v36, %v13828_v32 }
 0x4ad   : > { %v4565_v56 = vadd.f32 %v4541_v40, %v4368_v12  ;;  %v5178_v50 = vmax.f32 %v5154_v45, 0.0  ;;  %4896 = vperm.xlu1 %10996, %v9643_v5   ;;  %4891 = vperm.xlu0 %10995, %v9642_v37   ;;  %v3756_v59 = vmul.f32 %v13791_v8, %v13256_v17  ;;  %v3975_v38 = vadd.f32 %v3951_v60, %v3778_v19  ;;  %v15353_v5 = vld [vmem:[#allocation9_spill] sm:$0xff] }
 0x4ae   : > { %v3974_v62 = vadd.f32 %v3950_v33, %v3777_v0  ;;  %v4347_v46 = vmul.f32 %v13826_v48, %v13613_v3  ;;  %v3582_v61 = vadd.f32 %v3558_v41, %v3385_v1  ;;  %v3755_v35 = vmul.f32 %v13791_v8, %v13258_v47  ;;  %v15352_v41 = vld [vmem:[#allocation27_spill] sm:$0xff] }
 0x4af   : > { %v4346_v32 = vmul.f32 %v13826_v48, %v13615_v31  ;;  %v4762_v26 = vadd.f32 %v4738_v22, %v4565_v56  ;;  %5203 = vst.msk [vmem:[#allocation2] sm:$0xff] %vm5202_vm1, %v5178_v50  ;;  %v3953_v17 = vmul.f32 %v13813_v2, %v13361_v63  ;;  %v4172_v27 = vadd.f32 %v4148_v7, %v3975_v38  ;;  %v15354_v7 = vld [vmem:[#allocation20_spill] sm:$0xff]  ;;  %v9671_v38 = vld [vmem:[%s11246_s7 + $0xdc] sm:$0xf] }
 0x4b0   : > { %v4171_v43 = vadd.f32 %v4147_v18, %v3974_v62  ;;  %v4544_v3 = vmul.f32 %v13847_v57, %v13660_v14  ;;  %v5019_v42 = vpop.permute.xlu1 %5018  ;;  %v13957_v1 = vpop.permute.xlu0 %4846  ;;  %v4543_v47 = vmul.f32 %v13847_v57, %v13662_v25  ;;  %v3780_v40 = vadd.f32 %v3756_v59, %v3583_v23  ;;  %v9669_v14 = vld [vmem:[%s11246_s7 + $0xcc] sm:$0xf]  ;;  %v15355_v18 = vld [vmem:[#allocation29_spill] sm:$0xff] }
 0x4b1   : > { %v4959_v20 = vadd.f32 %v4935_v6, %v4762_v26  ;;  %v5132_v31 = vmul.f32 %v13904_v4, %v5019_v42  ;;  %4906 = vperm.xlu1 %10996, %v9645_v15   ;;  %4901 = vperm.xlu0 %10995, %v9644_v51   ;;  %v3952_v63 = vmul.f32 %v13813_v2, %v13363_v34  ;;  %v15356_v6 = vld [vmem:[#allocation21_spill] sm:$0xff]  ;;  %v15358_v51 = vld [vmem:[#allocation22_spill] sm:$0xff] }
 0x4b2   : > { %v4371_v54 = vadd.f32 %v4347_v46, %v4172_v27  ;;  %v4741_v53 = vmul.f32 %v13860_v30, %v13723_v52  ;;  %v4150_v9 = vmul.f32 %v13802_v24, %v13494_v11  ;;  %v4370_v39 = vadd.f32 %v4346_v32, %v4171_v43  ;;  %v9670_v62 = vld [vmem:[%s11246_s7 + $0xd4] sm:$0xff]  ;;  %v15357_v46 = vld [vmem:[#allocation139_spill] sm:$0xff] }
 0x4b3   : > { %v4740_v25 = vmul.f32 %v13860_v30, %v15352_v41  ;;  %v5156_v60 = vadd.f32 %v5132_v31, %v4959_v20  ;;  %v3779_v33 = vadd.f32 %v3755_v35, %v3582_v61  ;;  %v4149_v37 = vmul.f32 %v13802_v24, %v15353_v5  ;;  %v15359_v32 = vld [vmem:[#allocation23_spill] sm:$0xff]  ;;  %v9568_v41 = vld [vmem:[%s11246_s7 + $0xe0] sm:$0xff] }
 0x4b4   : > { %v4568_v19 = vadd.f32 %v4544_v3, %v4371_v54  ;;  %v4938_v34 = vmul.f32 %v13873_v36, %v13893_v16  ;;  %v13975_v52 = vpop.permute.xlu1 %4659  ;;  %v13977_v12 = vpop.permute.xlu0 %4654  ;;  %v3977_v11 = vadd.f32 %v3953_v17, %v3780_v40  ;;  %v4567_v22 = vadd.f32 %v4543_v47, %v4370_v39  ;;  %v15360_v17 = vld [vmem:[#allocation24_spill] sm:$0xff]  ;;  %v15362_v54 = vld [vmem:[#allocation141_spill] sm:$0xff] }
 0x4b5   : > { %v4937_v45 = vmul.f32 %v13873_v36, %v13895_v29  ;;  %v5180_v0 = vmax.f32 %v5156_v60, 0.0  ;;  %5093 = vperm.xlu1 %10996, %v9669_v14   ;;  %5088 = vperm.xlu0 %10995, %v15354_v7   ;;  %v13984_v23 = vadd.f32 %v13840_v49, %v15355_v18  ;;  %v3976_v56 = vadd.f32 %v3952_v63, %v3779_v33  ;;  %v15361_v40 = vld [vmem:[#allocation140_spill] sm:$0xff]  ;;  %v15364_v60 = vld [vmem:[#allocation33_spill] sm:$0xff] }
 0x4b6   : > { %v4348_v16 = vmul.f32 %v13826_v48, %v15356_v6  ;;  %v4765_v50 = vadd.f32 %v4741_v53, %v4568_v19  ;;  %v5235_v59 = vld [vmem:[#allocation2] sm:$0xff]  ;;  %v3165_v15 = vmul.f32 %v13744_v44, %v15357_v46  ;;  %v4174_v29 = vadd.f32 %v4150_v9, %v3977_v11 }
 0x4b7   : > { %v4349_v61 = vmul.f32 %v13826_v48, %v15358_v51  ;;  %v4764_v35 = vadd.f32 %v4740_v25, %v4567_v22  ;;  %5206 = vst.msk [vmem:[#allocation2 + $0x10] sm:$0xff] %vm5202_vm1, %v5180_v0  ;;  %10192 = vmatprep.mubr.msk.f32.mxu1 %vm5202_vm1, %v5235_v59  ;;  %v4173_v49 = vadd.f32 %v4149_v37, %v3976_v56  ;;  %v15363_v9 = vld [vmem:[#allocation30_spill] sm:$0xff] }
 0x4b8   : > { %v4545_v26 = vmul.f32 %v13847_v57, %v15359_v32  ;;  %v4546_v27 = vmul.f32 %v13847_v57, %v15360_v17  ;;  %v4962_v43 = vadd.f32 %v4938_v34, %v4765_v50  ;;  %v5034_v3 = vpop.permute.xlu1 %5033  ;;  %v5029_v42 = vpop.permute.xlu0 %5028  ;;  %v3164_v63 = vmul.f32 %v13744_v44, %v15361_v40  ;;  %v15365_v19 = vld [vmem:[#allocation150_spill] sm:$0xff] }
 0x4b9   : > { %v4961_v47 = vadd.f32 %v4937_v45, %v4764_v35  ;;  %v5135_v20 = vmul.f32 %v13904_v4, %v5034_v3  ;;  %v5134_v31 = vmul.f32 %v13904_v4, %v5029_v42  ;;  %5103 = vperm.xlu1 %10996, %v9671_v38   ;;  %5098 = vperm.xlu0 %10995, %v9670_v62   ;;  %v15367_v59 = vld [vmem:[#allocation34_spill] sm:$0xff]  ;;  %v15372_v42 = vld [vmem:[#allocation151_spill] sm:$0xff] }
 0x4ba   : > { %v3167_v53 = vmul.f32 %v13744_v44, %v15362_v54  ;;  %v4372_v14 = vadd.f32 %v4348_v16, %v4173_v49  ;;  %v4742_v39 = vmul.f32 %v13860_v30, %v15363_v9  ;;  %v4373_v25 = vadd.f32 %v4349_v61, %v4174_v29  ;;  %v15366_v16 = vld [vmem:[#allocation32_spill] sm:$0xff]  ;;  %v15368_v46 = vld [vmem:[#allocation142_spill] sm:$0xff]  ;;  %v15369_v49 = vld [vmem:[#allocation35_spill] sm:$0xff] }
 0x4bb   : > { %v4743_v33 = vmul.f32 %v13860_v30, %v15364_v60  ;;  %v5159_v5 = vadd.f32 %v5135_v20, %v4962_v43  ;;  %v5158_v37 = vadd.f32 %v5134_v31, %v4961_v47  ;;  %v3363_v34 = vmul.f32 %v13759_v10, %v15365_v19  ;;  %v9620_v61 = vld [vmem:[%s11246_s7 + $0xe2] sm:$0xff]  ;;  %v5549_v43 = vld [vmem:[#allocation3 + $0x38] sm:$0xff] }
 0x4bc   : > { %v4569_v11 = vadd.f32 %v4545_v26, %v4372_v14  ;;  %v4939_v22 = vmul.f32 %v13873_v36, %v13936_v28  ;;  %v14015_v45 = vpop.permute.xlu1 %4669  ;;  %v14017_v0 = vpop.permute.xlu0 %4664  ;;  %v4570_v7 = vadd.f32 %v4546_v27, %v4373_v25  ;;  %v4940_v18 = vmul.f32 %v13873_v36, %v13957_v1  ;;  %v9594_v35 = vld [vmem:[%s11246_s7 + $0xe1] sm:$0xff]  ;;  %v15370_v26 = vld [vmem:[#allocation149_spill] sm:$0xff] }
 0x4bd   : > { %v5183_v56 = vmax.f32 %v5159_v5, 0.0  ;;  %v5182_v6 = vmax.f32 %v5158_v37, 0.0  ;;  %4320 = vperm.xlu1 %10996, %v9568_v41   ;;  %4121 = vperm.xlu0 %10995, %v9670_v62   ;;  %v3189_v50 = vadd.f32 %v3165_v15, %v15366_v16  ;;  %v3188_v38 = vadd.f32 %v3164_v63, %v15367_v59  ;;  %v15371_v17 = vld [vmem:[#allocation162_spill] sm:$0xff]  ;;  %v5548_v15 = vld [vmem:[#allocation3 + $0x30] sm:$0xff]  ;;  %v15373_v20 = vld [vmem:[#allocation171_spill] sm:$0xff] }
 0x4be   : > { %v3166_v28 = vmul.f32 %v13744_v44, %v15368_v46  ;;  %v4766_v29 = vadd.f32 %v4742_v39, %v4569_v11  ;;  %v5236_v51 = vld [vmem:[#allocation2 + $0x10] sm:$0xff]  ;;  %v3191_v32 = vadd.f32 %v3167_v53, %v15369_v49  ;;  %v3364_v1 = vmul.f32 %v13759_v10, %v15370_v26  ;;  %v5398_v44 = vld [vmem:[#allocation3 + $0x28] sm:$0xf]  ;;  %v15375_v60 = vld [vmem:[#allocation161_spill] sm:$0xff] }
 0x4bf   : > { %v3560_v27 = vmul.f32 %v13774_v58, %v15371_v17  ;;  %v4767_v62 = vadd.f32 %v4743_v33, %v4570_v7  ;;  %5209 = vst.msk [vmem:[#allocation2 + $0x28] sm:$0xf] %vm5204_vm2, %v5183_v56  ;;  %10193 = vmatmul.mubr.msk.f32.vlgmr.msra.gmra.mrb[0].mxu1 %vm5202_vm1, %v5236_v51  ;;  %v3387_v3 = vadd.f32 %v3363_v34, %v3188_v38  ;;  %v15374_v41 = vld [vmem:[#allocation152_spill] sm:$0xff]  ;;  %v14048_v5 = vld [vmem:[%s11246_s7 + $0xe4] sm:$0xff]  ;;  %v15376_v34 = vld [vmem:[#allocation177_spill] sm:$0xff] }
 0x4c0   : > { %5208 = vst.msk [vmem:[#allocation2 + $0x20] sm:$0xff] %vm5202_vm1, %v5182_v6  ;;  %v3366_v47 = vmul.f32 %v13759_v10, %v15372_v42  ;;  %v3757_v31 = vmul.f32 %v13791_v8, %v15373_v20  ;;  %v4963_v40 = vadd.f32 %v4939_v22, %v4766_v29  ;;  %v5044_v63 = vpop.permute.xlu1 %5043  ;;  %v5039_v54 = vpop.permute.xlu0 %5038  ;;  %10643 = vmatpush3.bf16.msra.mxu1 %v13887_v13  ;;  %v9646_v37 = vld [vmem:[%s11246_s7 + $0xe3] sm:$0xff] }
 0x4c1   : > { %v4964_v53 = vadd.f32 %v4940_v18, %v4767_v62  ;;  %v5137_v14 = vmul.f32 %v13904_v4, %v5044_v63  ;;  %v5136_v9 = vmul.f32 %v13904_v4, %v5039_v54  ;;  %4714 = vperm.xlu1 %10996, %v9620_v61   ;;  %4517 = vperm.xlu0 %10995, %v9594_v35   ;;  %v15378_v6 = vld [vmem:[#allocation170_spill] sm:$0xff] }
 0x4c2   : > { %v3190_v39 = vadd.f32 %v3166_v28, %v13984_v23  ;;  %v3365_v25 = vmul.f32 %v13759_v10, %v15374_v41  ;;  %v3561_v33 = vmul.f32 %v13774_v58, %v15375_v60  ;;  %10208 = vmatprep.subr.msk.mxu1 %vm5270_vm0, %v5398_v44  ;;  %v14052_v13 = vpack.c.bf16 %v5549_v43, %v5548_v15  ;;  %v15377_v10 = vld [vmem:[#allocation163_spill] sm:$0xff]  ;;  %v15382_v15 = vld [vmem:[#allocation172_spill] sm:$0xff]  ;;  %v15383_v42 = vld [vmem:[#allocation26_spill] sm:$0xff] }
 0x4c3   : > { %v3584_v19 = vadd.f32 %v3560_v27, %v3387_v3  ;;  %v3954_v11 = vmul.f32 %v13813_v2, %v15376_v34  ;;  %v5161_v22 = vadd.f32 %v5137_v14, %v4964_v53  ;;  %v5160_v23 = vadd.f32 %v5136_v9, %v4963_v40  ;;  %v15379_v28 = vld [vmem:[#allocation11_spill] sm:$0xff]  ;;  %v15385_v63 = vld [vmem:[#allocation10_spill] sm:$0xff]  ;;  %v15389_v34 = vld [vmem:[#allocation25_spill] sm:$0xff] }
 0x4c4   : > { %v3388_v7 = vadd.f32 %v3364_v1, %v3189_v50  ;;  %v3390_v18 = vadd.f32 %v3366_v47, %v3191_v32  ;;  %v3563_v56 = vmul.f32 %v13774_v58, %v15377_v10  ;;  %v3758_v16 = vmul.f32 %v13791_v8, %v15378_v6  ;;  %v4852_v59 = vpop.permute.xlu1 %4851  ;;  %v14060_v38 = vpop.permute.xlu0 %4280  ;;  %10209 = vmatpush3.msk.msra.mxu1 %vm5270_vm0, %v5398_v44  ;;  %v9569_v50 = vld [vmem:[%s11246_s7 + $0xe8] sm:$0xf]  ;;  %v15380_v32 = vld [vmem:[#allocation164_spill] sm:$0xff]  ;;  %v9543_v44 = vld [vmem:[%s11246_s7 + $0xdc] sm:$0xf] }
 0x4c5   : > { %v3781_v46 = vadd.f32 %v3757_v31, %v3584_v19  ;;  %v4151_v29 = vmul.f32 %v13802_v24, %v15379_v28  ;;  %v5185_v51 = vmax.f32 %v5161_v22, 0.0  ;;  %v5184_v61 = vmax.f32 %v5160_v23, 0.0  ;;  %5108 = vperm.xlu1 %10996, %v14048_v5   ;;  %4911 = vperm.xlu0 %10995, %v9646_v37   ;;  %v15381_v1 = vld [vmem:[#allocation176_spill] sm:$0xff]  ;;  %v15384_v31 = vld [vmem:[#allocation173_spill] sm:$0xff]  ;;  %v15386_v9 = vld [vmem:[#allocation178_spill] sm:$0xff] }
 0x4c6   : > { %v3389_v35 = vadd.f32 %v3365_v25, %v3190_v39  ;;  %v3585_v49 = vadd.f32 %v3561_v33, %v3388_v7  ;;  %v3562_v26 = vmul.f32 %v13774_v58, %v15380_v32  ;;  %v3955_v17 = vmul.f32 %v13813_v2, %v15381_v1  ;;  %10645 = vmatprep.subr.bf16.mxu1 %v14052_v13  ;;  %v15387_v25 = vld [vmem:[#allocation37_spill] sm:$0xff]  ;;  %v15388_v19 = vld [vmem:[#allocation179_spill] sm:$0xff] }
 0x4c7   : > { %v5237_v27 = vld [vmem:[#allocation2 + $0x20] sm:$0xff]  ;;  %v3760_v43 = vmul.f32 %v13791_v8, %v15382_v15  ;;  %v3978_v3 = vadd.f32 %v3954_v11, %v3781_v46  ;;  %v4350_v47 = vmul.f32 %v13826_v48, %v15383_v42  ;;  %5211 = vst.msk [vmem:[#allocation2 + $0x38] sm:$0xf] %vm5204_vm2, %v5185_v51  ;;  %v3587_v58 = vadd.f32 %v3563_v56, %v3390_v18  ;;  %v9621_v22 = vld [vmem:[%s11246_s7 + $0xea] sm:$0xf]  ;;  %v15390_v18 = vld [vmem:[#allocation12_spill] sm:$0xff] }
 0x4c8   : > { %v14071_v62 = vld [vmem:[#allocation2 + $0x22] sm:$0xff]  ;;  %5210 = vst.msk [vmem:[#allocation2 + $0x30] sm:$0xff] %vm5202_vm1, %v5184_v61  ;;  %10195 = vmatprep.mubr.msk.f32.mxu1 %vm5202_vm1, %v5237_v27  ;;  %v3782_v20 = vadd.f32 %v3758_v16, %v3585_v49  ;;  %v3759_v40 = vmul.f32 %v13791_v8, %v15384_v31  ;;  %v4152_v54 = vmul.f32 %v13802_v24, %v15385_v63  ;;  %v14088_v53 = vpop.permute.xlu1 %4290  ;;  %v4857_v14 = vpop.permute.xlu0 %4856  ;;  %v15391_v28 = vld [vmem:[#allocation13_spill] sm:$0xff]  ;;  %v9647_v42 = vld [vmem:[%s11246_s7 + $0xeb] sm:$0xf] }
 0x4c9   : > { %10408 = vmatprep.mubr.msk.f32.mxu0 %vm5202_vm1, %v14071_v62  ;;  %v3957_v39 = vmul.f32 %v13813_v2, %v15386_v9  ;;  %v4175_v41 = vadd.f32 %v4151_v29, %v3978_v3  ;;  %v4547_v60 = vmul.f32 %v13847_v57, %v15387_v25  ;;  %4325 = vperm.xlu1 %10996, %v9569_v50   ;;  %v9595_v23 = vld [vmem:[%s11246_s7 + $0xe9] sm:$0xf]  ;;  %v7374_v31 = vld [vmem:[#allocation3 + $0x150] sm:$0xff]  ;;  %v15395_v25 = vld [vmem:[#allocation14_spill] sm:$0xff] }
 0x4ca   : > { %4126 = vperm.xlu0 %10995, %v9543_v44   ;;  %v3586_v33 = vadd.f32 %v3562_v26, %v3389_v35  ;;  %v3979_v37 = vadd.f32 %v3955_v17, %v3782_v20  ;;  %v3956_v8 = vmul.f32 %v13813_v2, %v15388_v19  ;;  %v4351_v11 = vmul.f32 %v13826_v48, %v15389_v34  ;;  %v15392_v2 = vld [vmem:[#allocation36_spill] sm:$0xff]  ;;  %v9673_v26 = vld [vmem:[%s11246_s7 + $0xec] sm:$0xf]  ;;  %v7224_v20 = vld [vmem:[#allocation3 + $0x148] sm:$0xf] }
 0x4cb   : > { %v3784_v7 = vadd.f32 %v3760_v43, %v3587_v58  ;;  %v4154_v10 = vmul.f32 %v13802_v24, %v15390_v18  ;;  %v4374_v56 = vadd.f32 %v4350_v47, %v4175_v41  ;;  %v4744_v6 = vmul.f32 %v13860_v30, %v13977_v12  ;;  %v15393_v17 = vld [vmem:[#allocation28_spill] sm:$0xff]  ;;  %v15394_v44 = vld [vmem:[#allocation31_spill] sm:$0xff] }
 0x4cc   : > { %v3783_v16 = vadd.f32 %v3759_v40, %v3586_v33  ;;  %v4176_v46 = vadd.f32 %v4152_v54, %v3979_v37  ;;  %v4153_v29 = vmul.f32 %v13802_v24, %v15391_v28  ;;  %v4548_v51 = vmul.f32 %v13847_v57, %v15392_v2  ;;  %v4867_v61 = vpop.permute.xlu1 %4866  ;;  %v4862_v50 = vpop.permute.xlu0 %4861  ;;  %v7375_v40 = vld [vmem:[#allocation3 + $0x158] sm:$0xff]  ;;  %v9570_v34 = vld [vmem:[%s11246_s7 + $0xf0] sm:$0xff] }
 0x4cd   : > { %v3981_v35 = vadd.f32 %v3957_v39, %v3784_v7  ;;  %v4571_v49 = vadd.f32 %v4547_v60, %v4374_v56  ;;  %v4941_v32 = vmul.f32 %v13873_v36, %v4852_v59  ;;  %4719 = vperm.xlu1 %10996, %v9621_v22   ;;  %v4352_v27 = vmul.f32 %v13826_v48, %v15393_v17  ;;  %v9622_v28 = vld [vmem:[%s11246_s7 + $0xf2] sm:$0xff] }
 0x4ce   : > { %4522 = vperm.xlu0 %10995, %v9595_v23   ;;  %v3980_v1 = vadd.f32 %v3956_v8, %v3783_v16  ;;  %v4375_v12 = vadd.f32 %v4351_v11, %v4176_v46  ;;  %v4353_v15 = vmul.f32 %v13826_v48, %v15394_v44  ;;  %v4745_v59 = vmul.f32 %v13860_v30, %v13975_v52 }
 0x4cf   : > { %v14114_v43 = vld [vmem:[#allocation2 + $0x30] sm:$0xff]  ;;  %v4178_v47 = vadd.f32 %v4154_v10, %v3981_v35  ;;  %v4768_v58 = vadd.f32 %v4744_v6, %v4571_v49  ;;  %v4549_v9 = vmul.f32 %v13847_v57, %v13917_v55  ;;  %v4550_v39 = vmul.f32 %v13847_v57, %v13938_v21 }
 0x4d0   : > { %v14116_v3 = vld [vmem:[#allocation2 + $0x32] sm:$0xff]  ;;  %10196 = vmatmul.mubr.msk.f32.gmra.mrb[2].mxu1 %vm5202_vm1, %v14114_v43  ;;  %v4177_v63 = vadd.f32 %v4153_v29, %v3980_v1  ;;  %v4572_v54 = vadd.f32 %v4548_v51, %v4375_v12  ;;  %v5049_v52 = vpop.permute.xlu1 %5048  ;;  %v14129_v41 = vpop.permute.xlu0 %4477  ;;  %v4942_v33 = vmul.f32 %v13873_v36, %v4857_v14  ;;  %v4747_v55 = vmul.f32 %v13860_v30, %v14015_v45 }
 0x4d1   : > { %10409 = vmatmul.mubr.msk.f32.vlgmr.msra.gmra.mrb[0].mxu0 %vm5202_vm1, %v14116_v3  ;;  %v4965_v60 = vadd.f32 %v4941_v32, %v4768_v58  ;;  %v5138_v37 = vmul.f32 %v13904_v4, %v5049_v52  ;;  %5113 = vperm.xlu1 %10996, %v9673_v26   ;;  %v4377_v8 = vadd.f32 %v4353_v15, %v4178_v47  ;;  %v9596_v29 = vld [vmem:[%s11246_s7 + $0xf1] sm:$0xff] }
 0x4d2   : > { %10691 = vmatpush3.bf16.msra.mxu0 %v15395_v25  ;;  %4916 = vperm.xlu0 %10995, %v9647_v42   ;;  %v4376_v19 = vadd.f32 %v4352_v27, %v4177_v63  ;;  %v14138_v21 = vpack.c.bf16 %v7375_v40, %v7374_v31  ;;  %v4769_v11 = vadd.f32 %v4745_v59, %v4572_v54  ;;  %v9674_v1 = vld [vmem:[%s11246_s7 + $0xf4] sm:$0xff]  ;;  %v9675_v25 = vld [vmem:[%s11246_s7 + $0xfc] sm:$0xf] }
 0x4d3   : > { %10424 = vmatprep.subr.msk.mxu0 %vm5270_vm0, %v7224_v20  ;;  %v4746_v22 = vmul.f32 %v13860_v30, %v14017_v0  ;;  %v5162_v14 = vadd.f32 %v5138_v37, %v4965_v60  ;;  %v4574_v7 = vadd.f32 %v4550_v39, %v4377_v8  ;;  %v4944_v18 = vmul.f32 %v13873_v36, %v4867_v61  ;;  %v9648_v12 = vld [vmem:[%s11246_s7 + $0xf3] sm:$0xff]  ;;  %v9649_v37 = vld [vmem:[%s11246_s7 + $0xfb] sm:$0xf] }
 0x4d4   : > { %v4573_v23 = vadd.f32 %v4549_v9, %v4376_v19  ;;  %v14143_v10 = vpop.permute.xlu1 %4487  ;;  %v5054_v56 = vpop.permute.xlu0 %5053  ;;  %v4966_v45 = vadd.f32 %v4942_v33, %v4769_v11  ;;  %v4943_v6 = vmul.f32 %v13873_v36, %v4862_v50  ;;  %v9571_v58 = vld [vmem:[%s11246_s7 + $0xf8] sm:$0xf]  ;;  %v14190_v19 = vld [vmem:[#allocation2 + $0x23] sm:$0xff] }
 0x4d5   : > { %v5186_v16 = vmax.f32 %v5162_v14, 0.0  ;;  %v5139_v46 = vmul.f32 %v13904_v4, %v5054_v56  ;;  %4330 = vperm.xlu1 %10996, %v9570_v34   ;;  %v4771_v0 = vadd.f32 %v4747_v55, %v4574_v7  ;;  %v9623_v54 = vld [vmem:[%s11246_s7 + $0xfa] sm:$0xf]  ;;  %v15396_v34 = vld [vmem:[#allocation15_spill] sm:$0xff]  ;;  %v7528_v7 = vld [vmem:[#allocation3 + $0x170] sm:$0xff] }
 0x4d6   : > { %10425 = vmatpush3.msk.msra.mxu0 %vm5270_vm0, %v7224_v20  ;;  %4131 = vperm.xlu0 %10995, %v14048_v5   ;;  %v4770_v2 = vadd.f32 %v4746_v22, %v4573_v23  ;;  %v9545_v20 = vld [vmem:[%s11246_s7 + $0xec] sm:$0xf]  ;;  %v9597_v9 = vld [vmem:[%s11246_s7 + $0xf9] sm:$0xf]  ;;  %v4155_v11 = vmul.f32 %v13802_v24, %v15396_v34  ;;  %v7376_v22 = vld [vmem:[#allocation3 + $0x160] sm:$0xf] }
 0x4d7   : > { %10693 = vmatprep.subr.bf16.mxu0 %v14138_v21  ;;  %5212 = vst.msk [vmem:[#allocation2 + $0x40] sm:$0xff] %vm5202_vm1, %v5186_v16  ;;  %v5163_v51 = vadd.f32 %v5139_v46, %v4966_v45  ;;  %v4968_v61 = vadd.f32 %v4944_v18, %v4771_v0  ;;  %v14198_v14 = vld [vmem:[#allocation2 + $0x33] sm:$0xff]  ;;  %v7527_v23 = vld [vmem:[#allocation3 + $0x168] sm:$0xff]  ;;  %v4354_v18 = vmul.f32 %v13826_v48, %v14060_v38  ;;  %s14892_s7 = scalar_lea.vmem [#allocation6], %s9149_s11 }
 0x4d8   : > { %v5064_v35 = vpop.permute.xlu1 %5063  ;;  %v5059_v50 = vpop.permute.xlu0 %5058  ;;  %v4967_v49 = vadd.f32 %v4943_v6, %v4770_v2  ;;  %v15397_v16 = vld [vmem:[#allocation181_spill] sm:$0xff]  ;;  %v4551_v0 = vmul.f32 %v13847_v57, %v14129_v41  ;;  %v14215_v38 = vpack.c.bf16 %v7528_v7, %v7527_v23  ;;  %s9069_s13 = sshll.u32 %s14892_s7, 4  ;;  %s14913_s13 = int_to_ptr.vmem [resolvable:$true] %s9069_s13 }
 0x4d9   : > { %v5187_v32 = vmax.f32 %v5163_v51, 0.0  ;;  %v5141_v26 = vmul.f32 %v13904_v4, %v5064_v35  ;;  %v5140_v5 = vmul.f32 %v13904_v4, %v5059_v50  ;;  %4724 = vperm.xlu1 %10996, %v9622_v28   ;;  %v4179_v46 = vadd.f32 %v4155_v11, %v15397_v16  ;;  %s11053_s17 = scalar_lea.vmem %s14913_s13, 1024  ;;  %p11060_p2 = scmp.lt.s32.totalorder %s14913_s13, %s11058_s25 }
 0x4da   : > { %4527 = vperm.xlu0 %10995, %v9596_v29   ;;  %p11054_p6 = scmp.ne.s32.totalorder %s14913_s13, %s11053_s17  ;;  %p11061_p3 = scmp.lt.s32.totalorder %s11059_s26, %s11053_s17 }
 0x4db   : > { %5213 = vst.msk [vmem:[#allocation2 + $0x48] sm:$0xf] %vm5204_vm2, %v5187_v32  ;;  %v5165_v17 = vadd.f32 %v5141_v26, %v4968_v61  ;;  %v5164_v27 = vadd.f32 %v5140_v5, %v4967_v49  ;;  %v4378_v29 = vadd.f32 %v4354_v18, %v4179_v46  ;;  %v4356_v49 = vmul.f32 %v13826_v48, %v14088_v53 }
 0x4dc   : > { %v4675_v44 = vpop.permute.xlu1 %4674  ;;  %v14158_v15 = vpop.permute.xlu0 %4225  ;;  %p11055_p10 = pnand %p11054_p6, %p15419_p9  ;;  %p11062_p4 = por %p11061_p3, %p11060_p2 }
 0x4dd   : > { %v5189_v42 = vmax.f32 %v5165_v17, 0.0  ;;  %v5188_v47 = vmax.f32 %v5164_v27, 0.0  ;;  %5118 = vperm.xlu1 %10996, %v9674_v1   ;;  %v4748_v2 = vmul.f32 %v13860_v30, %v4675_v44  ;;  %v4575_v35 = vadd.f32 %v4551_v0, %v4378_v29  ;;  %v15399_v1 = vld [vmem:[#allocation183_spill] sm:$0xff]  ;;  %v15400_v29 = vld [vmem:[#allocation193_spill] sm:$0xff] }
 0x4de   : > { %4921 = vperm.xlu0 %10995, %v9648_v12   ;;  %v14160_v59 = vld [vmem:[#allocation2 + $0x40] sm:$0xff]  ;;  %v4553_v17 = vmul.f32 %v13847_v57, %v14143_v10  ;;  %p11056_p12 = pneg %p11055_p10 }
 0x4df   : > { %5215 = vst.msk [vmem:[#allocation2 + $0x58] sm:$0xf] %vm5204_vm2, %v5189_v42  ;;  %10198 = vmatprep.mubr.msk.f32.mxu1 %vm5202_vm1, %v14160_v59  ;;  %v4772_v32 = vadd.f32 %v4748_v2, %v4575_v35  ;;  %v4144_v2 = vmul.f32 %v13802_v24, %v15400_v29 }
 0x4e0   : > { %5214 = vst.msk [vmem:[#allocation2 + $0x50] sm:$0xff] %vm5202_vm1, %v5188_v47  ;;  %v4685_v31 = vpop.permute.xlu1 %4684  ;;  %v14168_v40 = vpop.permute.xlu0 %4235  ;;  %p11063_p7 = pnand %p11062_p4, %p11056_p12 }
 0x4e1   : > { %4335 = vperm.xlu1 %10996, %v9571_v58   ;;  %v4750_v47 = vmul.f32 %v13860_v30, %v4685_v31 }
 0x4e2   : > { %4136 = vperm.xlu0 %10995, %v9545_v20   ;;  %v14170_v63 = vld [vmem:[#allocation2 + $0x42] sm:$0xff] }
 0x4e3   : > { %10411 = vmatprep.mubr.msk.f32.mxu0 %vm5202_vm1, %v14170_v63  ;;  %v14204_v56 = vld [vmem:[#allocation2 + $0x43] sm:$0xff] }
 0x4e4   : > { %v14176_v39 = vpop.permute.xlu1 %4422  ;;  %v14178_v52 = vpop.permute.xlu0 %4285 }
 0x4e5   : > { %4729 = vperm.xlu1 %10996, %v9623_v54  }
 0x4e6   : > { %4532 = vperm.xlu0 %10995, %v9597_v9  }
 0x4e7   : > { %v14181_v60 = vld [vmem:[#allocation2 + $0x50] sm:$0xff] }
 0x4e8   : > { %v14183_v33 = vld [vmem:[#allocation2 + $0x52] sm:$0xff]  ;;  %10199 = vmatmul.mubr.msk.f32.gmra.mrb[4].mxu1 %vm5202_vm1, %v14181_v60  ;;  %v14192_v8 = vpop.permute.xlu1 %4295  ;;  %v4872_v55 = vpop.permute.xlu0 %4871 }
 0x4e9   : > { %10412 = vmatmul.mubr.msk.f32.gmra.mrb[2].mxu0 %vm5202_vm1, %v14183_v33  ;;  %5123 = vperm.xlu1 %10996, %v9675_v25   ;;  %v14217_v28 = vld [vmem:[#allocation2 + $0x53] sm:$0xff]  ;;  %v4945_v50 = vmul.f32 %v13873_v36, %v4872_v55 }
 0x4ea   : > { %10426 = vmatprep.mubr.msk.f32.mxu0 %vm5202_vm1, %v14190_v19  ;;  %4926 = vperm.xlu0 %10995, %v9649_v37  }
 0x4eb   : > { %v4969_v27 = vadd.f32 %v4945_v50, %v4772_v32 }
 0x4ec   : > { %v4882_v45 = vpop.permute.xlu1 %4881  ;;  %v14206_v6 = vpop.permute.xlu0 %4432 }
 0x4ed   : > { %10427 = vmatmul.mubr.msk.f32.vlgmr.msra.gmra.mrb[0].mxu0 %vm5202_vm1, %v14198_v14  ;;  %v4947_v9 = vmul.f32 %v13873_v36, %v4882_v45 }
 0x4ee   : > { %10429 = vmatprep.mubr.msk.f32.mxu0 %vm5202_vm1, %v14204_v56  ;;  %10695 = vmatpush3.bf16.msra.mxu0 %v14138_v21  ;;  %v15398_v21 = vld [vmem:[#allocation17_spill] sm:$0xff] }
 0x4ef   : > { %10442 = vmatprep.subr.msk.mxu0 %vm5270_vm0, %v7376_v22  ;;  %v4157_v41 = vmul.f32 %v13802_v24, %v15398_v21 }
 0x4f0   : > { %v4620_v51 = vpop.permute.xlu1 %4619  ;;  %v14222_v61 = vpop.permute.xlu0 %4482 }
 0x4f1   : > { %10430 = vmatmul.mubr.msk.f32.gmra.mrb[2].mxu0 %vm5202_vm1, %v14217_v28  ;;  %v4181_v12 = vadd.f32 %v4157_v41, %v15399_v1  ;;  %v4343_v41 = vmul.f32 %v13826_v48, %v14158_v15 }
 0x4f2   : > { %10443 = vmatpush3.msk.msra.mxu0 %vm5270_vm0, %v7376_v22 }
 0x4f3   : > { %10697 = vmatprep.subr.bf16.mxu0 %v14215_v38  ;;  %v4380_v42 = vadd.f32 %v4356_v49, %v4181_v12  ;;  %v15401_v49 = vld [vmem:[#allocation174_spill] sm:$0xff]  ;;  %v4737_v12 = vmul.f32 %v13860_v30, %v4620_v51  ;;  %v4542_v51 = vmul.f32 %v13847_v57, %v14206_v6  ;;  %v4355_v6 = vmul.f32 %v13826_v48, %v14178_v52 }
 0x4f4   : > { %v14231_v26 = vpop.permute.xlu1 %4111  ;;  %v5069_v5 = vpop.permute.xlu0 %5068  ;;  %v4168_v32 = vadd.f32 %v4144_v2, %v15401_v49  ;;  %v4357_v52 = vmul.f32 %v13826_v48, %v14192_v8 }
 0x4f5   : > { %v5142_v44 = vmul.f32 %v13904_v4, %v5069_v5  ;;  %v4577_v53 = vadd.f32 %v4553_v17, %v4380_v42  ;;  %v4540_v5 = vmul.f32 %v13847_v57, %v14176_v39  ;;  %v15403_v39 = vld [vmem:[#allocation175_spill] sm:$0xff] }
 0x4f6   : > { %v4367_v1 = vadd.f32 %v4343_v41, %v4168_v32 }
 0x4f7   : > { %v5166_v58 = vadd.f32 %v5142_v44, %v4969_v27  ;;  %v4774_v37 = vadd.f32 %v4750_v47, %v4577_v53  ;;  %v15402_v44 = vld [vmem:[#allocation194_spill] sm:$0xff] }
 0x4f8   : > { %v14238_v20 = vpop.permute.xlu1 %4492  ;;  %v14240_v54 = vpop.permute.xlu0 %4116  ;;  %v4146_v15 = vmul.f32 %v13802_v24, %v15402_v44  ;;  %v4564_v42 = vadd.f32 %v4540_v5, %v4367_v1  ;;  %v15405_v1 = vld [vmem:[#allocation16_spill] sm:$0xff] }
 0x4f9   : > { %v5190_v25 = vmax.f32 %v5166_v58, 0.0  ;;  %v4971_v34 = vadd.f32 %v4947_v9, %v4774_v37  ;;  %v4345_v58 = vmul.f32 %v13826_v48, %v14168_v40  ;;  %v15404_v40 = vld [vmem:[#allocation165_spill] sm:$0xff] }
 0x4fa   : > { %v4761_v53 = vadd.f32 %v4737_v12, %v4564_v42  ;;  %v4170_v37 = vadd.f32 %v4146_v15, %v15403_v39  ;;  %v4156_v2 = vmul.f32 %v13802_v24, %v15404_v40  ;;  %v15406_v15 = vld [vmem:[#allocation180_spill] sm:$0xff] }
 0x4fb   : > { %5216 = vst.msk [vmem:[#allocation2 + $0x60] sm:$0xff] %vm5202_vm1, %v5190_v25 }
 0x4fc   : > { %v5079_v55 = vpop.permute.xlu1 %5078  ;;  %v4630_v10 = vpop.permute.xlu0 %4629  ;;  %v4180_v42 = vadd.f32 %v4156_v2, %v15406_v15 }
 0x4fd   : > { %v5144_v11 = vmul.f32 %v13904_v4, %v5079_v55 }
 0x4ff   : > { %v5168_v22 = vadd.f32 %v5144_v11, %v4971_v34  ;;  %v4369_v11 = vadd.f32 %v4345_v58, %v4170_v37  ;;  %v15407_v37 = vld [vmem:[#allocation182_spill] sm:$0xff] }
 0x500   : > { %v14245_v23 = vpop.permute.xlu1 %4305  ;;  %v14247_v31 = vpop.permute.xlu0 %4300 }
 0x501   : > { %v5192_v7 = vmax.f32 %v5168_v22, 0.0  ;;  %v4739_v22 = vmul.f32 %v13860_v30, %v4630_v10  ;;  %v4566_v41 = vadd.f32 %v4542_v51, %v4369_v11  ;;  %v4158_v10 = vmul.f32 %v13802_v24, %v15405_v1 }
 0x502   : > { %v14249_v18 = vld [vmem:[#allocation2 + $0x60] sm:$0xff]  ;;  %v4554_v11 = vmul.f32 %v13847_v57, %v14238_v20 }
 0x503   : > { %5218 = vst.msk [vmem:[#allocation2 + $0x70] sm:$0xff] %vm5202_vm1, %v5192_v7  ;;  %10201 = vmatprep.mubr.msk.f32.mxu1 %vm5202_vm1, %v14249_v18  ;;  %v4763_v5 = vadd.f32 %v4739_v22, %v4566_v41  ;;  %v4182_v51 = vadd.f32 %v4158_v10, %v15407_v37  ;;  %v15410_v37 = vld [vmem:[#allocation184_spill] sm:$0xff] }
 0x504   : > { %v4817_v45 = vpop.permute.xlu1 %4816  ;;  %v4680_v16 = vpop.permute.xlu0 %4679 }
 0x505   : > { %v4934_v47 = vmul.f32 %v13873_v36, %v4817_v45  ;;  %v4381_v40 = vadd.f32 %v4357_v52, %v4182_v51  ;;  %v14331_v52 = vld [vmem:[%s14963_s1 + $0x20] ss:$0 sm:$0xff] }
 0x507   : > { %v4958_v55 = vadd.f32 %v4934_v47, %v4761_v53  ;;  %v4552_v47 = vmul.f32 %v13847_v57, %v14222_v61  ;;  %v4379_v53 = vadd.f32 %v4355_v6, %v4180_v42  ;;  %v14317_v6 = vld [vmem:[%s14963_s1 + $0x1c] ss:$0 sm:$0xff] }
 0x508   : > { %v14254_v46 = vpop.permute.xlu1 %4315  ;;  %v14256_v0 = vpop.permute.xlu0 %4310 }
 0x50a   : > { %v14260_v21 = vld [vmem:[#allocation2 + $0x70] sm:$0xff] }
 0x50b   : > { %10202 = vmatmul.mubr.msk.f32.gmra.mrb[6].mxu1 %vm5202_vm1, %v14260_v21 }
 0x50c   : > { %v4827_v35 = vpop.permute.xlu1 %4826  ;;  %v4690_v50 = vpop.permute.xlu0 %4689 }
 0x50d   : > { %v4936_v49 = vmul.f32 %v13873_v36, %v4827_v35  ;;  %v4751_v41 = vmul.f32 %v13860_v30, %v4690_v50 }
 0x50f   : > { %v4960_v58 = vadd.f32 %v4936_v49, %v4763_v5  ;;  %v15409_v5 = vld [vmem:[#allocation19_spill] sm:$0xff] }
 0x510   : > { %v14270_v17 = vpop.permute.xlu1 %4502  ;;  %v14272_v27 = vpop.permute.xlu0 %4497  ;;  %v4159_v1 = vmul.f32 %v14317_v6, %v15409_v5 }
 0x514   : > { %v5014_v9 = vpop.permute.xlu1 %5013  ;;  %v4877_v25 = vpop.permute.xlu0 %4876 }
 0x515   : > { %v5131_v34 = vmul.f32 %v13904_v4, %v5014_v9  ;;  %v4749_v9 = vmul.f32 %v13860_v30, %v4680_v16  ;;  %v4946_v61 = vmul.f32 %v13873_v36, %v4877_v25  ;;  %v4578_v16 = vadd.f32 %v4554_v11, %v4381_v40  ;;  %v15408_v30 = vld [vmem:[#allocation18_spill] sm:$0xff] }
 0x516   : > { %v4160_v50 = vmul.f32 %v14317_v6, %v15408_v30 }
 0x517   : > { %v5155_v7 = vadd.f32 %v5131_v34, %v4958_v55  ;;  %v4576_v34 = vadd.f32 %v4552_v47, %v4379_v53  ;;  %v4775_v20 = vadd.f32 %v4751_v41, %v4578_v16  ;;  %v4161_v47 = vmul.f32 %v14317_v6, %v14231_v26  ;;  %v5701_v53 = vld [vmem:[#allocation3 + $0x50] sm:$0xff]  ;;  %v14340_v26 = vld [vmem:[#allocation2 + $0x21] sm:$0xff] }
 0x518   : > { %v14284_v29 = vpop.permute.xlu1 %4512  ;;  %v14286_v45 = vpop.permute.xlu0 %4507  ;;  %v4184_v51 = vadd.f32 %v4160_v50, %v15410_v37  ;;  %v15412_v41 = vld [vmem:[#allocation187_spill] sm:$0xff]  ;;  %v4360_v16 = vmul.f32 %v14331_v52, %v14256_v0  ;;  %v15413_v0 = vld [vmem:[#allocation186_spill] sm:$0xff] }
 0x519   : > { %v5179_v32 = vmax.f32 %v5155_v7, 0.0  ;;  %v4773_v2 = vadd.f32 %v4749_v9, %v4576_v34  ;;  %v4359_v9 = vmul.f32 %v14331_v52, %v14245_v23  ;;  %v15411_v34 = vld [vmem:[#allocation185_spill] sm:$0xff] }
 0x51a   : > { %v4183_v11 = vadd.f32 %v4159_v1, %v15411_v34 }
 0x51b   : > { %5205 = vst.msk [vmem:[#allocation2 + $0x8] sm:$0xf] %vm5204_vm2, %v5179_v32  ;;  %v4970_v49 = vadd.f32 %v4946_v61, %v4773_v2  ;;  %v4162_v61 = vmul.f32 %v14317_v6, %v14240_v54 }
 0x51c   : > { %v5024_v12 = vpop.permute.xlu1 %5023  ;;  %v4887_v44 = vpop.permute.xlu0 %4886 }
 0x51d   : > { %v5133_v35 = vmul.f32 %v13904_v4, %v5024_v12  ;;  %v4948_v32 = vmul.f32 %v13873_v36, %v4887_v44  ;;  %v5550_v44 = vld [vmem:[#allocation3 + $0x40] sm:$0xf] }
 0x51f   : > { %v5157_v39 = vadd.f32 %v5133_v35, %v4960_v58  ;;  %v4972_v15 = vadd.f32 %v4948_v32, %v4775_v20  ;;  %v5700_v35 = vld [vmem:[#allocation3 + $0x48] sm:$0xff]  ;;  %v4383_v32 = vadd.f32 %v4359_v9, %v4184_v51 }
 0x520   : > { %v4700_v24 = vpop.permute.xlu1 %4699  ;;  %v4695_v55 = vpop.permute.xlu0 %4694  ;;  %v14359_v54 = vpack.c.bf16 %v5701_v53, %v5700_v35 }
 0x521   : > { %v5181_v22 = vmax.f32 %v5157_v39, 0.0  ;;  %v4358_v39 = vmul.f32 %v14331_v52, %v14247_v31  ;;  %v14352_v31 = vld [vmem:[%s14963_s1 + $0x21] ss:$0 sm:$0xff] }
 0x522   : > { %v5387_v7 = vld [vmem:[#allocation2 + $0x1] sm:$0xff]  ;;  %v4555_v40 = vmul.f32 %v14352_v31, %v14272_v27  ;;  %v4558_v30 = vmul.f32 %v14352_v31, %v14284_v29  ;;  %v4557_v50 = vmul.f32 %v14352_v31, %v14286_v45 }
 0x523   : > { %5207 = vst.msk [vmem:[#allocation2 + $0x18] sm:$0xf] %vm5204_vm2, %v5181_v22  ;;  %10210 = vmatprep.mubr.msk.f32.mxu1 %vm5202_vm1, %v5387_v7  ;;  %v4556_v7 = vmul.f32 %v14352_v31, %v14270_v17  ;;  %v4382_v17 = vadd.f32 %v4358_v39, %v4183_v11  ;;  %v14371_v27 = vld [vmem:[%s14963_s1 + $0x22] ss:$0 sm:$0xff] }
 0x524   : > { %v14310_v48 = vpop.permute.xlu1 %4704  ;;  %v5074_v8 = vpop.permute.xlu0 %5073  ;;  %v4752_v20 = vmul.f32 %v14371_v27, %v4695_v55 }
 0x525   : > { %v5143_v57 = vmul.f32 %v13904_v4, %v5074_v8  ;;  %v4185_v8 = vadd.f32 %v4161_v47, %v15412_v41  ;;  %v4579_v55 = vadd.f32 %v4555_v40, %v4382_v17  ;;  %v14399_v47 = vld [vmem:[#allocation2 + $0x51] sm:$0xff] }
 0x527   : > { %v5167_v25 = vadd.f32 %v5143_v57, %v4970_v49  ;;  %v14366_v49 = vld [vmem:[#allocation2 + $0x31] sm:$0xff]  ;;  %v4753_v57 = vmul.f32 %v14371_v27, %v4700_v24  ;;  %v4580_v24 = vadd.f32 %v4556_v7, %v4383_v32  ;;  %v4776_v39 = vadd.f32 %v4752_v20, %v4579_v55  ;;  %v5539_v32 = vld [vmem:[#allocation2 + $0x2] sm:$0xff] }
 0x528   : > { %v5084_v10 = vpop.permute.xlu1 %5083  ;;  %v4710_v12 = vpop.permute.xlu0 %4709  ;;  %v5852_v55 = vld [vmem:[#allocation3 + $0x60] sm:$0xff] }
 0x529   : > { %v5191_v42 = vmax.f32 %v5167_v25, 0.0  ;;  %v5145_v36 = vmul.f32 %v13904_v4, %v5084_v10  ;;  %v4186_v25 = vadd.f32 %v4162_v61, %v15413_v0  ;;  %v14391_v10 = vld [vmem:[%s14963_s1 + $0x23] ss:$0 sm:$0xff]  ;;  %v4777_v9 = vadd.f32 %v4753_v57, %v4580_v24 }
 0x52a   : > { %v14326_v58 = vld [vmem:[#allocation2 + $0x11] sm:$0xff] }
 0x52b   : > { %5217 = vst.msk [vmem:[#allocation2 + $0x68] sm:$0xf] %vm5204_vm2, %v5191_v42  ;;  %v5169_v4 = vadd.f32 %v5145_v36, %v4972_v15  ;;  %10211 = vmatmul.mubr.msk.f32.vlgmr.msra.gmra.mrb[0].mxu1 %vm5202_vm1, %v14326_v58  ;;  %v4384_v42 = vadd.f32 %v4360_v16, %v4185_v8  ;;  %v4754_v36 = vmul.f32 %v14371_v27, %v14310_v48  ;;  %v14431_v24 = vld [vmem:[#allocation2 + $0x12] sm:$0xff] }
 0x52c   : > { %v4897_v22 = vpop.permute.xlu1 %4896  ;;  %v4892_v23 = vpop.permute.xlu0 %4891  ;;  %10213 = vmatprep.mubr.msk.f32.mxu1 %vm5202_vm1, %v14340_v26  ;;  %10647 = vmatpush3.bf16.msra.mxu1 %v14052_v13  ;;  %v4361_v13 = vmul.f32 %v14331_v52, %v14254_v46  ;;  %v14378_v46 = vld [vmem:[#allocation2 + $0x41] sm:$0xff] }
 0x52d   : > { %v5193_v2 = vmax.f32 %v5169_v4, 0.0  ;;  %10226 = vmatprep.subr.msk.mxu1 %vm5270_vm0, %v5550_v44  ;;  %v4950_v15 = vmul.f32 %v14391_v10, %v4897_v22  ;;  %v4949_v29 = vmul.f32 %v14391_v10, %v4892_v23  ;;  %v4581_v37 = vadd.f32 %v4557_v50, %v4384_v42  ;;  %v14416_v22 = vld [vmem:[%s14963_s1 + $0x24] ss:$0 sm:$0xff] }
 0x52e   : > { %v4385_v45 = vadd.f32 %v4361_v13, %v4186_v25 }
 0x52f   : > { %5219 = vst.msk [vmem:[#allocation2 + $0x78] sm:$0xf] %vm5204_vm2, %v5193_v2  ;;  %10214 = vmatmul.mubr.msk.f32.gmra.mrb[2].mxu1 %vm5202_vm1, %v14366_v49  ;;  %v4974_v11 = vadd.f32 %v4950_v15, %v4777_v9  ;;  %v4973_v61 = vadd.f32 %v4949_v29, %v4776_v39  ;;  %v4778_v40 = vadd.f32 %v4754_v36, %v4581_v37  ;;  %v5853_v15 = vld [vmem:[#allocation3 + $0x68] sm:$0xff] }
 0x530   : > { %v4907_v5 = vpop.permute.xlu1 %4906  ;;  %v4902_v1 = vpop.permute.xlu0 %4901  ;;  %10216 = vmatprep.mubr.msk.f32.mxu1 %vm5202_vm1, %v14378_v46  ;;  %10227 = vmatpush3.msk.msra.mxu1 %vm5270_vm0, %v5550_v44  ;;  %v4755_v44 = vmul.f32 %v14371_v27, %v4710_v12  ;;  %v4582_v4 = vadd.f32 %v4558_v30, %v4385_v45 }
 0x531   : > { %10649 = vmatprep.subr.bf16.mxu1 %v14359_v54  ;;  %v4952_v48 = vmul.f32 %v14391_v10, %v4907_v5  ;;  %v4951_v12 = vmul.f32 %v14391_v10, %v4902_v1  ;;  %v5702_v1 = vld [vmem:[#allocation3 + $0x58] sm:$0xf] }
 0x532   : > { %v14401_v35 = vld [vmem:[#allocation2 + $0x63] sm:$0xff]  ;;  %v4779_v2 = vadd.f32 %v4755_v44, %v4582_v4  ;;  %v10652_v4 = vpack.c.bf16 %v5853_v15, %v5852_v55  ;;  %v14481_v55 = vld [vmem:[#allocation2 + $0x34] sm:$0xff] }
 0x533   : > { %v14403_v53 = vld [vmem:[#allocation2 + $0x61] sm:$0xff]  ;;  %10217 = vmatmul.mubr.msk.f32.gmra.mrb[4].mxu1 %vm5202_vm1, %v14399_v47  ;;  %10432 = vmatprep.mubr.msk.f32.mxu0 %vm5202_vm1, %v14401_v35  ;;  %v4975_v57 = vadd.f32 %v4951_v12, %v4778_v40  ;;  %v7529_v15 = vld [vmem:[#allocation3 + $0x178] sm:$0xf] }
 0x534   : > { %v5094_v51 = vpop.permute.xlu1 %5093  ;;  %v5089_v34 = vpop.permute.xlu0 %5088  ;;  %10219 = vmatprep.mubr.msk.f32.mxu1 %vm5202_vm1, %v14403_v53  ;;  %v4976_v17 = vadd.f32 %v4952_v48, %v4779_v2  ;;  %v15414_v48 = vld [vmem:[#allocation189_spill] sm:$0xff] }
 0x535   : > { %v5147_v23 = vmul.f32 %v14416_v22, %v5094_v51  ;;  %v5146_v7 = vmul.f32 %v14416_v22, %v5089_v34 }
 0x536   : > { %v14420_v41 = vld [vmem:[#allocation2 + $0x71] sm:$0xff] }
 0x537   : > { %v14422_v8 = vld [vmem:[#allocation2 + $0x73] sm:$0xff]  ;;  %v5171_v13 = vadd.f32 %v5147_v23, %v4974_v11  ;;  %v5170_v16 = vadd.f32 %v5146_v7, %v4973_v61  ;;  %10220 = vmatmul.mubr.msk.f32.gmra.mrb[6].mxu1 %vm5202_vm1, %v14420_v41 }
 0x538   : > { %10433 = vmatmul.mubr.msk.f32.gmra.mrb[4].mxu0 %vm5202_vm1, %v14422_v8  ;;  %v5104_v20 = vpop.permute.xlu1 %5103  ;;  %v5099_v0 = vpop.permute.xlu0 %5098  ;;  %10228 = vmatprep.mubr.msk.f32.mxu1 %vm5202_vm1, %v5539_v32 }
 0x539   : > { %v5195_v25 = vmax.f32 %v5171_v13, 0.0  ;;  %v5194_v30 = vmax.f32 %v5170_v16, 0.0  ;;  %v5149_v50 = vmul.f32 %v14416_v22, %v5104_v20  ;;  %v5148_v5 = vmul.f32 %v14416_v22, %v5099_v0  ;;  %v14464_v16 = vld [vmem:[#allocation2 + $0x72] sm:$0xff]  ;;  %v5691_v20 = vld [vmem:[#allocation2 + $0x3] sm:$0xff] }
 0x53a   : > { %v14473_v0 = vld [vmem:[#allocation2 + $0x24] sm:$0xff] }
 0x53b   : > { %5221 = vst.msk [vmem:[#allocation2 + $0x88] sm:$0xf] %vm5204_vm2, %v5195_v25  ;;  %v5173_v29 = vadd.f32 %v5149_v50, %v4976_v17  ;;  %v5172_v45 = vadd.f32 %v5148_v5, %v4975_v57  ;;  %10229 = vmatmul.mubr.msk.f32.vlgmr.msra.gmra.mrb[0].mxu1 %vm5202_vm1, %v14431_v24 }
 0x53c   : > { %5220 = vst.msk [vmem:[#allocation2 + $0x80] sm:$0xff] %vm5202_vm1, %v5194_v30  ;;  %v4321_v42 = vpop.permute.xlu1 %4320  ;;  %v4122_v36 = vpop.permute.xlu0 %4121  ;;  %10231 = vmatprep.mubr.msk.f32.mxu1 %vm5202_vm1, %v14071_v62  ;;  %10651 = vmatpush3.bf16.msra.mxu1 %v14359_v54 }
 0x53d   : > { %v5197_v44 = vmax.f32 %v5173_v29, 0.0  ;;  %v5196_v9 = vmax.f32 %v5172_v45, 0.0  ;;  %v4163_v39 = vmul.f32 %v14317_v6, %v4122_v36  ;;  %10244 = vmatprep.subr.msk.mxu1 %vm5270_vm0, %v5702_v1  ;;  %v4362_v37 = vmul.f32 %v14331_v52, %v4321_v42  ;;  %v15415_v42 = vld [vmem:[#allocation188_spill] sm:$0xff] }
 0x53f   : > { %5223 = vst.msk [vmem:[#allocation2 + $0x98] sm:$0xf] %vm5204_vm2, %v5197_v44  ;;  %v4187_v12 = vadd.f32 %v4163_v39, %v15414_v48  ;;  %10232 = vmatmul.mubr.msk.f32.gmra.mrb[2].mxu1 %vm5202_vm1, %v14116_v3  ;;  %v14459_v3 = vld [vmem:[#allocation2 + $0x62] sm:$0xff] }
 0x540   : > { %5222 = vst.msk [vmem:[#allocation2 + $0x90] sm:$0xff] %vm5202_vm1, %v5196_v9  ;;  %v4715_v62 = vpop.permute.xlu1 %4714  ;;  %v4518_v54 = vpop.permute.xlu0 %4517  ;;  %10234 = vmatprep.mubr.msk.f32.mxu1 %vm5202_vm1, %v14170_v63  ;;  %10245 = vmatpush3.msk.msra.mxu1 %vm5270_vm0, %v5702_v1  ;;  %v14479_v1 = vld [vmem:[#allocation2 + $0x13] sm:$0xff]  ;;  %v7679_v44 = vld [vmem:[#allocation3 + $0x180] sm:$0xff]  ;;  %v7680_v9 = vld [vmem:[#allocation3 + $0x188] sm:$0xff] }
 0x541   : > { %v4386_v51 = vadd.f32 %v4362_v37, %v4187_v12  ;;  %v4559_v34 = vmul.f32 %v14352_v31, %v4518_v54  ;;  %10653 = vmatprep.subr.bf16.mxu1 %v10652_v4  ;;  %v4756_v61 = vmul.f32 %v14371_v27, %v4715_v62  ;;  %v14492_v48 = vld [vmem:[#allocation2 + $0x44] sm:$0xff]  ;;  %v5854_v54 = vld [vmem:[#allocation3 + $0x70] sm:$0xf] }
 0x543   : > { %v14452_v11 = vld [vmem:[#allocation2 + $0x83] sm:$0xff]  ;;  %v4583_v23 = vadd.f32 %v4559_v34, %v4386_v51  ;;  %10235 = vmatmul.mubr.msk.f32.gmra.mrb[4].mxu1 %vm5202_vm1, %v14183_v33  ;;  %v14499_v51 = vld [vmem:[#allocation2 + $0x54] sm:$0xff] }
 0x544   : > { %10435 = vmatprep.mubr.msk.f32.mxu0 %vm5202_vm1, %v14452_v11  ;;  %v5109_v7 = vpop.permute.xlu1 %5108  ;;  %v4912_v40 = vpop.permute.xlu0 %4911  ;;  %10237 = vmatprep.mubr.msk.f32.mxu1 %vm5202_vm1, %v14459_v3  ;;  %v6005_v34 = vld [vmem:[#allocation3 + $0x78] sm:$0xff] }
 0x545   : > { %v4780_v2 = vadd.f32 %v4756_v61, %v4583_v23  ;;  %v4953_v13 = vmul.f32 %v14391_v10, %v4912_v40  ;;  %v5150_v17 = vmul.f32 %v14416_v22, %v5109_v7  ;;  %v6006_v61 = vld [vmem:[#allocation3 + $0x80] sm:$0xff] }
 0x546   : > { %v14506_v7 = vld [vmem:[#allocation2 + $0x64] sm:$0xff] }
 0x547   : > { %v14466_v32 = vld [vmem:[#allocation2 + $0x93] sm:$0xff]  ;;  %v4977_v57 = vadd.f32 %v4953_v13, %v4780_v2  ;;  %10238 = vmatmul.mubr.msk.f32.gmra.mrb[6].mxu1 %vm5202_vm1, %v14464_v16 }
 0x548   : > { %10436 = vmatmul.mubr.msk.f32.gmra.mrb[6].mxu0 %vm5202_vm1, %v14466_v32  ;;  %v4326_v25 = vpop.permute.xlu1 %4325  ;;  %10246 = vmatprep.mubr.msk.f32.mxu1 %vm5202_vm1, %v5691_v20 }
 0x549   : > { %v4127_v30 = vpop.permute.xlu0 %4126  ;;  %10444 = vmatprep.mubr.msk.f32.mxu0 %vm5202_vm1, %v14473_v0  ;;  %v5174_v50 = vadd.f32 %v5150_v17, %v4977_v57  ;;  %v4363_v45 = vmul.f32 %v14331_v52, %v4326_v25  ;;  %v10656_v17 = vpack.c.bf16 %v6006_v61, %v6005_v34  ;;  %v14515_v57 = vld [vmem:[#allocation2 + $0x74] sm:$0xff]  ;;  %v7681_v61 = vld [vmem:[#allocation3 + $0x190] sm:$0xf] }
 0x54a   : > { %v4164_v5 = vmul.f32 %v14317_v6, %v4127_v30  ;;  %v14523_v30 = vld [vmem:[#allocation2 + $0x84] sm:$0xff]  ;;  %v14543_v34 = vld [vmem:[#allocation2 + $0x14] sm:$0xff] }
 0x54b   : > { %v5198_v29 = vmax.f32 %v5174_v50, 0.0  ;;  %10247 = vmatmul.mubr.msk.f32.vlgmr.msra.gmra.mrb[0].mxu1 %vm5202_vm1, %v14479_v1 }
 0x54c   : > { %v4188_v36 = vadd.f32 %v4164_v5, %v15415_v42  ;;  %10445 = vmatmul.mubr.msk.f32.vlgmr.msra.gmra.mrb[0].mxu0 %vm5202_vm1, %v14481_v55  ;;  %v4720_v39 = vpop.permute.xlu1 %4719  ;;  %10249 = vmatprep.mubr.msk.f32.mxu1 %vm5202_vm1, %v14190_v19 }
 0x54d   : > { %10699 = vmatpush3.bf16.msra.mxu0 %v14215_v38  ;;  %v4523_v37 = vpop.permute.xlu0 %4522  ;;  %5224 = vst.msk [vmem:[#allocation2 + $0xa0] sm:$0xff] %vm5202_vm1, %v5198_v29  ;;  %10447 = vmatprep.mubr.msk.f32.mxu0 %vm5202_vm1, %v14492_v48  ;;  %v10700_v38 = vpack.c.bf16 %v7680_v9, %v7679_v44  ;;  %v4757_v19 = vmul.f32 %v14371_v27, %v4720_v39  ;;  %v15416_v44 = vld [vmem:[#allocation192_spill] sm:$0xff]  ;;  %v5843_v39 = vld [vmem:[#allocation2 + $0x4] sm:$0xff] }
 0x54e   : > { %v4387_v12 = vadd.f32 %v4363_v45, %v4188_v36  ;;  %v4560_v62 = vmul.f32 %v14352_v31, %v4523_v37  ;;  %10460 = vmatprep.subr.msk.mxu0 %vm5270_vm0, %v7529_v15  ;;  %10655 = vmatpush3.bf16.msra.mxu1 %v10652_v4  ;;  %v14530_v45 = vld [vmem:[#allocation2 + $0x94] sm:$0xff] }
 0x54f   : > { %10250 = vmatmul.mubr.msk.f32.gmra.mrb[2].mxu1 %vm5202_vm1, %v14198_v14  ;;  %10262 = vmatprep.subr.msk.mxu1 %vm5270_vm0, %v5854_v54 }
 0x550   : > { %v4584_v23 = vadd.f32 %v4560_v62, %v4387_v12  ;;  %10448 = vmatmul.mubr.msk.f32.gmra.mrb[2].mxu0 %vm5202_vm1, %v14499_v51  ;;  %v5114_v40 = vpop.permute.xlu1 %5113  ;;  %10252 = vmatprep.mubr.msk.f32.mxu1 %vm5202_vm1, %v14204_v56 }
 0x551   : > { %v4917_v2 = vpop.permute.xlu0 %4916  ;;  %10450 = vmatprep.mubr.msk.f32.mxu0 %vm5202_vm1, %v14506_v7  ;;  %10461 = vmatpush3.msk.msra.mxu0 %vm5270_vm0, %v7529_v15  ;;  %v5151_v20 = vmul.f32 %v14416_v22, %v5114_v40  ;;  %v7831_v40 = vld [vmem:[#allocation3 + $0x198] sm:$0xff] }
 0x552   : > { %v4781_v4 = vadd.f32 %v4757_v19, %v4584_v23  ;;  %v4954_v13 = vmul.f32 %v14391_v10, %v4917_v2  ;;  %10263 = vmatpush3.msk.msra.mxu1 %vm5270_vm0, %v5854_v54  ;;  %10701 = vmatprep.subr.bf16.mxu0 %v10700_v38  ;;  %v7832_v2 = vld [vmem:[#allocation3 + $0x1a0] sm:$0xff] }
 0x553   : > { %10253 = vmatmul.mubr.msk.f32.gmra.mrb[4].mxu1 %vm5202_vm1, %v14217_v28  ;;  %10657 = vmatprep.subr.bf16.mxu1 %v10656_v17 }
 0x554   : > { %v4978_v25 = vadd.f32 %v4954_v13, %v4781_v4  ;;  %10451 = vmatmul.mubr.msk.f32.gmra.mrb[4].mxu0 %vm5202_vm1, %v14515_v57  ;;  %v4331_v50 = vpop.permute.xlu1 %4330  ;;  %10255 = vmatprep.mubr.msk.f32.mxu1 %vm5202_vm1, %v14401_v35 }
 0x555   : > { %v4132_v5 = vpop.permute.xlu0 %4131  ;;  %10453 = vmatprep.mubr.msk.f32.mxu0 %vm5202_vm1, %v14523_v30  ;;  %v4364_v36 = vmul.f32 %v14331_v52, %v4331_v50  ;;  %v10704_v50 = vpack.c.bf16 %v7832_v2, %v7831_v40  ;;  %v14585_v40 = vld [vmem:[#allocation2 + $0xa0] sm:$0xff] }
 0x556   : > { %v5175_v15 = vadd.f32 %v5151_v20, %v4978_v25  ;;  %v4165_v29 = vmul.f32 %v14317_v6, %v4132_v5  ;;  %v6007_v25 = vld [vmem:[#allocation3 + $0x88] sm:$0xf]  ;;  %v6157_v5 = vld [vmem:[#allocation3 + $0x90] sm:$0xff] }
 0x557   : > { %10256 = vmatmul.mubr.msk.f32.gmra.mrb[6].mxu1 %vm5202_vm1, %v14422_v8 }
 0x558   : > { %v5199_v42 = vmax.f32 %v5175_v15, 0.0  ;;  %v4189_v9 = vadd.f32 %v4165_v29, %v15416_v44  ;;  %10454 = vmatmul.mubr.msk.f32.gmra.mrb[6].mxu0 %vm5202_vm1, %v14530_v45  ;;  %v4725_v37 = vpop.permute.xlu1 %4724  ;;  %10264 = vmatprep.mubr.msk.f32.mxu1 %vm5202_vm1, %v5843_v39  ;;  %v6158_v15 = vld [vmem:[#allocation3 + $0x98] sm:$0xff]  ;;  %v14568_v39 = vld [vmem:[#allocation2 + $0x80] sm:$0xff] }
 0x559   : > { %v4528_v12 = vpop.permute.xlu0 %4527  ;;  %10462 = vmatprep.mubr.msk.f32.mxu0 %vm5202_vm1, %v14114_v43  ;;  %v4758_v19 = vmul.f32 %v14371_v27, %v4725_v37 }
 0x55a   : > { %5225 = vst.msk [vmem:[#allocation2 + $0xa8] sm:$0xf] %vm5204_vm2, %v5199_v42  ;;  %v4388_v62 = vadd.f32 %v4364_v36, %v4189_v9  ;;  %v4561_v54 = vmul.f32 %v14352_v31, %v4528_v12  ;;  %v10660_v9 = vpack.c.bf16 %v6158_v15, %v6157_v5  ;;  %v14596_v5 = vld [vmem:[#allocation2 + $0x20] sm:$0xff] }
 0x55b   : > { %10265 = vmatmul.mubr.msk.f32.vlgmr.msra.gmra.mrb[0].mxu1 %vm5202_vm1, %v14543_v34 }
 0x55c   : > { %v4585_v23 = vadd.f32 %v4561_v54, %v4388_v62  ;;  %10463 = vmatmul.mubr.msk.f32.vlgmr.msra.gmra.mrb[0].mxu0 %vm5202_vm1, %v14160_v59  ;;  %v5119_v43 = vpop.permute.xlu1 %5118  ;;  %10267 = vmatprep.mubr.msk.f32.mxu1 %vm5202_vm1, %v14473_v0  ;;  %v15417_v62 = vld [vmem:[#allocation191_spill] sm:$0xff] }
 0x55d   : > { %10703 = vmatpush3.bf16.msra.mxu0 %v10700_v38  ;;  %v4922_v4 = vpop.permute.xlu0 %4921  ;;  %10465 = vmatprep.mubr.msk.f32.mxu0 %vm5202_vm1, %v14181_v60  ;;  %v5152_v38 = vmul.f32 %v14416_v22, %v5119_v43 }
 0x55e   : > { %v4782_v13 = vadd.f32 %v4758_v19, %v4585_v23  ;;  %v4955_v20 = vmul.f32 %v14391_v10, %v4922_v4  ;;  %10478 = vmatprep.subr.msk.mxu0 %vm5270_vm0, %v7681_v61  ;;  %10659 = vmatpush3.bf16.msra.mxu1 %v10656_v17  ;;  %v5996_v4 = vld [vmem:[#allocation2 + $0x10] sm:$0xff] }
 0x55f   : > { %10268 = vmatmul.mubr.msk.f32.gmra.mrb[2].mxu1 %vm5202_vm1, %v14481_v55  ;;  %10280 = vmatprep.subr.msk.mxu1 %vm5270_vm0, %v6007_v25 }
 0x560   : > { %v4979_v29 = vadd.f32 %v4955_v20, %v4782_v13  ;;  %10466 = vmatmul.mubr.msk.f32.gmra.mrb[2].mxu0 %vm5202_vm1, %v14249_v18  ;;  %v4336_v42 = vpop.permute.xlu1 %4335  ;;  %10270 = vmatprep.mubr.msk.f32.mxu1 %vm5202_vm1, %v14492_v48 }
 0x561   : > { %v4137_v36 = vpop.permute.xlu0 %4136  ;;  %10468 = vmatprep.mubr.msk.f32.mxu0 %vm5202_vm1, %v14260_v21  ;;  %10479 = vmatpush3.msk.msra.mxu0 %vm5270_vm0, %v7681_v61  ;;  %v4365_v12 = vmul.f32 %v14331_v52, %v4336_v42  ;;  %v7984_v42 = vld [vmem:[#allocation3 + $0x1b8] sm:$0xff] }
 0x562   : > { %v5176_v17 = vadd.f32 %v5152_v38, %v4979_v29  ;;  %v4166_v44 = vmul.f32 %v14317_v6, %v4137_v36  ;;  %10281 = vmatpush3.msk.msra.mxu1 %vm5270_vm0, %v6007_v25  ;;  %10705 = vmatprep.subr.bf16.mxu0 %v10704_v50  ;;  %v14577_v6 = vld [vmem:[#allocation2 + $0x90] sm:$0xff] }
 0x563   : > { %10271 = vmatmul.mubr.msk.f32.gmra.mrb[4].mxu1 %vm5202_vm1, %v14499_v51  ;;  %10661 = vmatprep.subr.bf16.mxu1 %v10660_v9  ;;  %v7983_v29 = vld [vmem:[#allocation3 + $0x1b0] sm:$0xff] }
 0x564   : > { %v5200_v37 = vmax.f32 %v5176_v17, 0.0  ;;  %v4190_v54 = vadd.f32 %v4166_v44, %v15417_v62  ;;  %10469 = vmatmul.mubr.msk.f32.gmra.mrb[4].mxu0 %vm5202_vm1, %v14568_v39  ;;  %v4730_v61 = vpop.permute.xlu1 %4729  ;;  %10273 = vmatprep.mubr.msk.f32.mxu1 %vm5202_vm1, %v14506_v7  ;;  %v11023_v36 = vld [vmem:[#allocation2 + $0x30] sm:$0xff]  ;;  %v6309_v44 = vld [vmem:[#allocation3 + $0xa8] sm:$0xff]  ;;  %v7985_v62 = vld [vmem:[#allocation3 + $0x1c0] sm:$0xf] }
 0x565   : > { %v4533_v19 = vpop.permute.xlu0 %4532  ;;  %10471 = vmatprep.mubr.msk.f32.mxu0 %vm5202_vm1, %v14577_v6  ;;  %v4759_v2 = vmul.f32 %v14371_v27, %v4730_v61  ;;  %v7833_v27 = vld [vmem:[#allocation3 + $0x1a8] sm:$0xf] }
 0x566   : > { %5226 = vst.msk [vmem:[#allocation2 + $0xb0] sm:$0xff] %vm5202_vm1, %v5200_v37  ;;  %v4389_v52 = vadd.f32 %v4365_v12, %v4190_v54  ;;  %v4562_v23 = vmul.f32 %v14352_v31, %v4533_v19  ;;  %v6310_v37 = vld [vmem:[#allocation3 + $0xb0] sm:$0xff]  ;;  %v6461_v19 = vld [vmem:[#allocation3 + $0xc0] sm:$0xff] }
 0x567   : > { %10274 = vmatmul.mubr.msk.f32.gmra.mrb[6].mxu1 %vm5202_vm1, %v14515_v57  ;;  %v8136_v54 = vld [vmem:[#allocation3 + $0x1d0] sm:$0xff] }
 0x568   : > { %v4586_v43 = vadd.f32 %v4562_v23, %v4389_v52  ;;  %10472 = vmatmul.mubr.msk.f32.gmra.mrb[6].mxu0 %vm5202_vm1, %v14585_v40  ;;  %v5124_v13 = vpop.permute.xlu1 %5123  ;;  %10282 = vmatprep.mubr.msk.f32.mxu1 %vm5202_vm1, %v5996_v4  ;;  %v6462_v52 = vld [vmem:[#allocation3 + $0xc8] sm:$0xff] }
 0x569   : > { %v4927_v20 = vpop.permute.xlu0 %4926  ;;  %10480 = vmatprep.mubr.msk.f32.mxu0 %vm5202_vm1, %v14366_v49  ;;  %v5153_v15 = vmul.f32 %v14416_v22, %v5124_v13  ;;  %v10708_v22 = vpack.c.bf16 %v7984_v42, %v7983_v29  ;;  %v6301_v23 = vld [vmem:[#allocation2 + $0x22] sm:$0xff] }
 0x56a   : > { %v4783_v31 = vadd.f32 %v4759_v2, %v4586_v43  ;;  %v4956_v25 = vmul.f32 %v14391_v10, %v4927_v20  ;;  %v6159_v10 = vld [vmem:[#allocation3 + $0xa0] sm:$0xf]  ;;  %v8137_v2 = vld [vmem:[#allocation3 + $0x1d8] sm:$0xf]  ;;  %v8289_v4 = vld [vmem:[#allocation3 + $0x1e8] sm:$0xff] }
 0x56b   : > { %10283 = vmatmul.mubr.msk.f32.vlgmr.msra.gmra.mrb[0].mxu1 %vm5202_vm1, %v14596_v5  ;;  %v8288_v43 = vld [vmem:[#allocation3 + $0x1e0] sm:$0xff]  ;;  %v6613_v20 = vld [vmem:[#allocation3 + $0xd8] sm:$0xff]  ;;  %v6615_v42 = vld [vmem:[#allocation3 + $0xe8] sm:$0xf] }
 0x56c   : > { %v4980_v38 = vadd.f32 %v4956_v25, %v4783_v31  ;;  %10481 = vmatmul.mubr.msk.f32.vlgmr.msra.gmra.mrb[0].mxu0 %vm5202_vm1, %v14378_v46  ;;  %10285 = vmatprep.mubr.msk.f32.mxu1 %vm5202_vm1, %v11023_v36  ;;  %v14688_v13 = vld [vmem:[#allocation2 + $0x42] sm:$0xff] }
 0x56d   : > { %10707 = vmatpush3.bf16.msra.mxu0 %v10704_v50  ;;  %10483 = vmatprep.mubr.msk.f32.mxu0 %vm5202_vm1, %v14399_v47  ;;  %v10664_v50 = vpack.c.bf16 %v6310_v37, %v6309_v44  ;;  %v6614_v31 = vld [vmem:[#allocation3 + $0xe0] sm:$0xff] }
 0x56e   : > { %v5177_v17 = vadd.f32 %v5153_v15, %v4980_v38  ;;  %10496 = vmatprep.subr.msk.mxu0 %vm5270_vm0, %v7833_v27  ;;  %10663 = vmatpush3.bf16.msra.mxu1 %v10660_v9  ;;  %v14618_v9 = vld [vmem:[#allocation2 + $0x81] sm:$0xff]  ;;  %v8290_v15 = vld [vmem:[#allocation3 + $0x1f0] sm:$0xf]  ;;  %v8440_v38 = vld [vmem:[#allocation3 + $0x1f8] sm:$0xff] }
 0x56f   : > { %10286 = vmatmul.mubr.msk.f32.gmra.mrb[2].mxu1 %vm5202_vm1, %v14160_v59  ;;  %10298 = vmatprep.subr.msk.mxu1 %vm5270_vm0, %v6159_v10  ;;  %v14625_v59 = vld [vmem:[#allocation2 + $0x91] sm:$0xff]  ;;  %v14712_v25 = vld [vmem:[#allocation2 + $0xa3] sm:$0xff] }
 0x570   : > { %v5201_v12 = vmax.f32 %v5177_v17, 0.0  ;;  %10484 = vmatmul.mubr.msk.f32.gmra.mrb[2].mxu0 %vm5202_vm1, %v14403_v53  ;;  %10288 = vmatprep.mubr.msk.f32.mxu1 %vm5202_vm1, %v14181_v60  ;;  %v14631_v60 = vld [vmem:[#allocation2 + $0xa1] sm:$0xff]  ;;  %v6766_v17 = vld [vmem:[#allocation3 + $0xf0] sm:$0xff] }
 0x571   : > { %10486 = vmatprep.mubr.msk.f32.mxu0 %vm5202_vm1, %v14420_v41  ;;  %10497 = vmatpush3.msk.msra.mxu0 %vm5270_vm0, %v7833_v27  ;;  %v6453_v27 = vld [vmem:[#allocation2 + $0x23] sm:$0xff] }
 0x572   : > { %5227 = vst.msk [vmem:[#allocation2 + $0xb8] sm:$0xf] %vm5204_vm2, %v5201_v12  ;;  %10299 = vmatpush3.msk.msra.mxu1 %vm5270_vm0, %v6159_v10  ;;  %10709 = vmatprep.subr.bf16.mxu0 %v10708_v22  ;;  %v8441_v29 = vld [vmem:[#allocation3 + $0x200] sm:$0xff]  ;;  %v6767_v10 = vld [vmem:[#allocation3 + $0xf8] sm:$0xff] }
 0x573   : > { %10289 = vmatmul.mubr.msk.f32.gmra.mrb[4].mxu1 %vm5202_vm1, %v14249_v18  ;;  %10665 = vmatprep.subr.bf16.mxu1 %v10664_v50  ;;  %v7822_v18 = vld [vmem:[#allocation2 + $0x32] sm:$0xff]  ;;  %v10720_v36 = vpack.c.bf16 %v8441_v29, %v8440_v38  ;;  %v10676_v44 = vpack.c.bf16 %v6767_v10, %v6766_v17  ;;  %v14752_v37 = vld [vmem:[#allocation2 + $0xa4] sm:$0xff] }
 0x574   : > { %10487 = vmatmul.mubr.msk.f32.gmra.mrb[4].mxu0 %vm5202_vm1, %v14618_v9  ;;  %10291 = vmatprep.mubr.msk.f32.mxu1 %vm5202_vm1, %v14260_v21  ;;  %v8135_v21 = vld [vmem:[#allocation3 + $0x1c8] sm:$0xff]  ;;  %v8279_v12 = vld [vmem:[#allocation2 + $0x40] sm:$0xff] }
 0x575   : > { %10489 = vmatprep.mubr.msk.f32.mxu0 %vm5202_vm1, %v14625_v59  ;;  %v10712_v61 = vpack.c.bf16 %v8136_v54, %v8135_v21  ;;  %v6918_v54 = vld [vmem:[#allocation3 + $0x108] sm:$0xff] }
 0x577   : > { %10292 = vmatmul.mubr.msk.f32.gmra.mrb[6].mxu1 %vm5202_vm1, %v14568_v39 }
 0x578   : > { %10490 = vmatmul.mubr.msk.f32.gmra.mrb[6].mxu0 %vm5202_vm1, %v14631_v60  ;;  %10300 = vmatprep.mubr.msk.f32.mxu1 %vm5202_vm1, %v14326_v58  ;;  %v6311_v58 = vld [vmem:[#allocation3 + $0xb8] sm:$0xf] }
 0x579   : > { %10498 = vmatprep.mubr.msk.f32.mxu0 %vm5202_vm1, %v7822_v18 }
 0x57b   : > { %10301 = vmatmul.mubr.msk.f32.vlgmr.msra.gmra.mrb[0].mxu1 %vm5202_vm1, %v14340_v26  ;;  %v14666_v26 = vld [vmem:[#allocation2 + $0x92] sm:$0xff] }
 0x57c   : > { %10499 = vmatmul.mubr.msk.f32.vlgmr.msra.gmra.mrb[0].mxu0 %vm5202_vm1, %v14170_v63  ;;  %10303 = vmatprep.mubr.msk.f32.mxu1 %vm5202_vm1, %v14366_v49  ;;  %v10668_v63 = vpack.c.bf16 %v6462_v52, %v6461_v19  ;;  %v14672_v49 = vld [vmem:[#allocation2 + $0xa2] sm:$0xff]  ;;  %v8745_v52 = vld [vmem:[#allocation3 + $0x230] sm:$0xff] }
 0x57d   : > { %10711 = vmatpush3.bf16.msra.mxu0 %v10708_v22  ;;  %10501 = vmatprep.mubr.msk.f32.mxu0 %vm5202_vm1, %v14183_v33  ;;  %v14659_v33 = vld [vmem:[#allocation2 + $0x82] sm:$0xff]  ;;  %v14735_v22 = vld [vmem:[#allocation2 + $0x53] sm:$0xff] }
 0x57e   : > { %10514 = vmatprep.subr.msk.mxu0 %vm5270_vm0, %v7985_v62  ;;  %10667 = vmatpush3.bf16.msra.mxu1 %v10664_v50  ;;  %v8592_v50 = vld [vmem:[#allocation3 + $0x210] sm:$0xff]  ;;  %v8594_v19 = vld [vmem:[#allocation3 + $0x220] sm:$0xf] }
 0x57f   : > { %10304 = vmatmul.mubr.msk.f32.gmra.mrb[2].mxu1 %vm5202_vm1, %v14378_v46  ;;  %10316 = vmatprep.subr.msk.mxu1 %vm5270_vm0, %v6311_v58 }
 0x580   : > { %10502 = vmatmul.mubr.msk.f32.gmra.mrb[2].mxu0 %vm5202_vm1, %v14459_v3  ;;  %10306 = vmatprep.mubr.msk.f32.mxu1 %vm5202_vm1, %v14399_v47 }
 0x581   : > { %10504 = vmatprep.mubr.msk.f32.mxu0 %vm5202_vm1, %v14464_v16  ;;  %10515 = vmatpush3.msk.msra.mxu0 %vm5270_vm0, %v7985_v62  ;;  %v8282_v62 = vld [vmem:[#allocation2 + $0x70] sm:$0xff] }
 0x582   : > { %10317 = vmatpush3.msk.msra.mxu1 %vm5270_vm0, %v6311_v58  ;;  %10713 = vmatprep.subr.bf16.mxu0 %v10712_v61  ;;  %v6919_v58 = vld [vmem:[#allocation3 + $0x110] sm:$0xff] }
 0x583   : > { %10307 = vmatmul.mubr.msk.f32.gmra.mrb[4].mxu1 %vm5202_vm1, %v14403_v53  ;;  %10669 = vmatprep.subr.bf16.mxu1 %v10668_v63 }
 0x584   : > { %10505 = vmatmul.mubr.msk.f32.gmra.mrb[4].mxu0 %vm5202_vm1, %v14659_v33  ;;  %10309 = vmatprep.mubr.msk.f32.mxu1 %vm5202_vm1, %v14420_v41 }
 0x585   : > { %10507 = vmatprep.mubr.msk.f32.mxu0 %vm5202_vm1, %v14666_v26 }
 0x587   : > { %10310 = vmatmul.mubr.msk.f32.gmra.mrb[6].mxu1 %vm5202_vm1, %v14618_v9 }
 0x588   : > { %10508 = vmatmul.mubr.msk.f32.gmra.mrb[6].mxu0 %vm5202_vm1, %v14672_v49  ;;  %10318 = vmatprep.mubr.msk.f32.mxu1 %vm5202_vm1, %v14431_v24  ;;  %v10716_v24 = vpack.c.bf16 %v8289_v4, %v8288_v43  ;;  %v6913_v4 = vld [vmem:[#allocation2 + $0x61] sm:$0xff] }
 0x589   : > { %10516 = vmatprep.mubr.msk.f32.mxu0 %vm5202_vm1, %v14198_v14  ;;  %v6463_v14 = vld [vmem:[#allocation3 + $0xd0] sm:$0xf] }
 0x58b   : > { %10319 = vmatmul.mubr.msk.f32.vlgmr.msra.gmra.mrb[0].mxu1 %vm5202_vm1, %v6301_v23  ;;  %v8746_v23 = vld [vmem:[#allocation3 + $0x238] sm:$0xf] }
 0x58c   : > { %10517 = vmatmul.mubr.msk.f32.vlgmr.msra.gmra.mrb[0].mxu0 %vm5202_vm1, %v14204_v56  ;;  %10321 = vmatprep.mubr.msk.f32.mxu1 %vm5202_vm1, %v7822_v18  ;;  %v14695_v56 = vld [vmem:[#allocation2 + $0x52] sm:$0xff] }
 0x58d   : > { %10715 = vmatpush3.bf16.msra.mxu0 %v10712_v61  ;;  %10519 = vmatprep.mubr.msk.f32.mxu0 %vm5202_vm1, %v14217_v28  ;;  %v10672_v28 = vpack.c.bf16 %v6614_v31, %v6613_v20  ;;  %v8593_v18 = vld [vmem:[#allocation3 + $0x218] sm:$0xff]  ;;  %v6758_v61 = vld [vmem:[#allocation2 + $0x30] sm:$0xff] }
 0x58e   : > { %10532 = vmatprep.subr.msk.mxu0 %vm5270_vm0, %v8137_v2  ;;  %10671 = vmatpush3.bf16.msra.mxu1 %v10668_v63  ;;  %v10724_v21 = vpack.c.bf16 %v8593_v18, %v8592_v50  ;;  %v6910_v63 = vld [vmem:[#allocation2 + $0x31] sm:$0xff] }
 0x58f   : > { %10322 = vmatmul.mubr.msk.f32.gmra.mrb[2].mxu1 %vm5202_vm1, %v14688_v13  ;;  %10334 = vmatprep.subr.msk.mxu1 %vm5270_vm0, %v6463_v14  ;;  %v8898_v20 = vld [vmem:[#allocation3 + $0x250] sm:$0xf] }
 0x590   : > { %10520 = vmatmul.mubr.msk.f32.gmra.mrb[2].mxu0 %vm5202_vm1, %v14401_v35  ;;  %10324 = vmatprep.mubr.msk.f32.mxu1 %vm5202_vm1, %v14695_v56 }
 0x591   : > { %10522 = vmatprep.mubr.msk.f32.mxu0 %vm5202_vm1, %v14422_v8  ;;  %10533 = vmatpush3.msk.msra.mxu0 %vm5270_vm0, %v8137_v2  ;;  %v8897_v2 = vld [vmem:[#allocation3 + $0x248] sm:$0xff] }
 0x592   : > { %10335 = vmatpush3.msk.msra.mxu1 %vm5270_vm0, %v6463_v14  ;;  %10717 = vmatprep.subr.bf16.mxu0 %v10716_v24  ;;  %v6914_v14 = vld [vmem:[#allocation2 + $0x71] sm:$0xff] }
 0x593   : > { %10325 = vmatmul.mubr.msk.f32.gmra.mrb[4].mxu1 %vm5202_vm1, %v14459_v3  ;;  %10673 = vmatprep.subr.bf16.mxu1 %v10672_v28 }
 0x594   : > { %10523 = vmatmul.mubr.msk.f32.gmra.mrb[4].mxu0 %vm5202_vm1, %v14452_v11  ;;  %10327 = vmatprep.mubr.msk.f32.mxu1 %vm5202_vm1, %v14464_v16 }
 0x595   : > { %10525 = vmatprep.mubr.msk.f32.mxu0 %vm5202_vm1, %v14466_v32  ;;  %v6454_v32 = vld [vmem:[#allocation2 + $0x33] sm:$0xff] }
 0x597   : > { %10328 = vmatmul.mubr.msk.f32.gmra.mrb[6].mxu1 %vm5202_vm1, %v14659_v33 }
 0x598   : > { %10526 = vmatmul.mubr.msk.f32.gmra.mrb[6].mxu0 %vm5202_vm1, %v14712_v25  ;;  %10336 = vmatprep.mubr.msk.f32.mxu1 %vm5202_vm1, %v14479_v1  ;;  %v14728_v1 = vld [vmem:[#allocation2 + $0x43] sm:$0xff] }
 0x599   : > { %10534 = vmatprep.mubr.msk.f32.mxu0 %vm5202_vm1, %v14481_v55 }
 0x59b   : > { %10337 = vmatmul.mubr.msk.f32.vlgmr.msra.gmra.mrb[0].mxu1 %vm5202_vm1, %v6453_v27 }
 0x59c   : > { %10535 = vmatmul.mubr.msk.f32.vlgmr.msra.gmra.mrb[0].mxu0 %vm5202_vm1, %v14492_v48  ;;  %10339 = vmatprep.mubr.msk.f32.mxu1 %vm5202_vm1, %v6454_v32 }
 0x59d   : > { %10719 = vmatpush3.bf16.msra.mxu0 %v10716_v24  ;;  %10537 = vmatprep.mubr.msk.f32.mxu0 %vm5202_vm1, %v14499_v51  ;;  %v8590_v24 = vld [vmem:[#allocation2 + $0xb2] sm:$0xff] }
 0x59e   : > { %10550 = vmatprep.subr.msk.mxu0 %vm5270_vm0, %v8290_v15  ;;  %10675 = vmatpush3.bf16.msra.mxu1 %v10672_v28 }
 0x59f   : > { %10340 = vmatmul.mubr.msk.f32.gmra.mrb[2].mxu1 %vm5202_vm1, %v14728_v1  ;;  %10352 = vmatprep.subr.msk.mxu1 %vm5270_vm0, %v6615_v42 }
 0x5a0   : > { %10538 = vmatmul.mubr.msk.f32.gmra.mrb[2].mxu0 %vm5202_vm1, %v14506_v7  ;;  %10342 = vmatprep.mubr.msk.f32.mxu1 %vm5202_vm1, %v14735_v22 }
 0x5a1   : > { %10540 = vmatprep.mubr.msk.f32.mxu0 %vm5202_vm1, %v14515_v57  ;;  %10551 = vmatpush3.msk.msra.mxu0 %vm5270_vm0, %v8290_v15 }
 0x5a2   : > { %10353 = vmatpush3.msk.msra.mxu1 %vm5270_vm0, %v6615_v42  ;;  %10721 = vmatprep.subr.bf16.mxu0 %v10720_v36 }
 0x5a3   : > { %10343 = vmatmul.mubr.msk.f32.gmra.mrb[4].mxu1 %vm5202_vm1, %v14401_v35  ;;  %10677 = vmatprep.subr.bf16.mxu1 %v10676_v44  ;;  %v8280_v35 = vld [vmem:[#allocation2 + $0x50] sm:$0xff] }
 0x5a4   : > { %10541 = vmatmul.mubr.msk.f32.gmra.mrb[4].mxu0 %vm5202_vm1, %v14523_v30  ;;  %10345 = vmatprep.mubr.msk.f32.mxu1 %vm5202_vm1, %v14422_v8  ;;  %v8442_v8 = vld [vmem:[#allocation3 + $0x208] sm:$0xf] }
 0x5a5   : > { %10543 = vmatprep.mubr.msk.f32.mxu0 %vm5202_vm1, %v14530_v45 }
 0x5a7   : > { %10346 = vmatmul.mubr.msk.f32.gmra.mrb[6].mxu1 %vm5202_vm1, %v14452_v11  ;;  %v8281_v11 = vld [vmem:[#allocation2 + $0x60] sm:$0xff] }
 0x5a8   : > { %10544 = vmatmul.mubr.msk.f32.gmra.mrb[6].mxu0 %vm5202_vm1, %v14752_v37  ;;  %10354 = vmatprep.mubr.msk.f32.mxu1 %vm5202_vm1, %v14543_v34  ;;  %v6768_v34 = vld [vmem:[#allocation3 + $0x100] sm:$0xf] }
 0x5a9   : > { %10552 = vmatprep.mubr.msk.f32.mxu0 %vm5202_vm1, %v8279_v12 }
 0x5ab   : > { %10355 = vmatmul.mubr.msk.f32.vlgmr.msra.gmra.mrb[0].mxu1 %vm5202_vm1, %v14473_v0  ;;  %v10680_v0 = vpack.c.bf16 %v6919_v58, %v6918_v54 }
 0x5ac   : > { %10553 = vmatmul.mubr.msk.f32.vlgmr.msra.gmra.mrb[0].mxu0 %vm5202_vm1, %v8280_v35  ;;  %10357 = vmatprep.mubr.msk.f32.mxu1 %vm5202_vm1, %v14481_v55  ;;  %v8286_v55 = vld [vmem:[#allocation2 + $0xb0] sm:$0xff] }
 0x5ad   : > { %10723 = vmatpush3.bf16.msra.mxu0 %v10720_v36  ;;  %10555 = vmatprep.mubr.msk.f32.mxu0 %vm5202_vm1, %v8281_v11 }
 0x5ae   : > { %10568 = vmatprep.subr.msk.mxu0 %vm5270_vm0, %v8442_v8  ;;  %10679 = vmatpush3.bf16.msra.mxu1 %v10676_v44 }
 0x5af   : > { %10358 = vmatmul.mubr.msk.f32.gmra.mrb[2].mxu1 %vm5202_vm1, %v14492_v48  ;;  %10370 = vmatprep.subr.msk.mxu1 %vm5270_vm0, %v6768_v34 }
 0x5b0   : > { %10556 = vmatmul.mubr.msk.f32.gmra.mrb[2].mxu0 %vm5202_vm1, %v8282_v62  ;;  %10360 = vmatprep.mubr.msk.f32.mxu1 %vm5202_vm1, %v14499_v51 }
 0x5b1   : > { %10558 = vmatprep.mubr.msk.f32.mxu0 %vm5202_vm1, %v14568_v39  ;;  %10569 = vmatpush3.msk.msra.mxu0 %vm5270_vm0, %v8442_v8 }
 0x5b2   : > { %10371 = vmatpush3.msk.msra.mxu1 %vm5270_vm0, %v6768_v34  ;;  %10725 = vmatprep.subr.bf16.mxu0 %v10724_v21 }
 0x5b3   : > { %10361 = vmatmul.mubr.msk.f32.gmra.mrb[4].mxu1 %vm5202_vm1, %v14506_v7  ;;  %10681 = vmatprep.subr.bf16.mxu1 %v10680_v0 }
 0x5b4   : > { %10559 = vmatmul.mubr.msk.f32.gmra.mrb[4].mxu0 %vm5202_vm1, %v14577_v6  ;;  %10363 = vmatprep.mubr.msk.f32.mxu1 %vm5202_vm1, %v14515_v57 }
 0x5b5   : > { %10561 = vmatprep.mubr.msk.f32.mxu0 %vm5202_vm1, %v14585_v40  ;;  %v8744_v40 = vld [vmem:[#allocation3 + $0x228] sm:$0xff] }
 0x5b7   : > { %10364 = vmatmul.mubr.msk.f32.gmra.mrb[6].mxu1 %vm5202_vm1, %v14523_v30 }
 0x5b8   : > { %10562 = vmatmul.mubr.msk.f32.gmra.mrb[6].mxu0 %vm5202_vm1, %v8286_v55  ;;  %10372 = vmatprep.mubr.msk.f32.mxu1 %vm5202_vm1, %v14596_v5  ;;  %v6920_v5 = vld [vmem:[#allocation3 + $0x118] sm:$0xf] }
 0x5b9   : > { %10570 = vmatprep.mubr.msk.f32.mxu0 %vm5202_vm1, %v14378_v46  ;;  %v10728_v46 = vpack.c.bf16 %v8745_v52, %v8744_v40 }
 0x5bb   : > { %10373 = vmatmul.mubr.msk.f32.vlgmr.msra.gmra.mrb[0].mxu1 %vm5202_vm1, %v6758_v61 }
 0x5bc   : > { %10571 = vmatmul.mubr.msk.f32.vlgmr.msra.gmra.mrb[0].mxu0 %vm5202_vm1, %v14399_v47  ;;  %10375 = vmatprep.mubr.msk.f32.mxu1 %vm5202_vm1, %v8279_v12  ;;  %v15418_v47 = vld [vmem:[#allocation190_spill] sm:$0xff] }
 0x5bd   : > { %10727 = vmatpush3.bf16.msra.mxu0 %v10724_v21  ;;  %10573 = vmatprep.mubr.msk.f32.mxu0 %vm5202_vm1, %v14403_v53  ;;  %v8438_v53 = vld [vmem:[#allocation2 + $0xb1] sm:$0xff] }
 0x5be   : > { %10586 = vmatprep.subr.msk.mxu0 %vm5270_vm0, %v8594_v19  ;;  %10683 = vmatpush3.bf16.msra.mxu1 %v10680_v0 }
 0x5bf   : > { %10376 = vmatmul.mubr.msk.f32.gmra.mrb[2].mxu1 %vm5202_vm1, %v8280_v35  ;;  %10388 = vmatprep.subr.msk.mxu1 %vm5270_vm0, %v6920_v5 }
 0x5c0   : > { %10574 = vmatmul.mubr.msk.f32.gmra.mrb[2].mxu0 %vm5202_vm1, %v14420_v41  ;;  %10378 = vmatprep.mubr.msk.f32.mxu1 %vm5202_vm1, %v8281_v11  ;;  %v6909_v41 = vld [vmem:[#allocation2 + $0x21] sm:$0xff] }
 0x5c1   : > { %10576 = vmatprep.mubr.msk.f32.mxu0 %vm5202_vm1, %v14618_v9  ;;  %10587 = vmatpush3.msk.msra.mxu0 %vm5270_vm0, %v8594_v19 }
 0x5c2   : > { %10389 = vmatpush3.msk.msra.mxu1 %vm5270_vm0, %v6920_v5  ;;  %10729 = vmatprep.subr.bf16.mxu0 %v10728_v46 }
 0x5c3   : > { %10379 = vmatmul.mubr.msk.f32.gmra.mrb[4].mxu1 %vm5202_vm1, %v8282_v62  ;;  %10736 = vmatprep.subr.bf16.mxu1 %v15418_v47 }
 0x5c4   : > { %10577 = vmatmul.mubr.msk.f32.gmra.mrb[4].mxu0 %vm5202_vm1, %v14625_v59  ;;  %10381 = vmatprep.mubr.msk.f32.mxu1 %vm5202_vm1, %v14568_v39  ;;  %v6911_v39 = vld [vmem:[#allocation2 + $0x41] sm:$0xff] }
 0x5c5   : > { %10579 = vmatprep.mubr.msk.f32.mxu0 %vm5202_vm1, %v14631_v60  ;;  %v8896_v60 = vld [vmem:[#allocation3 + $0x240] sm:$0xff] }
 0x5c6   : > { %v10732_v43 = vpack.c.bf16 %v8897_v2, %v8896_v60 }
 0x5c7   : > { %10382 = vmatmul.mubr.msk.f32.gmra.mrb[6].mxu1 %vm5202_vm1, %v14577_v6  ;;  %v6912_v6 = vld [vmem:[#allocation2 + $0x51] sm:$0xff] }
 0x5c8   : > { %10580 = vmatmul.mubr.msk.f32.gmra.mrb[6].mxu0 %vm5202_vm1, %v8438_v53  ;;  %10390 = vmatprep.mubr.msk.f32.mxu1 %vm5202_vm1, %v6909_v41 }
 0x5c9   : > { %10588 = vmatprep.mubr.msk.f32.mxu0 %vm5202_vm1, %v14688_v13  ;;  %v11024_v13 = vld [vmem:[#allocation3 + $0x130] sm:$0xf] }
 0x5cb   : > { %10391 = vmatmul.mubr.msk.f32.vlgmr.msra.gmra.mrb[0].mxu1 %vm5202_vm1, %v6910_v63 }
 0x5cc   : > { %10589 = vmatmul.mubr.msk.f32.vlgmr.msra.gmra.mrb[0].mxu0 %vm5202_vm1, %v14695_v56  ;;  %10393 = vmatprep.mubr.msk.f32.mxu1 %vm5202_vm1, %v6911_v39 }
 0x5cd   : > { %10731 = vmatpush3.bf16.msra.mxu0 %v10728_v46  ;;  %10591 = vmatprep.mubr.msk.f32.mxu0 %vm5202_vm1, %v14459_v3 }
 0x5ce   : > { %10604 = vmatprep.subr.msk.mxu0 %vm5270_vm0, %v8746_v23  ;;  %10738 = vmatpush3.bf16.msra.mxu1 %v15418_v47 }
 0x5cf   : > { %10394 = vmatmul.mubr.msk.f32.gmra.mrb[2].mxu1 %vm5202_vm1, %v6912_v6  ;;  %10737 = vmatprep.subr.msk.mxu1 %vm5270_vm0, %v11024_v13 }
 0x5d0   : > { %10592 = vmatmul.mubr.msk.f32.gmra.mrb[2].mxu0 %vm5202_vm1, %v14464_v16  ;;  %10396 = vmatprep.mubr.msk.f32.mxu1 %vm5202_vm1, %v6913_v4 }
 0x5d1   : > { %10594 = vmatprep.mubr.msk.f32.mxu0 %vm5202_vm1, %v14659_v33  ;;  %10605 = vmatpush3.msk.msra.mxu0 %vm5270_vm0, %v8746_v23 }
 0x5d2   : > { %10739 = vmatpush3.msk.msra.mxu1 %vm5270_vm0, %v11024_v13  ;;  %10733 = vmatprep.subr.bf16.mxu0 %v10732_v43 }
 0x5d3   : > { %10397 = vmatmul.mubr.msk.f32.gmra.mrb[4].mxu1 %vm5202_vm1, %v6914_v14 }
 0x5d4   : > { %10595 = vmatmul.mubr.msk.f32.gmra.mrb[4].mxu0 %vm5202_vm1, %v14666_v26  ;;  %10399 = vmatprep.mubr.msk.f32.mxu1 %vm5202_vm1, %v14618_v9  ;;  %v8737_v9 = vld [vmem:[#allocation2 + $0x63] sm:$0xff] }
 0x5d5   : > { %10597 = vmatprep.mubr.msk.f32.mxu0 %vm5202_vm1, %v14672_v49 }
 0x5d7   : > { %10400 = vmatmul.mubr.msk.f32.gmra.mrb[6].mxu1 %vm5202_vm1, %v14625_v59  ;;  %v8739_v59 = vld [vmem:[#allocation2 + $0x83] sm:$0xff] }
 0x5d8   : > { %10598 = vmatmul.mubr.msk.f32.gmra.mrb[6].mxu0 %vm5202_vm1, %v8590_v24  ;;  %10414 = vmatprep.mubr.msk.f32.mxu1 %vm5202_vm1, %v14459_v3  ;;  %v8738_v3 = vld [vmem:[#allocation2 + $0x73] sm:$0xff] }
 0x5d9   : > { %10606 = vmatprep.mubr.msk.f32.mxu0 %vm5202_vm1, %v14728_v1 }
 0x5db   : > { %10415 = vmatmul.mubr.msk.f32.vlgmr.msra.gmra.mrb[4].mxu1 %vm5202_vm1, %v14464_v16  ;;  %v8740_v16 = vld [vmem:[#allocation2 + $0x93] sm:$0xff] }
 0x5dc   : > { %10607 = vmatmul.mubr.msk.f32.vlgmr.msra.gmra.mrb[0].mxu0 %vm5202_vm1, %v14735_v22  ;;  %10417 = vmatprep.mubr.msk.f32.mxu1 %vm5202_vm1, %v14659_v33  ;;  %v8742_v33 = vld [vmem:[#allocation2 + $0xb3] sm:$0xff] }
 0x5dd   : > { %10735 = vmatpush3.bf16.msra.mxu0 %v10732_v43  ;;  %10609 = vmatprep.mubr.msk.f32.mxu0 %vm5202_vm1, %v8737_v9 }
 0x5de   : > { %10622 = vmatprep.subr.msk.mxu0 %vm5270_vm0, %v8898_v20 }
 0x5df   : > { %10418 = vmatmul.mubr.msk.f32.gmra.mrb[6].mxu1 %vm5202_vm1, %v14666_v26 }
 0x5e0   : > { %10610 = vmatmul.mubr.msk.f32.gmra.mrb[2].mxu0 %vm5202_vm1, %v8738_v3 }
 0x5e1   : > { %10612 = vmatprep.mubr.msk.f32.mxu0 %vm5202_vm1, %v8739_v59  ;;  %10623 = vmatpush3.msk.msra.mxu0 %vm5270_vm0, %v8898_v20 }
 0x5e4   : > { %10613 = vmatmul.mubr.msk.f32.gmra.mrb[4].mxu0 %vm5202_vm1, %v8740_v16 }
 0x5e5   : > { %10615 = vmatprep.mubr.msk.f32.mxu0 %vm5202_vm1, %v14712_v25 }
 0x5e8   : > { %10616 = vmatmul.mubr.msk.f32.gmra.mrb[6].mxu0 %vm5202_vm1, %v8742_v33 }
 0x5e9   : > { %10624 = vmatprep.mubr.msk.f32.mxu0 %vm5202_vm1, %v14492_v48  ;;  %v8894_v48 = vld [vmem:[#allocation2 + $0xb4] sm:$0xff] }
 0x5ec   : > { %10625 = vmatmul.mubr.msk.f32.vlgmr.msra.gmra.mrb[0].mxu0 %vm5202_vm1, %v14499_v51 }
 0x5ed   : > { %10627 = vmatprep.mubr.msk.f32.mxu0 %vm5202_vm1, %v14506_v7 }
 0x5f0   : > { %10628 = vmatmul.mubr.msk.f32.gmra.mrb[2].mxu0 %vm5202_vm1, %v14515_v57 }
 0x5f1   : > { %10630 = vmatprep.mubr.msk.f32.mxu0 %vm5202_vm1, %v14523_v30  ;;  %v9678_v30 = vld [vmem:[%s14966_s4] ss:$0 sm:$0xff] }
 0x5f4   : > { %10631 = vmatmul.mubr.msk.f32.gmra.mrb[4].mxu0 %vm5202_vm1, %v14530_v45 }
 0x5f5   : > { %10633 = vmatprep.mubr.msk.f32.mxu0 %vm5202_vm1, %v14752_v37 }
 0x5f8   : > { %10634 = vmatmul.mubr.msk.f32.gmra.mrb[6].mxu0 %vm5202_vm1, %v8894_v48 }
 0x69e   : > { %v10392_v51 = vpop.f32.mrb[0].mxu1 }
 0x69f   : > { %v7014_v26 = vpop.f32.mrb[1].mxu1  ;;  %v10740_v45 = vadd.f32 %v10392_v51, %v9678_v30 }
 0x6a0   : > { %v10742_v25 = vadd.f32 %v9678_v30, %v7014_v26 }
 0x6a2   : > { %v10395_v7 = vpop.f32.mrb[2].mxu1 }
 0x6a3   : > { %v7024_v49 = vpop.f32.mrb[3].mxu1  ;;  %v10744_v29 = vadd.f32 %v10395_v7, %v9678_v30 }
 0x6a4   : > { %v10746_v42 = vadd.f32 %v9678_v30, %v7024_v49 }
 0x6ae   : > { %v10416_v31 = vpop.f32.mrb[4].mxu1 }
 0x6af   : > { %v7186_v56 = vpop.f32.mrb[5].mxu1  ;;  %v10748_v37 = vadd.f32 %v10416_v31, %v9678_v30 }
 0x6b0   : > { %v10750_v35 = vadd.f32 %v9678_v30, %v7186_v56 }
 0x6b2   : > { %v10419_v57 = vpop.f32.mrb[6].mxu1 }
 0x6b3   : > { %v7196_v28 = vpop.f32.mrb[7].mxu1  ;;  %v10752_v34 = vadd.f32 %v10419_v57, %v9678_v30 }
 0x6b4   : > { %v10754_v54 = vadd.f32 %v9678_v30, %v7196_v28 }
 0x6bf   : > { %v10626_v27 = vpop.f32.mrb[0].mxu0 }
 0x6c0   : > { %v10741_v15 = vadd.f32 %v10740_v45, %v10626_v27  ;;  %v8992_v32 = vpop.f32.mrb[1].mxu0 }
 0x6c1   : > { %v10743_v38 = vadd.f32 %v10742_v25, %v8992_v32 }
 0x6c2   : > { %v9040_v1 = vmax.f32 %v10741_v15, 0.0 }
 0x6c3   : > { %v9039_v36 = vmax.f32 %v10743_v38, 0.0  ;;  %v10629_v17 = vpop.f32.mrb[2].mxu0 }
 0x6c4   : > { %9048 = vst.msk [vmem:[%s14892_s7 + $0x8] sm:$0xff] %vm5202_vm1, %v9040_v1  ;;  %v10745_v10 = vadd.f32 %v10744_v29, %v10629_v17  ;;  %v9002_v22 = vpop.f32.mrb[3].mxu0 }
 0x6c5   : > { %9047 = vst.msk [vmem:[%s14892_s7] sm:$0xff] %vm5202_vm1, %v9039_v36  ;;  %v10747_v44 = vadd.f32 %v10746_v42, %v9002_v22 }
 0x6c6   : > { %v9042_v12 = vmax.f32 %v10745_v10, 0.0 }
 0x6c7   : > { %v9041_v8 = vmax.f32 %v10747_v44, 0.0  ;;  %v10632_v50 = vpop.f32.mrb[4].mxu0 }
 0x6c8   : > { %9050 = vst.msk [vmem:[%s14892_s7 + $0x18] sm:$0xff] %vm5202_vm1, %v9042_v12  ;;  %v10749_v18 = vadd.f32 %v10748_v37, %v10632_v50  ;;  %v9012_v11 = vpop.f32.mrb[5].mxu0 }
 0x6c9   : > { %9049 = vst.msk [vmem:[%s14892_s7 + $0x10] sm:$0xff] %vm5202_vm1, %v9041_v8  ;;  %v10751_v62 = vadd.f32 %v10750_v35, %v9012_v11 }
 0x6ca   : > { %v9044_v21 = vmax.f32 %v10749_v18, 0.0 }
 0x6cb   : > { %v9043_v58 = vmax.f32 %v10751_v62, 0.0  ;;  %v10635_v0 = vpop.f32.mrb[6].mxu0 }
 0x6cc   : > { %9052 = vst.msk [vmem:[%s14892_s7 + $0x28] sm:$0xff] %vm5202_vm1, %v9044_v21  ;;  %v10753_v55 = vadd.f32 %v10752_v34, %v10635_v0  ;;  %v9022_v61 = vpop.f32.mrb[7].mxu0 }
 0x6cd   : > { %9051 = vst.msk [vmem:[%s14892_s7 + $0x20] sm:$0xff] %vm5202_vm1, %v9043_v58  ;;  %v10755_v19 = vadd.f32 %v10754_v54, %v9022_v61 }
 0x6ce   : > { %v9046_v40 = vmax.f32 %v10753_v55, 0.0 }
 0x6cf   : > { %v9045_v52 = vmax.f32 %v10755_v19, 0.0 }
 0x6d0   : > { %9054 = vst.msk [vmem:[%s14892_s7 + $0x38] sm:$0xff] %vm5202_vm1, %v9046_v40 }
 0x6d1   : > { %9053 = vst.msk [vmem:[%s14892_s7 + $0x30] sm:$0xff] %vm5202_vm1, %v9045_v52 }
 0x6d2   : > { %11066 = shalt.err (!%p11063_p7)
}
 0x6d3   : > { %s11067_s6 = scalar_lea.hbm %s14911_s16, 1024  ;;  %s11071_s10 = scalar_lea.hbm %s14967_s5, 2048 }
 0x6d4   : > { %p11068_p8 = scmp.ne.s32.totalorder %s14911_s16, %s11067_s6  ;;  %p11072_p1 = scmp.lt.u32.totalorder %s14911_s16, %s14967_s5 }
 0x6d5   : > { %p11073_p0 = scmp.lt.u32.totalorder %s11071_s10, %s11067_s6  ;;  %p11075_p6 = scmp.lt.u32.totalorder %s11067_s6, %s14911_s16 }
 0x6d6   : > { %p11069_p11 = pnand %p11068_p8, %p15419_p9 }
 0x6d7   : > { %p11074_p5 = por %p11073_p0, %p11072_p1 }
 0x6d8   : > { %p11070_p13 = pneg %p11069_p11 }
 0x6d9   : > { %p11076_p10 = por %p11075_p6, %p11074_p5 }
 0x6db   : > { %p11077_p12 = pnand %p11076_p10, %p11070_p13 }
 0x6dd   : > { %11080 = shalt.err (!%p11077_p12)
}
 0x6de   : > { %s11126_s7 = smov 128   ;;  %s11127_s12 = smov 8  }
 0x6df   : > { %10944 = dma.vmem_to_hbm [thread:$0]  (%p15419_p9), %s14913_s13, 1024, %s14911_s16, %s14921_s22, %s11126_s7, %s11126_s7, %s11127_s12  }
 0x6e0 PF: > { %p10956_p2 = scmp.ge.s32.totalorder %s11119_s21, 2  ;;  %s9084_s14 = sand.u32 1, %s11107_s18  }
 0x6e1   : > { %p15420_p3 = scmp.ne.s32.totalorder %s14981_s29, 0  ;;  %s9085_s15 = scalar_lea.sflag [#allocation5], %s9084_s14 }
 0x6e3   : > { %p10951_p4 = pnand %p10956_p2, %p15420_p3 }
 0x6e5   : > { %11102 = dma.done.wait (!%p10951_p4), %s9085_s15, 1024  }
 0x6e6   : > { %11104 = vsyncadd (!%p10951_p4), %s9085_s15, 4294966272  ;;  %p16_p7 = scmp.ge.s32.totalorder %s11183_s24, 4   ;;  %s15421_s18 = smov %s11111_s19 }
 0x6e7   : > { %s15422_s19 = smov %s11115_s20  ;;  %s15423_s20 = smov %s11194_s27 }
 0x6e8   : > { %s15424_s21 = smov %s11183_s24  ;;  %18 = sbr.rel (!%p16_p7) target bundleno = 4 (0x4), region = 116 }
 0x6ef   :  { %9090 = vsyncpa [#allocation4], 1 }
 0x6f0   :  { %9092 = vsyncpa [#allocation4 + $0x1], 1 }
 0x6f1   :  { %9093 = vsyncpa [#allocation5], 1 }
 0x6f2   :  { %9095 = vsyncpa [#allocation5 + $0x1], 1 }

</bundles_post_ra>
